<compile_context>
chip_gen: v5e
topology: v5e:2x2
jax: 0.10.0
libtpu: 0.0.40
codegen_flags: <defaults>
</compile_context>

<pallas_src>
import jax
import jax.numpy as jnp
from jax.experimental import pallas as pl
from jax.experimental.pallas import tpu as pltpu


def _round_up(x, m):
    return (x + m - 1) // m * m


def _choose_tm(M):
    """Pick the M tile: large tiles for big layers, >=2 blocks for mid-size
    layers (so v7x's two TensorCores both get work), and a single full-dim
    block (padded to 16 sublanes for bf16) for tiny layers."""
    if M > 1024:
        tm = 512
    elif M > 64:
        tm = _round_up(-(-M // 2), 16)        # ceil(M/2) -> 2 parallel blocks
    else:
        tm = _round_up(M, 16)                 # single block, minimal padding
    Mp = _round_up(M, tm)
    return tm, Mp


# ----------------------------------------------------------------------------
# Fused GEMM + bias + ReLU + BatchNorm(scale/shift) Pallas kernel
# (K and N are full-dim blocks -> no reduction grid axis, no scratch needed)
# ----------------------------------------------------------------------------
def _fused_gemm_kernel(a_ref, w_ref, bsc_ref, o_ref):
    acc = jnp.dot(a_ref[...], w_ref[...], preferred_element_type=jnp.float32)
    y = jnp.maximum(acc + bsc_ref[0:1, :], 0.0)                  # bias + ReLU
    # folded BatchNorm: y * gamma/sqrt(var+eps) + (beta - mean*scale)
    o_ref[...] = (y * bsc_ref[1:2, :] + bsc_ref[2:3, :]).astype(o_ref.dtype)


def fused_matmul_bias_relu_bn(a, w_p, bsc):
    """a: (M, K) activations; w_p: (Kp, N) bf16 pre-padded weights (Kp >= K,
    multiple of 8); bsc: (3, N) f32 rows = (conv bias, bn scale, bn shift).
    Returns f32 (M, N) = bn(relu(a @ w + bias))."""
    M, K = a.shape
    Kp, N = w_p.shape
    tm, Mp = _choose_tm(M)

    a_p = jnp.pad(a, ((0, Mp - M), (0, Kp - K))).astype(jnp.bfloat16)

    out = pl.pallas_call(
        _fused_gemm_kernel,
        out_shape=jax.ShapeDtypeStruct((Mp, N), jnp.float32),
        grid_spec=pltpu.PrefetchScalarGridSpec(
            num_scalar_prefetch=0,
            grid=(Mp // tm,),
            in_specs=[
                pl.BlockSpec((tm, Kp), lambda i: (i, 0)),   # activation tile
                pl.BlockSpec((Kp, N), lambda i: (0, 0)),    # whole weight
                pl.BlockSpec((3, N), lambda i: (0, 0)),     # bias/scale/shift
            ],
            out_specs=pl.BlockSpec((tm, N), lambda i: (i, 0)),
        ),
        compiler_params=pltpu.CompilerParams(
            dimension_semantics=("parallel",)),
    )(a_p, w_p, bsc)
    return out[:M]


# ----------------------------------------------------------------------------
# im2col glue (plain JAX) + layer wrapper
# ----------------------------------------------------------------------------
def _im2col(x_nhwc, kh, kw, stride):
    B, H, W, C = x_nhwc.shape
    Ho = (H - kh) // stride + 1
    Wo = (W - kw) // stride + 1
    cols = []
    for di in range(kh):
        for dj in range(kw):
            cols.append(x_nhwc[:, di:di + stride * (Ho - 1) + 1:stride,
                                  dj:dj + stride * (Wo - 1) + 1:stride, :])
    patches = jnp.stack(cols, axis=3)                 # (B, Ho, Wo, kh*kw, C)
    return patches.reshape(B * Ho * Wo, kh * kw * C), (B, Ho, Wo)


def conv_relu_bn(x_nhwc, p):
    A, (B, Ho, Wo) = _im2col(x_nhwc, p["kh"], p["kw"], p["stride"])
    y = fused_matmul_bias_relu_bn(A, p["w"], p["bsc"])
    return y.reshape(B, Ho, Wo, p["cout"])


# ----------------------------------------------------------------------------
# SiameseNetwork parameters + forward
# ----------------------------------------------------------------------------
_LAYER_CFG = [  # (cin, cout, kernel, stride)
    (3, 32, 3, 2), (32, 64, 3, 2), (64, 128, 3, 2),
    (128, 256, 1, 2), (256, 256, 1, 2), (256, 512, 3, 2),
    (512, 1024, 1, 1),
]


def init_params(key):
    """Raw (PyTorch-layout) parameters: conv weights/bias + BN stats."""
    params = []
    for cin, cout, k, s in _LAYER_CFG:
        key, kw_, kb_ = jax.random.split(key, 3)
        fan_in = cin * k * k
        w = jax.random.normal(kw_, (k, k, cin, cout), jnp.float32) \
            * jnp.sqrt(2.0 / fan_in)
        b = 0.01 * jax.random.normal(kb_, (cout,), jnp.float32)
        params.append(dict(
            w=w, b=b, stride=s,
            gamma=jnp.ones((cout,), jnp.float32),
            beta=jnp.zeros((cout,), jnp.float32),
            mean=jnp.zeros((cout,), jnp.float32),
            var=jnp.ones((cout,), jnp.float32),
        ))
    return params


def prepare_params(params, eps=1e-5):
    """One-time weight prep: reshape to (K,N), pad K to a multiple of 8, cast
    to bf16, fold BN into scale/shift, pack bias/scale/shift into (3, N)."""
    prepped = []
    for p in params:
        kh, kw, cin, cout = p["w"].shape
        K = kh * kw * cin
        Kp = _round_up(K, 8)
        w2 = jnp.pad(p["w"].reshape(K, cout),
                     ((0, Kp - K), (0, 0))).astype(jnp.bfloat16)
        scale = p["gamma"] / jnp.sqrt(p["var"] + eps)
        shift = p["beta"] - p["mean"] * scale
        bsc = jnp.stack([p["b"], scale, shift], axis=0).astype(jnp.float32)
        prepped.append(dict(w=w2, bsc=bsc, kh=kh, kw=kw,
                            stride=p["stride"], cout=cout))
    return prepped


def _net(prepped, x_nchw):
    x = jnp.transpose(x_nchw, (0, 2, 3, 1))           # NCHW -> NHWC
    for p in prepped:
        x = conv_relu_bn(x, p)
    return jnp.transpose(x, (0, 3, 1, 2))             # NCHW (B, 1024, 1, 1)


def forward_once(prepped, x_nchw):
    return jnp.squeeze(_net(prepped, x_nchw))         # == torch.squeeze


def siamese_forward(prepped, input1, input2, input3=None):
    # Batch the branches through one pass of the network, then split & squeeze
    # per branch (preserves torch.squeeze semantics per branch).
    inputs = [input1, input2] if input3 is None else [input1, input2, input3]
    sizes = [x.shape[0] for x in inputs]
    y = _net(prepped, jnp.concatenate(inputs, axis=0))
    outs, off = [], 0
    for s in sizes:
        outs.append(jnp.squeeze(y[off:off + s]))
        off += s
    return tuple(outs)


# ----------------------------------------------------------------------------
if __name__ == "__main__":
    key = jax.random.PRNGKey(0)
    k_p, k1, k2 = jax.random.split(key, 3)
    raw_params = init_params(k_p)
    prepped = prepare_params(raw_params)

    # 80x80 is the smallest "nice" spatial size that survives the 7-layer
    # stride-2 stack and yields a 1x1 feature map (so squeeze -> (B, 1024)).
    B, C, H, W = 2, 3, 80, 80
    input1 = jax.random.normal(k1, (B, C, H, W), jnp.float32)
    input2 = jax.random.normal(k2, (B, C, H, W), jnp.float32)

    fwd = jax.jit(lambda a, b: siamese_forward(prepped, a, b))
    out1, out2 = fwd(input1, input2)
    jax.block_until_ready((out1, out2))

    assert out1.shape == (B, 1024) and out2.shape == (B, 1024)
    assert bool(jnp.all(jnp.isfinite(out1))) and bool(jnp.all(jnp.isfinite(out2)))
    print("KERNEL_OK")
</pallas_src>

<mosaic_0001>
module attributes {stable_mosaic.version = 11 : i64} {
  func.func @_fused_gemm_kernel(%arg0: i32, %arg1: memref<512x32xbf16, #tpu.memory_space<vmem>>, %arg2: memref<32x32xbf16, #tpu.memory_space<vmem>>, %arg3: memref<3x32xf32, #tpu.memory_space<vmem>>, %arg4: memref<512x32xf32, #tpu.memory_space<vmem>>) attributes {dimension_semantics = [#tpu.dimension_semantics<parallel>], iteration_bounds = array<i64: 12>, scalar_prefetch = 0 : i64, scratch_operands = 0 : i64, tpu.core_type = #tpu.core_type<tc>, window_params = [{transform_indices = @transform_0, window_bounds = array<i64: 512, 32>}, {pipeline_mode = #tpu.pipeline_mode<synchronous>, transform_indices = @transform_1, window_bounds = array<i64: 32, 32>}, {pipeline_mode = #tpu.pipeline_mode<synchronous>, transform_indices = @transform_2, window_bounds = array<i64: 3, 32>}, {transform_indices = @transform_3, window_bounds = array<i64: 512, 32>}]} {
    %c0 = arith.constant 0 : index
    %c0_0 = arith.constant 0 : index
    %0 = vector.load %arg1[%c0, %c0_0] : memref<512x32xbf16, #tpu.memory_space<vmem>>, vector<512x32xbf16>
    %c0_1 = arith.constant 0 : index
    %c0_2 = arith.constant 0 : index
    %1 = vector.load %arg2[%c0_1, %c0_2] : memref<32x32xbf16, #tpu.memory_space<vmem>>, vector<32x32xbf16>
    %cst = arith.constant dense<0.000000e+00> : vector<512x32xf32>
    %2 = tpu.matmul %0, %1, %cst {dimension_numbers = #tpu.dot_dimension_numbers<[1], [0], [0], [1], [0, 0, 1, 1], [], []>} : vector<512x32xbf16>, vector<32x32xbf16>, vector<512x32xf32> -> vector<512x32xf32>
    %c0_3 = arith.constant 0 : index
    %c0_4 = arith.constant 0 : index
    %3 = vector.load %arg3[%c0_3, %c0_4] : memref<3x32xf32, #tpu.memory_space<vmem>>, vector<1x32xf32>
    %4 = vector.broadcast %3 : vector<1x32xf32> to vector<512x32xf32>
    %5 = arith.addf %2, %4 : vector<512x32xf32>
    %cst_5 = arith.constant 0.000000e+00 : f32
    %6 = vector.broadcast %cst_5 : f32 to vector<512x32xf32>
    %7 = arith.maximumf %5, %6 : vector<512x32xf32>
    %c1 = arith.constant 1 : index
    %c0_6 = arith.constant 0 : index
    %8 = vector.load %arg3[%c1, %c0_6] : memref<3x32xf32, #tpu.memory_space<vmem>>, vector<1x32xf32>
    %9 = vector.broadcast %8 : vector<1x32xf32> to vector<512x32xf32>
    %10 = arith.mulf %7, %9 : vector<512x32xf32>
    %c2 = arith.constant 2 : index
    %c0_7 = arith.constant 0 : index
    %11 = vector.load %arg3[%c2, %c0_7] : memref<3x32xf32, #tpu.memory_space<vmem>>, vector<1x32xf32>
    %12 = vector.broadcast %11 : vector<1x32xf32> to vector<512x32xf32>
    %13 = arith.addf %10, %12 : vector<512x32xf32>
    %c0_8 = arith.constant 0 : index
    %c0_9 = arith.constant 0 : index
    %14 = vector.load %arg4[%c0_8, %c0_9] : memref<512x32xf32, #tpu.memory_space<vmem>>, vector<512x32xf32>
    tpu.vector_store %arg4[%c0_8, %c0_9], %13 {strides = array<i32>} : memref<512x32xf32, #tpu.memory_space<vmem>>, vector<512x32xf32>,
    return
  }
  func.func @transform_0(%arg0: i32) -> (i32, i32) {
    %c0_i32 = arith.constant 0 : i32
    %c0_i32_0 = arith.constant 0 : i32
    return %arg0, %c0_i32 : i32, i32
  }
  func.func @transform_1(%arg0: i32) -> (i32, i32) {
    %c0_i32 = arith.constant 0 : i32
    %c0_i32_0 = arith.constant 0 : i32
    %c0_i32_1 = arith.constant 0 : i32
    return %c0_i32, %c0_i32_0 : i32, i32
  }
  func.func @transform_2(%arg0: i32) -> (i32, i32) {
    %c0_i32 = arith.constant 0 : i32
    %c0_i32_0 = arith.constant 0 : i32
    %c0_i32_1 = arith.constant 0 : i32
    return %c0_i32, %c0_i32_0 : i32, i32
  }
  func.func @transform_3(%arg0: i32) -> (i32, i32) {
    %c0_i32 = arith.constant 0 : i32
    %c0_i32_0 = arith.constant 0 : i32
    return %arg0, %c0_i32 : i32, i32
  }
}

module attributes {stable_mosaic.version = 11 : i64} {
  func.func @_fused_gemm_kernel(%arg0: i32, %arg1: memref<512x288xbf16, #tpu.memory_space<vmem>>, %arg2: memref<288x64xbf16, #tpu.memory_space<vmem>>, %arg3: memref<3x64xf32, #tpu.memory_space<vmem>>, %arg4: memref<512x64xf32, #tpu.memory_space<vmem>>) attributes {dimension_semantics = [#tpu.dimension_semantics<parallel>], iteration_bounds = array<i64: 3>, scalar_prefetch = 0 : i64, scratch_operands = 0 : i64, tpu.core_type = #tpu.core_type<tc>, window_params = [{transform_indices = @transform_0, window_bounds = array<i64: 512, 288>}, {pipeline_mode = #tpu.pipeline_mode<synchronous>, transform_indices = @transform_1, window_bounds = array<i64: 288, 64>}, {pipeline_mode = #tpu.pipeline_mode<synchronous>, transform_indices = @transform_2, window_bounds = array<i64: 3, 64>}, {transform_indices = @transform_3, window_bounds = array<i64: 512, 64>}]} {
    %c0 = arith.constant 0 : index
    %c0_0 = arith.constant 0 : index
    %0 = vector.load %arg1[%c0, %c0_0] : memref<512x288xbf16, #tpu.memory_space<vmem>>, vector<512x288xbf16>
    %c0_1 = arith.constant 0 : index
    %c0_2 = arith.constant 0 : index
    %1 = vector.load %arg2[%c0_1, %c0_2] : memref<288x64xbf16, #tpu.memory_space<vmem>>, vector<288x64xbf16>
    %cst = arith.constant dense<0.000000e+00> : vector<512x64xf32>
    %2 = tpu.matmul %0, %1, %cst {dimension_numbers = #tpu.dot_dimension_numbers<[1], [0], [0], [1], [0, 0, 1, 1], [], []>} : vector<512x288xbf16>, vector<288x64xbf16>, vector<512x64xf32> -> vector<512x64xf32>
    %c0_3 = arith.constant 0 : index
    %c0_4 = arith.constant 0 : index
    %3 = vector.load %arg3[%c0_3, %c0_4] : memref<3x64xf32, #tpu.memory_space<vmem>>, vector<1x64xf32>
    %4 = vector.broadcast %3 : vector<1x64xf32> to vector<512x64xf32>
    %5 = arith.addf %2, %4 : vector<512x64xf32>
    %cst_5 = arith.constant 0.000000e+00 : f32
    %6 = vector.broadcast %cst_5 : f32 to vector<512x64xf32>
    %7 = arith.maximumf %5, %6 : vector<512x64xf32>
    %c1 = arith.constant 1 : index
    %c0_6 = arith.constant 0 : index
    %8 = vector.load %arg3[%c1, %c0_6] : memref<3x64xf32, #tpu.memory_space<vmem>>, vector<1x64xf32>
    %9 = vector.broadcast %8 : vector<1x64xf32> to vector<512x64xf32>
    %10 = arith.mulf %7, %9 : vector<512x64xf32>
    %c2 = arith.constant 2 : index
    %c0_7 = arith.constant 0 : index
    %11 = vector.load %arg3[%c2, %c0_7] : memref<3x64xf32, #tpu.memory_space<vmem>>, vector<1x64xf32>
    %12 = vector.broadcast %11 : vector<1x64xf32> to vector<512x64xf32>
    %13 = arith.addf %10, %12 : vector<512x64xf32>
    %c0_8 = arith.constant 0 : index
    %c0_9 = arith.constant 0 : index
    %14 = vector.load %arg4[%c0_8, %c0_9] : memref<512x64xf32, #tpu.memory_space<vmem>>, vector<512x64xf32>
    tpu.vector_store %arg4[%c0_8, %c0_9], %13 {strides = array<i32>} : memref<512x64xf32, #tpu.memory_space<vmem>>, vector<512x64xf32>,
    return
  }
  func.func @transform_0(%arg0: i32) -> (i32, i32) {
    %c0_i32 = arith.constant 0 : i32
    %c0_i32_0 = arith.constant 0 : i32
    return %arg0, %c0_i32 : i32, i32
  }
  func.func @transform_1(%arg0: i32) -> (i32, i32) {
    %c0_i32 = arith.constant 0 : i32
    %c0_i32_0 = arith.constant 0 : i32
    %c0_i32_1 = arith.constant 0 : i32
    return %c0_i32, %c0_i32_0 : i32, i32
  }
  func.func @transform_2(%arg0: i32) -> (i32, i32) {
    %c0_i32 = arith.constant 0 : i32
    %c0_i32_0 = arith.constant 0 : i32
    %c0_i32_1 = arith.constant 0 : i32
    return %c0_i32, %c0_i32_0 : i32, i32
  }
  func.func @transform_3(%arg0: i32) -> (i32, i32) {
    %c0_i32 = arith.constant 0 : i32
    %c0_i32_0 = arith.constant 0 : i32
    return %arg0, %c0_i32 : i32, i32
  }
}

module attributes {stable_mosaic.version = 11 : i64} {
  func.func @_fused_gemm_kernel(%arg0: i32, %arg1: memref<176x576xbf16, #tpu.memory_space<vmem>>, %arg2: memref<576x128xbf16, #tpu.memory_space<vmem>>, %arg3: memref<3x128xf32, #tpu.memory_space<vmem>>, %arg4: memref<176x128xf32, #tpu.memory_space<vmem>>) attributes {dimension_semantics = [#tpu.dimension_semantics<parallel>], iteration_bounds = array<i64: 2>, scalar_prefetch = 0 : i64, scratch_operands = 0 : i64, tpu.core_type = #tpu.core_type<tc>, window_params = [{transform_indices = @transform_0, window_bounds = array<i64: 176, 576>}, {pipeline_mode = #tpu.pipeline_mode<synchronous>, transform_indices = @transform_1, window_bounds = array<i64: 576, 128>}, {pipeline_mode = #tpu.pipeline_mode<synchronous>, transform_indices = @transform_2, window_bounds = array<i64: 3, 128>}, {transform_indices = @transform_3, window_bounds = array<i64: 176, 128>}]} {
    %c0 = arith.constant 0 : index
    %c0_0 = arith.constant 0 : index
    %0 = vector.load %arg1[%c0, %c0_0] : memref<176x576xbf16, #tpu.memory_space<vmem>>, vector<176x576xbf16>
    %c0_1 = arith.constant 0 : index
    %c0_2 = arith.constant 0 : index
    %1 = vector.load %arg2[%c0_1, %c0_2] : memref<576x128xbf16, #tpu.memory_space<vmem>>, vector<576x128xbf16>
    %cst = arith.constant dense<0.000000e+00> : vector<176x128xf32>
    %2 = tpu.matmul %0, %1, %cst {dimension_numbers = #tpu.dot_dimension_numbers<[1], [0], [0], [1], [0, 0, 1, 1], [], []>} : vector<176x576xbf16>, vector<576x128xbf16>, vector<176x128xf32> -> vector<176x128xf32>
    %c0_3 = arith.constant 0 : index
    %c0_4 = arith.constant 0 : index
    %3 = vector.load %arg3[%c0_3, %c0_4] : memref<3x128xf32, #tpu.memory_space<vmem>>, vector<1x128xf32>
    %4 = vector.broadcast %3 : vector<1x128xf32> to vector<176x128xf32>
    %5 = arith.addf %2, %4 : vector<176x128xf32>
    %cst_5 = arith.constant 0.000000e+00 : f32
    %6 = vector.broadcast %cst_5 : f32 to vector<176x128xf32>
    %7 = arith.maximumf %5, %6 : vector<176x128xf32>
    %c1 = arith.constant 1 : index
    %c0_6 = arith.constant 0 : index
    %8 = vector.load %arg3[%c1, %c0_6] : memref<3x128xf32, #tpu.memory_space<vmem>>, vector<1x128xf32>
    %9 = vector.broadcast %8 : vector<1x128xf32> to vector<176x128xf32>
    %10 = arith.mulf %7, %9 : vector<176x128xf32>
    %c2 = arith.constant 2 : index
    %c0_7 = arith.constant 0 : index
    %11 = vector.load %arg3[%c2, %c0_7] : memref<3x128xf32, #tpu.memory_space<vmem>>, vector<1x128xf32>
    %12 = vector.broadcast %11 : vector<1x128xf32> to vector<176x128xf32>
    %13 = arith.addf %10, %12 : vector<176x128xf32>
    %c0_8 = arith.constant 0 : index
    %c0_9 = arith.constant 0 : index
    %14 = vector.load %arg4[%c0_8, %c0_9] : memref<176x128xf32, #tpu.memory_space<vmem>>, vector<176x128xf32>
    tpu.vector_store %arg4[%c0_8, %c0_9], %13 {strides = array<i32>} : memref<176x128xf32, #tpu.memory_space<vmem>>, vector<176x128xf32>,
    return
  }
  func.func @transform_0(%arg0: i32) -> (i32, i32) {
    %c0_i32 = arith.constant 0 : i32
    %c0_i32_0 = arith.constant 0 : i32
    return %arg0, %c0_i32 : i32, i32
  }
  func.func @transform_1(%arg0: i32) -> (i32, i32) {
    %c0_i32 = arith.constant 0 : i32
    %c0_i32_0 = arith.constant 0 : i32
    %c0_i32_1 = arith.constant 0 : i32
    return %c0_i32, %c0_i32_0 : i32, i32
  }
  func.func @transform_2(%arg0: i32) -> (i32, i32) {
    %c0_i32 = arith.constant 0 : i32
    %c0_i32_0 = arith.constant 0 : i32
    %c0_i32_1 = arith.constant 0 : i32
    return %c0_i32, %c0_i32_0 : i32, i32
  }
  func.func @transform_3(%arg0: i32) -> (i32, i32) {
    %c0_i32 = arith.constant 0 : i32
    %c0_i32_0 = arith.constant 0 : i32
    return %arg0, %c0_i32 : i32, i32
  }
}

module attributes {stable_mosaic.version = 11 : i64} {
  func.func @_fused_gemm_kernel(%arg0: i32, %arg1: memref<64x128xbf16, #tpu.memory_space<vmem>>, %arg2: memref<128x256xbf16, #tpu.memory_space<vmem>>, %arg3: memref<3x256xf32, #tpu.memory_space<vmem>>, %arg4: memref<64x256xf32, #tpu.memory_space<vmem>>) attributes {dimension_semantics = [#tpu.dimension_semantics<parallel>], iteration_bounds = array<i64: 2>, scalar_prefetch = 0 : i64, scratch_operands = 0 : i64, tpu.core_type = #tpu.core_type<tc>, window_params = [{transform_indices = @transform_0, window_bounds = array<i64: 64, 128>}, {pipeline_mode = #tpu.pipeline_mode<synchronous>, transform_indices = @transform_1, window_bounds = array<i64: 128, 256>}, {pipeline_mode = #tpu.pipeline_mode<synchronous>, transform_indices = @transform_2, window_bounds = array<i64: 3, 256>}, {transform_indices = @transform_3, window_bounds = array<i64: 64, 256>}]} {
    %c0 = arith.constant 0 : index
    %c0_0 = arith.constant 0 : index
    %0 = vector.load %arg1[%c0, %c0_0] : memref<64x128xbf16, #tpu.memory_space<vmem>>, vector<64x128xbf16>
    %c0_1 = arith.constant 0 : index
    %c0_2 = arith.constant 0 : index
    %1 = vector.load %arg2[%c0_1, %c0_2] : memref<128x256xbf16, #tpu.memory_space<vmem>>, vector<128x256xbf16>
    %cst = arith.constant dense<0.000000e+00> : vector<64x256xf32>
    %2 = tpu.matmul %0, %1, %cst {dimension_numbers = #tpu.dot_dimension_numbers<[1], [0], [0], [1], [0, 0, 1, 1], [], []>} : vector<64x128xbf16>, vector<128x256xbf16>, vector<64x256xf32> -> vector<64x256xf32>
    %c0_3 = arith.constant 0 : index
    %c0_4 = arith.constant 0 : index
    %3 = vector.load %arg3[%c0_3, %c0_4] : memref<3x256xf32, #tpu.memory_space<vmem>>, vector<1x256xf32>
    %4 = vector.broadcast %3 : vector<1x256xf32> to vector<64x256xf32>
    %5 = arith.addf %2, %4 : vector<64x256xf32>
    %cst_5 = arith.constant 0.000000e+00 : f32
    %6 = vector.broadcast %cst_5 : f32 to vector<64x256xf32>
    %7 = arith.maximumf %5, %6 : vector<64x256xf32>
    %c1 = arith.constant 1 : index
    %c0_6 = arith.constant 0 : index
    %8 = vector.load %arg3[%c1, %c0_6] : memref<3x256xf32, #tpu.memory_space<vmem>>, vector<1x256xf32>
    %9 = vector.broadcast %8 : vector<1x256xf32> to vector<64x256xf32>
    %10 = arith.mulf %7, %9 : vector<64x256xf32>
    %c2 = arith.constant 2 : index
    %c0_7 = arith.constant 0 : index
    %11 = vector.load %arg3[%c2, %c0_7] : memref<3x256xf32, #tpu.memory_space<vmem>>, vector<1x256xf32>
    %12 = vector.broadcast %11 : vector<1x256xf32> to vector<64x256xf32>
    %13 = arith.addf %10, %12 : vector<64x256xf32>
    %c0_8 = arith.constant 0 : index
    %c0_9 = arith.constant 0 : index
    %14 = vector.load %arg4[%c0_8, %c0_9] : memref<64x256xf32, #tpu.memory_space<vmem>>, vector<64x256xf32>
    tpu.vector_store %arg4[%c0_8, %c0_9], %13 {strides = array<i32>} : memref<64x256xf32, #tpu.memory_space<vmem>>, vector<64x256xf32>,
    return
  }
  func.func @transform_0(%arg0: i32) -> (i32, i32) {
    %c0_i32 = arith.constant 0 : i32
    %c0_i32_0 = arith.constant 0 : i32
    return %arg0, %c0_i32 : i32, i32
  }
  func.func @transform_1(%arg0: i32) -> (i32, i32) {
    %c0_i32 = arith.constant 0 : i32
    %c0_i32_0 = arith.constant 0 : i32
    %c0_i32_1 = arith.constant 0 : i32
    return %c0_i32, %c0_i32_0 : i32, i32
  }
  func.func @transform_2(%arg0: i32) -> (i32, i32) {
    %c0_i32 = arith.constant 0 : i32
    %c0_i32_0 = arith.constant 0 : i32
    %c0_i32_1 = arith.constant 0 : i32
    return %c0_i32, %c0_i32_0 : i32, i32
  }
  func.func @transform_3(%arg0: i32) -> (i32, i32) {
    %c0_i32 = arith.constant 0 : i32
    %c0_i32_0 = arith.constant 0 : i32
    return %arg0, %c0_i32 : i32, i32
  }
}

module attributes {stable_mosaic.version = 11 : i64} {
  func.func @_fused_gemm_kernel(%arg0: i32, %arg1: memref<48x256xbf16, #tpu.memory_space<vmem>>, %arg2: memref<256x256xbf16, #tpu.memory_space<vmem>>, %arg3: memref<3x256xf32, #tpu.memory_space<vmem>>, %arg4: memref<48x256xf32, #tpu.memory_space<vmem>>) attributes {dimension_semantics = [#tpu.dimension_semantics<parallel>], iteration_bounds = array<i64: 1>, scalar_prefetch = 0 : i64, scratch_operands = 0 : i64, tpu.core_type = #tpu.core_type<tc>, window_params = [{transform_indices = @transform_0, window_bounds = array<i64: 48, 256>}, {pipeline_mode = #tpu.pipeline_mode<synchronous>, transform_indices = @transform_1, window_bounds = array<i64: 256, 256>}, {pipeline_mode = #tpu.pipeline_mode<synchronous>, transform_indices = @transform_2, window_bounds = array<i64: 3, 256>}, {transform_indices = @transform_3, window_bounds = array<i64: 48, 256>}]} {
    %c0 = arith.constant 0 : index
    %c0_0 = arith.constant 0 : index
    %0 = vector.load %arg1[%c0, %c0_0] : memref<48x256xbf16, #tpu.memory_space<vmem>>, vector<48x256xbf16>
    %c0_1 = arith.constant 0 : index
    %c0_2 = arith.constant 0 : index
    %1 = vector.load %arg2[%c0_1, %c0_2] : memref<256x256xbf16, #tpu.memory_space<vmem>>, vector<256x256xbf16>
    %cst = arith.constant dense<0.000000e+00> : vector<48x256xf32>
    %2 = tpu.matmul %0, %1, %cst {dimension_numbers = #tpu.dot_dimension_numbers<[1], [0], [0], [1], [0, 0, 1, 1], [], []>} : vector<48x256xbf16>, vector<256x256xbf16>, vector<48x256xf32> -> vector<48x256xf32>
    %c0_3 = arith.constant 0 : index
    %c0_4 = arith.constant 0 : index
    %3 = vector.load %arg3[%c0_3, %c0_4] : memref<3x256xf32, #tpu.memory_space<vmem>>, vector<1x256xf32>
    %4 = vector.broadcast %3 : vector<1x256xf32> to vector<48x256xf32>
    %5 = arith.addf %2, %4 : vector<48x256xf32>
    %cst_5 = arith.constant 0.000000e+00 : f32
    %6 = vector.broadcast %cst_5 : f32 to vector<48x256xf32>
    %7 = arith.maximumf %5, %6 : vector<48x256xf32>
    %c1 = arith.constant 1 : index
    %c0_6 = arith.constant 0 : index
    %8 = vector.load %arg3[%c1, %c0_6] : memref<3x256xf32, #tpu.memory_space<vmem>>, vector<1x256xf32>
    %9 = vector.broadcast %8 : vector<1x256xf32> to vector<48x256xf32>
    %10 = arith.mulf %7, %9 : vector<48x256xf32>
    %c2 = arith.constant 2 : index
    %c0_7 = arith.constant 0 : index
    %11 = vector.load %arg3[%c2, %c0_7] : memref<3x256xf32, #tpu.memory_space<vmem>>, vector<1x256xf32>
    %12 = vector.broadcast %11 : vector<1x256xf32> to vector<48x256xf32>
    %13 = arith.addf %10, %12 : vector<48x256xf32>
    %c0_8 = arith.constant 0 : index
    %c0_9 = arith.constant 0 : index
    %14 = vector.load %arg4[%c0_8, %c0_9] : memref<48x256xf32, #tpu.memory_space<vmem>>, vector<48x256xf32>
    tpu.vector_store %arg4[%c0_8, %c0_9], %13 {strides = array<i32>} : memref<48x256xf32, #tpu.memory_space<vmem>>, vector<48x256xf32>,
    return
  }
  func.func @transform_0(%arg0: i32) -> (i32, i32) {
    %c0_i32 = arith.constant 0 : i32
    %c0_i32_0 = arith.constant 0 : i32
    return %arg0, %c0_i32 : i32, i32
  }
  func.func @transform_1(%arg0: i32) -> (i32, i32) {
    %c0_i32 = arith.constant 0 : i32
    %c0_i32_0 = arith.constant 0 : i32
    %c0_i32_1 = arith.constant 0 : i32
    return %c0_i32, %c0_i32_0 : i32, i32
  }
  func.func @transform_2(%arg0: i32) -> (i32, i32) {
    %c0_i32 = arith.constant 0 : i32
    %c0_i32_0 = arith.constant 0 : i32
    %c0_i32_1 = arith.constant 0 : i32
    return %c0_i32, %c0_i32_0 : i32, i32
  }
  func.func @transform_3(%arg0: i32) -> (i32, i32) {
    %c0_i32 = arith.constant 0 : i32
    %c0_i32_0 = arith.constant 0 : i32
    return %arg0, %c0_i32 : i32, i32
  }
}

module attributes {stable_mosaic.version = 11 : i64} {
  func.func @_fused_gemm_kernel(%arg0: i32, %arg1: memref<16x2304xbf16, #tpu.memory_space<vmem>>, %arg2: memref<2304x512xbf16, #tpu.memory_space<vmem>>, %arg3: memref<3x512xf32, #tpu.memory_space<vmem>>, %arg4: memref<16x512xf32, #tpu.memory_space<vmem>>) attributes {dimension_semantics = [#tpu.dimension_semantics<parallel>], iteration_bounds = array<i64: 1>, scalar_prefetch = 0 : i64, scratch_operands = 0 : i64, tpu.core_type = #tpu.core_type<tc>, window_params = [{transform_indices = @transform_0, window_bounds = array<i64: 16, 2304>}, {pipeline_mode = #tpu.pipeline_mode<synchronous>, transform_indices = @transform_1, window_bounds = array<i64: 2304, 512>}, {pipeline_mode = #tpu.pipeline_mode<synchronous>, transform_indices = @transform_2, window_bounds = array<i64: 3, 512>}, {transform_indices = @transform_3, window_bounds = array<i64: 16, 512>}]} {
    %c0 = arith.constant 0 : index
    %c0_0 = arith.constant 0 : index
    %0 = vector.load %arg1[%c0, %c0_0] : memref<16x2304xbf16, #tpu.memory_space<vmem>>, vector<16x2304xbf16>
    %c0_1 = arith.constant 0 : index
    %c0_2 = arith.constant 0 : index
    %1 = vector.load %arg2[%c0_1, %c0_2] : memref<2304x512xbf16, #tpu.memory_space<vmem>>, vector<2304x512xbf16>
    %cst = arith.constant dense<0.000000e+00> : vector<16x512xf32>
    %2 = tpu.matmul %0, %1, %cst {dimension_numbers = #tpu.dot_dimension_numbers<[1], [0], [0], [1], [0, 0, 1, 1], [], []>} : vector<16x2304xbf16>, vector<2304x512xbf16>, vector<16x512xf32> -> vector<16x512xf32>
    %c0_3 = arith.constant 0 : index
    %c0_4 = arith.constant 0 : index
    %3 = vector.load %arg3[%c0_3, %c0_4] : memref<3x512xf32, #tpu.memory_space<vmem>>, vector<1x512xf32>
    %4 = vector.broadcast %3 : vector<1x512xf32> to vector<16x512xf32>
    %5 = arith.addf %2, %4 : vector<16x512xf32>
    %cst_5 = arith.constant 0.000000e+00 : f32
    %6 = vector.broadcast %cst_5 : f32 to vector<16x512xf32>
    %7 = arith.maximumf %5, %6 : vector<16x512xf32>
    %c1 = arith.constant 1 : index
    %c0_6 = arith.constant 0 : index
    %8 = vector.load %arg3[%c1, %c0_6] : memref<3x512xf32, #tpu.memory_space<vmem>>, vector<1x512xf32>
    %9 = vector.broadcast %8 : vector<1x512xf32> to vector<16x512xf32>
    %10 = arith.mulf %7, %9 : vector<16x512xf32>
    %c2 = arith.constant 2 : index
    %c0_7 = arith.constant 0 : index
    %11 = vector.load %arg3[%c2, %c0_7] : memref<3x512xf32, #tpu.memory_space<vmem>>, vector<1x512xf32>
    %12 = vector.broadcast %11 : vector<1x512xf32> to vector<16x512xf32>
    %13 = arith.addf %10, %12 : vector<16x512xf32>
    %c0_8 = arith.constant 0 : index
    %c0_9 = arith.constant 0 : index
    %14 = vector.load %arg4[%c0_8, %c0_9] : memref<16x512xf32, #tpu.memory_space<vmem>>, vector<16x512xf32>
    tpu.vector_store %arg4[%c0_8, %c0_9], %13 {strides = array<i32>} : memref<16x512xf32, #tpu.memory_space<vmem>>, vector<16x512xf32>,
    return
  }
  func.func @transform_0(%arg0: i32) -> (i32, i32) {
    %c0_i32 = arith.constant 0 : i32
    %c0_i32_0 = arith.constant 0 : i32
    return %arg0, %c0_i32 : i32, i32
  }
  func.func @transform_1(%arg0: i32) -> (i32, i32) {
    %c0_i32 = arith.constant 0 : i32
    %c0_i32_0 = arith.constant 0 : i32
    %c0_i32_1 = arith.constant 0 : i32
    return %c0_i32, %c0_i32_0 : i32, i32
  }
  func.func @transform_2(%arg0: i32) -> (i32, i32) {
    %c0_i32 = arith.constant 0 : i32
    %c0_i32_0 = arith.constant 0 : i32
    %c0_i32_1 = arith.constant 0 : i32
    return %c0_i32, %c0_i32_0 : i32, i32
  }
  func.func @transform_3(%arg0: i32) -> (i32, i32) {
    %c0_i32 = arith.constant 0 : i32
    %c0_i32_0 = arith.constant 0 : i32
    return %arg0, %c0_i32 : i32, i32
  }
}

module attributes {stable_mosaic.version = 11 : i64} {
  func.func @_fused_gemm_kernel(%arg0: i32, %arg1: memref<16x512xbf16, #tpu.memory_space<vmem>>, %arg2: memref<512x1024xbf16, #tpu.memory_space<vmem>>, %arg3: memref<3x1024xf32, #tpu.memory_space<vmem>>, %arg4: memref<16x1024xf32, #tpu.memory_space<vmem>>) attributes {dimension_semantics = [#tpu.dimension_semantics<parallel>], iteration_bounds = array<i64: 1>, scalar_prefetch = 0 : i64, scratch_operands = 0 : i64, tpu.core_type = #tpu.core_type<tc>, window_params = [{transform_indices = @transform_0, window_bounds = array<i64: 16, 512>}, {pipeline_mode = #tpu.pipeline_mode<synchronous>, transform_indices = @transform_1, window_bounds = array<i64: 512, 1024>}, {pipeline_mode = #tpu.pipeline_mode<synchronous>, transform_indices = @transform_2, window_bounds = array<i64: 3, 1024>}, {transform_indices = @transform_3, window_bounds = array<i64: 16, 1024>}]} {
    %c0 = arith.constant 0 : index
    %c0_0 = arith.constant 0 : index
    %0 = vector.load %arg1[%c0, %c0_0] : memref<16x512xbf16, #tpu.memory_space<vmem>>, vector<16x512xbf16>
    %c0_1 = arith.constant 0 : index
    %c0_2 = arith.constant 0 : index
    %1 = vector.load %arg2[%c0_1, %c0_2] : memref<512x1024xbf16, #tpu.memory_space<vmem>>, vector<512x1024xbf16>
    %cst = arith.constant dense<0.000000e+00> : vector<16x1024xf32>
    %2 = tpu.matmul %0, %1, %cst {dimension_numbers = #tpu.dot_dimension_numbers<[1], [0], [0], [1], [0, 0, 1, 1], [], []>} : vector<16x512xbf16>, vector<512x1024xbf16>, vector<16x1024xf32> -> vector<16x1024xf32>
    %c0_3 = arith.constant 0 : index
    %c0_4 = arith.constant 0 : index
    %3 = vector.load %arg3[%c0_3, %c0_4] : memref<3x1024xf32, #tpu.memory_space<vmem>>, vector<1x1024xf32>
    %4 = vector.broadcast %3 : vector<1x1024xf32> to vector<16x1024xf32>
    %5 = arith.addf %2, %4 : vector<16x1024xf32>
    %cst_5 = arith.constant 0.000000e+00 : f32
    %6 = vector.broadcast %cst_5 : f32 to vector<16x1024xf32>
    %7 = arith.maximumf %5, %6 : vector<16x1024xf32>
    %c1 = arith.constant 1 : index
    %c0_6 = arith.constant 0 : index
    %8 = vector.load %arg3[%c1, %c0_6] : memref<3x1024xf32, #tpu.memory_space<vmem>>, vector<1x1024xf32>
    %9 = vector.broadcast %8 : vector<1x1024xf32> to vector<16x1024xf32>
    %10 = arith.mulf %7, %9 : vector<16x1024xf32>
    %c2 = arith.constant 2 : index
    %c0_7 = arith.constant 0 : index
    %11 = vector.load %arg3[%c2, %c0_7] : memref<3x1024xf32, #tpu.memory_space<vmem>>, vector<1x1024xf32>
    %12 = vector.broadcast %11 : vector<1x1024xf32> to vector<16x1024xf32>
    %13 = arith.addf %10, %12 : vector<16x1024xf32>
    %c0_8 = arith.constant 0 : index
    %c0_9 = arith.constant 0 : index
    %14 = vector.load %arg4[%c0_8, %c0_9] : memref<16x1024xf32, #tpu.memory_space<vmem>>, vector<16x1024xf32>
    tpu.vector_store %arg4[%c0_8, %c0_9], %13 {strides = array<i32>} : memref<16x1024xf32, #tpu.memory_space<vmem>>, vector<16x1024xf32>,
    return
  }
  func.func @transform_0(%arg0: i32) -> (i32, i32) {
    %c0_i32 = arith.constant 0 : i32
    %c0_i32_0 = arith.constant 0 : i32
    return %arg0, %c0_i32 : i32, i32
  }
  func.func @transform_1(%arg0: i32) -> (i32, i32) {
    %c0_i32 = arith.constant 0 : i32
    %c0_i32_0 = arith.constant 0 : i32
    %c0_i32_1 = arith.constant 0 : i32
    return %c0_i32, %c0_i32_0 : i32, i32
  }
  func.func @transform_2(%arg0: i32) -> (i32, i32) {
    %c0_i32 = arith.constant 0 : i32
    %c0_i32_0 = arith.constant 0 : i32
    %c0_i32_1 = arith.constant 0 : i32
    return %c0_i32, %c0_i32_0 : i32, i32
  }
  func.func @transform_3(%arg0: i32) -> (i32, i32) {
    %c0_i32 = arith.constant 0 : i32
    %c0_i32_0 = arith.constant 0 : i32
    return %arg0, %c0_i32 : i32, i32
  }
}

</mosaic_0001>

<bundles_post_ra>
// kernel: _lambda_.7
= control target key start
LH: loop header
LB: loop body
LE: loop exit
PB: predicated region body
PF: predicated region fallthrough
CT: control target
= control target key end

     0   :  { %s1257_s12 = smov 0   ;;  %s1687_s0 = inlined_call_operand.vmem [shape: bf16[6144,32], index: 0, kind: input, shape index: {}]   ;;  %s1688_s1 = inlined_call_operand.vmem [shape: bf16[32,32], index: 1, kind: input, shape index: {}]   ;;  %s1689_s2 = inlined_call_operand.vmem [shape: f32[3,32], index: 2, kind: input, shape index: {}]   ;;  %s1690_s3 = inlined_call_operand.vmem [shape: f32[6144,32], index: 3, kind: output, shape index: {}]  }
   0x1 LB: > { %s999_s13 = sadd.s32 4294967295, %s1235_s12   ;;  %p1003_p0 = scmp.ge.s32.totalorder %s1235_s12, 1  ;;  %s1235_s12 = sphi %s1257_s12, %s13_s12  }
   0x2   : > { %p138_p1 = scmp.lt.s32.totalorder %s1235_s12, 13 }
   0x4   : > { %p139_p2 = pnand %p1003_p0, %p138_p1 }
   0x5   : > { %s1004_s16 = sshll.u32 (!%p139_p2), %s999_s13, 6 }
   0x6   : > { %142 = sbr.rel (%p139_p2) target bundleno = 282 (0x11a), region = 32  ;;  %p163_p3 = scmp.lt.s32.totalorder (!%p139_p2), %s1004_s16, 767 }
   0xb   : > { %v1211_v0 = vld [vmem:[%s1688_s1 + $0x8] sm:$0xff]  ;;  %v1210_v1 = vld [vmem:[%s1688_s1] sm:$0xff]  ;;  %s1692_s16 = smov (!%p163_p3, %s1004_s16), 767  ;;  %vm417_vm0 = vcmask 261120  }
   0xc   : > { %520 = vmatpush.bf16.msra.mxu0 %v1211_v0  ;;  %1212 = vmatpush.bf16.msra.mxu1 %v1211_v0  ;;  %s1005_s19 = sshll.u32 %s1692_s16, 2  ;;  %v1346_v34 = vld [vmem:[%s1689_s2] ss:$0 sm:$0xff]  ;;  %v1352_v38 = vld [vmem:[%s1689_s2 + $0x1] ss:$0 sm:$0xff]  ;;  %s1007_s27 = sshll.u32 %s1692_s16, 3 }
   0xd   : > { %1213 = vmatpush.bf16.msra.mxu2 %v1211_v0  ;;  %1214 = vmatpush.bf16.msra.mxu3 %v1211_v0  ;;  %s1277_s22 = scalar_lea.vmem %s1687_s0, %s1005_s19  ;;  %v1359_v41 = vld [vmem:[%s1689_s2 + $0x2] ss:$0 sm:$0xff]  ;;  %s1366_s5 = scalar_lea.vmem %s1690_s3, %s1007_s27 }
   0xe   : > { %v1178_v2 = vld [vmem:[%s1277_s22] sm:$0xff]  ;;  %v1179_v6 = vld [vmem:[%s1277_s22 + $0x8] sm:$0xff]  ;;  %v1180_v10 = vld [vmem:[%s1277_s22 + $0x10] sm:$0xff] }
   0xf   : > { %v1186_v3 = vld [vmem:[%s1277_s22 + $0x40] sm:$0xff]  ;;  %v1187_v7 = vld [vmem:[%s1277_s22 + $0x48] sm:$0xff]  ;;  %v1188_v11 = vld [vmem:[%s1277_s22 + $0x50] sm:$0xff] }
  0x10   : > { %521 = vmatpush.bf16.msra.mxu0 %v1210_v1  ;;  %1215 = vmatpush.bf16.msra.mxu1 %v1210_v1  ;;  %v1194_v4 = vld [vmem:[%s1277_s22 + $0x80] sm:$0xff]  ;;  %v1195_v8 = vld [vmem:[%s1277_s22 + $0x88] sm:$0xff]  ;;  %v1196_v12 = vld [vmem:[%s1277_s22 + $0x90] sm:$0xff] }
  0x11   : > { %1216 = vmatpush.bf16.msra.mxu2 %v1210_v1  ;;  %1217 = vmatpush.bf16.msra.mxu3 %v1210_v1  ;;  %v1202_v5 = vld [vmem:[%s1277_s22 + $0xc0] sm:$0xff]  ;;  %v1203_v9 = vld [vmem:[%s1277_s22 + $0xc8] sm:$0xff]  ;;  %v1204_v13 = vld [vmem:[%s1277_s22 + $0xd0] sm:$0xff] }
  0x12   : > { %v1181_v14 = vld [vmem:[%s1277_s22 + $0x18] sm:$0xff]  ;;  %v1182_v18 = vld [vmem:[%s1277_s22 + $0x20] sm:$0xff]  ;;  %v1183_v22 = vld [vmem:[%s1277_s22 + $0x28] sm:$0xff] }
  0x13   : > { %1144 = vmatmul.msk.bf16.vlgmr.msra.gmra.mxu0 %vm417_vm0, %v1178_v2  ;;  %1152 = vmatmul.msk.bf16.vlgmr.msra.gmra.mxu1 %vm417_vm0, %v1186_v3  ;;  %v1189_v15 = vld [vmem:[%s1277_s22 + $0x58] sm:$0xff]  ;;  %v1190_v19 = vld [vmem:[%s1277_s22 + $0x60] sm:$0xff]  ;;  %v1191_v23 = vld [vmem:[%s1277_s22 + $0x68] sm:$0xff] }
  0x14   : > { %1160 = vmatmul.msk.bf16.vlgmr.msra.gmra.mxu2 %vm417_vm0, %v1194_v4  ;;  %1168 = vmatmul.msk.bf16.vlgmr.msra.gmra.mxu3 %vm417_vm0, %v1202_v5  ;;  %v1197_v16 = vld [vmem:[%s1277_s22 + $0x98] sm:$0xff]  ;;  %v1198_v20 = vld [vmem:[%s1277_s22 + $0xa0] sm:$0xff]  ;;  %v1199_v24 = vld [vmem:[%s1277_s22 + $0xa8] sm:$0xff] }
  0x15   : > { %v1205_v17 = vld [vmem:[%s1277_s22 + $0xd8] sm:$0xff]  ;;  %v1206_v21 = vld [vmem:[%s1277_s22 + $0xe0] sm:$0xff]  ;;  %v1207_v25 = vld [vmem:[%s1277_s22 + $0xe8] sm:$0xff] }
  0x16   : > { %v1184_v26 = vld [vmem:[%s1277_s22 + $0x30] sm:$0xff]  ;;  %v1185_v30 = vld [vmem:[%s1277_s22 + $0x38] sm:$0xff] }
  0x17   : > { %v1192_v27 = vld [vmem:[%s1277_s22 + $0x70] sm:$0xff]  ;;  %v1193_v31 = vld [vmem:[%s1277_s22 + $0x78] sm:$0xff] }
  0x18   : > { %v1200_v28 = vld [vmem:[%s1277_s22 + $0xb0] sm:$0xff]  ;;  %v1201_v32 = vld [vmem:[%s1277_s22 + $0xb8] sm:$0xff] }
  0x19   : > { %v1208_v29 = vld [vmem:[%s1277_s22 + $0xf0] sm:$0xff]  ;;  %v1209_v33 = vld [vmem:[%s1277_s22 + $0xf8] sm:$0xff] }
  0x23   : > { %1145 = vmatmul.msk.bf16.gmra.mxu0 %vm417_vm0, %v1179_v6  ;;  %1153 = vmatmul.msk.bf16.gmra.mxu1 %vm417_vm0, %v1187_v7 }
  0x24   : > { %1161 = vmatmul.msk.bf16.gmra.mxu2 %vm417_vm0, %v1195_v8  ;;  %1169 = vmatmul.msk.bf16.gmra.mxu3 %vm417_vm0, %v1203_v9 }
  0x33   : > { %1146 = vmatmul.msk.bf16.gmra.mxu0 %vm417_vm0, %v1180_v10  ;;  %1154 = vmatmul.msk.bf16.gmra.mxu1 %vm417_vm0, %v1188_v11 }
  0x34   : > { %1162 = vmatmul.msk.bf16.gmra.mxu2 %vm417_vm0, %v1196_v12  ;;  %1170 = vmatmul.msk.bf16.gmra.mxu3 %vm417_vm0, %v1204_v13 }
  0x43   : > { %1147 = vmatmul.msk.bf16.gmra.mxu0 %vm417_vm0, %v1181_v14  ;;  %1155 = vmatmul.msk.bf16.gmra.mxu1 %vm417_vm0, %v1189_v15 }
  0x44   : > { %1163 = vmatmul.msk.bf16.gmra.mxu2 %vm417_vm0, %v1197_v16  ;;  %1171 = vmatmul.msk.bf16.gmra.mxu3 %vm417_vm0, %v1205_v17 }
  0x53   : > { %1148 = vmatmul.msk.bf16.gmra.mxu0 %vm417_vm0, %v1182_v18  ;;  %1156 = vmatmul.msk.bf16.gmra.mxu1 %vm417_vm0, %v1190_v19 }
  0x54   : > { %1164 = vmatmul.msk.bf16.gmra.mxu2 %vm417_vm0, %v1198_v20  ;;  %1172 = vmatmul.msk.bf16.gmra.mxu3 %vm417_vm0, %v1206_v21 }
  0x63   : > { %1149 = vmatmul.msk.bf16.gmra.mxu0 %vm417_vm0, %v1183_v22  ;;  %1157 = vmatmul.msk.bf16.gmra.mxu1 %vm417_vm0, %v1191_v23 }
  0x64   : > { %1165 = vmatmul.msk.bf16.gmra.mxu2 %vm417_vm0, %v1199_v24  ;;  %1173 = vmatmul.msk.bf16.gmra.mxu3 %vm417_vm0, %v1207_v25 }
  0x73   : > { %1150 = vmatmul.msk.bf16.gmra.mxu0 %vm417_vm0, %v1184_v26  ;;  %1158 = vmatmul.msk.bf16.gmra.mxu1 %vm417_vm0, %v1192_v27 }
  0x74   : > { %1166 = vmatmul.msk.bf16.gmra.mxu2 %vm417_vm0, %v1200_v28  ;;  %1174 = vmatmul.msk.bf16.gmra.mxu3 %vm417_vm0, %v1208_v29 }
  0x83   : > { %1151 = vmatmul.msk.bf16.gmra.mxu0 %vm417_vm0, %v1185_v30  ;;  %1159 = vmatmul.msk.bf16.gmra.mxu1 %vm417_vm0, %v1193_v31 }
  0x84   : > { %1167 = vmatmul.msk.bf16.gmra.mxu2 %vm417_vm0, %v1201_v32  ;;  %1175 = vmatmul.msk.bf16.gmra.mxu3 %vm417_vm0, %v1209_v33 }
  0x90   : > { %v523_v35 = vpop.f32.mrf.mxu0  ;;  %v563_v36 = vpop.f32.mrf.mxu1 }
  0x91   : > { %v524_v37 = vadd.f32 %v1346_v34, %v523_v35  ;;  %v564_v39 = vadd.f32 %v1346_v34, %v563_v36 }
  0x93   : > { %v683_v40 = vmax.f32 %v524_v37, 0.0  ;;  %v699_v42 = vmax.f32 %v564_v39, 0.0 }
  0x95   : > { %v749_v43 = vmul.f32 %v1352_v38, %v683_v40  ;;  %v765_v44 = vmul.f32 %v1352_v38, %v699_v42 }
  0x97   : > { %v815_v45 = vadd.f32 %v1359_v41, %v749_v43  ;;  %v831_v46 = vadd.f32 %v1359_v41, %v765_v44  ;;  %v603_v47 = vpop.f32.mrf.mxu2  ;;  %v643_v48 = vpop.f32.mrf.mxu3 }
  0x98   : > { %v604_v49 = vadd.f32 %v1346_v34, %v603_v47  ;;  %v644_v50 = vadd.f32 %v1346_v34, %v643_v48  ;;  %v525_v51 = vpop.f32.mrf.mxu0  ;;  %v565_v52 = vpop.f32.mrf.mxu1 }
  0x99   : > { %879 = vst.msk [vmem:[%s1366_s5] sm:$0xff] %vm417_vm0, %v815_v45  ;;  %v526_v53 = vadd.f32 %v1346_v34, %v525_v51  ;;  %v566_v54 = vadd.f32 %v1346_v34, %v565_v52 }
  0x9a   : > { %895 = vst.msk [vmem:[%s1366_s5 + $0x80] sm:$0xff] %vm417_vm0, %v831_v46  ;;  %v715_v55 = vmax.f32 %v604_v49, 0.0  ;;  %v731_v56 = vmax.f32 %v644_v50, 0.0 }
  0x9b   : > { %v684_v57 = vmax.f32 %v526_v53, 0.0  ;;  %v700_v58 = vmax.f32 %v566_v54, 0.0 }
  0x9c   : > { %v781_v59 = vmul.f32 %v1352_v38, %v715_v55  ;;  %v797_v60 = vmul.f32 %v1352_v38, %v731_v56 }
  0x9d   : > { %v750_v61 = vmul.f32 %v1352_v38, %v684_v57  ;;  %v766_v62 = vmul.f32 %v1352_v38, %v700_v58 }
  0x9e   : > { %v847_v63 = vadd.f32 %v1359_v41, %v781_v59  ;;  %v863_v0 = vadd.f32 %v1359_v41, %v797_v60 }
  0x9f   : > { %v816_v1 = vadd.f32 %v1359_v41, %v750_v61  ;;  %v832_v2 = vadd.f32 %v1359_v41, %v766_v62  ;;  %v605_v3 = vpop.f32.mrf.mxu2  ;;  %v645_v4 = vpop.f32.mrf.mxu3 }
  0xa0   : > { %911 = vst.msk [vmem:[%s1366_s5 + $0x100] sm:$0xff] %vm417_vm0, %v847_v63  ;;  %v606_v5 = vadd.f32 %v1346_v34, %v605_v3  ;;  %v646_v6 = vadd.f32 %v1346_v34, %v645_v4  ;;  %v528_v7 = vpop.f32.mrf.mxu0  ;;  %v568_v8 = vpop.f32.mrf.mxu1 }
  0xa1   : > { %927 = vst.msk [vmem:[%s1366_s5 + $0x180] sm:$0xff] %vm417_vm0, %v863_v0  ;;  %v529_v9 = vadd.f32 %v1346_v34, %v528_v7  ;;  %v569_v10 = vadd.f32 %v1346_v34, %v568_v8 }
  0xa2   : > { %880 = vst.msk [vmem:[%s1366_s5 + $0x8] sm:$0xff] %vm417_vm0, %v816_v1  ;;  %v716_v11 = vmax.f32 %v606_v5, 0.0  ;;  %v732_v12 = vmax.f32 %v646_v6, 0.0 }
  0xa3   : > { %896 = vst.msk [vmem:[%s1366_s5 + $0x88] sm:$0xff] %vm417_vm0, %v832_v2  ;;  %v685_v13 = vmax.f32 %v529_v9, 0.0  ;;  %v701_v14 = vmax.f32 %v569_v10, 0.0 }
  0xa4   : > { %v782_v15 = vmul.f32 %v1352_v38, %v716_v11  ;;  %v798_v16 = vmul.f32 %v1352_v38, %v732_v12 }
  0xa5   : > { %v751_v17 = vmul.f32 %v1352_v38, %v685_v13  ;;  %v767_v18 = vmul.f32 %v1352_v38, %v701_v14 }
  0xa6   : > { %v848_v19 = vadd.f32 %v1359_v41, %v782_v15  ;;  %v864_v20 = vadd.f32 %v1359_v41, %v798_v16 }
  0xa7   : > { %v817_v21 = vadd.f32 %v1359_v41, %v751_v17  ;;  %v833_v22 = vadd.f32 %v1359_v41, %v767_v18  ;;  %v608_v23 = vpop.f32.mrf.mxu2  ;;  %v648_v24 = vpop.f32.mrf.mxu3 }
  0xa8   : > { %912 = vst.msk [vmem:[%s1366_s5 + $0x108] sm:$0xff] %vm417_vm0, %v848_v19  ;;  %v609_v25 = vadd.f32 %v1346_v34, %v608_v23  ;;  %v649_v26 = vadd.f32 %v1346_v34, %v648_v24  ;;  %v530_v27 = vpop.f32.mrf.mxu0  ;;  %v570_v28 = vpop.f32.mrf.mxu1 }
  0xa9   : > { %928 = vst.msk [vmem:[%s1366_s5 + $0x188] sm:$0xff] %vm417_vm0, %v864_v20  ;;  %v531_v29 = vadd.f32 %v1346_v34, %v530_v27  ;;  %v571_v30 = vadd.f32 %v1346_v34, %v570_v28 }
  0xaa   : > { %881 = vst.msk [vmem:[%s1366_s5 + $0x10] sm:$0xff] %vm417_vm0, %v817_v21  ;;  %v717_v31 = vmax.f32 %v609_v25, 0.0  ;;  %v733_v32 = vmax.f32 %v649_v26, 0.0 }
  0xab   : > { %897 = vst.msk [vmem:[%s1366_s5 + $0x90] sm:$0xff] %vm417_vm0, %v833_v22  ;;  %v686_v33 = vmax.f32 %v531_v29, 0.0  ;;  %v702_v35 = vmax.f32 %v571_v30, 0.0 }
  0xac   : > { %v783_v36 = vmul.f32 %v1352_v38, %v717_v31  ;;  %v799_v37 = vmul.f32 %v1352_v38, %v733_v32 }
  0xad   : > { %v752_v39 = vmul.f32 %v1352_v38, %v686_v33  ;;  %v768_v40 = vmul.f32 %v1352_v38, %v702_v35 }
  0xae   : > { %v849_v42 = vadd.f32 %v1359_v41, %v783_v36  ;;  %v865_v43 = vadd.f32 %v1359_v41, %v799_v37 }
  0xaf   : > { %v818_v44 = vadd.f32 %v1359_v41, %v752_v39  ;;  %v834_v45 = vadd.f32 %v1359_v41, %v768_v40  ;;  %v610_v46 = vpop.f32.mrf.mxu2  ;;  %v650_v47 = vpop.f32.mrf.mxu3 }
  0xb0   : > { %913 = vst.msk [vmem:[%s1366_s5 + $0x110] sm:$0xff] %vm417_vm0, %v849_v42  ;;  %v611_v48 = vadd.f32 %v1346_v34, %v610_v46  ;;  %v651_v49 = vadd.f32 %v1346_v34, %v650_v47  ;;  %v533_v50 = vpop.f32.mrf.mxu0  ;;  %v573_v51 = vpop.f32.mrf.mxu1 }
  0xb1   : > { %929 = vst.msk [vmem:[%s1366_s5 + $0x190] sm:$0xff] %vm417_vm0, %v865_v43  ;;  %v534_v52 = vadd.f32 %v1346_v34, %v533_v50  ;;  %v574_v53 = vadd.f32 %v1346_v34, %v573_v51 }
  0xb2   : > { %882 = vst.msk [vmem:[%s1366_s5 + $0x18] sm:$0xff] %vm417_vm0, %v818_v44  ;;  %v718_v54 = vmax.f32 %v611_v48, 0.0  ;;  %v734_v55 = vmax.f32 %v651_v49, 0.0 }
  0xb3   : > { %898 = vst.msk [vmem:[%s1366_s5 + $0x98] sm:$0xff] %vm417_vm0, %v834_v45  ;;  %v687_v56 = vmax.f32 %v534_v52, 0.0  ;;  %v703_v57 = vmax.f32 %v574_v53, 0.0 }
  0xb4   : > { %v784_v58 = vmul.f32 %v1352_v38, %v718_v54  ;;  %v800_v59 = vmul.f32 %v1352_v38, %v734_v55 }
  0xb5   : > { %v753_v60 = vmul.f32 %v1352_v38, %v687_v56  ;;  %v769_v61 = vmul.f32 %v1352_v38, %v703_v57 }
  0xb6   : > { %v850_v62 = vadd.f32 %v1359_v41, %v784_v58  ;;  %v866_v63 = vadd.f32 %v1359_v41, %v800_v59 }
  0xb7   : > { %v819_v0 = vadd.f32 %v1359_v41, %v753_v60  ;;  %v835_v1 = vadd.f32 %v1359_v41, %v769_v61  ;;  %v613_v2 = vpop.f32.mrf.mxu2  ;;  %v653_v3 = vpop.f32.mrf.mxu3 }
  0xb8   : > { %914 = vst.msk [vmem:[%s1366_s5 + $0x118] sm:$0xff] %vm417_vm0, %v850_v62  ;;  %v614_v4 = vadd.f32 %v1346_v34, %v613_v2  ;;  %v654_v5 = vadd.f32 %v1346_v34, %v653_v3  ;;  %v535_v6 = vpop.f32.mrf.mxu0  ;;  %v575_v7 = vpop.f32.mrf.mxu1 }
  0xb9   : > { %930 = vst.msk [vmem:[%s1366_s5 + $0x198] sm:$0xff] %vm417_vm0, %v866_v63  ;;  %v536_v8 = vadd.f32 %v1346_v34, %v535_v6  ;;  %v576_v9 = vadd.f32 %v1346_v34, %v575_v7 }
  0xba   : > { %883 = vst.msk [vmem:[%s1366_s5 + $0x20] sm:$0xff] %vm417_vm0, %v819_v0  ;;  %v719_v10 = vmax.f32 %v614_v4, 0.0  ;;  %v735_v11 = vmax.f32 %v654_v5, 0.0 }
  0xbb   : > { %899 = vst.msk [vmem:[%s1366_s5 + $0xa0] sm:$0xff] %vm417_vm0, %v835_v1  ;;  %v688_v12 = vmax.f32 %v536_v8, 0.0  ;;  %v704_v13 = vmax.f32 %v576_v9, 0.0 }
  0xbc   : > { %v785_v14 = vmul.f32 %v1352_v38, %v719_v10  ;;  %v801_v15 = vmul.f32 %v1352_v38, %v735_v11 }
  0xbd   : > { %v754_v16 = vmul.f32 %v1352_v38, %v688_v12  ;;  %v770_v17 = vmul.f32 %v1352_v38, %v704_v13 }
  0xbe   : > { %v851_v18 = vadd.f32 %v1359_v41, %v785_v14  ;;  %v867_v19 = vadd.f32 %v1359_v41, %v801_v15 }
  0xbf   : > { %v820_v20 = vadd.f32 %v1359_v41, %v754_v16  ;;  %v836_v21 = vadd.f32 %v1359_v41, %v770_v17  ;;  %v615_v22 = vpop.f32.mrf.mxu2  ;;  %v655_v23 = vpop.f32.mrf.mxu3 }
  0xc0   : > { %915 = vst.msk [vmem:[%s1366_s5 + $0x120] sm:$0xff] %vm417_vm0, %v851_v18  ;;  %v616_v24 = vadd.f32 %v1346_v34, %v615_v22  ;;  %v656_v25 = vadd.f32 %v1346_v34, %v655_v23  ;;  %v538_v26 = vpop.f32.mrf.mxu0  ;;  %v578_v27 = vpop.f32.mrf.mxu1 }
  0xc1   : > { %931 = vst.msk [vmem:[%s1366_s5 + $0x1a0] sm:$0xff] %vm417_vm0, %v867_v19  ;;  %v539_v28 = vadd.f32 %v1346_v34, %v538_v26  ;;  %v579_v29 = vadd.f32 %v1346_v34, %v578_v27 }
  0xc2   : > { %884 = vst.msk [vmem:[%s1366_s5 + $0x28] sm:$0xff] %vm417_vm0, %v820_v20  ;;  %v720_v30 = vmax.f32 %v616_v24, 0.0  ;;  %v736_v31 = vmax.f32 %v656_v25, 0.0 }
  0xc3   : > { %900 = vst.msk [vmem:[%s1366_s5 + $0xa8] sm:$0xff] %vm417_vm0, %v836_v21  ;;  %v689_v32 = vmax.f32 %v539_v28, 0.0  ;;  %v705_v33 = vmax.f32 %v579_v29, 0.0 }
  0xc4   : > { %v786_v35 = vmul.f32 %v1352_v38, %v720_v30  ;;  %v802_v36 = vmul.f32 %v1352_v38, %v736_v31 }
  0xc5   : > { %v755_v37 = vmul.f32 %v1352_v38, %v689_v32  ;;  %v771_v39 = vmul.f32 %v1352_v38, %v705_v33 }
  0xc6   : > { %v852_v40 = vadd.f32 %v1359_v41, %v786_v35  ;;  %v868_v42 = vadd.f32 %v1359_v41, %v802_v36 }
  0xc7   : > { %v821_v43 = vadd.f32 %v1359_v41, %v755_v37  ;;  %v837_v44 = vadd.f32 %v1359_v41, %v771_v39  ;;  %v618_v45 = vpop.f32.mrf.mxu2  ;;  %v658_v46 = vpop.f32.mrf.mxu3 }
  0xc8   : > { %916 = vst.msk [vmem:[%s1366_s5 + $0x128] sm:$0xff] %vm417_vm0, %v852_v40  ;;  %v619_v47 = vadd.f32 %v1346_v34, %v618_v45  ;;  %v659_v48 = vadd.f32 %v1346_v34, %v658_v46  ;;  %v540_v49 = vpop.f32.mrf.mxu0  ;;  %v580_v50 = vpop.f32.mrf.mxu1 }
  0xc9   : > { %932 = vst.msk [vmem:[%s1366_s5 + $0x1a8] sm:$0xff] %vm417_vm0, %v868_v42  ;;  %v541_v51 = vadd.f32 %v1346_v34, %v540_v49  ;;  %v581_v52 = vadd.f32 %v1346_v34, %v580_v50 }
  0xca   : > { %885 = vst.msk [vmem:[%s1366_s5 + $0x30] sm:$0xff] %vm417_vm0, %v821_v43  ;;  %v721_v53 = vmax.f32 %v619_v47, 0.0  ;;  %v737_v54 = vmax.f32 %v659_v48, 0.0 }
  0xcb   : > { %901 = vst.msk [vmem:[%s1366_s5 + $0xb0] sm:$0xff] %vm417_vm0, %v837_v44  ;;  %v690_v55 = vmax.f32 %v541_v51, 0.0  ;;  %v706_v56 = vmax.f32 %v581_v52, 0.0 }
  0xcc   : > { %v787_v57 = vmul.f32 %v1352_v38, %v721_v53  ;;  %v803_v58 = vmul.f32 %v1352_v38, %v737_v54 }
  0xcd   : > { %v756_v59 = vmul.f32 %v1352_v38, %v690_v55  ;;  %v772_v60 = vmul.f32 %v1352_v38, %v706_v56 }
  0xce   : > { %v853_v61 = vadd.f32 %v1359_v41, %v787_v57  ;;  %v869_v62 = vadd.f32 %v1359_v41, %v803_v58 }
  0xcf   : > { %v822_v63 = vadd.f32 %v1359_v41, %v756_v59  ;;  %v838_v0 = vadd.f32 %v1359_v41, %v772_v60  ;;  %v620_v1 = vpop.f32.mrf.mxu2  ;;  %v660_v2 = vpop.f32.mrf.mxu3 }
  0xd0   : > { %917 = vst.msk [vmem:[%s1366_s5 + $0x130] sm:$0xff] %vm417_vm0, %v853_v61  ;;  %v621_v3 = vadd.f32 %v1346_v34, %v620_v1  ;;  %v661_v4 = vadd.f32 %v1346_v34, %v660_v2  ;;  %v543_v5 = vpop.f32.mrf.mxu0  ;;  %v583_v6 = vpop.f32.mrf.mxu1 }
  0xd1   : > { %933 = vst.msk [vmem:[%s1366_s5 + $0x1b0] sm:$0xff] %vm417_vm0, %v869_v62  ;;  %v544_v7 = vadd.f32 %v1346_v34, %v543_v5  ;;  %v584_v8 = vadd.f32 %v1346_v34, %v583_v6 }
  0xd2   : > { %886 = vst.msk [vmem:[%s1366_s5 + $0x38] sm:$0xff] %vm417_vm0, %v822_v63  ;;  %v722_v9 = vmax.f32 %v621_v3, 0.0  ;;  %v738_v10 = vmax.f32 %v661_v4, 0.0 }
  0xd3   : > { %902 = vst.msk [vmem:[%s1366_s5 + $0xb8] sm:$0xff] %vm417_vm0, %v838_v0  ;;  %v691_v11 = vmax.f32 %v544_v7, 0.0  ;;  %v707_v12 = vmax.f32 %v584_v8, 0.0 }
  0xd4   : > { %v788_v13 = vmul.f32 %v1352_v38, %v722_v9  ;;  %v804_v14 = vmul.f32 %v1352_v38, %v738_v10 }
  0xd5   : > { %v757_v15 = vmul.f32 %v1352_v38, %v691_v11  ;;  %v773_v16 = vmul.f32 %v1352_v38, %v707_v12 }
  0xd6   : > { %v854_v17 = vadd.f32 %v1359_v41, %v788_v13  ;;  %v870_v18 = vadd.f32 %v1359_v41, %v804_v14 }
  0xd7   : > { %v823_v19 = vadd.f32 %v1359_v41, %v757_v15  ;;  %v839_v20 = vadd.f32 %v1359_v41, %v773_v16  ;;  %v623_v21 = vpop.f32.mrf.mxu2  ;;  %v663_v22 = vpop.f32.mrf.mxu3 }
  0xd8   : > { %918 = vst.msk [vmem:[%s1366_s5 + $0x138] sm:$0xff] %vm417_vm0, %v854_v17  ;;  %v624_v23 = vadd.f32 %v1346_v34, %v623_v21  ;;  %v664_v24 = vadd.f32 %v1346_v34, %v663_v22  ;;  %v545_v25 = vpop.f32.mrf.mxu0  ;;  %v585_v26 = vpop.f32.mrf.mxu1 }
  0xd9   : > { %934 = vst.msk [vmem:[%s1366_s5 + $0x1b8] sm:$0xff] %vm417_vm0, %v870_v18  ;;  %v546_v27 = vadd.f32 %v1346_v34, %v545_v25  ;;  %v586_v28 = vadd.f32 %v1346_v34, %v585_v26 }
  0xda   : > { %887 = vst.msk [vmem:[%s1366_s5 + $0x40] sm:$0xff] %vm417_vm0, %v823_v19  ;;  %v723_v29 = vmax.f32 %v624_v23, 0.0  ;;  %v739_v30 = vmax.f32 %v664_v24, 0.0 }
  0xdb   : > { %903 = vst.msk [vmem:[%s1366_s5 + $0xc0] sm:$0xff] %vm417_vm0, %v839_v20  ;;  %v692_v31 = vmax.f32 %v546_v27, 0.0  ;;  %v708_v32 = vmax.f32 %v586_v28, 0.0 }
  0xdc   : > { %v789_v33 = vmul.f32 %v1352_v38, %v723_v29  ;;  %v805_v35 = vmul.f32 %v1352_v38, %v739_v30 }
  0xdd   : > { %v758_v36 = vmul.f32 %v1352_v38, %v692_v31  ;;  %v774_v37 = vmul.f32 %v1352_v38, %v708_v32 }
  0xde   : > { %v855_v39 = vadd.f32 %v1359_v41, %v789_v33  ;;  %v871_v40 = vadd.f32 %v1359_v41, %v805_v35 }
  0xdf   : > { %v824_v42 = vadd.f32 %v1359_v41, %v758_v36  ;;  %v840_v43 = vadd.f32 %v1359_v41, %v774_v37  ;;  %v625_v44 = vpop.f32.mrf.mxu2  ;;  %v665_v45 = vpop.f32.mrf.mxu3 }
  0xe0   : > { %919 = vst.msk [vmem:[%s1366_s5 + $0x140] sm:$0xff] %vm417_vm0, %v855_v39  ;;  %v626_v46 = vadd.f32 %v1346_v34, %v625_v44  ;;  %v666_v47 = vadd.f32 %v1346_v34, %v665_v45  ;;  %v548_v48 = vpop.f32.mrf.mxu0  ;;  %v588_v49 = vpop.f32.mrf.mxu1 }
  0xe1   : > { %935 = vst.msk [vmem:[%s1366_s5 + $0x1c0] sm:$0xff] %vm417_vm0, %v871_v40  ;;  %v549_v50 = vadd.f32 %v1346_v34, %v548_v48  ;;  %v589_v51 = vadd.f32 %v1346_v34, %v588_v49 }
  0xe2   : > { %888 = vst.msk [vmem:[%s1366_s5 + $0x48] sm:$0xff] %vm417_vm0, %v824_v42  ;;  %v724_v52 = vmax.f32 %v626_v46, 0.0  ;;  %v740_v53 = vmax.f32 %v666_v47, 0.0 }
  0xe3   : > { %904 = vst.msk [vmem:[%s1366_s5 + $0xc8] sm:$0xff] %vm417_vm0, %v840_v43  ;;  %v693_v54 = vmax.f32 %v549_v50, 0.0  ;;  %v709_v55 = vmax.f32 %v589_v51, 0.0 }
  0xe4   : > { %v790_v56 = vmul.f32 %v1352_v38, %v724_v52  ;;  %v806_v57 = vmul.f32 %v1352_v38, %v740_v53 }
  0xe5   : > { %v759_v58 = vmul.f32 %v1352_v38, %v693_v54  ;;  %v775_v59 = vmul.f32 %v1352_v38, %v709_v55 }
  0xe6   : > { %v856_v60 = vadd.f32 %v1359_v41, %v790_v56  ;;  %v872_v61 = vadd.f32 %v1359_v41, %v806_v57 }
  0xe7   : > { %v825_v62 = vadd.f32 %v1359_v41, %v759_v58  ;;  %v841_v63 = vadd.f32 %v1359_v41, %v775_v59  ;;  %v628_v0 = vpop.f32.mrf.mxu2  ;;  %v668_v1 = vpop.f32.mrf.mxu3 }
  0xe8   : > { %920 = vst.msk [vmem:[%s1366_s5 + $0x148] sm:$0xff] %vm417_vm0, %v856_v60  ;;  %v629_v2 = vadd.f32 %v1346_v34, %v628_v0  ;;  %v669_v3 = vadd.f32 %v1346_v34, %v668_v1  ;;  %v550_v4 = vpop.f32.mrf.mxu0  ;;  %v590_v5 = vpop.f32.mrf.mxu1 }
  0xe9   : > { %936 = vst.msk [vmem:[%s1366_s5 + $0x1c8] sm:$0xff] %vm417_vm0, %v872_v61  ;;  %v551_v6 = vadd.f32 %v1346_v34, %v550_v4  ;;  %v591_v7 = vadd.f32 %v1346_v34, %v590_v5 }
  0xea   : > { %889 = vst.msk [vmem:[%s1366_s5 + $0x50] sm:$0xff] %vm417_vm0, %v825_v62  ;;  %v725_v8 = vmax.f32 %v629_v2, 0.0  ;;  %v741_v9 = vmax.f32 %v669_v3, 0.0 }
  0xeb   : > { %905 = vst.msk [vmem:[%s1366_s5 + $0xd0] sm:$0xff] %vm417_vm0, %v841_v63  ;;  %v694_v10 = vmax.f32 %v551_v6, 0.0  ;;  %v710_v11 = vmax.f32 %v591_v7, 0.0 }
  0xec   : > { %v791_v12 = vmul.f32 %v1352_v38, %v725_v8  ;;  %v807_v13 = vmul.f32 %v1352_v38, %v741_v9 }
  0xed   : > { %v760_v14 = vmul.f32 %v1352_v38, %v694_v10  ;;  %v776_v15 = vmul.f32 %v1352_v38, %v710_v11 }
  0xee   : > { %v857_v16 = vadd.f32 %v1359_v41, %v791_v12  ;;  %v873_v17 = vadd.f32 %v1359_v41, %v807_v13 }
  0xef   : > { %v826_v18 = vadd.f32 %v1359_v41, %v760_v14  ;;  %v842_v19 = vadd.f32 %v1359_v41, %v776_v15  ;;  %v630_v20 = vpop.f32.mrf.mxu2  ;;  %v670_v21 = vpop.f32.mrf.mxu3 }
  0xf0   : > { %921 = vst.msk [vmem:[%s1366_s5 + $0x150] sm:$0xff] %vm417_vm0, %v857_v16  ;;  %v631_v22 = vadd.f32 %v1346_v34, %v630_v20  ;;  %v671_v23 = vadd.f32 %v1346_v34, %v670_v21  ;;  %v553_v24 = vpop.f32.mrf.mxu0  ;;  %v593_v25 = vpop.f32.mrf.mxu1 }
  0xf1   : > { %937 = vst.msk [vmem:[%s1366_s5 + $0x1d0] sm:$0xff] %vm417_vm0, %v873_v17  ;;  %v554_v26 = vadd.f32 %v1346_v34, %v553_v24  ;;  %v594_v27 = vadd.f32 %v1346_v34, %v593_v25 }
  0xf2   : > { %890 = vst.msk [vmem:[%s1366_s5 + $0x58] sm:$0xff] %vm417_vm0, %v826_v18  ;;  %v726_v28 = vmax.f32 %v631_v22, 0.0  ;;  %v742_v29 = vmax.f32 %v671_v23, 0.0 }
  0xf3   : > { %906 = vst.msk [vmem:[%s1366_s5 + $0xd8] sm:$0xff] %vm417_vm0, %v842_v19  ;;  %v695_v30 = vmax.f32 %v554_v26, 0.0  ;;  %v711_v31 = vmax.f32 %v594_v27, 0.0 }
  0xf4   : > { %v792_v32 = vmul.f32 %v1352_v38, %v726_v28  ;;  %v808_v33 = vmul.f32 %v1352_v38, %v742_v29 }
  0xf5   : > { %v761_v35 = vmul.f32 %v1352_v38, %v695_v30  ;;  %v777_v36 = vmul.f32 %v1352_v38, %v711_v31 }
  0xf6   : > { %v858_v37 = vadd.f32 %v1359_v41, %v792_v32  ;;  %v874_v39 = vadd.f32 %v1359_v41, %v808_v33 }
  0xf7   : > { %v827_v40 = vadd.f32 %v1359_v41, %v761_v35  ;;  %v843_v42 = vadd.f32 %v1359_v41, %v777_v36  ;;  %v633_v43 = vpop.f32.mrf.mxu2  ;;  %v673_v44 = vpop.f32.mrf.mxu3 }
  0xf8   : > { %922 = vst.msk [vmem:[%s1366_s5 + $0x158] sm:$0xff] %vm417_vm0, %v858_v37  ;;  %v634_v45 = vadd.f32 %v1346_v34, %v633_v43  ;;  %v674_v46 = vadd.f32 %v1346_v34, %v673_v44  ;;  %v555_v47 = vpop.f32.mrf.mxu0  ;;  %v595_v48 = vpop.f32.mrf.mxu1 }
  0xf9   : > { %938 = vst.msk [vmem:[%s1366_s5 + $0x1d8] sm:$0xff] %vm417_vm0, %v874_v39  ;;  %v556_v49 = vadd.f32 %v1346_v34, %v555_v47  ;;  %v596_v50 = vadd.f32 %v1346_v34, %v595_v48 }
  0xfa   : > { %891 = vst.msk [vmem:[%s1366_s5 + $0x60] sm:$0xff] %vm417_vm0, %v827_v40  ;;  %v727_v51 = vmax.f32 %v634_v45, 0.0  ;;  %v743_v52 = vmax.f32 %v674_v46, 0.0 }
  0xfb   : > { %907 = vst.msk [vmem:[%s1366_s5 + $0xe0] sm:$0xff] %vm417_vm0, %v843_v42  ;;  %v696_v53 = vmax.f32 %v556_v49, 0.0  ;;  %v712_v54 = vmax.f32 %v596_v50, 0.0 }
  0xfc   : > { %v793_v55 = vmul.f32 %v1352_v38, %v727_v51  ;;  %v809_v56 = vmul.f32 %v1352_v38, %v743_v52 }
  0xfd   : > { %v762_v57 = vmul.f32 %v1352_v38, %v696_v53  ;;  %v778_v58 = vmul.f32 %v1352_v38, %v712_v54 }
  0xfe   : > { %v859_v59 = vadd.f32 %v1359_v41, %v793_v55  ;;  %v875_v60 = vadd.f32 %v1359_v41, %v809_v56 }
  0xff   : > { %v828_v61 = vadd.f32 %v1359_v41, %v762_v57  ;;  %v844_v62 = vadd.f32 %v1359_v41, %v778_v58  ;;  %v635_v63 = vpop.f32.mrf.mxu2  ;;  %v675_v0 = vpop.f32.mrf.mxu3 }
 0x100   : > { %923 = vst.msk [vmem:[%s1366_s5 + $0x160] sm:$0xff] %vm417_vm0, %v859_v59  ;;  %v636_v1 = vadd.f32 %v1346_v34, %v635_v63  ;;  %v676_v2 = vadd.f32 %v1346_v34, %v675_v0  ;;  %v558_v3 = vpop.f32.mrf.mxu0  ;;  %v598_v4 = vpop.f32.mrf.mxu1 }
 0x101   : > { %939 = vst.msk [vmem:[%s1366_s5 + $0x1e0] sm:$0xff] %vm417_vm0, %v875_v60  ;;  %v559_v5 = vadd.f32 %v1346_v34, %v558_v3  ;;  %v599_v6 = vadd.f32 %v1346_v34, %v598_v4 }
 0x102   : > { %892 = vst.msk [vmem:[%s1366_s5 + $0x68] sm:$0xff] %vm417_vm0, %v828_v61  ;;  %v728_v7 = vmax.f32 %v636_v1, 0.0  ;;  %v744_v8 = vmax.f32 %v676_v2, 0.0 }
 0x103   : > { %908 = vst.msk [vmem:[%s1366_s5 + $0xe8] sm:$0xff] %vm417_vm0, %v844_v62  ;;  %v697_v9 = vmax.f32 %v559_v5, 0.0  ;;  %v713_v10 = vmax.f32 %v599_v6, 0.0 }
 0x104   : > { %v794_v11 = vmul.f32 %v1352_v38, %v728_v7  ;;  %v810_v12 = vmul.f32 %v1352_v38, %v744_v8 }
 0x105   : > { %v763_v13 = vmul.f32 %v1352_v38, %v697_v9  ;;  %v779_v14 = vmul.f32 %v1352_v38, %v713_v10 }
 0x106   : > { %v860_v15 = vadd.f32 %v1359_v41, %v794_v11  ;;  %v876_v16 = vadd.f32 %v1359_v41, %v810_v12 }
 0x107   : > { %v829_v17 = vadd.f32 %v1359_v41, %v763_v13  ;;  %v845_v18 = vadd.f32 %v1359_v41, %v779_v14  ;;  %v638_v19 = vpop.f32.mrf.mxu2  ;;  %v678_v20 = vpop.f32.mrf.mxu3 }
 0x108   : > { %924 = vst.msk [vmem:[%s1366_s5 + $0x168] sm:$0xff] %vm417_vm0, %v860_v15  ;;  %v639_v21 = vadd.f32 %v1346_v34, %v638_v19  ;;  %v679_v22 = vadd.f32 %v1346_v34, %v678_v20  ;;  %v560_v23 = vpop.f32.mrf.mxu0  ;;  %v600_v24 = vpop.f32.mrf.mxu1 }
 0x109   : > { %940 = vst.msk [vmem:[%s1366_s5 + $0x1e8] sm:$0xff] %vm417_vm0, %v876_v16  ;;  %v561_v25 = vadd.f32 %v1346_v34, %v560_v23  ;;  %v601_v26 = vadd.f32 %v1346_v34, %v600_v24 }
 0x10a   : > { %893 = vst.msk [vmem:[%s1366_s5 + $0x70] sm:$0xff] %vm417_vm0, %v829_v17  ;;  %v729_v27 = vmax.f32 %v639_v21, 0.0  ;;  %v745_v28 = vmax.f32 %v679_v22, 0.0 }
 0x10b   : > { %909 = vst.msk [vmem:[%s1366_s5 + $0xf0] sm:$0xff] %vm417_vm0, %v845_v18  ;;  %v698_v29 = vmax.f32 %v561_v25, 0.0  ;;  %v714_v30 = vmax.f32 %v601_v26, 0.0 }
 0x10c   : > { %v795_v31 = vmul.f32 %v1352_v38, %v729_v27  ;;  %v811_v32 = vmul.f32 %v1352_v38, %v745_v28 }
 0x10d   : > { %v764_v33 = vmul.f32 %v1352_v38, %v698_v29  ;;  %v780_v35 = vmul.f32 %v1352_v38, %v714_v30 }
 0x10e   : > { %v861_v36 = vadd.f32 %v1359_v41, %v795_v31  ;;  %v877_v37 = vadd.f32 %v1359_v41, %v811_v32 }
 0x10f   : > { %v830_v39 = vadd.f32 %v1359_v41, %v764_v33  ;;  %v846_v40 = vadd.f32 %v1359_v41, %v780_v35  ;;  %v640_v42 = vpop.f32.mrf.mxu2  ;;  %v680_v43 = vpop.f32.mrf.mxu3 }
 0x110   : > { %925 = vst.msk [vmem:[%s1366_s5 + $0x170] sm:$0xff] %vm417_vm0, %v861_v36  ;;  %v641_v44 = vadd.f32 %v1346_v34, %v640_v42  ;;  %v681_v45 = vadd.f32 %v1346_v34, %v680_v43 }
 0x111   : > { %941 = vst.msk [vmem:[%s1366_s5 + $0x1f0] sm:$0xff] %vm417_vm0, %v877_v37 }
 0x112   : > { %894 = vst.msk [vmem:[%s1366_s5 + $0x78] sm:$0xff] %vm417_vm0, %v830_v39  ;;  %v730_v46 = vmax.f32 %v641_v44, 0.0  ;;  %v746_v47 = vmax.f32 %v681_v45, 0.0 }
 0x113   : > { %910 = vst.msk [vmem:[%s1366_s5 + $0xf8] sm:$0xff] %vm417_vm0, %v846_v40 }
 0x114   : > { %v796_v48 = vmul.f32 %v1352_v38, %v730_v46  ;;  %v812_v49 = vmul.f32 %v1352_v38, %v746_v47 }
 0x116   : > { %v862_v50 = vadd.f32 %v1359_v41, %v796_v48  ;;  %v878_v51 = vadd.f32 %v1359_v41, %v812_v49 }
 0x118   : > { %926 = vst.msk [vmem:[%s1366_s5 + $0x178] sm:$0xff] %vm417_vm0, %v862_v50 }
 0x119   : > { %942 = vst.msk [vmem:[%s1366_s5 + $0x1f8] sm:$0xff] %vm417_vm0, %v878_v51 }
 0x11a PF: > { %s13_s12 = sadd.s32 1, %s1235_s12  }
 0x11b   : > { %p10_p4 = scmp.ge.s32.totalorder %s13_s12, 14  }
 0x11d   :  { %12 = sbr.rel (!%p10_p4) target bundleno = 1 (0x1), region = 62 }

// kernel: _lambda_.8
= control target key start
LH: loop header
LB: loop body
LE: loop exit
PB: predicated region body
PF: predicated region fallthrough
CT: control target
= control target key end

     0   :  { %s2527_s12 = smov 0   ;;  %s3288_s0 = inlined_call_operand.vmem [shape: bf16[1536,288], index: 0, kind: input, shape index: {}]   ;;  %s3289_s1 = inlined_call_operand.vmem [shape: bf16[288,64], index: 1, kind: input, shape index: {}]   ;;  %s3290_s2 = inlined_call_operand.vmem [shape: f32[3,64], index: 2, kind: input, shape index: {}]   ;;  %s3291_s3 = inlined_call_operand.vmem [shape: f32[1536,64], index: 3, kind: output, shape index: {}]  }
   0x1 LB: > { %s1853_s13 = sadd.s32 4294967295, %s2505_s12   ;;  %p1857_p0 = scmp.ge.s32.totalorder %s2505_s12, 1  ;;  %s2505_s12 = sphi %s2527_s12, %s13_s12  }
   0x2   : > { %p139_p1 = scmp.lt.s32.totalorder %s2505_s12, 4 }
   0x4   : > { %p140_p2 = pnand %p1857_p0, %p139_p1 }
   0x5   : > { %s1858_s20 = sshll.u32 (!%p140_p2), %s1853_s13, 6 }
   0x6   : > { %143 = sbr.rel (%p140_p2) target bundleno = 570 (0x23a), region = 32  ;;  %p165_p3 = scmp.lt.s32.totalorder (!%p140_p2), %s1858_s20, 191 }
   0xb   : > { %v2455_v0 = vld [vmem:[%s3289_s1 + $0x38] sm:$0xff]  ;;  %v2541_v1 = vld [vmem:[%s3289_s1 + $0x88] sm:$0xff]  ;;  %v2454_v3 = vld [vmem:[%s3289_s1 + $0x30] sm:$0xff]  ;;  %s3293_s20 = smov (!%p165_p3, %s1858_s20), 191  ;;  %vm932_vm0 = vcmask 261120   ;;  %vm1732_vm1 = vcmask 523264  }
   0xc   : > { %v2546_v2 = vld [vmem:[%s3289_s1 + $0x78] sm:$0xff]  ;;  %1029 = vmatpush.bf16.msra.mxu0 %v2455_v0  ;;  %2466 = vmatpush.bf16.msra.mxu3 %v2455_v0  ;;  %v2556_v4 = vld [vmem:[%s3289_s1 + $0x80] sm:$0xff]  ;;  %v2462_v5 = vld [vmem:[%s3289_s1 + $0x70] sm:$0xff]  ;;  %s2484_s29 = smul.u32 12, %s3293_s20  ;;  %s1861_s8 = sshll.u32 %s3293_s20, 3 }
   0xd   : > { %1373 = vmatpush.bf16.msra.mxu2 %v2541_v1  ;;  %1198 = vmatpush.bf16.msra.mxu1 %v2546_v2  ;;  %v2453_v6 = vld [vmem:[%s3289_s1 + $0x28] sm:$0xff]  ;;  %v2452_v11 = vld [vmem:[%s3289_s1 + $0x20] sm:$0xff]  ;;  %v2451_v13 = vld [vmem:[%s3289_s1 + $0x18] sm:$0xff]  ;;  %s2719_s20 = scalar_lea.vmem %s3291_s3, %s1861_s8 }
   0xe   : > { %s2571_s5 = scalar_lea.vmem %s3288_s0, %s2484_s29  ;;  %v2461_v7 = vld [vmem:[%s3289_s1 + $0x68] sm:$0xff]  ;;  %v2460_v12 = vld [vmem:[%s3289_s1 + $0x60] sm:$0xff]  ;;  %v2459_v14 = vld [vmem:[%s3289_s1 + $0x58] sm:$0xff] }
   0xf   : > { %v1872_v8 = vld [vmem:[%s2571_s5 + $0x8] sm:$0xf]  ;;  %v2354_v9 = vld [vmem:[%s2571_s5 + $0x10] sm:$0xf0]  ;;  %v1884_v17 = vld [vmem:[%s2571_s5 + $0x20] sm:$0xf] }
  0x10   : > { %1030 = vmatpush.bf16.msra.mxu0 %v2454_v3  ;;  %2467 = vmatpush.bf16.msra.mxu3 %v2454_v3  ;;  %v1873_v10 = vor.u32 %v2354_v9, %v1872_v8  ;;  %v2450_v15 = vld [vmem:[%s3289_s1 + $0x10] sm:$0xff]  ;;  %v2357_v18 = vld [vmem:[%s2571_s5 + $0x28] sm:$0xf0]  ;;  %v2448_v22 = vld [vmem:[%s3289_s1] sm:$0xff] }
  0x11   : > { %1374 = vmatpush.bf16.msra.mxu2 %v2556_v4  ;;  %1199 = vmatpush.bf16.msra.mxu1 %v2462_v5  ;;  %v2458_v16 = vld [vmem:[%s3289_s1 + $0x50] sm:$0xff]  ;;  %v2449_v19 = vld [vmem:[%s3289_s1 + $0x8] sm:$0xff]  ;;  %v1885_v20 = vor.u32 %v2357_v18, %v1884_v17  ;;  %v1864_v23 = vld [vmem:[%s2571_s5] sm:$0xf] }
  0x12   : > { %v2457_v21 = vld [vmem:[%s3289_s1 + $0x48] sm:$0xff]  ;;  %v2152_v25 = vld [vmem:[%s2571_s5 + $0x240] sm:$0xf]  ;;  %v2352_v28 = vld [vmem:[%s2571_s5 + $0x4] sm:$0xf] }
  0x13   : > { %v2353_v24 = vld [vmem:[%s2571_s5 + $0x8] sm:$0xf0]  ;;  %v2456_v27 = vld [vmem:[%s3289_s1 + $0x40] sm:$0xff]  ;;  %v1866_v29 = vld [vmem:[%s2571_s5 + $0xc] sm:$0xf0] }
  0x14   : > { %1031 = vmatpush.bf16.msra.mxu0 %v2453_v6  ;;  %2468 = vmatpush.bf16.msra.mxu3 %v2453_v6  ;;  %v2425_v26 = vld [vmem:[%s2571_s5 + $0x248] sm:$0xf0]  ;;  %v1865_v30 = vor.u32 %v2353_v24, %v1864_v23  ;;  %v1869_v32 = vor.u32 %v2352_v28, %v1866_v29  ;;  %v1896_v33 = vld [vmem:[%s2571_s5 + $0x38] sm:$0xf]  ;;  %v2360_v34 = vld [vmem:[%s2571_s5 + $0x40] sm:$0xf0] }
  0x15   : > { %2318 = vmatmul.msk.bf16.vlgmr.msra.gmra.mxu2 %vm932_vm0, %v1873_v10  ;;  %1200 = vmatpush.bf16.msra.mxu1 %v2461_v7  ;;  %v2153_v31 = vor.u32 %v2425_v26, %v2152_v25  ;;  %v1897_v35 = vor.u32 %v2360_v34, %v1896_v33  ;;  %v1876_v36 = vld [vmem:[%s2571_s5 + $0x18] sm:$0xf]  ;;  %v2356_v37 = vld [vmem:[%s2571_s5 + $0x20] sm:$0xf0]  ;;  %v2355_v40 = vld [vmem:[%s2571_s5 + $0x1c] sm:$0xf] }
  0x16   : > { %v2164_v38 = vld [vmem:[%s2571_s5 + $0x258] sm:$0xf]  ;;  %v2428_v39 = vld [vmem:[%s2571_s5 + $0x260] sm:$0xf0]  ;;  %v1878_v41 = vld [vmem:[%s2571_s5 + $0x24] sm:$0xf0]  ;;  %v1877_v42 = vor.u32 %v2356_v37, %v1876_v36 }
  0x17   : > { %v2165_v43 = vor.u32 %v2428_v39, %v2164_v38  ;;  %v1881_v44 = vor.u32 %v2355_v40, %v1878_v41  ;;  %v1908_v45 = vld [vmem:[%s2571_s5 + $0x50] sm:$0xf]  ;;  %v2363_v46 = vld [vmem:[%s2571_s5 + $0x58] sm:$0xf0]  ;;  %v2358_v52 = vld [vmem:[%s2571_s5 + $0x34] sm:$0xf] }
  0x18   : > { %1032 = vmatpush.bf16.msra.mxu0 %v2452_v11  ;;  %2469 = vmatpush.bf16.msra.mxu3 %v2452_v11  ;;  %v1909_v47 = vor.u32 %v2363_v46, %v1908_v45  ;;  %v1888_v48 = vld [vmem:[%s2571_s5 + $0x30] sm:$0xf]  ;;  %v2359_v49 = vld [vmem:[%s2571_s5 + $0x38] sm:$0xf0]  ;;  %v1890_v53 = vld [vmem:[%s2571_s5 + $0x3c] sm:$0xf0] }
  0x19   : > { %1201 = vmatpush.bf16.msra.mxu1 %v2460_v12  ;;  %v2176_v50 = vld [vmem:[%s2571_s5 + $0x270] sm:$0xf]  ;;  %v2431_v51 = vld [vmem:[%s2571_s5 + $0x278] sm:$0xf0]  ;;  %v1889_v54 = vor.u32 %v2359_v49, %v1888_v48  ;;  %v1893_v56 = vor.u32 %v2358_v52, %v1890_v53  ;;  %v1920_v57 = vld [vmem:[%s2571_s5 + $0x68] sm:$0xf] }
  0x1a   : > { %v2177_v55 = vor.u32 %v2431_v51, %v2176_v50  ;;  %v2366_v58 = vld [vmem:[%s2571_s5 + $0x70] sm:$0xf0]  ;;  %v1900_v60 = vld [vmem:[%s2571_s5 + $0x48] sm:$0xf]  ;;  %v2361_v0 = vld [vmem:[%s2571_s5 + $0x4c] sm:$0xf] }
  0x1b   : > { %v1921_v59 = vor.u32 %v2366_v58, %v1920_v57  ;;  %v2362_v61 = vld [vmem:[%s2571_s5 + $0x50] sm:$0xf0]  ;;  %v2188_v62 = vld [vmem:[%s2571_s5 + $0x288] sm:$0xf]  ;;  %v2369_v6 = vld [vmem:[%s2571_s5 + $0x88] sm:$0xf0] }
  0x1c   : > { %1033 = vmatpush.bf16.msra.mxu0 %v2451_v13  ;;  %2470 = vmatpush.bf16.msra.mxu3 %v2451_v13  ;;  %v2434_v63 = vld [vmem:[%s2571_s5 + $0x290] sm:$0xf0]  ;;  %v1912_v8 = vld [vmem:[%s2571_s5 + $0x60] sm:$0xf]  ;;  %v2365_v9 = vld [vmem:[%s2571_s5 + $0x68] sm:$0xf0] }
  0x1d   : > { %1202 = vmatpush.bf16.msra.mxu1 %v2459_v14  ;;  %v2189_v3 = vor.u32 %v2434_v63, %v2188_v62  ;;  %v2200_v10 = vld [vmem:[%s2571_s5 + $0x2a0] sm:$0xf]  ;;  %v2437_v11 = vld [vmem:[%s2571_s5 + $0x2a8] sm:$0xf0]  ;;  %v1914_v13 = vld [vmem:[%s2571_s5 + $0x6c] sm:$0xf0] }
  0x1e   : > { %v1944_v17 = vld [vmem:[%s2571_s5 + $0x98] sm:$0xf]  ;;  %v2372_v18 = vld [vmem:[%s2571_s5 + $0xa0] sm:$0xf0]  ;;  %v2367_v24 = vld [vmem:[%s2571_s5 + $0x7c] sm:$0xf] }
  0x1f   : > { %v2440_v23 = vld [vmem:[%s2571_s5 + $0x2c0] sm:$0xf0]  ;;  %v1926_v25 = vld [vmem:[%s2571_s5 + $0x84] sm:$0xf0]  ;;  %v1956_v29 = vld [vmem:[%s2571_s5 + $0xb0] sm:$0xf] }
  0x20   : > { %1034 = vmatpush.bf16.msra.mxu0 %v2450_v15  ;;  %2471 = vmatpush.bf16.msra.mxu3 %v2450_v15  ;;  %v2201_v15 = vor.u32 %v2437_v11, %v2200_v10  ;;  %v1929_v28 = vor.u32 %v2367_v24, %v1926_v25  ;;  %v2371_v33 = vld [vmem:[%s2571_s5 + $0x98] sm:$0xf0]  ;;  %v2224_v34 = vld [vmem:[%s2571_s5 + $0x2d0] sm:$0xf]  ;;  %v2370_v36 = vld [vmem:[%s2571_s5 + $0x94] sm:$0xf] }
  0x21   : > { %1203 = vmatpush.bf16.msra.mxu1 %v2458_v16  ;;  %v1938_v37 = vld [vmem:[%s2571_s5 + $0x9c] sm:$0xf0]  ;;  %v1968_v41 = vld [vmem:[%s2571_s5 + $0xc8] sm:$0xf]  ;;  %v2374_v45 = vld [vmem:[%s2571_s5 + $0xb0] sm:$0xf0] }
  0x22   : > { %v1941_v40 = vor.u32 %v2370_v36, %v1938_v37  ;;  %v2236_v46 = vld [vmem:[%s2571_s5 + $0x2e8] sm:$0xf]  ;;  %v2373_v48 = vld [vmem:[%s2571_s5 + $0xac] sm:$0xf]  ;;  %v1950_v49 = vld [vmem:[%s2571_s5 + $0xb4] sm:$0xf0] }
  0x23   : > { %v1953_v53 = vor.u32 %v2373_v48, %v1950_v49  ;;  %v1960_v58 = vld [vmem:[%s2571_s5 + $0xc0] sm:$0xf]  ;;  %v2376_v63 = vld [vmem:[%s2571_s5 + $0xc4] sm:$0xf]  ;;  %v1972_v24 = vld [vmem:[%s2571_s5 + $0xd8] sm:$0xf] }
  0x24   : > { %1035 = vmatpush.bf16.msra.mxu0 %v2449_v19  ;;  %2472 = vmatpush.bf16.msra.mxu3 %v2449_v19  ;;  %v1945_v19 = vor.u32 %v2372_v18, %v1944_v17  ;;  %v2694_v62 = vld [vmem:[%s3290_s2] ss:$0 sm:$0xff]  ;;  %v2702_v10 = vld [vmem:[%s3290_s2 + $0x1] ss:$0 sm:$0xff]  ;;  %v2380_v25 = vld [vmem:[%s2571_s5 + $0xe0] sm:$0xf0] }
  0x25   : > { %2319 = vmatmul.msk.bf16.gmra.mxu2 %vm932_vm0, %v1885_v20  ;;  %1204 = vmatpush.bf16.msra.mxu1 %v2457_v21  ;;  %v1924_v20 = vld [vmem:[%s2571_s5 + $0x78] sm:$0xf] }
  0x28   : > { %1036 = vmatpush.bf16.msra.mxu0 %v2448_v22  ;;  %2473 = vmatpush.bf16.msra.mxu3 %v2448_v22  ;;  %v2212_v22 = vld [vmem:[%s2571_s5 + $0x2b8] sm:$0xf] }
  0x29   : > { %1205 = vmatpush.bf16.msra.mxu1 %v2456_v27 }
  0x2b   : > { %1037 = vmatmul.bf16.vlgmr.msra.gmra.mxu0 %v1865_v30  ;;  %1157 = vmatmul.bf16.vlgmr.msra.gmra.mxu3 %v2153_v31  ;;  %v2375_v30 = vld [vmem:[%s2571_s5 + $0xb8] sm:$0xf0] }
  0x2c   : > { %2474 = vmatpush.bf16.msrb.mxu3 %v2546_v2  ;;  %1206 = vmatmul.bf16.vlgmr.msra.gmra.mxu1 %v1869_v32  ;;  %v1901_v2 = vor.u32 %v2362_v61, %v1900_v60  ;;  %v1957_v31 = vor.u32 %v2375_v30, %v1956_v29  ;;  %v1936_v32 = vld [vmem:[%s2571_s5 + $0x90] sm:$0xf]  ;;  %v2424_v60 = vld [vmem:[%s2571_s5 + $0x244] sm:$0xf]  ;;  %v2379_v29 = vld [vmem:[%s2571_s5 + $0xdc] sm:$0xf] }
  0x2d   : > { %v1937_v38 = vor.u32 %v2371_v33, %v1936_v32  ;;  %v2154_v61 = vld [vmem:[%s2571_s5 + $0x24c] sm:$0xf0]  ;;  %v1974_v30 = vld [vmem:[%s2571_s5 + $0xe4] sm:$0xf0]  ;;  %v1973_v33 = vor.u32 %v2380_v25, %v1972_v24 }
  0x2e   : > { %v1977_v37 = vor.u32 %v2379_v29, %v1974_v30  ;;  %v2386_v29 = vld [vmem:[%s2571_s5 + $0x110] sm:$0xf0]  ;;  %v2433_v30 = vld [vmem:[%s2571_s5 + $0x28c] sm:$0xf] }
  0x30   : > { %2475 = vmatpush.bf16.msrb.mxu3 %v2462_v5  ;;  %v1932_v5 = vld [vmem:[%s2571_s5 + $0x80] sm:$0xf] }
  0x34   : > { %2476 = vmatpush.bf16.msrb.mxu3 %v2461_v7  ;;  %v1933_v7 = vor.u32 %v2369_v6, %v1932_v5 }
  0x35   : > { %2320 = vmatmul.msk.bf16.gmra.mxu2 %vm932_vm0, %v1897_v35  ;;  %v2443_v35 = vld [vmem:[%s2571_s5 + $0x2d8] sm:$0xf0] }
  0x36   : > { %v2225_v39 = vor.u32 %v2443_v35, %v2224_v34 }
  0x38   : > { %2477 = vmatpush.bf16.msrb.mxu3 %v2460_v12  ;;  %v2364_v12 = vld [vmem:[%s2571_s5 + $0x64] sm:$0xf] }
  0x3b   : > { %1042 = vmatmul.bf16.gmra.mxu0 %v1877_v42  ;;  %1162 = vmatmul.bf16.gmra.mxu3 %v2165_v43  ;;  %v2378_v42 = vld [vmem:[%s2571_s5 + $0xd0] sm:$0xf0] }
  0x3c   : > { %2478 = vmatpush.bf16.msrb.mxu3 %v2459_v14  ;;  %1211 = vmatmul.bf16.gmra.mxu1 %v1881_v44  ;;  %v1913_v14 = vor.u32 %v2365_v9, %v1912_v8  ;;  %v1969_v43 = vor.u32 %v2378_v42, %v1968_v41  ;;  %v1948_v44 = vld [vmem:[%s2571_s5 + $0xa8] sm:$0xf] }
  0x3d   : > { %v1949_v50 = vor.u32 %v2374_v45, %v1948_v44  ;;  %v2004_v45 = vld [vmem:[%s2571_s5 + $0x110] sm:$0xf] }
  0x40   : > { %2479 = vmatpush.bf16.msrb.mxu3 %v2458_v16  ;;  %v1917_v16 = vor.u32 %v2364_v12, %v1914_v13  ;;  %v1992_v12 = vld [vmem:[%s2571_s5 + $0xf8] sm:$0xf]  ;;  %v2384_v13 = vld [vmem:[%s2571_s5 + $0x100] sm:$0xf0] }
  0x44   : > { %2480 = vmatpush.bf16.msrb.mxu3 %v2457_v21  ;;  %v2368_v21 = vld [vmem:[%s2571_s5 + $0x80] sm:$0xf0] }
  0x45   : > { %2321 = vmatmul.msk.bf16.gmra.mxu2 %vm932_vm0, %v1909_v47  ;;  %v1925_v26 = vor.u32 %v2368_v21, %v1924_v20  ;;  %v2446_v47 = vld [vmem:[%s2571_s5 + $0x2f0] sm:$0xf0]  ;;  %v1993_v21 = vor.u32 %v2384_v13, %v1992_v12 }
  0x46   : > { %v2237_v51 = vor.u32 %v2446_v47, %v2236_v46  ;;  %v2387_v46 = vld [vmem:[%s2571_s5 + $0x118] sm:$0xf0] }
  0x48   : > { %2481 = vmatpush.bf16.msrb.mxu3 %v2456_v27  ;;  %v2213_v27 = vor.u32 %v2440_v23, %v2212_v22 }
  0x4b   : > { %1047 = vmatmul.bf16.gmra.mxu0 %v1889_v54  ;;  %1167 = vmatmul.bf16.gmra.mxu3 %v2177_v55  ;;  %v1980_v54 = vld [vmem:[%s2571_s5 + $0xe0] sm:$0xf]  ;;  %v2381_v55 = vld [vmem:[%s2571_s5 + $0xe8] sm:$0xf0] }
  0x4c   : > { %2482 = vmatpush.bf16.msra.mxu3 %v2541_v1  ;;  %1216 = vmatmul.bf16.gmra.mxu1 %v1893_v56  ;;  %v1902_v1 = vld [vmem:[%s2571_s5 + $0x54] sm:$0xf0]  ;;  %v1981_v57 = vor.u32 %v2381_v55, %v1980_v54 }
  0x50   : > { %2483 = vmatpush.bf16.msra.mxu3 %v2556_v4  ;;  %v1905_v4 = vor.u32 %v2361_v0, %v1902_v1  ;;  %v1962_v0 = vld [vmem:[%s2571_s5 + $0xcc] sm:$0xf0] }
  0x51   : > { %v1965_v5 = vor.u32 %v2376_v63, %v1962_v0  ;;  %v1986_v63 = vld [vmem:[%s2571_s5 + $0xfc] sm:$0xf0] }
  0x55   : > { %2322 = vmatmul.msk.bf16.gmra.mxu2 %vm932_vm0, %v1921_v59  ;;  %v2377_v59 = vld [vmem:[%s2571_s5 + $0xc8] sm:$0xf0] }
  0x56   : > { %v1961_v1 = vor.u32 %v2377_v59, %v1960_v58  ;;  %v2430_v58 = vld [vmem:[%s2571_s5 + $0x274] sm:$0xf]  ;;  %v2178_v59 = vld [vmem:[%s2571_s5 + $0x27c] sm:$0xf0] }
  0x5b   : > { %1052 = vmatmul.bf16.gmra.mxu0 %v1901_v2  ;;  %1172 = vmatmul.bf16.gmra.mxu3 %v2189_v3  ;;  %v2157_v2 = vor.u32 %v2424_v60, %v2154_v61  ;;  %v2382_v61 = vld [vmem:[%s2571_s5 + $0xf4] sm:$0xf] }
  0x5c   : > { %1221 = vmatmul.bf16.gmra.mxu1 %v1905_v4 }
  0x65   : > { %2323 = vmatmul.msk.bf16.gmra.mxu2 %vm932_vm0, %v1933_v7 }
  0x6b   : > { %1057 = vmatmul.bf16.gmra.mxu0 %v1913_v14  ;;  %1177 = vmatmul.bf16.gmra.mxu3 %v2201_v15  ;;  %v2712_v15 = vld [vmem:[%s3290_s2 + $0x2] ss:$0 sm:$0xff] }
  0x6c   : > { %1226 = vmatmul.bf16.gmra.mxu1 %v1917_v16 }
  0x75   : > { %2324 = vmatmul.msk.bf16.gmra.mxu2 %vm932_vm0, %v1945_v19 }
  0x7b   : > { %1062 = vmatmul.bf16.gmra.mxu0 %v1925_v26  ;;  %1182 = vmatmul.bf16.gmra.mxu3 %v2213_v27  ;;  %v2427_v26 = vld [vmem:[%s2571_s5 + $0x25c] sm:$0xf]  ;;  %v2166_v27 = vld [vmem:[%s2571_s5 + $0x264] sm:$0xf0] }
  0x7c   : > { %1231 = vmatmul.bf16.gmra.mxu1 %v1929_v28  ;;  %v2169_v34 = vor.u32 %v2427_v26, %v2166_v27 }
  0x85   : > { %2325 = vmatmul.msk.bf16.gmra.mxu2 %vm932_vm0, %v1957_v31 }
  0x8b   : > { %1067 = vmatmul.bf16.gmra.mxu0 %v1937_v38  ;;  %1187 = vmatmul.bf16.gmra.mxu3 %v2225_v39 }
  0x8c   : > { %1236 = vmatmul.bf16.gmra.mxu1 %v1941_v40 }
  0x95   : > { %2326 = vmatmul.msk.bf16.gmra.mxu2 %vm932_vm0, %v1969_v43 }
  0x98   : > { %v1376_v52 = vpop.f32.mrf.mxu2 }
  0x9b   : > { %1072 = vmatmul.bf16.gmra.mxu0 %v1949_v50  ;;  %1192 = vmatmul.bf16.gmra.mxu3 %v2237_v51 }
  0x9c   : > { %1241 = vmatmul.bf16.gmra.mxu1 %v1953_v53  ;;  %v2005_v53 = vor.u32 %v2387_v46, %v2004_v45 }
  0xa0   : > { %v1378_v56 = vpop.f32.mrf.mxu2 }
  0xa5   : > { %2327 = vmatmul.msk.bf16.gmra.mxu2 %vm932_vm0, %v1981_v57  ;;  %v2383_v57 = vld [vmem:[%s2571_s5 + $0xf8] sm:$0xf0] }
  0xa8   : > { %v1381_v3 = vpop.f32.mrf.mxu2  ;;  %v1038_v4 = vpop.f32.mrf.mxu0 }
  0xa9   : > { %v1039_v6 = vadd.f32 %v2694_v62, %v1038_v4  ;;  %v1207_v7 = vpop.f32.mrf.mxu1 }
  0xab   : > { %v1208_v8 = vadd.f32 %v1207_v7, %v1039_v6  ;;  %1077 = vmatmul.bf16.gmra.mxu0 %v1961_v1  ;;  %1326 = vmatmul.bf16.vlgmr.msrb.gmra.mxu3 %v2157_v2  ;;  %v1989_v6 = vor.u32 %v2382_v61, %v1986_v63  ;;  %v2008_v63 = vld [vmem:[%s2571_s5 + $0x120] sm:$0xf] }
  0xac   : > { %1246 = vmatmul.bf16.gmra.mxu1 %v1965_v5 }
  0xad   : > { %v1377_v9 = vadd.f32 %v1376_v52, %v1208_v8 }
  0xae   : > { %v2704_v11 = vpop.f32.mrf.mxu3 }
  0xaf   : > { %v1536_v14 = vmax.f32 %v1377_v9, 0.0 }
  0xb0   : > { %v1383_v16 = vpop.f32.mrf.mxu2  ;;  %v1040_v17 = vpop.f32.mrf.mxu0 }
  0xb1   : > { %v1602_v18 = vmul.f32 %v2702_v10, %v1536_v14  ;;  %v1041_v19 = vadd.f32 %v2694_v62, %v1040_v17  ;;  %v1209_v20 = vpop.f32.mrf.mxu1  ;;  %v2016_v17 = vld [vmem:[%s2571_s5 + $0x128] sm:$0xf] }
  0xb3   : > { %v1668_v22 = vadd.f32 %v2712_v15, %v1602_v18  ;;  %v1210_v23 = vadd.f32 %v1209_v20, %v1041_v19  ;;  %v2390_v18 = vld [vmem:[%s2571_s5 + $0x130] sm:$0xf0] }
  0xb4   : > { %v2017_v25 = vor.u32 %v2390_v18, %v2016_v17 }
  0xb5   : > { %1733 = vst.msk [vmem:[%s2719_s20] sm:$0xff] %vm1732_vm1, %v1668_v22  ;;  %v1379_v28 = vadd.f32 %v1378_v56, %v1210_v23  ;;  %2328 = vmatmul.msk.bf16.gmra.mxu2 %vm932_vm0, %v1993_v21  ;;  %v1984_v56 = vld [vmem:[%s2571_s5 + $0xf0] sm:$0xf] }
  0xb6   : > { %v2731_v31 = vpop.f32.mrf.mxu3  ;;  %v1985_v2 = vor.u32 %v2383_v57, %v1984_v56 }
  0xb7   : > { %v1537_v32 = vmax.f32 %v1379_v28, 0.0  ;;  %v1996_v28 = vld [vmem:[%s2571_s5 + $0x108] sm:$0xf] }
  0xb8   : > { %v1386_v35 = vpop.f32.mrf.mxu2  ;;  %v1043_v36 = vpop.f32.mrf.mxu0 }
  0xb9   : > { %v1603_v38 = vmul.f32 %v2702_v10, %v1537_v32  ;;  %v1044_v39 = vadd.f32 %v2694_v62, %v1043_v36  ;;  %v1212_v40 = vpop.f32.mrf.mxu1  ;;  %v2190_v32 = vld [vmem:[%s2571_s5 + $0x294] sm:$0xf0] }
  0xbb   : > { %v1669_v41 = vadd.f32 %v2712_v15, %v1603_v38  ;;  %v1213_v42 = vadd.f32 %v1212_v40, %v1044_v39  ;;  %1082 = vmatmul.bf16.gmra.mxu0 %v1973_v33  ;;  %1331 = vmatmul.bf16.gmra.mxu3 %v2169_v34  ;;  %v2385_v34 = vld [vmem:[%s2571_s5 + $0x10c] sm:$0xf]  ;;  %v1997_v38 = vor.u32 %v2386_v29, %v1996_v28 }
  0xbc   : > { %1251 = vmatmul.bf16.gmra.mxu1 %v1977_v37  ;;  %v2193_v39 = vor.u32 %v2433_v30, %v2190_v32 }
  0xbd   : > { %1734 = vst.msk [vmem:[%s2719_s20 + $0x8] sm:$0xff] %vm1732_vm1, %v1669_v41  ;;  %v1382_v43 = vadd.f32 %v1381_v3, %v1213_v42  ;;  %v2181_v3 = vor.u32 %v2430_v58, %v2178_v59 }
  0xbe   : > { %v2738_v44 = vpop.f32.mrf.mxu3 }
  0xbf   : > { %v1538_v47 = vmax.f32 %v1382_v43, 0.0 }
  0xc0   : > { %v1388_v48 = vpop.f32.mrf.mxu2  ;;  %v1045_v49 = vpop.f32.mrf.mxu0 }
  0xc1   : > { %v1604_v50 = vmul.f32 %v2702_v10, %v1538_v47  ;;  %v1046_v51 = vadd.f32 %v2694_v62, %v1045_v49  ;;  %v1214_v52 = vpop.f32.mrf.mxu1 }
  0xc3   : > { %v1670_v54 = vadd.f32 %v2712_v15, %v1604_v50  ;;  %v1215_v55 = vadd.f32 %v1214_v52, %v1046_v51  ;;  %v2028_v51 = vld [vmem:[%s2571_s5 + $0x140] sm:$0xf]  ;;  %v2393_v52 = vld [vmem:[%s2571_s5 + $0x148] sm:$0xf0] }
  0xc4   : > { %v2029_v59 = vor.u32 %v2393_v52, %v2028_v51 }
  0xc5   : > { %1735 = vst.msk [vmem:[%s2719_s20 + $0x10] sm:$0xff] %vm1732_vm1, %v1670_v54  ;;  %v1384_v60 = vadd.f32 %v1383_v16, %v1215_v55  ;;  %2329 = vmatmul.msk.bf16.gmra.mxu2 %vm932_vm0, %v2005_v53 }
  0xc6   : > { %v2754_v0 = vpop.f32.mrf.mxu3 }
  0xc7   : > { %v1539_v1 = vmax.f32 %v1384_v60, 0.0 }
  0xc8   : > { %v1391_v4 = vpop.f32.mrf.mxu2  ;;  %v1048_v5 = vpop.f32.mrf.mxu0 }
  0xc9   : > { %v1605_v7 = vmul.f32 %v2702_v10, %v1539_v1  ;;  %v1049_v8 = vadd.f32 %v2694_v62, %v1048_v5  ;;  %v1217_v9 = vpop.f32.mrf.mxu1  ;;  %v2389_v1 = vld [vmem:[%s2571_s5 + $0x128] sm:$0xf0]  ;;  %v2388_v5 = vld [vmem:[%s2571_s5 + $0x124] sm:$0xf] }
  0xcb   : > { %v1671_v12 = vadd.f32 %v2712_v15, %v1605_v7  ;;  %v1218_v13 = vadd.f32 %v1217_v9, %v1049_v8  ;;  %1087 = vmatmul.bf16.gmra.mxu0 %v1985_v2  ;;  %1336 = vmatmul.bf16.gmra.mxu3 %v2181_v3  ;;  %v2436_v2 = vld [vmem:[%s2571_s5 + $0x2a4] sm:$0xf]  ;;  %v2202_v3 = vld [vmem:[%s2571_s5 + $0x2ac] sm:$0xf0]  ;;  %v2009_v9 = vor.u32 %v2389_v1, %v2008_v63  ;;  %v2399_v63 = vld [vmem:[%s2571_s5 + $0x178] sm:$0xf0] }
  0xcc   : > { %1256 = vmatmul.bf16.gmra.mxu1 %v1989_v6  ;;  %v2010_v6 = vld [vmem:[%s2571_s5 + $0x12c] sm:$0xf0] }
  0xcd   : > { %1736 = vst.msk [vmem:[%s2719_s20 + $0x18] sm:$0xff] %vm1732_vm1, %v1671_v12  ;;  %v1387_v14 = vadd.f32 %v1386_v35, %v1218_v13  ;;  %v1998_v35 = vld [vmem:[%s2571_s5 + $0x114] sm:$0xf0]  ;;  %v2205_v12 = vor.u32 %v2436_v2, %v2202_v3  ;;  %v2013_v17 = vor.u32 %v2388_v5, %v2010_v6 }
  0xce   : > { %v2761_v16 = vpop.f32.mrf.mxu3  ;;  %v2001_v42 = vor.u32 %v2385_v34, %v1998_v35 }
  0xcf   : > { %v1540_v19 = vmax.f32 %v1387_v14, 0.0 }
  0xd0   : > { %v1393_v20 = vpop.f32.mrf.mxu2  ;;  %v1050_v21 = vpop.f32.mrf.mxu0 }
  0xd1   : > { %v1606_v22 = vmul.f32 %v2702_v10, %v1540_v19  ;;  %v1051_v23 = vadd.f32 %v2694_v62, %v1050_v21  ;;  %v1219_v24 = vpop.f32.mrf.mxu1 }
  0xd3   : > { %v1672_v26 = vadd.f32 %v2712_v15, %v1606_v22  ;;  %v1220_v27 = vadd.f32 %v1219_v24, %v1051_v23 }
  0xd5   : > { %1737 = vst.msk [vmem:[%s2719_s20 + $0x20] sm:$0xff] %vm1732_vm1, %v1672_v26  ;;  %v1389_v33 = vadd.f32 %v1388_v48, %v1220_v27  ;;  %2330 = vmatmul.msk.bf16.gmra.mxu2 %vm932_vm0, %v2017_v25  ;;  %v2040_v25 = vld [vmem:[%s2571_s5 + $0x158] sm:$0xf]  ;;  %v2396_v26 = vld [vmem:[%s2571_s5 + $0x160] sm:$0xf0] }
  0xd6   : > { %v2777_v36 = vpop.f32.mrf.mxu3  ;;  %v2041_v34 = vor.u32 %v2396_v26, %v2040_v25 }
  0xd7   : > { %v1541_v37 = vmax.f32 %v1389_v33, 0.0 }
  0xd8   : > { %v1396_v40 = vpop.f32.mrf.mxu2  ;;  %v1053_v41 = vpop.f32.mrf.mxu0 }
  0xd9   : > { %v1607_v43 = vmul.f32 %v2702_v10, %v1541_v37  ;;  %v1054_v45 = vadd.f32 %v2694_v62, %v1053_v41  ;;  %v1222_v46 = vpop.f32.mrf.mxu1  ;;  %v2214_v41 = vld [vmem:[%s2571_s5 + $0x2c4] sm:$0xf0] }
  0xdb   : > { %v1673_v47 = vadd.f32 %v2712_v15, %v1607_v43  ;;  %v1223_v48 = vadd.f32 %v1222_v46, %v1054_v45  ;;  %1092 = vmatmul.bf16.gmra.mxu0 %v1997_v38  ;;  %1341 = vmatmul.bf16.gmra.mxu3 %v2193_v39  ;;  %v2020_v38 = vld [vmem:[%s2571_s5 + $0x138] sm:$0xf]  ;;  %v2392_v39 = vld [vmem:[%s2571_s5 + $0x140] sm:$0xf0]  ;;  %v2391_v43 = vld [vmem:[%s2571_s5 + $0x13c] sm:$0xf] }
  0xdc   : > { %1261 = vmatmul.bf16.gmra.mxu1 %v2001_v42  ;;  %v2022_v45 = vld [vmem:[%s2571_s5 + $0x144] sm:$0xf0] }
  0xdd   : > { %1738 = vst.msk [vmem:[%s2719_s20 + $0x28] sm:$0xff] %vm1732_vm1, %v1673_v47  ;;  %v1392_v49 = vadd.f32 %v1391_v4, %v1223_v48  ;;  %v2021_v48 = vor.u32 %v2392_v39, %v2020_v38  ;;  %v2064_v39 = vld [vmem:[%s2571_s5 + $0x188] sm:$0xf] }
  0xde   : > { %v2784_v50 = vpop.f32.mrf.mxu3 }
  0xdf   : > { %v1542_v53 = vmax.f32 %v1392_v49, 0.0 }
  0xe0   : > { %v1398_v54 = vpop.f32.mrf.mxu2  ;;  %v1055_v55 = vpop.f32.mrf.mxu0 }
  0xe1   : > { %v1608_v56 = vmul.f32 %v2702_v10, %v1542_v53  ;;  %v1056_v57 = vadd.f32 %v2694_v62, %v1055_v55  ;;  %v1224_v58 = vpop.f32.mrf.mxu1  ;;  %v2025_v53 = vor.u32 %v2391_v43, %v2022_v45 }
  0xe3   : > { %v1674_v60 = vadd.f32 %v2712_v15, %v1608_v56  ;;  %v1225_v61 = vadd.f32 %v1224_v58, %v1056_v57 }
  0xe5   : > { %1739 = vst.msk [vmem:[%s2719_s20 + $0x30] sm:$0xff] %vm1732_vm1, %v1674_v60  ;;  %v1394_v4 = vadd.f32 %v1393_v20, %v1225_v61  ;;  %2331 = vmatmul.msk.bf16.gmra.mxu2 %vm932_vm0, %v2029_v59  ;;  %v2052_v61 = vld [vmem:[%s2571_s5 + $0x170] sm:$0xf] }
  0xe6   : > { %v2800_v7 = vpop.f32.mrf.mxu3 }
  0xe7   : > { %v1543_v8 = vmax.f32 %v1394_v4, 0.0 }
  0xe8   : > { %v1401_v13 = vpop.f32.mrf.mxu2  ;;  %v1058_v14 = vpop.f32.mrf.mxu0 }
  0xe9   : > { %v1609_v18 = vmul.f32 %v2702_v10, %v1543_v8  ;;  %v1059_v19 = vadd.f32 %v2694_v62, %v1058_v14  ;;  %v1227_v20 = vpop.f32.mrf.mxu1  ;;  %v2053_v8 = vor.u32 %v2399_v63, %v2052_v61  ;;  %v2395_v14 = vld [vmem:[%s2571_s5 + $0x158] sm:$0xf0] }
  0xeb   : > { %v1675_v21 = vadd.f32 %v2712_v15, %v1609_v18  ;;  %v1228_v22 = vadd.f32 %v1227_v20, %v1059_v19  ;;  %1097 = vmatmul.bf16.gmra.mxu0 %v2009_v9  ;;  %1346 = vmatmul.bf16.gmra.mxu3 %v2205_v12  ;;  %v2226_v18 = vld [vmem:[%s2571_s5 + $0x2dc] sm:$0xf0]  ;;  %v2394_v20 = vld [vmem:[%s2571_s5 + $0x154] sm:$0xf] }
  0xec   : > { %1266 = vmatmul.bf16.gmra.mxu1 %v2013_v17  ;;  %v2442_v17 = vld [vmem:[%s2571_s5 + $0x2d4] sm:$0xf] }
  0xed   : > { %1740 = vst.msk [vmem:[%s2719_s20 + $0x38] sm:$0xff] %vm1732_vm1, %v1675_v21  ;;  %v1397_v23 = vadd.f32 %v1396_v40, %v1228_v22  ;;  %v2439_v40 = vld [vmem:[%s2571_s5 + $0x2bc] sm:$0xf]  ;;  %v2034_v21 = vld [vmem:[%s2571_s5 + $0x15c] sm:$0xf0]  ;;  %v2229_v26 = vor.u32 %v2442_v17, %v2226_v18 }
  0xee   : > { %v2807_v24 = vpop.f32.mrf.mxu3  ;;  %v2217_v49 = vor.u32 %v2439_v40, %v2214_v41  ;;  %v2402_v40 = vld [vmem:[%s2571_s5 + $0x190] sm:$0xf0]  ;;  %v2076_v18 = vld [vmem:[%s2571_s5 + $0x1a0] sm:$0xf] }
  0xef   : > { %v1544_v27 = vmax.f32 %v1397_v23, 0.0 }
  0xf0   : > { %v1403_v28 = vpop.f32.mrf.mxu2  ;;  %v1060_v29 = vpop.f32.mrf.mxu0 }
  0xf1   : > { %v1610_v30 = vmul.f32 %v2702_v10, %v1544_v27  ;;  %v1061_v32 = vadd.f32 %v2694_v62, %v1060_v29  ;;  %v1229_v33 = vpop.f32.mrf.mxu1 }
  0xf3   : > { %v1676_v35 = vadd.f32 %v2712_v15, %v1610_v30  ;;  %v1230_v37 = vadd.f32 %v1229_v33, %v1061_v32  ;;  %v2037_v30 = vor.u32 %v2394_v20, %v2034_v21 }
  0xf5   : > { %1741 = vst.msk [vmem:[%s2719_s20 + $0x40] sm:$0xff] %vm1732_vm1, %v1676_v35  ;;  %v1399_v42 = vadd.f32 %v1398_v54, %v1230_v37  ;;  %2332 = vmatmul.msk.bf16.gmra.mxu2 %vm932_vm0, %v2041_v34 }
  0xf6   : > { %v2823_v46 = vpop.f32.mrf.mxu3 }
  0xf7   : > { %v1545_v47 = vmax.f32 %v1399_v42, 0.0 }
  0xf8   : > { %v1406_v51 = vpop.f32.mrf.mxu2  ;;  %v1063_v52 = vpop.f32.mrf.mxu0 }
  0xf9   : > { %v1611_v55 = vmul.f32 %v2702_v10, %v1545_v47  ;;  %v1064_v56 = vadd.f32 %v2694_v62, %v1063_v52  ;;  %v1232_v54 = vpop.f32.mrf.mxu1 }
  0xfb   : > { %v1677_v57 = vadd.f32 %v2712_v15, %v1611_v55  ;;  %v1233_v58 = vadd.f32 %v1232_v54, %v1064_v56  ;;  %1102 = vmatmul.bf16.gmra.mxu0 %v2021_v48  ;;  %1351 = vmatmul.bf16.gmra.mxu3 %v2217_v49  ;;  %v2065_v49 = vor.u32 %v2402_v40, %v2064_v39  ;;  %v2398_v55 = vld [vmem:[%s2571_s5 + $0x170] sm:$0xf0]  ;;  %v2445_v56 = vld [vmem:[%s2571_s5 + $0x2ec] sm:$0xf]  ;;  %v2238_v54 = vld [vmem:[%s2571_s5 + $0x2f4] sm:$0xf0] }
  0xfc   : > { %1271 = vmatmul.bf16.gmra.mxu1 %v2025_v53  ;;  %v2044_v53 = vld [vmem:[%s2571_s5 + $0x168] sm:$0xf]  ;;  %v2400_v39 = vld [vmem:[%s2571_s5 + $0x184] sm:$0xf]  ;;  %v2058_v40 = vld [vmem:[%s2571_s5 + $0x18c] sm:$0xf0] }
  0xfd   : > { %1742 = vst.msk [vmem:[%s2719_s20 + $0x48] sm:$0xff] %vm1732_vm1, %v1677_v57  ;;  %v1402_v59 = vadd.f32 %v1401_v13, %v1233_v58  ;;  %v2032_v13 = vld [vmem:[%s2571_s5 + $0x150] sm:$0xf]  ;;  %v2397_v58 = vld [vmem:[%s2571_s5 + $0x16c] sm:$0xf] }
  0xfe   : > { %v2830_v60 = vpop.f32.mrf.mxu3  ;;  %v2033_v25 = vor.u32 %v2395_v14, %v2032_v13 }
  0xff   : > { %v1546_v1 = vmax.f32 %v1402_v59, 0.0  ;;  %v2046_v59 = vld [vmem:[%s2571_s5 + $0x174] sm:$0xf0] }
 0x100   : > { %v1408_v2 = vpop.f32.mrf.mxu2  ;;  %v1065_v3 = vpop.f32.mrf.mxu0 }
 0x101   : > { %v1612_v4 = vmul.f32 %v2702_v10, %v1546_v1  ;;  %v1066_v5 = vadd.f32 %v2694_v62, %v1065_v3  ;;  %v1234_v6 = vpop.f32.mrf.mxu1  ;;  %v2045_v1 = vor.u32 %v2398_v55, %v2044_v53  ;;  %v2241_v3 = vor.u32 %v2445_v56, %v2238_v54 }
 0x102   : > { %v1159_v54 = vadd.f32 %v2694_v62, %v2704_v11 }
 0x103   : > { %v1678_v9 = vadd.f32 %v2712_v15, %v1612_v4  ;;  %v1235_v12 = vadd.f32 %v1234_v6, %v1066_v5  ;;  %v2049_v6 = vor.u32 %v2397_v58, %v2046_v59  ;;  %v2088_v59 = vld [vmem:[%s2571_s5 + $0x1b8] sm:$0xf] }
 0x105   : > { %1743 = vst.msk [vmem:[%s2719_s20 + $0x50] sm:$0xff] %vm1732_vm1, %v1678_v9  ;;  %v1404_v19 = vadd.f32 %v1403_v28, %v1235_v12  ;;  %2333 = vmatmul.msk.bf16.gmra.mxu2 %vm932_vm0, %v2053_v8 }
 0x106   : > { %v2846_v22 = vpop.f32.mrf.mxu3 }
 0x107   : > { %v1547_v23 = vmax.f32 %v1404_v19, 0.0  ;;  %v2405_v19 = vld [vmem:[%s2571_s5 + $0x1a8] sm:$0xf0] }
 0x108   : > { %v1411_v27 = vpop.f32.mrf.mxu2  ;;  %v1068_v29 = vpop.f32.mrf.mxu0 }
 0x109   : > { %v1613_v32 = vmul.f32 %v2702_v10, %v1547_v23  ;;  %v1069_v33 = vadd.f32 %v2694_v62, %v1068_v29  ;;  %v1237_v28 = vpop.f32.mrf.mxu1 }
 0x10b   : > { %v1679_v34 = vadd.f32 %v2712_v15, %v1613_v32  ;;  %v1238_v35 = vadd.f32 %v1237_v28, %v1069_v33  ;;  %1107 = vmatmul.bf16.gmra.mxu0 %v2033_v25  ;;  %1356 = vmatmul.bf16.gmra.mxu3 %v2229_v26  ;;  %v2056_v33 = vld [vmem:[%s2571_s5 + $0x180] sm:$0xf]  ;;  %v2401_v28 = vld [vmem:[%s2571_s5 + $0x188] sm:$0xf0] }
 0x10c   : > { %1276 = vmatmul.bf16.gmra.mxu1 %v2037_v30  ;;  %v2077_v30 = vor.u32 %v2405_v19, %v2076_v18  ;;  %v2196_v18 = vld [vmem:[%s2571_s5 + $0x290] sm:$0xf]  ;;  %v2435_v19 = vld [vmem:[%s2571_s5 + $0x298] sm:$0xf0] }
 0x10d   : > { %1744 = vst.msk [vmem:[%s2719_s20 + $0x58] sm:$0xff] %vm1732_vm1, %v1679_v34  ;;  %v1407_v37 = vadd.f32 %v1406_v51, %v1238_v35  ;;  %v2184_v34 = vld [vmem:[%s2571_s5 + $0x278] sm:$0xf]  ;;  %v2432_v35 = vld [vmem:[%s2571_s5 + $0x280] sm:$0xf0] }
 0x10e   : > { %v2853_v38 = vpop.f32.mrf.mxu3 }
 0x10f   : > { %v1548_v41 = vmax.f32 %v1407_v37, 0.0 }
 0x110   : > { %v1413_v42 = vpop.f32.mrf.mxu2  ;;  %v1070_v43 = vpop.f32.mrf.mxu0 }
 0x111   : > { %v1614_v45 = vmul.f32 %v2702_v10, %v1548_v41  ;;  %v1071_v47 = vadd.f32 %v2694_v62, %v1070_v43  ;;  %v1239_v48 = vpop.f32.mrf.mxu1 }
 0x113   : > { %v1680_v52 = vadd.f32 %v2712_v15, %v1614_v45  ;;  %v1240_v51 = vadd.f32 %v1239_v48, %v1071_v47  ;;  %v2057_v45 = vor.u32 %v2401_v28, %v2056_v33  ;;  %v2185_v47 = vor.u32 %v2432_v35, %v2184_v34 }
 0x114   : > { %v2197_v33 = vor.u32 %v2435_v19, %v2196_v18 }
 0x115   : > { %1745 = vst.msk [vmem:[%s2719_s20 + $0x60] sm:$0xff] %vm1732_vm1, %v1680_v52  ;;  %v1409_v57 = vadd.f32 %v1408_v2, %v1240_v51  ;;  %2334 = vmatmul.msk.bf16.gmra.mxu2 %vm932_vm0, %v2065_v49  ;;  %v2061_v52 = vor.u32 %v2400_v39, %v2058_v40 }
 0x116   : > { %v2869_v61 = vpop.f32.mrf.mxu3 }
 0x117   : > { %v1549_v63 = vmax.f32 %v1409_v57, 0.0 }
 0x118   : > { %v1416_v4 = vpop.f32.mrf.mxu2  ;;  %v1073_v5 = vpop.f32.mrf.mxu0 }
 0x119   : > { %v1615_v8 = vmul.f32 %v2702_v10, %v1549_v63  ;;  %v1074_v9 = vadd.f32 %v2694_v62, %v1073_v5  ;;  %v1242_v2 = vpop.f32.mrf.mxu1  ;;  %v2408_v63 = vld [vmem:[%s2571_s5 + $0x1c0] sm:$0xf0] }
 0x11b   : > { %v1681_v12 = vadd.f32 %v2712_v15, %v1615_v8  ;;  %v1243_v13 = vadd.f32 %v1242_v2, %v1074_v9  ;;  %1112 = vmatmul.bf16.gmra.mxu0 %v2045_v1  ;;  %1361 = vmatmul.bf16.gmra.mxu3 %v2241_v3  ;;  %v2089_v2 = vor.u32 %v2408_v63, %v2088_v59  ;;  %v2080_v59 = vld [vmem:[%s2571_s5 + $0x1b0] sm:$0xf]  ;;  %v2407_v63 = vld [vmem:[%s2571_s5 + $0x1b8] sm:$0xf0] }
 0x11c   : > { %1281 = vmatmul.bf16.gmra.mxu1 %v2049_v6 }
 0x11d   : > { %1746 = vst.msk [vmem:[%s2719_s20 + $0x68] sm:$0xff] %vm1732_vm1, %v1681_v12  ;;  %v1412_v14 = vadd.f32 %v1411_v27, %v1243_v13  ;;  %v2068_v13 = vld [vmem:[%s2571_s5 + $0x198] sm:$0xf] }
 0x11e   : > { %v2876_v17 = vpop.f32.mrf.mxu3 }
 0x11f   : > { %v1550_v20 = vmax.f32 %v1412_v14, 0.0  ;;  %v2404_v14 = vld [vmem:[%s2571_s5 + $0x1a0] sm:$0xf0] }
 0x120   : > { %v1418_v21 = vpop.f32.mrf.mxu2  ;;  %v1075_v23 = vpop.f32.mrf.mxu0 }
 0x121   : > { %v1616_v25 = vmul.f32 %v2702_v10, %v1550_v20  ;;  %v1076_v26 = vadd.f32 %v2694_v62, %v1075_v23  ;;  %v1244_v29 = vpop.f32.mrf.mxu1  ;;  %v1161_v20 = vadd.f32 %v2694_v62, %v2731_v31 }
 0x123   : > { %v1682_v32 = vadd.f32 %v2712_v15, %v1616_v25  ;;  %v1245_v27 = vadd.f32 %v1244_v29, %v1076_v26  ;;  %v2403_v25 = vld [vmem:[%s2571_s5 + $0x19c] sm:$0xf]  ;;  %v2070_v26 = vld [vmem:[%s2571_s5 + $0x1a4] sm:$0xf0] }
 0x124   : > { %v2073_v35 = vor.u32 %v2403_v25, %v2070_v26 }
 0x125   : > { %1747 = vst.msk [vmem:[%s2719_s20 + $0x70] sm:$0xff] %vm1732_vm1, %v1682_v32  ;;  %v1414_v37 = vadd.f32 %v1413_v42, %v1245_v27  ;;  %2335 = vmatmul.msk.bf16.gmra.mxu2 %vm932_vm0, %v2077_v30  ;;  %v2069_v27 = vor.u32 %v2404_v14, %v2068_v13  ;;  %v2081_v14 = vor.u32 %v2407_v63, %v2080_v59 }
 0x126   : > { %v2892_v41 = vpop.f32.mrf.mxu3 }
 0x127   : > { %v1551_v43 = vmax.f32 %v1414_v37, 0.0 }
 0x128   : > { %v1421_v48 = vpop.f32.mrf.mxu2  ;;  %v1078_v49 = vpop.f32.mrf.mxu0 }
 0x129   : > { %v1617_v51 = vmul.f32 %v2702_v10, %v1551_v43  ;;  %v1079_v53 = vadd.f32 %v2694_v62, %v1078_v49  ;;  %v1247_v42 = vpop.f32.mrf.mxu1  ;;  %v1164_v43 = vadd.f32 %v2694_v62, %v2738_v44  ;;  %v2100_v49 = vld [vmem:[%s2571_s5 + $0x1d0] sm:$0xf] }
 0x12b   : > { %v1683_v55 = vadd.f32 %v2712_v15, %v1617_v51  ;;  %v1248_v56 = vadd.f32 %v1247_v42, %v1079_v53  ;;  %1117 = vmatmul.bf16.gmra.mxu0 %v2057_v45  ;;  %2344 = vmatmul.msk.bf16.vlgmr.msra.gmra.mxu3 %vm932_vm0, %v2185_v47 }
 0x12c   : > { %1286 = vmatmul.bf16.gmra.mxu1 %v2061_v52  ;;  %v2411_v52 = vld [vmem:[%s2571_s5 + $0x1d8] sm:$0xf0] }
 0x12d   : > { %1748 = vst.msk [vmem:[%s2719_s20 + $0x78] sm:$0xff] %vm1732_vm1, %v1683_v55  ;;  %v1417_v57 = vadd.f32 %v1416_v4, %v1248_v56 }
 0x12e   : > { %v1327_v58 = vpop.f32.mrf.mxu3 }
 0x12f   : > { %v1552_v1 = vmax.f32 %v1417_v57, 0.0  ;;  %v2904_v3 = vadd.f32 %v1327_v58, %v1159_v54  ;;  %v2101_v57 = vor.u32 %v2411_v52, %v2100_v49  ;;  %v2092_v49 = vld [vmem:[%s2571_s5 + $0x1c8] sm:$0xf]  ;;  %v2410_v52 = vld [vmem:[%s2571_s5 + $0x1d0] sm:$0xf0] }
 0x130   : > { %v1423_v5 = vpop.f32.mrf.mxu2  ;;  %v1080_v6 = vpop.f32.mrf.mxu0  ;;  %v2093_v63 = vor.u32 %v2410_v52, %v2092_v49 }
 0x131   : > { %v1618_v11 = vmul.f32 %v2702_v10, %v1552_v1  ;;  %v1081_v8 = vadd.f32 %v2694_v62, %v1080_v6  ;;  %v1249_v9 = vpop.f32.mrf.mxu1  ;;  %v2208_v1 = vld [vmem:[%s2571_s5 + $0x2a8] sm:$0xf]  ;;  %v2438_v6 = vld [vmem:[%s2571_s5 + $0x2b0] sm:$0xf0] }
 0x132   : > { %v2209_v18 = vor.u32 %v2438_v6, %v2208_v1 }
 0x133   : > { %v1684_v4 = vadd.f32 %v2712_v15, %v1618_v11  ;;  %v1250_v12 = vadd.f32 %v1249_v9, %v1081_v8  ;;  %v1166_v11 = vadd.f32 %v2694_v62, %v2754_v0  ;;  %v2406_v9 = vld [vmem:[%s2571_s5 + $0x1b4] sm:$0xf] }
 0x135   : > { %1749 = vst.msk [vmem:[%s2719_s20 + $0x80] sm:$0xff] %vm1732_vm1, %v1684_v4  ;;  %v1419_v23 = vadd.f32 %v1418_v21, %v1250_v12  ;;  %2336 = vmatmul.msk.bf16.gmra.mxu2 %vm932_vm0, %v2089_v2  ;;  %v2082_v2 = vld [vmem:[%s2571_s5 + $0x1bc] sm:$0xf0] }
 0x136   : > { %v1329_v29 = vpop.f32.mrf.mxu3 }
 0x137   : > { %v1553_v30 = vmax.f32 %v1419_v23, 0.0  ;;  %v2920_v32 = vadd.f32 %v1329_v29, %v1161_v20  ;;  %v2085_v23 = vor.u32 %v2406_v9, %v2082_v2 }
 0x138   : > { %v1426_v28 = vpop.f32.mrf.mxu2  ;;  %v1083_v34 = vpop.f32.mrf.mxu0 }
 0x139   : > { %v1619_v31 = vmul.f32 %v2702_v10, %v1553_v30  ;;  %v1084_v21 = vadd.f32 %v2694_v62, %v1083_v34  ;;  %v1252_v37 = vpop.f32.mrf.mxu1  ;;  %v1169_v30 = vadd.f32 %v2694_v62, %v2761_v16  ;;  %v2112_v34 = vld [vmem:[%s2571_s5 + $0x1e8] sm:$0xf] }
 0x13b   : > { %v1685_v39 = vadd.f32 %v2712_v15, %v1619_v31  ;;  %v1253_v40 = vadd.f32 %v1252_v37, %v1084_v21  ;;  %1122 = vmatmul.bf16.gmra.mxu0 %v2069_v27  ;;  %2345 = vmatmul.msk.bf16.gmra.mxu3 %vm932_vm0, %v2197_v33 }
 0x13c   : > { %1291 = vmatmul.bf16.gmra.mxu1 %v2073_v35  ;;  %v2414_v35 = vld [vmem:[%s2571_s5 + $0x1f0] sm:$0xf0] }
 0x13d   : > { %1750 = vst.msk [vmem:[%s2719_s20 + $0x88] sm:$0xff] %vm1732_vm1, %v1685_v39  ;;  %v1422_v45 = vadd.f32 %v1421_v48, %v1253_v40 }
 0x13e   : > { %v1332_v47 = vpop.f32.mrf.mxu3 }
 0x13f   : > { %v1554_v51 = vmax.f32 %v1422_v45, 0.0  ;;  %v2932_v53 = vadd.f32 %v1332_v47, %v1164_v43  ;;  %v2113_v45 = vor.u32 %v2414_v35, %v2112_v34  ;;  %v2104_v34 = vld [vmem:[%s2571_s5 + $0x1e0] sm:$0xf]  ;;  %v2413_v35 = vld [vmem:[%s2571_s5 + $0x1e8] sm:$0xf0] }
 0x140   : > { %v1428_v42 = vpop.f32.mrf.mxu2  ;;  %v1085_v55 = vpop.f32.mrf.mxu0  ;;  %v2105_v52 = vor.u32 %v2413_v35, %v2104_v34 }
 0x141   : > { %v1620_v44 = vmul.f32 %v2702_v10, %v1554_v51  ;;  %v1086_v56 = vadd.f32 %v2694_v62, %v1085_v55  ;;  %v1254_v54 = vpop.f32.mrf.mxu1  ;;  %v2220_v51 = vld [vmem:[%s2571_s5 + $0x2c0] sm:$0xf]  ;;  %v2441_v55 = vld [vmem:[%s2571_s5 + $0x2c8] sm:$0xf0] }
 0x142   : > { %v2221_v1 = vor.u32 %v2441_v55, %v2220_v51 }
 0x143   : > { %v1686_v48 = vadd.f32 %v2712_v15, %v1620_v44  ;;  %v1255_v58 = vadd.f32 %v1254_v54, %v1086_v56  ;;  %v1171_v44 = vadd.f32 %v2694_v62, %v2777_v36  ;;  %v2409_v54 = vld [vmem:[%s2571_s5 + $0x1cc] sm:$0xf] }
 0x145   : > { %1751 = vst.msk [vmem:[%s2719_s20 + $0x90] sm:$0xff] %vm1732_vm1, %v1686_v48  ;;  %v1424_v8 = vadd.f32 %v1423_v5, %v1255_v58  ;;  %2337 = vmatmul.msk.bf16.gmra.mxu2 %vm932_vm0, %v2101_v57  ;;  %v2094_v57 = vld [vmem:[%s2571_s5 + $0x1d4] sm:$0xf0] }
 0x146   : > { %v1334_v4 = vpop.f32.mrf.mxu3 }
 0x147   : > { %v1555_v12 = vmax.f32 %v1424_v8, 0.0  ;;  %v2948_v13 = vadd.f32 %v1334_v4, %v1166_v11  ;;  %v2097_v8 = vor.u32 %v2409_v54, %v2094_v57 }
 0x148   : > { %v1431_v19 = vpop.f32.mrf.mxu2  ;;  %v1088_v20 = vpop.f32.mrf.mxu0 }
 0x149   : > { %v1621_v0 = vmul.f32 %v2702_v10, %v1555_v12  ;;  %v1089_v5 = vadd.f32 %v2694_v62, %v1088_v20  ;;  %v1257_v25 = vpop.f32.mrf.mxu1  ;;  %v1174_v12 = vadd.f32 %v2694_v62, %v2784_v50  ;;  %v2124_v20 = vld [vmem:[%s2571_s5 + $0x200] sm:$0xf] }
 0x14b   : > { %v1687_v26 = vadd.f32 %v2712_v15, %v1621_v0  ;;  %v1258_v29 = vadd.f32 %v1257_v25, %v1089_v5  ;;  %1127 = vmatmul.bf16.gmra.mxu0 %v2081_v14  ;;  %2346 = vmatmul.msk.bf16.gmra.mxu3 %vm932_vm0, %v2209_v18 }
 0x14c   : > { %1296 = vmatmul.bf16.gmra.mxu1 %v2085_v23  ;;  %v2417_v23 = vld [vmem:[%s2571_s5 + $0x208] sm:$0xf0] }
 0x14d   : > { %1752 = vst.msk [vmem:[%s2719_s20 + $0x98] sm:$0xff] %vm1732_vm1, %v1687_v26  ;;  %v1427_v27 = vadd.f32 %v1426_v28, %v1258_v29 }
 0x14e   : > { %v1337_v33 = vpop.f32.mrf.mxu3 }
 0x14f   : > { %v1556_v31 = vmax.f32 %v1427_v27, 0.0  ;;  %v2960_v21 = vadd.f32 %v1337_v33, %v1169_v30  ;;  %v2125_v27 = vor.u32 %v2417_v23, %v2124_v20  ;;  %v2116_v20 = vld [vmem:[%s2571_s5 + $0x1f8] sm:$0xf]  ;;  %v2416_v23 = vld [vmem:[%s2571_s5 + $0x200] sm:$0xf0] }
 0x150   : > { %v1433_v37 = vpop.f32.mrf.mxu2  ;;  %v1090_v39 = vpop.f32.mrf.mxu0  ;;  %v2117_v35 = vor.u32 %v2416_v23, %v2116_v20 }
 0x151   : > { %v1622_v16 = vmul.f32 %v2702_v10, %v1556_v31  ;;  %v1091_v40 = vadd.f32 %v2694_v62, %v1090_v39  ;;  %v1259_v43 = vpop.f32.mrf.mxu1  ;;  %v2232_v31 = vld [vmem:[%s2571_s5 + $0x2d8] sm:$0xf]  ;;  %v2444_v39 = vld [vmem:[%s2571_s5 + $0x2e0] sm:$0xf0] }
 0x152   : > { %v2233_v51 = vor.u32 %v2444_v39, %v2232_v31 }
 0x153   : > { %v1688_v28 = vadd.f32 %v2712_v15, %v1622_v16  ;;  %v1260_v47 = vadd.f32 %v1259_v43, %v1091_v40  ;;  %v1176_v16 = vadd.f32 %v2694_v62, %v2800_v7  ;;  %v2412_v43 = vld [vmem:[%s2571_s5 + $0x1e4] sm:$0xf] }
 0x155   : > { %1753 = vst.msk [vmem:[%s2719_s20 + $0xa0] sm:$0xff] %vm1732_vm1, %v1688_v28  ;;  %v1429_v56 = vadd.f32 %v1428_v42, %v1260_v47  ;;  %2338 = vmatmul.msk.bf16.gmra.mxu2 %vm932_vm0, %v2113_v45  ;;  %v2106_v45 = vld [vmem:[%s2571_s5 + $0x1ec] sm:$0xf0] }
 0x156   : > { %v1339_v48 = vpop.f32.mrf.mxu3 }
 0x157   : > { %v1557_v58 = vmax.f32 %v1429_v56, 0.0  ;;  %v2976_v59 = vadd.f32 %v1339_v48, %v1171_v44  ;;  %v2109_v56 = vor.u32 %v2412_v43, %v2106_v45 }
 0x158   : > { %v1436_v6 = vpop.f32.mrf.mxu2  ;;  %v1093_v11 = vpop.f32.mrf.mxu0 }
 0x159   : > { %v1623_v36 = vmul.f32 %v2702_v10, %v1557_v58  ;;  %v1094_v42 = vadd.f32 %v2694_v62, %v1093_v11  ;;  %v1262_v9 = vpop.f32.mrf.mxu1  ;;  %v1179_v58 = vadd.f32 %v2694_v62, %v2807_v24  ;;  %v2136_v11 = vld [vmem:[%s2571_s5 + $0x218] sm:$0xf] }
 0x15b   : > { %v1689_v2 = vadd.f32 %v2712_v15, %v1623_v36  ;;  %v1263_v4 = vadd.f32 %v1262_v9, %v1094_v42  ;;  %1132 = vmatmul.bf16.gmra.mxu0 %v2093_v63  ;;  %2347 = vmatmul.msk.bf16.gmra.mxu3 %vm932_vm0, %v2221_v1 }
 0x15c   : > { %1301 = vmatmul.bf16.gmra.mxu1 %v2097_v8  ;;  %v2420_v8 = vld [vmem:[%s2571_s5 + $0x220] sm:$0xf0] }
 0x15d   : > { %1754 = vst.msk [vmem:[%s2719_s20 + $0xa8] sm:$0xff] %vm1732_vm1, %v1689_v2  ;;  %v1432_v14 = vadd.f32 %v1431_v19, %v1263_v4 }
 0x15e   : > { %v1342_v18 = vpop.f32.mrf.mxu3 }
 0x15f   : > { %v1558_v0 = vmax.f32 %v1432_v14, 0.0  ;;  %v2988_v5 = vadd.f32 %v1342_v18, %v1174_v12  ;;  %v2137_v14 = vor.u32 %v2420_v8, %v2136_v11  ;;  %v2128_v11 = vld [vmem:[%s2571_s5 + $0x210] sm:$0xf]  ;;  %v2419_v8 = vld [vmem:[%s2571_s5 + $0x218] sm:$0xf0] }
 0x160   : > { %v1438_v25 = vpop.f32.mrf.mxu2  ;;  %v1095_v26 = vpop.f32.mrf.mxu0 }
 0x161   : > { %v1624_v50 = vmul.f32 %v2702_v10, %v1558_v0  ;;  %v1096_v29 = vadd.f32 %v2694_v62, %v1095_v26  ;;  %v1264_v30 = vpop.f32.mrf.mxu1  ;;  %v2244_v0 = vld [vmem:[%s2571_s5 + $0x2f0] sm:$0xf]  ;;  %v2447_v26 = vld [vmem:[%s2571_s5 + $0x2f8] sm:$0xf0] }
 0x162   : > { %v2245_v31 = vor.u32 %v2447_v26, %v2244_v0 }
 0x163   : > { %v1690_v19 = vadd.f32 %v2712_v15, %v1624_v50  ;;  %v1265_v33 = vadd.f32 %v1264_v30, %v1096_v29  ;;  %v1181_v50 = vadd.f32 %v2694_v62, %v2823_v46  ;;  %v2415_v30 = vld [vmem:[%s2571_s5 + $0x1fc] sm:$0xf]  ;;  %v3038_v46 = vld [vmem:[%s3290_s2] ss:$0 sm:$0xff] }
 0x165   : > { %1755 = vst.msk [vmem:[%s2719_s20 + $0xb0] sm:$0xff] %vm1732_vm1, %v1690_v19  ;;  %v1434_v40 = vadd.f32 %v1433_v37, %v1265_v33  ;;  %2339 = vmatmul.msk.bf16.gmra.mxu2 %vm932_vm0, %v2125_v27  ;;  %v2118_v27 = vld [vmem:[%s2571_s5 + $0x204] sm:$0xf0] }
 0x166   : > { %v1344_v28 = vpop.f32.mrf.mxu3 }
 0x167   : > { %v1559_v47 = vmax.f32 %v1434_v40, 0.0  ;;  %v3004_v49 = vadd.f32 %v1344_v28, %v1176_v16  ;;  %v2121_v40 = vor.u32 %v2415_v30, %v2118_v27  ;;  %v1189_v30 = vadd.f32 %v3038_v46, %v2853_v38 }
 0x168   : > { %v1441_v55 = vpop.f32.mrf.mxu2  ;;  %v1098_v44 = vpop.f32.mrf.mxu0 }
 0x169   : > { %v1625_v7 = vmul.f32 %v2702_v10, %v1559_v47  ;;  %v1099_v37 = vadd.f32 %v2694_v62, %v1098_v44  ;;  %v1267_v54 = vpop.f32.mrf.mxu1  ;;  %v1184_v47 = vadd.f32 %v3038_v46, %v2830_v60  ;;  %v2423_v44 = vld [vmem:[%s2571_s5 + $0x238] sm:$0xf0]  ;;  %v3054_v60 = vld [vmem:[%s3290_s2 + $0x1] ss:$0 sm:$0xff] }
 0x16b   : > { %v1691_v57 = vadd.f32 %v2712_v15, %v1625_v7  ;;  %v1268_v48 = vadd.f32 %v1267_v54, %v1099_v37  ;;  %1137 = vmatmul.bf16.gmra.mxu0 %v2105_v52  ;;  %2348 = vmatmul.msk.bf16.gmra.mxu3 %vm932_vm0, %v2233_v51  ;;  %v2148_v51 = vld [vmem:[%s2571_s5 + $0x230] sm:$0xf] }
 0x16c   : > { %1306 = vmatmul.bf16.gmra.mxu1 %v2109_v56 }
 0x16d   : > { %1756 = vst.msk [vmem:[%s2719_s20 + $0xb8] sm:$0xff] %vm1732_vm1, %v1691_v57  ;;  %v1437_v63 = vadd.f32 %v1436_v6, %v1268_v48  ;;  %v2149_v48 = vor.u32 %v2423_v44, %v2148_v51  ;;  %v2421_v44 = vld [vmem:[%s2571_s5 + $0x22c] sm:$0xf] }
 0x16e   : > { %v1347_v1 = vpop.f32.mrf.mxu3 }
 0x16f   : > { %v1560_v36 = vmax.f32 %v1437_v63, 0.0  ;;  %v3016_v42 = vadd.f32 %v1347_v1, %v1179_v58  ;;  %v3061_v58 = vld [vmem:[%s3290_s2 + $0x2] ss:$0 sm:$0xff] }
 0x170   : > { %v1443_v9 = vpop.f32.mrf.mxu2  ;;  %v1100_v2 = vpop.f32.mrf.mxu0 }
 0x171   : > { %v1626_v24 = vmul.f32 %v2702_v10, %v1560_v36  ;;  %v1101_v4 = vadd.f32 %v2694_v62, %v1100_v2  ;;  %v1269_v12 = vpop.f32.mrf.mxu1  ;;  %v1186_v36 = vadd.f32 %v3038_v46, %v2846_v22 }
 0x173   : > { %v1692_v6 = vadd.f32 %v2712_v15, %v1626_v24  ;;  %v1270_v18 = vadd.f32 %v1269_v12, %v1101_v4  ;;  %v2418_v24 = vld [vmem:[%s2571_s5 + $0x214] sm:$0xf]  ;;  %v2130_v4 = vld [vmem:[%s2571_s5 + $0x21c] sm:$0xf0] }
 0x174   : > { %v2133_v0 = vor.u32 %v2418_v24, %v2130_v4 }
 0x175   : > { %1757 = vst.msk [vmem:[%s2719_s20 + $0xc0] sm:$0xff] %vm1732_vm1, %v1692_v6  ;;  %v1439_v29 = vadd.f32 %v1438_v25, %v1270_v18  ;;  %2340 = vmatmul.msk.bf16.gmra.mxu2 %vm932_vm0, %v2137_v14  ;;  %v2129_v18 = vor.u32 %v2419_v8, %v2128_v11 }
 0x176   : > { %v1349_v19 = vpop.f32.mrf.mxu3 }
 0x177   : > { %v1561_v33 = vmax.f32 %v1439_v29, 0.0  ;;  %v3032_v34 = vadd.f32 %v1349_v19, %v1181_v50 }
 0x178   : > { %v1446_v39 = vpop.f32.mrf.mxu2  ;;  %v1103_v16 = vpop.f32.mrf.mxu0 }
 0x179   : > { %v1627_v62 = vmul.f32 %v2702_v10, %v1561_v33  ;;  %v1104_v25 = vadd.f32 %v3038_v46, %v1103_v16  ;;  %v1272_v43 = vpop.f32.mrf.mxu1  ;;  %v2160_v33 = vld [vmem:[%s2571_s5 + $0x248] sm:$0xf] }
 0x17b   : > { %v1693_v45 = vadd.f32 %v2712_v15, %v1627_v62  ;;  %v1273_v28 = vadd.f32 %v1272_v43, %v1104_v25  ;;  %1142 = vmatmul.bf16.gmra.mxu0 %v2117_v35  ;;  %2349 = vmatmul.msk.bf16.gmra.mxu3 %vm932_vm0, %v2245_v31  ;;  %v2426_v35 = vld [vmem:[%s2571_s5 + $0x250] sm:$0xf0] }
 0x17c   : > { %1311 = vmatmul.bf16.gmra.mxu1 %v2121_v40 }
 0x17d   : > { %1758 = vst.msk [vmem:[%s2719_s20 + $0xc8] sm:$0xff] %vm1732_vm1, %v1693_v45  ;;  %v1442_v10 = vadd.f32 %v1441_v55, %v1273_v28  ;;  %v2161_v45 = vor.u32 %v2426_v35, %v2160_v33 }
 0x17e   : > { %v1352_v52 = vpop.f32.mrf.mxu3 }
 0x17f   : > { %v1562_v56 = vmax.f32 %v1442_v10, 0.0  ;;  %v3049_v7 = vadd.f32 %v1352_v52, %v1184_v47  ;;  %v2140_v47 = vld [vmem:[%s2571_s5 + $0x228] sm:$0xf]  ;;  %v2422_v10 = vld [vmem:[%s2571_s5 + $0x230] sm:$0xf0]  ;;  %v1191_v52 = vadd.f32 %v3038_v46, %v2869_v61 }
 0x180   : > { %v1448_v15 = vpop.f32.mrf.mxu2  ;;  %v1105_v37 = vpop.f32.mrf.mxu0 }
 0x181   : > { %v1628_v55 = vmul.f32 %v3054_v60, %v1562_v56  ;;  %v1106_v54 = vadd.f32 %v3038_v46, %v1105_v37  ;;  %v1274_v57 = vpop.f32.mrf.mxu1  ;;  %v2142_v56 = vld [vmem:[%s2571_s5 + $0x234] sm:$0xf0] }
 0x183   : > { %v1694_v63 = vadd.f32 %v3061_v58, %v1628_v55  ;;  %v1275_v1 = vadd.f32 %v1274_v57, %v1106_v54  ;;  %v2141_v57 = vor.u32 %v2422_v10, %v2140_v47 }
 0x185   : > { %1759 = vst.msk [vmem:[%s2719_s20 + $0xd0] sm:$0xff] %vm1732_vm1, %v1694_v63  ;;  %v1444_v2 = vadd.f32 %v1443_v9, %v1275_v1  ;;  %2341 = vmatmul.msk.bf16.gmra.mxu2 %vm932_vm0, %v2149_v48  ;;  %v2145_v1 = vor.u32 %v2421_v44, %v2142_v56 }
 0x186   : > { %v1354_v12 = vpop.f32.mrf.mxu3 }
 0x187   : > { %v1563_v14 = vmax.f32 %v1444_v2, 0.0  ;;  %v3073_v6 = vadd.f32 %v1354_v12, %v1186_v36  ;;  %v1194_v2 = vadd.f32 %v3038_v46, %v2876_v17  ;;  %v2172_v12 = vld [vmem:[%s2571_s5 + $0x260] sm:$0xf] }
 0x188   : > { %v1451_v20 = vpop.f32.mrf.mxu2  ;;  %v1108_v23 = vpop.f32.mrf.mxu0 }
 0x189   : > { %v1629_v22 = vmul.f32 %v3054_v60, %v1563_v14  ;;  %v1109_v26 = vadd.f32 %v3038_v46, %v1108_v23  ;;  %v1277_v9 = vpop.f32.mrf.mxu1  ;;  %v2429_v14 = vld [vmem:[%s2571_s5 + $0x268] sm:$0xf0] }
 0x18b   : > { %v1695_v50 = vadd.f32 %v3061_v58, %v1629_v22  ;;  %v1278_v29 = vadd.f32 %v1277_v9, %v1109_v26  ;;  %1147 = vmatmul.bf16.gmra.mxu0 %v2129_v18 }
 0x18c   : > { %1316 = vmatmul.bf16.gmra.mxu1 %v2133_v0 }
 0x18d   : > { %1760 = vst.msk [vmem:[%s2719_s20 + $0xd8] sm:$0xff] %vm1732_vm1, %v1695_v50  ;;  %v1447_v27 = vadd.f32 %v1446_v39, %v1278_v29  ;;  %v2173_v29 = vor.u32 %v2429_v14, %v2172_v12 }
 0x18e   : > { %v1357_v19 = vpop.f32.mrf.mxu3 }
 0x18f   : > { %v1564_v31 = vmax.f32 %v1447_v27, 0.0  ;;  %v3084_v16 = vadd.f32 %v1357_v19, %v1189_v30 }
 0x190   : > { %v1453_v40 = vpop.f32.mrf.mxu2  ;;  %v1110_v62 = vpop.f32.mrf.mxu0 }
 0x191   : > { %v1630_v25 = vmul.f32 %v3054_v60, %v1564_v31  ;;  %v1111_v38 = vadd.f32 %v3038_v46, %v1110_v62  ;;  %v1279_v43 = vpop.f32.mrf.mxu1 }
 0x193   : > { %v1696_v28 = vadd.f32 %v3061_v58, %v1630_v25  ;;  %v1280_v39 = vadd.f32 %v1279_v43, %v1111_v38 }
 0x195   : > { %1761 = vst.msk [vmem:[%s2719_s20 + $0xe0] sm:$0xff] %vm1732_vm1, %v1696_v28  ;;  %v1449_v51 = vadd.f32 %v1448_v15, %v1280_v39  ;;  %2342 = vmatmul.msk.bf16.gmra.mxu2 %vm932_vm0, %v2161_v45 }
 0x196   : > { %v1359_v37 = vpop.f32.mrf.mxu3 }
 0x197   : > { %v1565_v55 = vmax.f32 %v1449_v51, 0.0  ;;  %v3098_v54 = vadd.f32 %v1359_v37, %v1191_v52 }
 0x198   : > { %v1456_v48 = vpop.f32.mrf.mxu2  ;;  %v1113_v63 = vpop.f32.mrf.mxu0 }
 0x199   : > { %v1631_v61 = vmul.f32 %v3054_v60, %v1565_v55  ;;  %v1114_v11 = vadd.f32 %v3038_v46, %v1113_v63  ;;  %v1282_v15 = vpop.f32.mrf.mxu1 }
 0x19b   : > { %v1697_v8 = vadd.f32 %v3061_v58, %v1631_v61  ;;  %v1283_v36 = vadd.f32 %v1282_v15, %v1114_v11  ;;  %1152 = vmatmul.bf16.gmra.mxu0 %v2141_v57 }
 0x19c   : > { %1321 = vmatmul.bf16.gmra.mxu1 %v2145_v1 }
 0x19d   : > { %1762 = vst.msk [vmem:[%s2719_s20 + $0xe8] sm:$0xff] %vm1732_vm1, %v1697_v8  ;;  %v1452_v24 = vadd.f32 %v1451_v20, %v1283_v36  ;;  %v1196_v20 = vadd.f32 %v3038_v46, %v2892_v41 }
 0x19e   : > { %v1362_v4 = vpop.f32.mrf.mxu3 }
 0x19f   : > { %v1566_v18 = vmax.f32 %v1452_v24, 0.0  ;;  %v3109_v23 = vadd.f32 %v1362_v4, %v1194_v2 }
 0x1a0   : > { %v1458_v0 = vpop.f32.mrf.mxu2  ;;  %v1115_v22 = vpop.f32.mrf.mxu0 }
 0x1a1   : > { %v1632_v26 = vmul.f32 %v3054_v60, %v1566_v18  ;;  %v1116_v9 = vadd.f32 %v3038_v46, %v1115_v22  ;;  %v1284_v50 = vpop.f32.mrf.mxu1 }
 0x1a3   : > { %v1698_v17 = vadd.f32 %v3061_v58, %v1632_v26  ;;  %v1285_v30 = vadd.f32 %v1284_v50, %v1116_v9 }
 0x1a5   : > { %1763 = vst.msk [vmem:[%s2719_s20 + $0xf0] sm:$0xff] %vm1732_vm1, %v1698_v17  ;;  %v1454_v27 = vadd.f32 %v1453_v40, %v1285_v30  ;;  %2343 = vmatmul.msk.bf16.gmra.mxu2 %vm932_vm0, %v2173_v29 }
 0x1a6   : > { %v1364_v19 = vpop.f32.mrf.mxu3 }
 0x1a7   : > { %v1567_v33 = vmax.f32 %v1454_v27, 0.0  ;;  %v3119_v35 = vadd.f32 %v1364_v19, %v1196_v20 }
 0x1a8   : > { %v1461_v31 = vpop.f32.mrf.mxu2  ;;  %v1118_v62 = vpop.f32.mrf.mxu0 }
 0x1a9   : > { %v1633_v25 = vmul.f32 %v3054_v60, %v1567_v33  ;;  %v1119_v38 = vadd.f32 %v3038_v46, %v1118_v62  ;;  %v1287_v43 = vpop.f32.mrf.mxu1 }
 0x1ab   : > { %v1699_v45 = vadd.f32 %v3061_v58, %v1633_v25  ;;  %v1288_v41 = vadd.f32 %v1287_v43, %v1119_v38 }
 0x1ad   : > { %1764 = vst.msk [vmem:[%s2719_s20 + $0xf8] sm:$0xff] %vm1732_vm1, %v1699_v45  ;;  %v1457_v40 = vadd.f32 %v1456_v48, %v1288_v41 }
 0x1ae   : > { %v1506_v28 = vpop.f32.mrf.mxu3 }
 0x1af   : > { %v1568_v39 = vmax.f32 %v1457_v40, 0.0  ;;  %v1507_v47 = vadd.f32 %v1506_v28, %v2960_v21 }
 0x1b0   : > { %v1463_v10 = vpop.f32.mrf.mxu2  ;;  %v1120_v52 = vpop.f32.mrf.mxu0 }
 0x1b1   : > { %v1634_v51 = vmul.f32 %v3054_v60, %v1568_v39  ;;  %v1588_v44 = vmax.f32 %v1507_v47, 0.0  ;;  %v1121_v56 = vadd.f32 %v3038_v46, %v1120_v52  ;;  %v1289_v37 = vpop.f32.mrf.mxu1 }
 0x1b3   : > { %v1700_v55 = vadd.f32 %v3061_v58, %v1634_v51  ;;  %v1654_v57 = vmul.f32 %v3054_v60, %v1588_v44  ;;  %v1290_v63 = vadd.f32 %v1289_v37, %v1121_v56 }
 0x1b5   : > { %1765 = vst.msk [vmem:[%s2719_s20 + $0x100] sm:$0xff] %vm1732_vm1, %v1700_v55  ;;  %v1720_v48 = vadd.f32 %v3061_v58, %v1654_v57  ;;  %v1459_v1 = vadd.f32 %v1458_v0, %v1290_v63 }
 0x1b6   : > { %v1508_v21 = vpop.f32.mrf.mxu3 }
 0x1b7   : > { %1785 = vst.msk [vmem:[%s2719_s20 + $0x1a0] sm:$0xff] %vm1732_vm1, %v1720_v48  ;;  %v1569_v61 = vmax.f32 %v1459_v1, 0.0  ;;  %v1509_v11 = vadd.f32 %v1508_v21, %v2976_v59 }
 0x1b8   : > { %v1466_v15 = vpop.f32.mrf.mxu2  ;;  %v1123_v8 = vpop.f32.mrf.mxu0 }
 0x1b9   : > { %v1635_v36 = vmul.f32 %v3054_v60, %v1569_v61  ;;  %v1589_v2 = vmax.f32 %v1509_v11, 0.0  ;;  %v1124_v24 = vadd.f32 %v3038_v46, %v1123_v8  ;;  %v1292_v4 = vpop.f32.mrf.mxu1 }
 0x1bb   : > { %v1701_v12 = vadd.f32 %v3061_v58, %v1635_v36  ;;  %v1655_v14 = vmul.f32 %v3054_v60, %v1589_v2  ;;  %v1293_v18 = vadd.f32 %v1292_v4, %v1124_v24 }
 0x1bd   : > { %1766 = vst.msk [vmem:[%s2719_s20 + $0x108] sm:$0xff] %vm1732_vm1, %v1701_v12  ;;  %v1721_v0 = vadd.f32 %v3061_v58, %v1655_v14  ;;  %v1462_v22 = vadd.f32 %v1461_v31, %v1293_v18 }
 0x1be   : > { %v1511_v59 = vpop.f32.mrf.mxu3 }
 0x1bf   : > { %1786 = vst.msk [vmem:[%s2719_s20 + $0x1a8] sm:$0xff] %vm1732_vm1, %v1721_v0  ;;  %v1570_v26 = vmax.f32 %v1462_v22, 0.0  ;;  %v1512_v9 = vadd.f32 %v1511_v59, %v2988_v5 }
 0x1c0   : > { %v1468_v50 = vpop.f32.mrf.mxu2  ;;  %v1125_v29 = vpop.f32.mrf.mxu0 }
 0x1c1   : > { %v1636_v17 = vmul.f32 %v3054_v60, %v1570_v26  ;;  %v1590_v30 = vmax.f32 %v1512_v9, 0.0  ;;  %v1126_v20 = vadd.f32 %v3038_v46, %v1125_v29  ;;  %v1294_v27 = vpop.f32.mrf.mxu1 }
 0x1c3   : > { %v1702_v19 = vadd.f32 %v3061_v58, %v1636_v17  ;;  %v1656_v33 = vmul.f32 %v3054_v60, %v1590_v30  ;;  %v1295_v31 = vadd.f32 %v1294_v27, %v1126_v20 }
 0x1c5   : > { %1767 = vst.msk [vmem:[%s2719_s20 + $0x110] sm:$0xff] %vm1732_vm1, %v1702_v19  ;;  %v1722_v62 = vadd.f32 %v3061_v58, %v1656_v33  ;;  %v1464_v25 = vadd.f32 %v1463_v10, %v1295_v31 }
 0x1c6   : > { %v1513_v5 = vpop.f32.mrf.mxu3 }
 0x1c7   : > { %1787 = vst.msk [vmem:[%s2719_s20 + $0x1b0] sm:$0xff] %vm1732_vm1, %v1722_v62  ;;  %v1571_v38 = vmax.f32 %v1464_v25, 0.0  ;;  %v1514_v43 = vadd.f32 %v1513_v5, %v3004_v49 }
 0x1c8   : > { %v1471_v45 = vpop.f32.mrf.mxu2  ;;  %v1128_v41 = vpop.f32.mrf.mxu0 }
 0x1c9   : > { %v1637_v40 = vmul.f32 %v3054_v60, %v1571_v38  ;;  %v1591_v28 = vmax.f32 %v1514_v43, 0.0  ;;  %v1129_v39 = vadd.f32 %v3038_v46, %v1128_v41  ;;  %v1297_v47 = vpop.f32.mrf.mxu1 }
 0x1cb   : > { %v1703_v52 = vadd.f32 %v3061_v58, %v1637_v40  ;;  %v1657_v51 = vmul.f32 %v3054_v60, %v1591_v28  ;;  %v1298_v10 = vadd.f32 %v1297_v47, %v1129_v39 }
 0x1cd   : > { %1768 = vst.msk [vmem:[%s2719_s20 + $0x118] sm:$0xff] %vm1732_vm1, %v1703_v52  ;;  %v1723_v44 = vadd.f32 %v3061_v58, %v1657_v51  ;;  %v1467_v56 = vadd.f32 %v1466_v15, %v1298_v10 }
 0x1ce   : > { %v1516_v49 = vpop.f32.mrf.mxu3 }
 0x1cf   : > { %1788 = vst.msk [vmem:[%s2719_s20 + $0x1b8] sm:$0xff] %vm1732_vm1, %v1723_v44  ;;  %v1572_v37 = vmax.f32 %v1467_v56, 0.0  ;;  %v1517_v55 = vadd.f32 %v1516_v49, %v3016_v42 }
 0x1d0   : > { %v1473_v57 = vpop.f32.mrf.mxu2  ;;  %v1130_v63 = vpop.f32.mrf.mxu0 }
 0x1d1   : > { %v1638_v48 = vmul.f32 %v3054_v60, %v1572_v37  ;;  %v1592_v1 = vmax.f32 %v1517_v55, 0.0  ;;  %v1131_v21 = vadd.f32 %v3038_v46, %v1130_v63  ;;  %v1299_v61 = vpop.f32.mrf.mxu1 }
 0x1d3   : > { %v1704_v11 = vadd.f32 %v3061_v58, %v1638_v48  ;;  %v1658_v8 = vmul.f32 %v3054_v60, %v1592_v1  ;;  %v1300_v15 = vadd.f32 %v1299_v61, %v1131_v21 }
 0x1d5   : > { %1769 = vst.msk [vmem:[%s2719_s20 + $0x120] sm:$0xff] %vm1732_vm1, %v1704_v11  ;;  %v1724_v36 = vadd.f32 %v3061_v58, %v1658_v8  ;;  %v1469_v2 = vadd.f32 %v1468_v50, %v1300_v15 }
 0x1d6   : > { %v1518_v42 = vpop.f32.mrf.mxu3 }
 0x1d7   : > { %1789 = vst.msk [vmem:[%s2719_s20 + $0x1c0] sm:$0xff] %vm1732_vm1, %v1724_v36  ;;  %v1573_v24 = vmax.f32 %v1469_v2, 0.0  ;;  %v1519_v4 = vadd.f32 %v1518_v42, %v3032_v34 }
 0x1d8   : > { %v1476_v12 = vpop.f32.mrf.mxu2  ;;  %v1133_v14 = vpop.f32.mrf.mxu0 }
 0x1d9   : > { %v1639_v18 = vmul.f32 %v3054_v60, %v1573_v24  ;;  %v1593_v0 = vmax.f32 %v1519_v4, 0.0  ;;  %v1134_v22 = vadd.f32 %v3038_v46, %v1133_v14  ;;  %v1302_v59 = vpop.f32.mrf.mxu1 }
 0x1db   : > { %v1705_v26 = vadd.f32 %v3061_v58, %v1639_v18  ;;  %v1659_v9 = vmul.f32 %v3054_v60, %v1593_v0  ;;  %v1303_v50 = vadd.f32 %v1302_v59, %v1134_v22 }
 0x1dd   : > { %1770 = vst.msk [vmem:[%s2719_s20 + $0x128] sm:$0xff] %vm1732_vm1, %v1705_v26  ;;  %v1725_v29 = vadd.f32 %v3061_v58, %v1659_v9  ;;  %v1472_v17 = vadd.f32 %v1471_v45, %v1303_v50 }
 0x1de   : > { %v1521_v34 = vpop.f32.mrf.mxu3 }
 0x1df   : > { %1790 = vst.msk [vmem:[%s2719_s20 + $0x1c8] sm:$0xff] %vm1732_vm1, %v1725_v29  ;;  %v1574_v30 = vmax.f32 %v1472_v17, 0.0  ;;  %v1522_v20 = vadd.f32 %v1521_v34, %v3049_v7 }
 0x1e0   : > { %v1478_v27 = vpop.f32.mrf.mxu2  ;;  %v1135_v19 = vpop.f32.mrf.mxu0 }
 0x1e1   : > { %v1640_v33 = vmul.f32 %v3054_v60, %v1574_v30  ;;  %v1594_v31 = vmax.f32 %v1522_v20, 0.0  ;;  %v1136_v62 = vadd.f32 %v3038_v46, %v1135_v19  ;;  %v1304_v25 = vpop.f32.mrf.mxu1 }
 0x1e3   : > { %v1706_v5 = vadd.f32 %v3061_v58, %v1640_v33  ;;  %v1660_v38 = vmul.f32 %v3054_v60, %v1594_v31  ;;  %v1305_v43 = vadd.f32 %v1304_v25, %v1136_v62 }
 0x1e5   : > { %1771 = vst.msk [vmem:[%s2719_s20 + $0x130] sm:$0xff] %vm1732_vm1, %v1706_v5  ;;  %v1726_v45 = vadd.f32 %v3061_v58, %v1660_v38  ;;  %v1474_v41 = vadd.f32 %v1473_v57, %v1305_v43 }
 0x1e6   : > { %v1523_v7 = vpop.f32.mrf.mxu3 }
 0x1e7   : > { %1791 = vst.msk [vmem:[%s2719_s20 + $0x1d0] sm:$0xff] %vm1732_vm1, %v1726_v45  ;;  %v1575_v40 = vmax.f32 %v1474_v41, 0.0  ;;  %v1524_v28 = vadd.f32 %v1523_v7, %v3073_v6 }
 0x1e8   : > { %v1481_v39 = vpop.f32.mrf.mxu2  ;;  %v1138_v47 = vpop.f32.mrf.mxu0 }
 0x1e9   : > { %v1641_v52 = vmul.f32 %v3054_v60, %v1575_v40  ;;  %v1595_v51 = vmax.f32 %v1524_v28, 0.0  ;;  %v1139_v10 = vadd.f32 %v3038_v46, %v1138_v47  ;;  %v1307_v44 = vpop.f32.mrf.mxu1 }
 0x1eb   : > { %v1707_v56 = vadd.f32 %v3061_v58, %v1641_v52  ;;  %v1661_v49 = vmul.f32 %v3054_v60, %v1595_v51  ;;  %v1308_v37 = vadd.f32 %v1307_v44, %v1139_v10 }
 0x1ed   : > { %1772 = vst.msk [vmem:[%s2719_s20 + $0x138] sm:$0xff] %vm1732_vm1, %v1707_v56  ;;  %v1727_v55 = vadd.f32 %v3061_v58, %v1661_v49  ;;  %v1477_v57 = vadd.f32 %v1476_v12, %v1308_v37 }
 0x1ee   : > { %v1526_v6 = vpop.f32.mrf.mxu3 }
 0x1ef   : > { %1792 = vst.msk [vmem:[%s2719_s20 + $0x1d8] sm:$0xff] %vm1732_vm1, %v1727_v55  ;;  %v1576_v63 = vmax.f32 %v1477_v57, 0.0  ;;  %v1527_v48 = vadd.f32 %v1526_v6, %v3084_v16 }
 0x1f0   : > { %v1483_v1 = vpop.f32.mrf.mxu2  ;;  %v1140_v21 = vpop.f32.mrf.mxu0 }
 0x1f1   : > { %v1642_v61 = vmul.f32 %v3054_v60, %v1576_v63  ;;  %v1596_v11 = vmax.f32 %v1527_v48, 0.0  ;;  %v1141_v8 = vadd.f32 %v3038_v46, %v1140_v21  ;;  %v1309_v15 = vpop.f32.mrf.mxu1 }
 0x1f3   : > { %v1708_v36 = vadd.f32 %v3061_v58, %v1642_v61  ;;  %v1662_v2 = vmul.f32 %v3054_v60, %v1596_v11  ;;  %v1310_v42 = vadd.f32 %v1309_v15, %v1141_v8 }
 0x1f5   : > { %1773 = vst.msk [vmem:[%s2719_s20 + $0x140] sm:$0xff] %vm1732_vm1, %v1708_v36  ;;  %v1728_v24 = vadd.f32 %v3061_v58, %v1662_v2  ;;  %v1479_v4 = vadd.f32 %v1478_v27, %v1310_v42 }
 0x1f6   : > { %v1528_v16 = vpop.f32.mrf.mxu3 }
 0x1f7   : > { %1793 = vst.msk [vmem:[%s2719_s20 + $0x1e0] sm:$0xff] %vm1732_vm1, %v1728_v24  ;;  %v1577_v12 = vmax.f32 %v1479_v4, 0.0  ;;  %v1529_v14 = vadd.f32 %v1528_v16, %v3098_v54 }
 0x1f8   : > { %v1486_v18 = vpop.f32.mrf.mxu2  ;;  %v1143_v0 = vpop.f32.mrf.mxu0 }
 0x1f9   : > { %v1643_v22 = vmul.f32 %v3054_v60, %v1577_v12  ;;  %v1597_v59 = vmax.f32 %v1529_v14, 0.0  ;;  %v1144_v26 = vadd.f32 %v3038_v46, %v1143_v0  ;;  %v1312_v9 = vpop.f32.mrf.mxu1 }
 0x1fb   : > { %v1709_v50 = vadd.f32 %v3061_v58, %v1643_v22  ;;  %v1663_v29 = vmul.f32 %v3054_v60, %v1597_v59  ;;  %v1313_v17 = vadd.f32 %v1312_v9, %v1144_v26 }
 0x1fd   : > { %1774 = vst.msk [vmem:[%s2719_s20 + $0x148] sm:$0xff] %vm1732_vm1, %v1709_v50  ;;  %v1729_v34 = vadd.f32 %v3061_v58, %v1663_v29  ;;  %v1482_v30 = vadd.f32 %v1481_v39, %v1313_v17 }
 0x1fe   : > { %v1531_v54 = vpop.f32.mrf.mxu3 }
 0x1ff   : > { %1794 = vst.msk [vmem:[%s2719_s20 + $0x1e8] sm:$0xff] %vm1732_vm1, %v1729_v34  ;;  %v1578_v20 = vmax.f32 %v1482_v30, 0.0  ;;  %v1532_v27 = vadd.f32 %v1531_v54, %v3109_v23 }
 0x200   : > { %v1488_v19 = vpop.f32.mrf.mxu2  ;;  %v1145_v33 = vpop.f32.mrf.mxu0 }
 0x201   : > { %v1644_v31 = vmul.f32 %v3054_v60, %v1578_v20  ;;  %v1598_v62 = vmax.f32 %v1532_v27, 0.0  ;;  %v1146_v25 = vadd.f32 %v3038_v46, %v1145_v33  ;;  %v1314_v5 = vpop.f32.mrf.mxu1 }
 0x203   : > { %v1710_v38 = vadd.f32 %v3061_v58, %v1644_v31  ;;  %v1664_v43 = vmul.f32 %v3054_v60, %v1598_v62  ;;  %v1315_v45 = vadd.f32 %v1314_v5, %v1146_v25 }
 0x205   : > { %1775 = vst.msk [vmem:[%s2719_s20 + $0x150] sm:$0xff] %vm1732_vm1, %v1710_v38  ;;  %v1730_v41 = vadd.f32 %v3061_v58, %v1664_v43  ;;  %v1484_v7 = vadd.f32 %v1483_v1, %v1315_v45 }
 0x206   : > { %v1533_v23 = vpop.f32.mrf.mxu3 }
 0x207   : > { %1795 = vst.msk [vmem:[%s2719_s20 + $0x1f0] sm:$0xff] %vm1732_vm1, %v1730_v41  ;;  %v1579_v40 = vmax.f32 %v1484_v7, 0.0  ;;  %v1534_v28 = vadd.f32 %v1533_v23, %v3119_v35 }
 0x208   : > { %v1491_v39 = vpop.f32.mrf.mxu2  ;;  %v1148_v47 = vpop.f32.mrf.mxu0 }
 0x209   : > { %v1645_v52 = vmul.f32 %v3054_v60, %v1579_v40  ;;  %v1599_v51 = vmax.f32 %v1534_v28, 0.0  ;;  %v1149_v10 = vadd.f32 %v3038_v46, %v1148_v47  ;;  %v1317_v44 = vpop.f32.mrf.mxu1 }
 0x20b   : > { %v1711_v56 = vadd.f32 %v3061_v58, %v1645_v52  ;;  %v1665_v49 = vmul.f32 %v3054_v60, %v1599_v51  ;;  %v1318_v37 = vadd.f32 %v1317_v44, %v1149_v10 }
 0x20d   : > { %1776 = vst.msk [vmem:[%s2719_s20 + $0x158] sm:$0xff] %vm1732_vm1, %v1711_v56  ;;  %v1731_v55 = vadd.f32 %v3061_v58, %v1665_v49  ;;  %v1487_v57 = vadd.f32 %v1486_v18, %v1318_v37 }
 0x20f   : > { %1796 = vst.msk [vmem:[%s2719_s20 + $0x1f8] sm:$0xff] %vm1732_vm1, %v1731_v55  ;;  %v1580_v35 = vmax.f32 %v1487_v57, 0.0 }
 0x210   : > { %v1493_v6 = vpop.f32.mrf.mxu2  ;;  %v1150_v63 = vpop.f32.mrf.mxu0 }
 0x211   : > { %v1646_v48 = vmul.f32 %v3054_v60, %v1580_v35  ;;  %v1151_v1 = vadd.f32 %v3038_v46, %v1150_v63  ;;  %v1319_v21 = vpop.f32.mrf.mxu1 }
 0x213   : > { %v1712_v61 = vadd.f32 %v3061_v58, %v1646_v48  ;;  %v1320_v11 = vadd.f32 %v1319_v21, %v1151_v1 }
 0x215   : > { %1777 = vst.msk [vmem:[%s2719_s20 + $0x160] sm:$0xff] %vm1732_vm1, %v1712_v61  ;;  %v1489_v8 = vadd.f32 %v1488_v19, %v1320_v11 }
 0x217   : > { %v1581_v15 = vmax.f32 %v1489_v8, 0.0 }
 0x218   : > { %v1496_v36 = vpop.f32.mrf.mxu2  ;;  %v1153_v2 = vpop.f32.mrf.mxu0 }
 0x219   : > { %v1647_v42 = vmul.f32 %v3054_v60, %v1581_v15  ;;  %v1497_v24 = vadd.f32 %v1496_v36, %v2904_v3  ;;  %v1154_v4 = vadd.f32 %v3038_v46, %v1153_v2  ;;  %v1322_v16 = vpop.f32.mrf.mxu1 }
 0x21b   : > { %v1713_v12 = vadd.f32 %v3061_v58, %v1647_v42  ;;  %v1584_v14 = vmax.f32 %v1497_v24, 0.0  ;;  %v1323_v18 = vadd.f32 %v1322_v16, %v1154_v4 }
 0x21d   : > { %1778 = vst.msk [vmem:[%s2719_s20 + $0x168] sm:$0xff] %vm1732_vm1, %v1713_v12  ;;  %v1650_v0 = vmul.f32 %v3054_v60, %v1584_v14  ;;  %v1492_v22 = vadd.f32 %v1491_v39, %v1323_v18 }
 0x21f   : > { %v1716_v59 = vadd.f32 %v3061_v58, %v1650_v0  ;;  %v1582_v26 = vmax.f32 %v1492_v22, 0.0 }
 0x220   : > { %v1498_v9 = vpop.f32.mrf.mxu2  ;;  %v1155_v50 = vpop.f32.mrf.mxu0 }
 0x221   : > { %1781 = vst.msk [vmem:[%s2719_s20 + $0x180] sm:$0xff] %vm1732_vm1, %v1716_v59  ;;  %v1648_v3 = vmul.f32 %v3054_v60, %v1582_v26  ;;  %v1499_v29 = vadd.f32 %v1498_v9, %v2920_v32  ;;  %v1156_v17 = vadd.f32 %v3038_v46, %v1155_v50  ;;  %v1324_v34 = vpop.f32.mrf.mxu1 }
 0x223   : > { %v1714_v30 = vadd.f32 %v3061_v58, %v1648_v3  ;;  %v1585_v54 = vmax.f32 %v1499_v29, 0.0  ;;  %v1325_v20 = vadd.f32 %v1324_v34, %v1156_v17 }
 0x225   : > { %1779 = vst.msk [vmem:[%s2719_s20 + $0x170] sm:$0xff] %vm1732_vm1, %v1714_v30  ;;  %v1651_v27 = vmul.f32 %v3054_v60, %v1585_v54  ;;  %v1494_v19 = vadd.f32 %v1493_v6, %v1325_v20 }
 0x227   : > { %v1717_v33 = vadd.f32 %v3061_v58, %v1651_v27  ;;  %v1583_v31 = vmax.f32 %v1494_v19, 0.0 }
 0x228   : > { %v1501_v62 = vpop.f32.mrf.mxu2 }
 0x229   : > { %1782 = vst.msk [vmem:[%s2719_s20 + $0x188] sm:$0xff] %vm1732_vm1, %v1717_v33  ;;  %v1649_v32 = vmul.f32 %v3054_v60, %v1583_v31  ;;  %v1502_v46 = vadd.f32 %v1501_v62, %v2932_v53 }
 0x22b   : > { %v1715_v25 = vadd.f32 %v3061_v58, %v1649_v32  ;;  %v1586_v5 = vmax.f32 %v1502_v46, 0.0 }
 0x22d   : > { %1780 = vst.msk [vmem:[%s2719_s20 + $0x178] sm:$0xff] %vm1732_vm1, %v1715_v25  ;;  %v1652_v38 = vmul.f32 %v3054_v60, %v1586_v5 }
 0x22f   : > { %v1718_v43 = vadd.f32 %v3061_v58, %v1652_v38 }
 0x230   : > { %v1503_v45 = vpop.f32.mrf.mxu2 }
 0x231   : > { %1783 = vst.msk [vmem:[%s2719_s20 + $0x190] sm:$0xff] %vm1732_vm1, %v1718_v43  ;;  %v1504_v41 = vadd.f32 %v1503_v45, %v2948_v13 }
 0x233   : > { %v1587_v7 = vmax.f32 %v1504_v41, 0.0 }
 0x235   : > { %v1653_v23 = vmul.f32 %v3054_v60, %v1587_v7 }
 0x237   : > { %v1719_v40 = vadd.f32 %v3061_v58, %v1653_v23 }
 0x239   : > { %1784 = vst.msk [vmem:[%s2719_s20 + $0x198] sm:$0xff] %vm1732_vm1, %v1719_v40 }
 0x23a PF: > { %s13_s12 = sadd.s32 1, %s2505_s12  }
 0x23b   : > { %p10_p4 = scmp.ge.s32.totalorder %s13_s12, 5  }
 0x23d   :  { %12 = sbr.rel (!%p10_p4) target bundleno = 1 (0x1), region = 62 }

// kernel: _lambda_.9
= control target key start
LH: loop header
LB: loop body
LE: loop exit
PB: predicated region body
PF: predicated region fallthrough
CT: control target
= control target key end

     0   :  { %s1850_s12 = smov 0   ;;  %s2273_s0 = inlined_call_operand.vmem [shape: bf16[352,576], index: 0, kind: input, shape index: {}]   ;;  %s2274_s1 = inlined_call_operand.vmem [shape: bf16[576,128], index: 1, kind: input, shape index: {}]   ;;  %s2275_s2 = inlined_call_operand.vmem [shape: f32[3,128], index: 2, kind: input, shape index: {}]   ;;  %s2276_s3 = inlined_call_operand.vmem [shape: f32[352,128], index: 3, kind: output, shape index: {}]  }
   0x1 LB: > { %s1311_s13 = sadd.s32 4294967295, %s1828_s12   ;;  %p1315_p0 = scmp.ge.s32.totalorder %s1828_s12, 1  ;;  %s1828_s12 = sphi %s1850_s12, %s13_s12  }
   0x2   : > { %p139_p1 = scmp.lt.s32.totalorder %s1828_s12, 3 }
   0x4   : > { %p140_p2 = pnand %p1315_p0, %p139_p1 }
   0x5   : > { %s164_s20 = smul.u32 (!%p140_p2), 22, %s1311_s13 }
   0x6   : > { %143 = sbr.rel (%p140_p2) target bundleno = 403 (0x193), region = 32 }
   0x7   : > { %p165_p3 = scmp.lt.s32.totalorder (!%p140_p2), %s164_s20, 43 }
   0xb   : > { %v1757_v0 = vld [vmem:[%s2274_s1 + $0x38] sm:$0xff]  ;;  %v1756_v1 = vld [vmem:[%s2274_s1 + $0x30] sm:$0xff]  ;;  %v1755_v2 = vld [vmem:[%s2274_s1 + $0x28] sm:$0xff]  ;;  %s2278_s20 = smov (!%p165_p3, %s164_s20), 43  ;;  %vm809_vm0 = vcmask 523264  }
   0xc   : > { %843 = vmatpush.bf16.msra.mxu0 %v1757_v0  ;;  %1786 = vmatpush.bf16.msra.mxu1 %v1757_v0  ;;  %v1754_v3 = vld [vmem:[%s2274_s1 + $0x20] sm:$0xff]  ;;  %v1753_v4 = vld [vmem:[%s2274_s1 + $0x18] sm:$0xff]  ;;  %v1752_v5 = vld [vmem:[%s2274_s1 + $0x10] sm:$0xff]  ;;  %s1810_s27 = smul.u32 20, %s2278_s20  ;;  %s1317_s24 = sshll.u32 %s2278_s20, 3 }
   0xd   : > { %1788 = vmatpush.bf16.msra.mxu3 %v1757_v0  ;;  %1787 = vmatpush.bf16.msra.mxu2 %v1757_v0  ;;  %v1751_v6 = vld [vmem:[%s2274_s1 + $0x8] sm:$0xff]  ;;  %v1750_v7 = vld [vmem:[%s2274_s1] sm:$0xff]  ;;  %v1765_v14 = vld [vmem:[%s2274_s1 + $0x78] sm:$0xff] }
   0xe   : > { %s1885_s5 = scalar_lea.vmem %s2273_s0, %s1810_s27  ;;  %v1781_v15 = vld [vmem:[%s2274_s1 + $0xf8] sm:$0xff]  ;;  %v1764_v23 = vld [vmem:[%s2274_s1 + $0x70] sm:$0xff]  ;;  %v1763_v27 = vld [vmem:[%s2274_s1 + $0x68] sm:$0xff]  ;;  %s2169_s27 = scalar_lea.vmem %s2276_s3, %s1317_s24 }
   0xf   : > { %v1320_v8 = vld [vmem:[%s1885_s5] sm:$0xf]  ;;  %v1697_v9 = vld [vmem:[%s1885_s5 + $0x10] sm:$0xf0]  ;;  %v1380_v10 = vld [vmem:[%s1885_s5 + $0x78] sm:$0xf] }
  0x10   : > { %844 = vmatpush.bf16.msra.mxu0 %v1756_v1  ;;  %1789 = vmatpush.bf16.msra.mxu1 %v1756_v1  ;;  %v1712_v11 = vld [vmem:[%s1885_s5 + $0x88] sm:$0xf0]  ;;  %v1480_v12 = vld [vmem:[%s1885_s5 + $0x140] sm:$0xf]  ;;  %v1737_v13 = vld [vmem:[%s1885_s5 + $0x150] sm:$0xf0]  ;;  %v1321_v18 = vor.u32 %v1697_v9, %v1320_v8 }
  0x11   : > { %1791 = vmatpush.bf16.msra.mxu3 %v1756_v1  ;;  %1790 = vmatpush.bf16.msra.mxu2 %v1756_v1  ;;  %v1440_v16 = vld [vmem:[%s1885_s5 + $0xf0] sm:$0xf]  ;;  %v1727_v17 = vld [vmem:[%s1885_s5 + $0x100] sm:$0xf0]  ;;  %v1381_v19 = vor.u32 %v1712_v11, %v1380_v10  ;;  %v1481_v20 = vor.u32 %v1737_v13, %v1480_v12  ;;  %v1773_v21 = vld [vmem:[%s2274_s1 + $0xb8] sm:$0xff] }
  0x12   : > { %v1441_v22 = vor.u32 %v1727_v17, %v1440_v16  ;;  %v1780_v24 = vld [vmem:[%s2274_s1 + $0xf0] sm:$0xff]  ;;  %v1785_v25 = vld [vmem:[%s2274_s1 + $0x118] sm:$0xff]  ;;  %v1779_v28 = vld [vmem:[%s2274_s1 + $0xe8] sm:$0xff] }
  0x13   : > { %v1772_v26 = vld [vmem:[%s2274_s1 + $0xb0] sm:$0xff]  ;;  %v1771_v30 = vld [vmem:[%s2274_s1 + $0xa8] sm:$0xff]  ;;  %v1762_v31 = vld [vmem:[%s2274_s1 + $0x60] sm:$0xff] }
  0x14   : > { %845 = vmatpush.bf16.msra.mxu0 %v1755_v2  ;;  %1792 = vmatpush.bf16.msra.mxu1 %v1755_v2  ;;  %v1784_v29 = vld [vmem:[%s2274_s1 + $0x110] sm:$0xff]  ;;  %v1778_v32 = vld [vmem:[%s2274_s1 + $0xe0] sm:$0xff]  ;;  %v1783_v33 = vld [vmem:[%s2274_s1 + $0x108] sm:$0xff] }
  0x15   : > { %1794 = vmatpush.bf16.msra.mxu3 %v1755_v2  ;;  %1793 = vmatpush.bf16.msra.mxu2 %v1755_v2  ;;  %v1340_v34 = vld [vmem:[%s1885_s5 + $0x28] sm:$0xf]  ;;  %v1702_v35 = vld [vmem:[%s1885_s5 + $0x38] sm:$0xf0]  ;;  %v1400_v36 = vld [vmem:[%s1885_s5 + $0xa0] sm:$0xf] }
  0x16   : > { %v1717_v37 = vld [vmem:[%s1885_s5 + $0xb0] sm:$0xf0]  ;;  %v1500_v38 = vld [vmem:[%s1885_s5 + $0x168] sm:$0xf]  ;;  %v1770_v39 = vld [vmem:[%s2274_s1 + $0xa0] sm:$0xff]  ;;  %v1341_v46 = vor.u32 %v1702_v35, %v1340_v34 }
  0x17   : > { %v1742_v40 = vld [vmem:[%s1885_s5 + $0x178] sm:$0xf0]  ;;  %v1460_v41 = vld [vmem:[%s1885_s5 + $0x118] sm:$0xf]  ;;  %v1732_v43 = vld [vmem:[%s1885_s5 + $0x128] sm:$0xf0]  ;;  %v1401_v47 = vor.u32 %v1717_v37, %v1400_v36 }
  0x18   : > { %846 = vmatpush.bf16.msra.mxu0 %v1754_v3  ;;  %1795 = vmatpush.bf16.msra.mxu1 %v1754_v3  ;;  %v1761_v42 = vld [vmem:[%s2274_s1 + $0x58] sm:$0xff]  ;;  %v1782_v45 = vld [vmem:[%s2274_s1 + $0x100] sm:$0xff]  ;;  %v1501_v48 = vor.u32 %v1742_v40, %v1500_v38  ;;  %v1461_v50 = vor.u32 %v1732_v43, %v1460_v41  ;;  %v1760_v51 = vld [vmem:[%s2274_s1 + $0x50] sm:$0xff] }
  0x19   : > { %1797 = vmatpush.bf16.msra.mxu3 %v1754_v3  ;;  %1796 = vmatpush.bf16.msra.mxu2 %v1754_v3  ;;  %v1777_v44 = vld [vmem:[%s2274_s1 + $0xd8] sm:$0xff]  ;;  %v1776_v52 = vld [vmem:[%s2274_s1 + $0xd0] sm:$0xff]  ;;  %v1759_v54 = vld [vmem:[%s2274_s1 + $0x48] sm:$0xff] }
  0x1a   : > { %v1769_v49 = vld [vmem:[%s2274_s1 + $0x98] sm:$0xff]  ;;  %v1768_v53 = vld [vmem:[%s2274_s1 + $0x90] sm:$0xff]  ;;  %v1775_v55 = vld [vmem:[%s2274_s1 + $0xc8] sm:$0xff] }
  0x1b   : > { %v1767_v56 = vld [vmem:[%s2274_s1 + $0x88] sm:$0xff]  ;;  %v1758_v57 = vld [vmem:[%s2274_s1 + $0x40] sm:$0xff]  ;;  %v1360_v59 = vld [vmem:[%s1885_s5 + $0x50] sm:$0xf] }
  0x1c   : > { %847 = vmatpush.bf16.msra.mxu0 %v1753_v4  ;;  %1798 = vmatpush.bf16.msra.mxu1 %v1753_v4  ;;  %v1774_v58 = vld [vmem:[%s2274_s1 + $0xc0] sm:$0xff]  ;;  %v1420_v61 = vld [vmem:[%s1885_s5 + $0xc8] sm:$0xf]  ;;  %v1722_v62 = vld [vmem:[%s1885_s5 + $0xd8] sm:$0xf0] }
  0x1d   : > { %1800 = vmatpush.bf16.msra.mxu3 %v1753_v4  ;;  %1799 = vmatpush.bf16.msra.mxu2 %v1753_v4  ;;  %v1707_v60 = vld [vmem:[%s1885_s5 + $0x60] sm:$0xf0]  ;;  %v1520_v0 = vld [vmem:[%s1885_s5 + $0x190] sm:$0xf]  ;;  %v1328_v2 = vld [vmem:[%s1885_s5 + $0x8] sm:$0xf] }
  0x1e   : > { %v1766_v63 = vld [vmem:[%s2274_s1 + $0x80] sm:$0xff]  ;;  %v1698_v3 = vld [vmem:[%s1885_s5 + $0x18] sm:$0xf0]  ;;  %v1361_v4 = vor.u32 %v1707_v60, %v1360_v59  ;;  %v1322_v9 = vld [vmem:[%s1885_s5 + $0x14] sm:$0xf0] }
  0x1f   : > { %v1747_v1 = vld [vmem:[%s1885_s5 + $0x1a0] sm:$0xf0]  ;;  %v1336_v10 = vld [vmem:[%s1885_s5 + $0x10] sm:$0xf]  ;;  %v1696_v12 = vld [vmem:[%s1885_s5 + $0xc] sm:$0xf] }
  0x20   : > { %848 = vmatpush.bf16.msra.mxu0 %v1752_v5  ;;  %1801 = vmatpush.bf16.msra.mxu1 %v1752_v5  ;;  %v1695_v8 = vld [vmem:[%s1885_s5 + $0x4] sm:$0xf]  ;;  %v1330_v13 = vld [vmem:[%s1885_s5 + $0x1c] sm:$0xf0]  ;;  %v1709_v35 = vld [vmem:[%s1885_s5 + $0x70] sm:$0xf0] }
  0x21   : > { %1803 = vmatpush.bf16.msra.mxu3 %v1752_v5  ;;  %1802 = vmatpush.bf16.msra.mxu2 %v1752_v5  ;;  %v1421_v5 = vor.u32 %v1722_v62, %v1420_v61  ;;  %v1699_v11 = vld [vmem:[%s1885_s5 + $0x20] sm:$0xf0]  ;;  %v1325_v16 = vor.u32 %v1695_v8, %v1322_v9  ;;  %v1376_v34 = vld [vmem:[%s1885_s5 + $0x60] sm:$0xf]  ;;  %v1706_v36 = vld [vmem:[%s1885_s5 + $0x5c] sm:$0xf] }
  0x22   : > { %v1337_v17 = vor.u32 %v1699_v11, %v1336_v10  ;;  %v1370_v37 = vld [vmem:[%s1885_s5 + $0x6c] sm:$0xf0]  ;;  %v1388_v38 = vld [vmem:[%s1885_s5 + $0x80] sm:$0xf]  ;;  %v1377_v41 = vor.u32 %v1709_v35, %v1376_v34  ;;  %v1719_v59 = vld [vmem:[%s1885_s5 + $0xc0] sm:$0xf0] }
  0x23   : > { %v1716_v60 = vld [vmem:[%s1885_s5 + $0xac] sm:$0xf]  ;;  %v1410_v61 = vld [vmem:[%s1885_s5 + $0xbc] sm:$0xf0]  ;;  %v1428_v62 = vld [vmem:[%s1885_s5 + $0xd0] sm:$0xf] }
  0x24   : > { %849 = vmatpush.bf16.msra.mxu0 %v1751_v6  ;;  %1804 = vmatpush.bf16.msra.mxu1 %v1751_v6  ;;  %v1721_v8 = vld [vmem:[%s1885_s5 + $0xd4] sm:$0xf]  ;;  %v1430_v9 = vld [vmem:[%s1885_s5 + $0xe4] sm:$0xf0]  ;;  %v1448_v10 = vld [vmem:[%s1885_s5 + $0xf8] sm:$0xf] }
  0x25   : > { %1806 = vmatpush.bf16.msra.mxu3 %v1751_v6  ;;  %1805 = vmatpush.bf16.msra.mxu2 %v1751_v6  ;;  %v1521_v6 = vor.u32 %v1747_v1, %v1520_v0  ;;  %v1728_v11 = vld [vmem:[%s1885_s5 + $0x108] sm:$0xf0] }
  0x28   : > { %850 = vmatpush.bf16.msra.mxu0 %v1750_v7  ;;  %1807 = vmatpush.bf16.msra.mxu1 %v1750_v7 }
  0x29   : > { %1809 = vmatpush.bf16.msra.mxu3 %v1750_v7  ;;  %1808 = vmatpush.bf16.msra.mxu2 %v1750_v7  ;;  %v1329_v7 = vor.u32 %v1698_v3, %v1328_v2  ;;  %v1413_v2 = vor.u32 %v1716_v60, %v1410_v61 }
  0x2b   : > { %851 = vmatmul.bf16.vlgmr.msra.gmra.mxu0 %v1321_v18  ;;  %866 = vmatmul.bf16.vlgmr.msra.gmra.mxu1 %v1381_v19  ;;  %v1333_v18 = vor.u32 %v1696_v12, %v1330_v13 }
  0x2c   : > { %907 = vmatpush.bf16.msrb.mxu1 %v1765_v14  ;;  %891 = vmatmul.bf16.vlgmr.msra.gmra.mxu3 %v1481_v20  ;;  %v1348_v14 = vld [vmem:[%s1885_s5 + $0x30] sm:$0xf]  ;;  %v1700_v20 = vld [vmem:[%s1885_s5 + $0x2c] sm:$0xf] }
  0x2d   : > { %1035 = vmatpush.bf16.msrb.mxu3 %v1781_v15  ;;  %971 = vmatpush.bf16.msrb.mxu2 %v1773_v21  ;;  %v1703_v15 = vld [vmem:[%s1885_s5 + $0x40] sm:$0xf0]  ;;  %v1342_v21 = vld [vmem:[%s1885_s5 + $0x3c] sm:$0xf0] }
  0x2e   : > { %881 = vmatmul.bf16.vlgmr.msra.gmra.mxu2 %v1441_v22  ;;  %1103 = vmatpush.bf16.msrb.mxu0 %v1785_v25  ;;  %v1349_v19 = vor.u32 %v1703_v15, %v1348_v14  ;;  %v1356_v22 = vld [vmem:[%s1885_s5 + $0x38] sm:$0xf]  ;;  %v1350_v25 = vld [vmem:[%s1885_s5 + $0x44] sm:$0xf0] }
  0x30   : > { %908 = vmatpush.bf16.msrb.mxu1 %v1764_v23  ;;  %v1704_v23 = vld [vmem:[%s1885_s5 + $0x48] sm:$0xf0] }
  0x31   : > { %1036 = vmatpush.bf16.msrb.mxu3 %v1780_v24  ;;  %972 = vmatpush.bf16.msrb.mxu2 %v1772_v26  ;;  %v1701_v24 = vld [vmem:[%s1885_s5 + $0x34] sm:$0xf]  ;;  %v1368_v26 = vld [vmem:[%s1885_s5 + $0x58] sm:$0xf] }
  0x32   : > { %1104 = vmatpush.bf16.msrb.mxu0 %v1784_v29  ;;  %v1357_v29 = vor.u32 %v1704_v23, %v1356_v22 }
  0x34   : > { %909 = vmatpush.bf16.msrb.mxu1 %v1763_v27  ;;  %v1708_v27 = vld [vmem:[%s1885_s5 + $0x68] sm:$0xf0] }
  0x35   : > { %1037 = vmatpush.bf16.msrb.mxu3 %v1779_v28  ;;  %973 = vmatpush.bf16.msrb.mxu2 %v1771_v30  ;;  %v1345_v28 = vor.u32 %v1700_v20, %v1342_v21  ;;  %v1353_v30 = vor.u32 %v1701_v24, %v1350_v25  ;;  %v1725_v25 = vld [vmem:[%s1885_s5 + $0xf4] sm:$0xf] }
  0x36   : > { %1105 = vmatpush.bf16.msrb.mxu0 %v1783_v33  ;;  %v1362_v33 = vld [vmem:[%s1885_s5 + $0x64] sm:$0xf0] }
  0x38   : > { %910 = vmatpush.bf16.msrb.mxu1 %v1762_v31  ;;  %v1369_v31 = vor.u32 %v1708_v27, %v1368_v26  ;;  %v1442_v26 = vld [vmem:[%s1885_s5 + $0x104] sm:$0xf0]  ;;  %v1456_v27 = vld [vmem:[%s1885_s5 + $0x100] sm:$0xf] }
  0x39   : > { %1038 = vmatpush.bf16.msrb.mxu3 %v1778_v32  ;;  %974 = vmatpush.bf16.msrb.mxu2 %v1770_v39  ;;  %v1705_v32 = vld [vmem:[%s1885_s5 + $0x54] sm:$0xf]  ;;  %v1445_v34 = vor.u32 %v1725_v25, %v1442_v26  ;;  %v1508_v25 = vld [vmem:[%s1885_s5 + $0x170] sm:$0xf]  ;;  %v1743_v26 = vld [vmem:[%s1885_s5 + $0x180] sm:$0xf0] }
  0x3a   : > { %1106 = vmatpush.bf16.msrb.mxu0 %v1782_v45  ;;  %v1713_v39 = vld [vmem:[%s1885_s5 + $0x90] sm:$0xf0]  ;;  %v1365_v40 = vor.u32 %v1705_v32, %v1362_v33  ;;  %v1382_v45 = vld [vmem:[%s1885_s5 + $0x8c] sm:$0xf0] }
  0x3b   : > { %856 = vmatmul.bf16.gmra.mxu0 %v1341_v46  ;;  %871 = vmatmul.bf16.gmra.mxu1 %v1401_v47  ;;  %v1389_v43 = vor.u32 %v1713_v39, %v1388_v38  ;;  %v1396_v46 = vld [vmem:[%s1885_s5 + $0x88] sm:$0xf]  ;;  %v1714_v47 = vld [vmem:[%s1885_s5 + $0x98] sm:$0xf0]  ;;  %v1733_v32 = vld [vmem:[%s1885_s5 + $0x130] sm:$0xf0] }
  0x3c   : > { %911 = vmatpush.bf16.msrb.mxu1 %v1761_v42  ;;  %896 = vmatmul.bf16.gmra.mxu3 %v1501_v48  ;;  %v1373_v42 = vor.u32 %v1706_v36, %v1370_v37  ;;  %v1711_v48 = vld [vmem:[%s1885_s5 + $0x84] sm:$0xf] }
  0x3d   : > { %1039 = vmatpush.bf16.msrb.mxu3 %v1777_v44  ;;  %975 = vmatpush.bf16.msrb.mxu2 %v1769_v49  ;;  %v1710_v44 = vld [vmem:[%s1885_s5 + $0x7c] sm:$0xf]  ;;  %v1390_v49 = vld [vmem:[%s1885_s5 + $0x94] sm:$0xf0] }
  0x3e   : > { %886 = vmatmul.bf16.gmra.mxu2 %v1461_v50  ;;  %v1408_v50 = vld [vmem:[%s1885_s5 + $0xa8] sm:$0xf] }
  0x40   : > { %912 = vmatpush.bf16.msrb.mxu1 %v1760_v51  ;;  %v1718_v51 = vld [vmem:[%s1885_s5 + $0xb8] sm:$0xf0] }
  0x41   : > { %1040 = vmatpush.bf16.msrb.mxu3 %v1776_v52  ;;  %976 = vmatpush.bf16.msrb.mxu2 %v1768_v53  ;;  %v1385_v52 = vor.u32 %v1710_v44, %v1382_v45  ;;  %v1397_v53 = vor.u32 %v1714_v47, %v1396_v46 }
  0x44   : > { %913 = vmatpush.bf16.msrb.mxu1 %v1759_v54  ;;  %v1393_v54 = vor.u32 %v1711_v48, %v1390_v49 }
  0x45   : > { %1041 = vmatpush.bf16.msrb.mxu3 %v1775_v55  ;;  %977 = vmatpush.bf16.msrb.mxu2 %v1767_v56  ;;  %v1409_v55 = vor.u32 %v1718_v51, %v1408_v50  ;;  %v1715_v56 = vld [vmem:[%s1885_s5 + $0xa4] sm:$0xf]  ;;  %v1730_v51 = vld [vmem:[%s1885_s5 + $0x11c] sm:$0xf] }
  0x48   : > { %914 = vmatpush.bf16.msrb.mxu1 %v1758_v57  ;;  %v1402_v57 = vld [vmem:[%s1885_s5 + $0xb4] sm:$0xf0] }
  0x49   : > { %1042 = vmatpush.bf16.msrb.mxu3 %v1774_v58  ;;  %978 = vmatpush.bf16.msrb.mxu2 %v1766_v63  ;;  %v1416_v58 = vld [vmem:[%s1885_s5 + $0xb0] sm:$0xf]  ;;  %v1723_v63 = vld [vmem:[%s1885_s5 + $0xe0] sm:$0xf0]  ;;  %v1405_v0 = vor.u32 %v1715_v56, %v1402_v57  ;;  %v1470_v56 = vld [vmem:[%s1885_s5 + $0x134] sm:$0xf0] }
  0x4a   : > { %v1417_v1 = vor.u32 %v1719_v59, %v1416_v58  ;;  %v1429_v3 = vor.u32 %v1723_v63, %v1428_v62  ;;  %v1488_v57 = vld [vmem:[%s1885_s5 + $0x148] sm:$0xf]  ;;  %v1738_v58 = vld [vmem:[%s1885_s5 + $0x158] sm:$0xf0] }
  0x4b   : > { %861 = vmatmul.bf16.gmra.mxu0 %v1361_v4  ;;  %876 = vmatmul.bf16.gmra.mxu1 %v1421_v5  ;;  %v1720_v4 = vld [vmem:[%s1885_s5 + $0xcc] sm:$0xf]  ;;  %v1422_v5 = vld [vmem:[%s1885_s5 + $0xdc] sm:$0xf0] }
  0x4c   : > { %901 = vmatmul.bf16.gmra.mxu3 %v1521_v6  ;;  %v1436_v6 = vld [vmem:[%s1885_s5 + $0xd8] sm:$0xf]  ;;  %v1425_v12 = vor.u32 %v1720_v4, %v1422_v5  ;;  %v1489_v4 = vor.u32 %v1738_v58, %v1488_v57 }
  0x4d   : > { %v1516_v58 = vld [vmem:[%s1885_s5 + $0x178] sm:$0xf] }
  0x4e   : > { %979 = vmatmul.bf16.vlgmr.msrb.gmra.mxu2 %v1329_v7  ;;  %v1724_v7 = vld [vmem:[%s1885_s5 + $0xe8] sm:$0xf0] }
  0x4f   : > { %v1437_v13 = vor.u32 %v1724_v7, %v1436_v6 }
  0x5b   : > { %915 = vmatmul.bf16.vlgmr.msrb.gmra.mxu1 %v1325_v16  ;;  %1682 = vmatmul.msk.bf16.vlgmr.msrb.gmra.mxu0 %vm809_vm0, %v1337_v17  ;;  %v1433_v16 = vor.u32 %v1721_v8, %v1430_v9  ;;  %v1449_v17 = vor.u32 %v1728_v11, %v1448_v10 }
  0x5c   : > { %1043 = vmatmul.bf16.vlgmr.msrb.gmra.mxu3 %v1333_v18  ;;  %v2059_v18 = vld [vmem:[%s2275_s2] ss:$0 sm:$0xff] }
  0x5e   : > { %984 = vmatmul.bf16.gmra.mxu2 %v1349_v19 }
  0x6b   : > { %920 = vmatmul.bf16.gmra.mxu1 %v1345_v28  ;;  %1683 = vmatmul.msk.bf16.gmra.mxu0 %vm809_vm0, %v1357_v29  ;;  %v1729_v28 = vld [vmem:[%s1885_s5 + $0x110] sm:$0xf0]  ;;  %v1726_v29 = vld [vmem:[%s1885_s5 + $0xfc] sm:$0xf] }
  0x6c   : > { %1048 = vmatmul.bf16.gmra.mxu3 %v1353_v30  ;;  %v1450_v30 = vld [vmem:[%s1885_s5 + $0x10c] sm:$0xf0]  ;;  %v1457_v35 = vor.u32 %v1729_v28, %v1456_v27 }
  0x6d   : > { %v1453_v39 = vor.u32 %v1726_v29, %v1450_v30 }
  0x6e   : > { %989 = vmatmul.bf16.gmra.mxu2 %v1369_v31  ;;  %v1468_v31 = vld [vmem:[%s1885_s5 + $0x120] sm:$0xf] }
  0x7b   : > { %925 = vmatmul.bf16.gmra.mxu1 %v1365_v40  ;;  %1684 = vmatmul.msk.bf16.gmra.mxu0 %vm809_vm0, %v1377_v41 }
  0x7c   : > { %1053 = vmatmul.bf16.gmra.mxu3 %v1373_v42  ;;  %v1469_v42 = vor.u32 %v1733_v32, %v1468_v31 }
  0x7e   : > { %994 = vmatmul.bf16.gmra.mxu2 %v1389_v43 }
  0x8b   : > { %930 = vmatmul.bf16.gmra.mxu1 %v1385_v52  ;;  %1685 = vmatmul.msk.bf16.gmra.mxu0 %vm809_vm0, %v1397_v53  ;;  %v1462_v52 = vld [vmem:[%s1885_s5 + $0x12c] sm:$0xf0]  ;;  %v1476_v53 = vld [vmem:[%s1885_s5 + $0x128] sm:$0xf] }
  0x8c   : > { %1058 = vmatmul.bf16.gmra.mxu3 %v1393_v54  ;;  %v1734_v54 = vld [vmem:[%s1885_s5 + $0x138] sm:$0xf0]  ;;  %v1465_v60 = vor.u32 %v1730_v51, %v1462_v52 }
  0x8d   : > { %v1477_v61 = vor.u32 %v1734_v54, %v1476_v53  ;;  %v2149_v53 = vld [vmem:[%s2275_s2 + $0x1] ss:$0 sm:$0xff] }
  0x8e   : > { %999 = vmatmul.bf16.gmra.mxu2 %v1409_v55  ;;  %v1731_v55 = vld [vmem:[%s1885_s5 + $0x124] sm:$0xf] }
  0x9b   : > { %935 = vmatmul.bf16.gmra.mxu1 %v1405_v0  ;;  %1686 = vmatmul.msk.bf16.gmra.mxu0 %vm809_vm0, %v1417_v1  ;;  %v1473_v1 = vor.u32 %v1731_v55, %v1470_v56  ;;  %v2154_v55 = vld [vmem:[%s2275_s2 + $0x2] ss:$0 sm:$0xff] }
  0x9c   : > { %1063 = vmatmul.bf16.gmra.mxu3 %v1413_v2  ;;  %v1502_v56 = vld [vmem:[%s1885_s5 + $0x17c] sm:$0xf0] }
  0x9e   : > { %1004 = vmatmul.bf16.gmra.mxu2 %v1429_v3 }
  0xa8   : > { %v2051_v14 = vpop.f32.mrf.mxu0  ;;  %v2053_v15 = vpop.f32.mrf.mxu1 }
  0xa9   : > { %v853_v30 = vadd.f32 %v2059_v18, %v2051_v14 }
  0xab   : > { %940 = vmatmul.bf16.gmra.mxu1 %v1425_v12  ;;  %1687 = vmatmul.msk.bf16.gmra.mxu0 %vm809_vm0, %v1437_v13  ;;  %v1735_v12 = vld [vmem:[%s1885_s5 + $0x144] sm:$0xf]  ;;  %v1482_v13 = vld [vmem:[%s1885_s5 + $0x154] sm:$0xf0] }
  0xac   : > { %1068 = vmatmul.bf16.gmra.mxu3 %v1433_v16  ;;  %v1496_v16 = vld [vmem:[%s1885_s5 + $0x150] sm:$0xf]  ;;  %v1485_v28 = vor.u32 %v1735_v12, %v1482_v13 }
  0xae   : > { %1009 = vmatmul.bf16.gmra.mxu2 %v1449_v17  ;;  %v1739_v17 = vld [vmem:[%s1885_s5 + $0x160] sm:$0xf0] }
  0xaf   : > { %v892_v19 = vpop.f32.mrf.mxu3  ;;  %v1497_v29 = vor.u32 %v1739_v17, %v1496_v16 }
  0xb0   : > { %v2062_v20 = vadd.f32 %v2059_v18, %v892_v19  ;;  %v2064_v21 = vpop.f32.mrf.mxu0  ;;  %v2066_v22 = vpop.f32.mrf.mxu1  ;;  %v1736_v19 = vld [vmem:[%s1885_s5 + $0x14c] sm:$0xf] }
  0xb1   : > { %v882_v23 = vpop.f32.mrf.mxu2 }
  0xb2   : > { %v2069_v24 = vadd.f32 %v2059_v18, %v882_v23  ;;  %v1490_v23 = vld [vmem:[%s1885_s5 + $0x15c] sm:$0xf0] }
  0xb7   : > { %v894_v33 = vpop.f32.mrf.mxu3 }
  0xb8   : > { %v2080_v36 = vadd.f32 %v2059_v18, %v894_v33  ;;  %v2082_v37 = vpop.f32.mrf.mxu0  ;;  %v872_v38 = vpop.f32.mrf.mxu1 }
  0xb9   : > { %v2085_v40 = vadd.f32 %v2059_v18, %v872_v38  ;;  %v884_v41 = vpop.f32.mrf.mxu2  ;;  %v1509_v38 = vor.u32 %v1743_v26, %v1508_v25  ;;  %v858_v12 = vadd.f32 %v2059_v18, %v2082_v37 }
  0xba   : > { %v2088_v43 = vadd.f32 %v2059_v18, %v884_v41 }
  0xbb   : > { %945 = vmatmul.bf16.gmra.mxu1 %v1445_v34  ;;  %1688 = vmatmul.msk.bf16.gmra.mxu0 %vm809_vm0, %v1457_v35  ;;  %v1493_v34 = vor.u32 %v1736_v19, %v1490_v23 }
  0xbc   : > { %1073 = vmatmul.bf16.gmra.mxu3 %v1453_v39 }
  0xbe   : > { %1014 = vmatmul.bf16.gmra.mxu2 %v1469_v42  ;;  %v855_v42 = vadd.f32 %v2059_v18, %v2064_v21  ;;  %v1740_v21 = vld [vmem:[%s1885_s5 + $0x16c] sm:$0xf] }
  0xbf   : > { %v897_v44 = vpop.f32.mrf.mxu3 }
  0xc0   : > { %v2092_v45 = vadd.f32 %v2059_v18, %v897_v44  ;;  %v2094_v46 = vpop.f32.mrf.mxu0  ;;  %v874_v47 = vpop.f32.mrf.mxu1 }
  0xc1   : > { %v2097_v48 = vadd.f32 %v2059_v18, %v874_v47  ;;  %v887_v49 = vpop.f32.mrf.mxu2 }
  0xc2   : > { %v2100_v50 = vadd.f32 %v2059_v18, %v887_v49 }
  0xc7   : > { %v899_v59 = vpop.f32.mrf.mxu3 }
  0xc8   : > { %v2111_v62 = vadd.f32 %v2059_v18, %v899_v59  ;;  %v2113_v63 = vpop.f32.mrf.mxu0  ;;  %v877_v0 = vpop.f32.mrf.mxu1  ;;  %v1744_v59 = vld [vmem:[%s1885_s5 + $0x188] sm:$0xf0] }
  0xc9   : > { %v2116_v2 = vadd.f32 %v2059_v18, %v877_v0  ;;  %v889_v3 = vpop.f32.mrf.mxu2 }
  0xca   : > { %v2119_v5 = vadd.f32 %v2059_v18, %v889_v3  ;;  %v1528_v3 = vld [vmem:[%s1885_s5 + $0x198] sm:$0xf] }
  0xcb   : > { %950 = vmatmul.bf16.gmra.mxu1 %v1465_v60  ;;  %1689 = vmatmul.msk.bf16.gmra.mxu0 %vm809_vm0, %v1477_v61  ;;  %v1741_v60 = vld [vmem:[%s1885_s5 + $0x174] sm:$0xf]  ;;  %v1510_v61 = vld [vmem:[%s1885_s5 + $0x184] sm:$0xf0] }
  0xcc   : > { %1078 = vmatmul.bf16.gmra.mxu3 %v1473_v1  ;;  %v1513_v23 = vor.u32 %v1741_v60, %v1510_v61  ;;  %v863_v60 = vadd.f32 %v2059_v18, %v2113_v63 }
  0xce   : > { %1019 = vmatmul.bf16.gmra.mxu2 %v1489_v4  ;;  %v1748_v4 = vld [vmem:[%s1885_s5 + $0x1a8] sm:$0xf0] }
  0xcf   : > { %v902_v6 = vpop.f32.mrf.mxu3  ;;  %v1529_v26 = vor.u32 %v1748_v4, %v1528_v3 }
  0xd0   : > { %v2123_v7 = vadd.f32 %v2059_v18, %v902_v6  ;;  %v2125_v8 = vpop.f32.mrf.mxu0  ;;  %v879_v9 = vpop.f32.mrf.mxu1 }
  0xd1   : > { %v2128_v10 = vadd.f32 %v2059_v18, %v879_v9  ;;  %v980_v11 = vpop.f32.mrf.mxu2  ;;  %v1505_v9 = vor.u32 %v1740_v21, %v1502_v56  ;;  %v1530_v21 = vld [vmem:[%s1885_s5 + $0x1ac] sm:$0xf0] }
  0xd7   : > { %v904_v27 = vpop.f32.mrf.mxu3 }
  0xd8   : > { %v2141_v31 = vadd.f32 %v2059_v18, %v904_v27  ;;  %v916_v32 = vpop.f32.mrf.mxu1  ;;  %v1108_v33 = vpop.f32.mrf.mxu0 }
  0xd9   : > { %v982_v35 = vpop.f32.mrf.mxu2  ;;  %v917_v39 = vadd.f32 %v916_v32, %v853_v30 }
  0xdb   : > { %955 = vmatmul.bf16.gmra.mxu1 %v1485_v28  ;;  %1690 = vmatmul.msk.bf16.gmra.mxu0 %vm809_vm0, %v1497_v29  ;;  %v981_v41 = vadd.f32 %v980_v11, %v917_v39  ;;  %v1517_v11 = vor.u32 %v1744_v59, %v1516_v58 }
  0xdc   : > { %1083 = vmatmul.bf16.gmra.mxu3 %v1493_v34 }
  0xde   : > { %1024 = vmatmul.bf16.gmra.mxu2 %v1509_v38 }
  0xdf   : > { %v1044_v14 = vpop.f32.mrf.mxu3 }
  0xe0   : > { %v1045_v44 = vadd.f32 %v1044_v14, %v981_v41  ;;  %v918_v47 = vpop.f32.mrf.mxu1  ;;  %v1110_v49 = vpop.f32.mrf.mxu0 }
  0xe1   : > { %v985_v51 = vpop.f32.mrf.mxu2  ;;  %v919_v54 = vadd.f32 %v918_v47, %v855_v42  ;;  %v1522_v47 = vld [vmem:[%s1885_s5 + $0x1a4] sm:$0xf0] }
  0xe2   : > { %v1109_v52 = vadd.f32 %v1108_v33, %v1045_v44  ;;  %v860_v33 = vadd.f32 %v2059_v18, %v2094_v46  ;;  %v1745_v44 = vld [vmem:[%s1885_s5 + $0x194] sm:$0xf] }
  0xe3   : > { %v983_v1 = vadd.f32 %v982_v35, %v919_v54  ;;  %v1746_v54 = vld [vmem:[%s1885_s5 + $0x19c] sm:$0xf]  ;;  %v1525_v58 = vor.u32 %v1745_v44, %v1522_v47 }
  0xe4   : > { %v1163_v57 = vmax.f32 %v1109_v52, 0.0  ;;  %v1536_v52 = vld [vmem:[%s1885_s5 + $0x1a0] sm:$0xf]  ;;  %v1533_v4 = vor.u32 %v1746_v54, %v1530_v21 }
  0xe6   : > { %v1187_v0 = vmul.f32 %v2149_v53, %v1163_v57 }
  0xe7   : > { %v1046_v6 = vpop.f32.mrf.mxu3 }
  0xe8   : > { %v1211_v13 = vadd.f32 %v2154_v55, %v1187_v0  ;;  %v1047_v16 = vadd.f32 %v1046_v6, %v983_v1  ;;  %v921_v17 = vpop.f32.mrf.mxu1  ;;  %v1113_v19 = vpop.f32.mrf.mxu0 }
  0xe9   : > { %v987_v25 = vpop.f32.mrf.mxu2  ;;  %v922_v28 = vadd.f32 %v921_v17, %v858_v12  ;;  %v865_v17 = vadd.f32 %v2059_v18, %v2125_v8 }
  0xea   : > { %1233 = vst [vmem:[%s2169_s27] sm:$0xff] %v1211_v13  ;;  %v1111_v27 = vadd.f32 %v1110_v49, %v1047_v16 }
  0xeb   : > { %960 = vmatmul.bf16.gmra.mxu1 %v1505_v9  ;;  %1691 = vmatmul.msk.bf16.gmra.mxu0 %vm809_vm0, %v1517_v11  ;;  %v986_v30 = vadd.f32 %v985_v51, %v922_v28  ;;  %v1749_v51 = vld [vmem:[%s1885_s5 + $0x1b0] sm:$0xf0] }
  0xec   : > { %v1164_v29 = vmax.f32 %v1111_v27, 0.0  ;;  %1088 = vmatmul.bf16.gmra.mxu3 %v1513_v23  ;;  %v1537_v59 = vor.u32 %v1749_v51, %v1536_v52  ;;  %v870_v51 = vadd.f32 %v2059_v18, %v2066_v22 }
  0xee   : > { %1029 = vmatmul.bf16.gmra.mxu2 %v1529_v26  ;;  %v1188_v37 = vmul.f32 %v2149_v53, %v1164_v29 }
  0xef   : > { %v1049_v32 = vpop.f32.mrf.mxu3 }
  0xf0   : > { %v1212_v34 = vadd.f32 %v2154_v55, %v1188_v37  ;;  %v1050_v35 = vadd.f32 %v1049_v32, %v986_v30  ;;  %v923_v38 = vpop.f32.mrf.mxu1  ;;  %v1115_v39 = vpop.f32.mrf.mxu0 }
  0xf1   : > { %v990_v41 = vpop.f32.mrf.mxu2  ;;  %v924_v42 = vadd.f32 %v923_v38, %v860_v33 }
  0xf2   : > { %1234 = vst [vmem:[%s2169_s27 + $0x8] sm:$0xff] %v1212_v34  ;;  %v1114_v14 = vadd.f32 %v1113_v19, %v1050_v35  ;;  %v868_v34 = vadd.f32 %v2059_v18, %v2053_v15 }
  0xf3   : > { %v988_v46 = vadd.f32 %v987_v25, %v924_v42 }
  0xf4   : > { %v1165_v49 = vmax.f32 %v1114_v14, 0.0 }
  0xf6   : > { %v1189_v56 = vmul.f32 %v2149_v53, %v1165_v49 }
  0xf7   : > { %v1051_v57 = vpop.f32.mrf.mxu3 }
  0xf8   : > { %v1213_v61 = vadd.f32 %v2154_v55, %v1189_v56  ;;  %v1052_v0 = vadd.f32 %v1051_v57, %v988_v46  ;;  %v926_v1 = vpop.f32.mrf.mxu1  ;;  %v1118_v3 = vpop.f32.mrf.mxu0 }
  0xf9   : > { %v992_v6 = vpop.f32.mrf.mxu2  ;;  %v927_v11 = vadd.f32 %v926_v1, %v863_v60 }
  0xfa   : > { %1235 = vst [vmem:[%s2169_s27 + $0x10] sm:$0xff] %v1213_v61  ;;  %v1116_v9 = vadd.f32 %v1115_v39, %v1052_v0 }
  0xfb   : > { %965 = vmatmul.bf16.gmra.mxu1 %v1525_v58  ;;  %1692 = vmatmul.msk.bf16.gmra.mxu0 %vm809_vm0, %v1537_v59  ;;  %v991_v16 = vadd.f32 %v990_v41, %v927_v11 }
  0xfc   : > { %v1166_v12 = vmax.f32 %v1116_v9, 0.0  ;;  %1093 = vmatmul.bf16.gmra.mxu3 %v1533_v4 }
  0xfe   : > { %v1190_v13 = vmul.f32 %v2149_v53, %v1166_v12 }
  0xff   : > { %v1054_v63 = vpop.f32.mrf.mxu3 }
 0x100   : > { %v1214_v19 = vadd.f32 %v2154_v55, %v1190_v13  ;;  %v1055_v23 = vadd.f32 %v1054_v63, %v991_v16  ;;  %v928_v25 = vpop.f32.mrf.mxu1  ;;  %v1120_v26 = vpop.f32.mrf.mxu0 }
 0x101   : > { %v995_v27 = vpop.f32.mrf.mxu2  ;;  %v929_v29 = vadd.f32 %v928_v25, %v865_v17 }
 0x102   : > { %1236 = vst [vmem:[%s2169_s27 + $0x18] sm:$0xff] %v1214_v19  ;;  %v1119_v28 = vadd.f32 %v1118_v3, %v1055_v23 }
 0x103   : > { %v993_v32 = vadd.f32 %v992_v6, %v929_v29 }
 0x104   : > { %v1167_v37 = vmax.f32 %v1119_v28, 0.0 }
 0x106   : > { %v1191_v30 = vmul.f32 %v2149_v53, %v1167_v37 }
 0x107   : > { %v1056_v33 = vpop.f32.mrf.mxu3 }
 0x108   : > { %v1215_v8 = vadd.f32 %v2154_v55, %v1191_v30  ;;  %v1057_v35 = vadd.f32 %v1056_v33, %v993_v32  ;;  %v931_v38 = vpop.f32.mrf.mxu1  ;;  %v1123_v39 = vpop.f32.mrf.mxu0 }
 0x109   : > { %v997_v41 = vpop.f32.mrf.mxu2  ;;  %v932_v42 = vadd.f32 %v931_v38, %v868_v34 }
 0x10a   : > { %1237 = vst [vmem:[%s2169_s27 + $0x20] sm:$0xff] %v1215_v8  ;;  %v1121_v14 = vadd.f32 %v1120_v26, %v1057_v35 }
 0x10b   : > { %v996_v49 = vadd.f32 %v995_v27, %v932_v42 }
 0x10c   : > { %v1168_v44 = vmax.f32 %v1121_v14, 0.0 }
 0x10e   : > { %v1192_v47 = vmul.f32 %v2149_v53, %v1168_v44 }
 0x10f   : > { %v1059_v52 = vpop.f32.mrf.mxu3 }
 0x110   : > { %v1216_v15 = vadd.f32 %v2154_v55, %v1192_v47  ;;  %v1060_v54 = vadd.f32 %v1059_v52, %v996_v49  ;;  %v933_v21 = vpop.f32.mrf.mxu1  ;;  %v1125_v56 = vpop.f32.mrf.mxu0 }
 0x111   : > { %v1000_v46 = vpop.f32.mrf.mxu2  ;;  %v934_v58 = vadd.f32 %v933_v21, %v870_v51 }
 0x112   : > { %1238 = vst [vmem:[%s2169_s27 + $0x28] sm:$0xff] %v1216_v15  ;;  %v1124_v57 = vadd.f32 %v1123_v39, %v1060_v54 }
 0x113   : > { %v998_v61 = vadd.f32 %v997_v41, %v934_v58 }
 0x114   : > { %v1169_v59 = vmax.f32 %v1124_v57, 0.0 }
 0x116   : > { %v1193_v60 = vmul.f32 %v2149_v53, %v1169_v59 }
 0x117   : > { %v1061_v0 = vpop.f32.mrf.mxu3 }
 0x118   : > { %v1217_v1 = vadd.f32 %v2154_v55, %v1193_v60  ;;  %v1062_v3 = vadd.f32 %v1061_v0, %v998_v61  ;;  %v936_v18 = vpop.f32.mrf.mxu1  ;;  %v1128_v22 = vpop.f32.mrf.mxu0 }
 0x119   : > { %v1002_v4 = vpop.f32.mrf.mxu2  ;;  %v937_v9 = vadd.f32 %v936_v18, %v2085_v40 }
 0x11a   : > { %1239 = vst [vmem:[%s2169_s27 + $0x30] sm:$0xff] %v1217_v1  ;;  %v1126_v6 = vadd.f32 %v1125_v56, %v1062_v3 }
 0x11b   : > { %v1001_v13 = vadd.f32 %v1000_v46, %v937_v9 }
 0x11c   : > { %v1170_v11 = vmax.f32 %v1126_v6, 0.0 }
 0x11e   : > { %v1194_v12 = vmul.f32 %v2149_v53, %v1170_v11 }
 0x11f   : > { %v1064_v16 = vpop.f32.mrf.mxu3 }
 0x120   : > { %v1218_v63 = vadd.f32 %v2154_v55, %v1194_v12  ;;  %v1065_v17 = vadd.f32 %v1064_v16, %v1001_v13  ;;  %v938_v19 = vpop.f32.mrf.mxu1  ;;  %v1130_v23 = vpop.f32.mrf.mxu0 }
 0x121   : > { %v1005_v25 = vpop.f32.mrf.mxu2  ;;  %v939_v27 = vadd.f32 %v938_v19, %v2097_v48 }
 0x122   : > { %1240 = vst [vmem:[%s2169_s27 + $0x38] sm:$0xff] %v1218_v63  ;;  %v1129_v26 = vadd.f32 %v1128_v22, %v1065_v17 }
 0x123   : > { %v1003_v40 = vadd.f32 %v1002_v4, %v939_v27 }
 0x124   : > { %v1171_v28 = vmax.f32 %v1129_v26, 0.0 }
 0x126   : > { %v1195_v29 = vmul.f32 %v2149_v53, %v1171_v28 }
 0x127   : > { %v1066_v37 = vpop.f32.mrf.mxu3 }
 0x128   : > { %v1219_v30 = vadd.f32 %v2154_v55, %v1195_v29  ;;  %v1067_v32 = vadd.f32 %v1066_v37, %v1003_v40  ;;  %v941_v33 = vpop.f32.mrf.mxu1  ;;  %v1133_v34 = vpop.f32.mrf.mxu0 }
 0x129   : > { %v1007_v8 = vpop.f32.mrf.mxu2  ;;  %v942_v38 = vadd.f32 %v941_v33, %v2116_v2 }
 0x12a   : > { %1241 = vst [vmem:[%s2169_s27 + $0x40] sm:$0xff] %v1219_v30  ;;  %v1131_v35 = vadd.f32 %v1130_v23, %v1067_v32 }
 0x12b   : > { %v1006_v48 = vadd.f32 %v1005_v25, %v942_v38 }
 0x12c   : > { %v1172_v39 = vmax.f32 %v1131_v35, 0.0 }
 0x12e   : > { %v1196_v41 = vmul.f32 %v2149_v53, %v1172_v39 }
 0x12f   : > { %v1069_v14 = vpop.f32.mrf.mxu3 }
 0x130   : > { %v1220_v42 = vadd.f32 %v2154_v55, %v1196_v41  ;;  %v1070_v44 = vadd.f32 %v1069_v14, %v1006_v48  ;;  %v943_v47 = vpop.f32.mrf.mxu1  ;;  %v1135_v49 = vpop.f32.mrf.mxu0 }
 0x131   : > { %v1010_v52 = vpop.f32.mrf.mxu2  ;;  %v944_v15 = vadd.f32 %v943_v47, %v2128_v10 }
 0x132   : > { %1242 = vst [vmem:[%s2169_s27 + $0x48] sm:$0xff] %v1220_v42  ;;  %v1134_v51 = vadd.f32 %v1133_v34, %v1070_v44 }
 0x133   : > { %v1008_v2 = vadd.f32 %v1007_v8, %v944_v15 }
 0x134   : > { %v1173_v54 = vmax.f32 %v1134_v51, 0.0 }
 0x136   : > { %v1197_v21 = vmul.f32 %v2149_v53, %v1173_v54 }
 0x137   : > { %v1071_v56 = vpop.f32.mrf.mxu3 }
 0x138   : > { %v1221_v46 = vadd.f32 %v2154_v55, %v1197_v21  ;;  %v1072_v57 = vadd.f32 %v1071_v56, %v1008_v2  ;;  %v946_v58 = vpop.f32.mrf.mxu1  ;;  %v1138_v59 = vpop.f32.mrf.mxu0 }
 0x139   : > { %v1012_v60 = vpop.f32.mrf.mxu2  ;;  %v947_v0 = vadd.f32 %v946_v58, %v2069_v24 }
 0x13a   : > { %1243 = vst [vmem:[%s2169_s27 + $0x50] sm:$0xff] %v1221_v46  ;;  %v1136_v61 = vadd.f32 %v1135_v49, %v1072_v57 }
 0x13b   : > { %v1011_v10 = vadd.f32 %v1010_v52, %v947_v0 }
 0x13c   : > { %v1174_v1 = vmax.f32 %v1136_v61, 0.0 }
 0x13e   : > { %v1198_v3 = vmul.f32 %v2149_v53, %v1174_v1 }
 0x13f   : > { %v1074_v18 = vpop.f32.mrf.mxu3 }
 0x140   : > { %v1222_v22 = vadd.f32 %v2154_v55, %v1198_v3  ;;  %v1075_v4 = vadd.f32 %v1074_v18, %v1011_v10  ;;  %v948_v6 = vpop.f32.mrf.mxu1  ;;  %v1140_v9 = vpop.f32.mrf.mxu0 }
 0x141   : > { %v1015_v11 = vpop.f32.mrf.mxu2  ;;  %v949_v13 = vadd.f32 %v948_v6, %v2088_v43 }
 0x142   : > { %1244 = vst [vmem:[%s2169_s27 + $0x58] sm:$0xff] %v1222_v22  ;;  %v1139_v12 = vadd.f32 %v1138_v59, %v1075_v4 }
 0x143   : > { %v1013_v24 = vadd.f32 %v1012_v60, %v949_v13 }
 0x144   : > { %v1175_v16 = vmax.f32 %v1139_v12, 0.0 }
 0x146   : > { %v1199_v63 = vmul.f32 %v2149_v53, %v1175_v16 }
 0x147   : > { %v1076_v17 = vpop.f32.mrf.mxu3 }
 0x148   : > { %v1223_v19 = vadd.f32 %v2154_v55, %v1199_v63  ;;  %v1077_v23 = vadd.f32 %v1076_v17, %v1013_v24  ;;  %v951_v25 = vpop.f32.mrf.mxu1  ;;  %v1143_v26 = vpop.f32.mrf.mxu0 }
 0x149   : > { %v1017_v27 = vpop.f32.mrf.mxu2  ;;  %v952_v29 = vadd.f32 %v951_v25, %v2100_v50 }
 0x14a   : > { %1245 = vst [vmem:[%s2169_s27 + $0x60] sm:$0xff] %v1223_v19  ;;  %v1141_v28 = vadd.f32 %v1140_v9, %v1077_v23 }
 0x14b   : > { %v1016_v43 = vadd.f32 %v1015_v11, %v952_v29 }
 0x14c   : > { %v1176_v40 = vmax.f32 %v1141_v28, 0.0 }
 0x14e   : > { %v1200_v37 = vmul.f32 %v2149_v53, %v1176_v40 }
 0x14f   : > { %v1079_v30 = vpop.f32.mrf.mxu3 }
 0x150   : > { %v1224_v32 = vadd.f32 %v2154_v55, %v1200_v37  ;;  %v1080_v33 = vadd.f32 %v1079_v30, %v1016_v43  ;;  %v953_v34 = vpop.f32.mrf.mxu1  ;;  %v1145_v8 = vpop.f32.mrf.mxu0 }
 0x151   : > { %v954_v38 = vadd.f32 %v953_v34, %v2119_v5  ;;  %v1020_v39 = vpop.f32.mrf.mxu2 }
 0x152   : > { %1246 = vst [vmem:[%s2169_s27 + $0x68] sm:$0xff] %v1224_v32  ;;  %v1144_v35 = vadd.f32 %v1143_v26, %v1080_v33 }
 0x153   : > { %v1018_v50 = vadd.f32 %v1017_v27, %v954_v38 }
 0x154   : > { %v1177_v41 = vmax.f32 %v1144_v35, 0.0 }
 0x156   : > { %v1201_v48 = vmul.f32 %v2149_v53, %v1177_v41 }
 0x157   : > { %v1081_v14 = vpop.f32.mrf.mxu3 }
 0x158   : > { %v1225_v42 = vadd.f32 %v2154_v55, %v1201_v48  ;;  %v1082_v44 = vadd.f32 %v1081_v14, %v1018_v50  ;;  %v956_v47 = vpop.f32.mrf.mxu1  ;;  %v1148_v49 = vpop.f32.mrf.mxu0 }
 0x159   : > { %v957_v51 = vadd.f32 %v956_v47, %v2062_v20  ;;  %v1022_v54 = vpop.f32.mrf.mxu2 }
 0x15a   : > { %1247 = vst [vmem:[%s2169_s27 + $0x70] sm:$0xff] %v1225_v42  ;;  %v1146_v52 = vadd.f32 %v1145_v8, %v1082_v44 }
 0x15b   : > { %v1021_v21 = vadd.f32 %v1020_v39, %v957_v51 }
 0x15c   : > { %v1178_v15 = vmax.f32 %v1146_v52, 0.0 }
 0x15e   : > { %v1202_v5 = vmul.f32 %v2149_v53, %v1178_v15 }
 0x15f   : > { %v1084_v2 = vpop.f32.mrf.mxu3 }
 0x160   : > { %v1226_v56 = vadd.f32 %v2154_v55, %v1202_v5  ;;  %v1085_v46 = vadd.f32 %v1084_v2, %v1021_v21  ;;  %v958_v57 = vpop.f32.mrf.mxu1  ;;  %v1150_v58 = vpop.f32.mrf.mxu0 }
 0x161   : > { %v959_v60 = vadd.f32 %v958_v57, %v2080_v36  ;;  %v1025_v1 = vpop.f32.mrf.mxu2 }
 0x162   : > { %1248 = vst [vmem:[%s2169_s27 + $0x78] sm:$0xff] %v1226_v56  ;;  %v1149_v59 = vadd.f32 %v1148_v49, %v1085_v46 }
 0x163   : > { %v1023_v20 = vadd.f32 %v1022_v54, %v959_v60 }
 0x164   : > { %v1179_v61 = vmax.f32 %v1149_v59, 0.0 }
 0x166   : > { %v1203_v0 = vmul.f32 %v2149_v53, %v1179_v61 }
 0x167   : > { %v1086_v3 = vpop.f32.mrf.mxu3 }
 0x168   : > { %v1227_v10 = vadd.f32 %v2154_v55, %v1203_v0  ;;  %v1087_v18 = vadd.f32 %v1086_v3, %v1023_v20  ;;  %v961_v22 = vpop.f32.mrf.mxu1  ;;  %v1153_v9 = vpop.f32.mrf.mxu0 }
 0x169   : > { %v962_v6 = vadd.f32 %v961_v22, %v2092_v45  ;;  %v1027_v17 = vpop.f32.mrf.mxu2 }
 0x16a   : > { %1249 = vst [vmem:[%s2169_s27 + $0x80] sm:$0xff] %v1227_v10  ;;  %v1151_v4 = vadd.f32 %v1150_v58, %v1087_v18 }
 0x16b   : > { %v1026_v36 = vadd.f32 %v1025_v1, %v962_v6 }
 0x16c   : > { %v1180_v11 = vmax.f32 %v1151_v4, 0.0 }
 0x16e   : > { %v1204_v12 = vmul.f32 %v2149_v53, %v1180_v11 }
 0x16f   : > { %v1089_v13 = vpop.f32.mrf.mxu3 }
 0x170   : > { %v1228_v16 = vadd.f32 %v2154_v55, %v1204_v12  ;;  %v1090_v63 = vadd.f32 %v1089_v13, %v1026_v36  ;;  %v963_v24 = vpop.f32.mrf.mxu1  ;;  %v1155_v26 = vpop.f32.mrf.mxu0 }
 0x171   : > { %v964_v23 = vadd.f32 %v963_v24, %v2111_v62  ;;  %v1030_v32 = vpop.f32.mrf.mxu2 }
 0x172   : > { %1250 = vst [vmem:[%s2169_s27 + $0x88] sm:$0xff] %v1228_v16  ;;  %v1154_v19 = vadd.f32 %v1153_v9, %v1090_v63 }
 0x173   : > { %v1028_v27 = vadd.f32 %v1027_v17, %v964_v23 }
 0x174   : > { %v1181_v25 = vmax.f32 %v1154_v19, 0.0 }
 0x176   : > { %v1205_v45 = vmul.f32 %v2149_v53, %v1181_v25 }
 0x177   : > { %v1091_v28 = vpop.f32.mrf.mxu3 }
 0x178   : > { %v1229_v29 = vadd.f32 %v2154_v55, %v1205_v45  ;;  %v1092_v40 = vadd.f32 %v1091_v28, %v1028_v27  ;;  %v966_v37 = vpop.f32.mrf.mxu1  ;;  %v1158_v8 = vpop.f32.mrf.mxu0 }
 0x179   : > { %v967_v30 = vadd.f32 %v966_v37, %v2123_v7  ;;  %v1032_v42 = vpop.f32.mrf.mxu2 }
 0x17a   : > { %1251 = vst [vmem:[%s2169_s27 + $0x90] sm:$0xff] %v1229_v29  ;;  %v1156_v43 = vadd.f32 %v1155_v26, %v1092_v40 }
 0x17b   : > { %v1031_v62 = vadd.f32 %v1030_v32, %v967_v30 }
 0x17c   : > { %v1182_v33 = vmax.f32 %v1156_v43, 0.0 }
 0x17e   : > { %v1206_v34 = vmul.f32 %v2149_v53, %v1182_v33 }
 0x17f   : > { %v1094_v35 = vpop.f32.mrf.mxu3 }
 0x180   : > { %v1230_v38 = vadd.f32 %v2154_v55, %v1206_v34  ;;  %v1095_v39 = vadd.f32 %v1094_v35, %v1031_v62  ;;  %v968_v41 = vpop.f32.mrf.mxu1  ;;  %v1160_v51 = vpop.f32.mrf.mxu0 }
 0x181   : > { %v969_v50 = vadd.f32 %v968_v41, %v2141_v31 }
 0x182   : > { %1252 = vst [vmem:[%s2169_s27 + $0x98] sm:$0xff] %v1230_v38  ;;  %v1159_v48 = vadd.f32 %v1158_v8, %v1095_v39 }
 0x183   : > { %v1033_v44 = vadd.f32 %v1032_v42, %v969_v50 }
 0x184   : > { %v1183_v14 = vmax.f32 %v1159_v48, 0.0 }
 0x186   : > { %v1207_v7 = vmul.f32 %v2149_v53, %v1183_v14 }
 0x187   : > { %v1096_v47 = vpop.f32.mrf.mxu3 }
 0x188   : > { %v1231_v49 = vadd.f32 %v2154_v55, %v1207_v7  ;;  %v1097_v52 = vadd.f32 %v1096_v47, %v1033_v44 }
 0x18a   : > { %1253 = vst [vmem:[%s2169_s27 + $0xa0] sm:$0xff] %v1231_v49  ;;  %v1161_v15 = vadd.f32 %v1160_v51, %v1097_v52 }
 0x18c   : > { %v1184_v54 = vmax.f32 %v1161_v15, 0.0 }
 0x18e   : > { %v1208_v5 = vmul.f32 %v2149_v53, %v1184_v54 }
 0x190   : > { %v1232_v21 = vadd.f32 %v2154_v55, %v1208_v5 }
 0x192   : > { %1254 = vst [vmem:[%s2169_s27 + $0xa8] sm:$0xff] %v1232_v21 }
 0x193 PF: > { %s13_s12 = sadd.s32 1, %s1828_s12  }
 0x194   : > { %p10_p4 = scmp.ge.s32.totalorder %s13_s12, 4  }
 0x196   :  { %12 = sbr.rel (!%p10_p4) target bundleno = 1 (0x1), region = 62 }

// kernel: _lambda_.10
= control target key start
LH: loop header
LB: loop body
LE: loop exit
PB: predicated region body
PF: predicated region fallthrough
CT: control target
= control target key end

     0   :  { %s671_s12 = smov 0   ;;  %s877_s0 = inlined_call_operand.vmem [shape: bf16[128,128], index: 0, kind: input, shape index: {}]   ;;  %s878_s1 = inlined_call_operand.vmem [shape: bf16[128,256], index: 1, kind: input, shape index: {}]   ;;  %s879_s2 = inlined_call_operand.vmem [shape: f32[3,256], index: 2, kind: input, shape index: {}]   ;;  %s880_s3 = inlined_call_operand.vmem [shape: f32[128,256], index: 3, kind: output, shape index: {}]  }
   0x1 LB: > { %s504_s13 = sadd.s32 4294967295, %s649_s12   ;;  %p508_p0 = scmp.ge.s32.totalorder %s649_s12, 1  ;;  %s649_s12 = sphi %s671_s12, %s13_s12  }
   0x2   : > { %p138_p1 = scmp.lt.s32.totalorder %s649_s12, 3 }
   0x4   : > { %p139_p2 = pnand %p508_p0, %p138_p1 }
   0x5   : > { %s509_s29 = sshll.u32 (!%p139_p2), %s504_s13, 3 }
   0x6   : > { %142 = sbr.rel (%p139_p2) target bundleno = 211 (0xd3), region = 32  ;;  %p164_p3 = scmp.lt.s32.totalorder (!%p139_p2), %s509_s29, 15 }
   0xb   : > { %v588_v0 = vld [vmem:[%s878_s1 + $0x70] sm:$0xf]  ;;  %v618_v1 = vld [vmem:[%s878_s1 + $0x74] sm:$0xf0]  ;;  %v617_v2 = vld [vmem:[%s878_s1 + $0x74] sm:$0xf] }
   0xc   : > { %v589_v3 = vor.u32 %v618_v1, %v588_v0  ;;  %v590_v4 = vld [vmem:[%s878_s1 + $0x78] sm:$0xf0]  ;;  %v580_v5 = vld [vmem:[%s878_s1 + $0x60] sm:$0xf]  ;;  %v616_v6 = vld [vmem:[%s878_s1 + $0x64] sm:$0xf0] }
   0xd   : > { %v593_v7 = vor.u32 %v617_v2, %v590_v4  ;;  %v615_v8 = vld [vmem:[%s878_s1 + $0x64] sm:$0xf]  ;;  %v582_v9 = vld [vmem:[%s878_s1 + $0x68] sm:$0xf0]  ;;  %v581_v10 = vor.u32 %v616_v6, %v580_v5  ;;  %v572_v12 = vld [vmem:[%s878_s1 + $0x50] sm:$0xf] }
   0xe   : > { %310 = vmatpush.bf16.msra.mxu0 %v589_v3  ;;  %619 = vmatpush.bf16.msra.mxu2 %v589_v3  ;;  %v585_v11 = vor.u32 %v615_v8, %v582_v9  ;;  %v614_v13 = vld [vmem:[%s878_s1 + $0x54] sm:$0xf0]  ;;  %v613_v14 = vld [vmem:[%s878_s1 + $0x54] sm:$0xf]  ;;  %v574_v15 = vld [vmem:[%s878_s1 + $0x58] sm:$0xf0] }
   0xf   : > { %339 = vmatpush.bf16.msra.mxu1 %v593_v7  ;;  %627 = vmatpush.bf16.msra.mxu3 %v593_v7  ;;  %v573_v16 = vor.u32 %v614_v13, %v572_v12  ;;  %v577_v17 = vor.u32 %v613_v14, %v574_v15  ;;  %v564_v18 = vld [vmem:[%s878_s1 + $0x40] sm:$0xf]  ;;  %v612_v19 = vld [vmem:[%s878_s1 + $0x44] sm:$0xf0]  ;;  %v611_v20 = vld [vmem:[%s878_s1 + $0x44] sm:$0xf] }
  0x10   : > { %v566_v21 = vld [vmem:[%s878_s1 + $0x48] sm:$0xf0]  ;;  %v565_v22 = vor.u32 %v612_v19, %v564_v18  ;;  %v556_v24 = vld [vmem:[%s878_s1 + $0x30] sm:$0xf]  ;;  %v610_v25 = vld [vmem:[%s878_s1 + $0x34] sm:$0xf0] }
  0x11   : > { %v569_v23 = vor.u32 %v611_v20, %v566_v21  ;;  %v609_v26 = vld [vmem:[%s878_s1 + $0x34] sm:$0xf]  ;;  %v558_v27 = vld [vmem:[%s878_s1 + $0x38] sm:$0xf0]  ;;  %v557_v28 = vor.u32 %v610_v25, %v556_v24  ;;  %v548_v30 = vld [vmem:[%s878_s1 + $0x20] sm:$0xf] }
  0x12   : > { %311 = vmatpush.bf16.msra.mxu0 %v581_v10  ;;  %620 = vmatpush.bf16.msra.mxu2 %v581_v10  ;;  %v561_v29 = vor.u32 %v609_v26, %v558_v27  ;;  %v608_v31 = vld [vmem:[%s878_s1 + $0x24] sm:$0xf0]  ;;  %v607_v32 = vld [vmem:[%s878_s1 + $0x24] sm:$0xf]  ;;  %v550_v33 = vld [vmem:[%s878_s1 + $0x28] sm:$0xf0] }
  0x13   : > { %340 = vmatpush.bf16.msra.mxu1 %v585_v11  ;;  %628 = vmatpush.bf16.msra.mxu3 %v585_v11  ;;  %v549_v34 = vor.u32 %v608_v31, %v548_v30  ;;  %v553_v35 = vor.u32 %v607_v32, %v550_v33  ;;  %v540_v36 = vld [vmem:[%s878_s1 + $0x10] sm:$0xf]  ;;  %v606_v37 = vld [vmem:[%s878_s1 + $0x14] sm:$0xf0]  ;;  %s882_s29 = smov (!%p164_p3, %s509_s29), 15 }
  0x14   : > { %v605_v38 = vld [vmem:[%s878_s1 + $0x14] sm:$0xf]  ;;  %v542_v39 = vld [vmem:[%s878_s1 + $0x18] sm:$0xf0]  ;;  %v541_v40 = vor.u32 %v606_v37, %v540_v36  ;;  %v532_v42 = vld [vmem:[%s878_s1] sm:$0xf] }
  0x15   : > { %v545_v41 = vor.u32 %v605_v38, %v542_v39  ;;  %v604_v43 = vld [vmem:[%s878_s1 + $0x4] sm:$0xf0]  ;;  %s510_s24 = sshll.u32 %s882_s29, 2  ;;  %v603_v44 = vld [vmem:[%s878_s1 + $0x4] sm:$0xf]  ;;  %s598_s11 = sshll.u32 %s882_s29, 4 }
  0x16   : > { %312 = vmatpush.bf16.msra.mxu0 %v573_v16  ;;  %621 = vmatpush.bf16.msra.mxu2 %v573_v16  ;;  %v534_v45 = vld [vmem:[%s878_s1 + $0x8] sm:$0xf0]  ;;  %v533_v46 = vor.u32 %v604_v43, %v532_v42  ;;  %s167_s5 = scalar_lea.vmem %s877_s0, %s510_s24  ;;  %v200_v52 = vld [vmem:[%s879_s2] ss:$4 sm:$0x3]  ;;  %s811_s16 = scalar_lea.vmem %s880_s3, %s598_s11 }
  0x17   : > { %341 = vmatpush.bf16.msra.mxu1 %v577_v17  ;;  %629 = vmatpush.bf16.msra.mxu3 %v577_v17  ;;  %v537_v47 = vor.u32 %v603_v44, %v534_v45  ;;  %v599_v48 = vld [vmem:[%s167_s5] sm:$0xff]  ;;  %v601_v49 = vld [vmem:[%s167_s5 + $0x10] sm:$0xff]  ;;  %v600_v50 = vld [vmem:[%s167_s5 + $0x8] sm:$0xff]  ;;  %v786_v53 = vperm.slane %v200_v52, 0  ;;  %v791_v55 = vperm.slane %v200_v52, 1 }
  0x18   : > { %v602_v51 = vld [vmem:[%s167_s5 + $0x18] sm:$0xff]  ;;  %v594_v54 = vld [vmem:[%s879_s2 + $0x1] ss:$4 sm:$0x3] }
  0x19   : > { %v595_v57 = vld [vmem:[%s879_s2 + $0x2] ss:$4 sm:$0x3]  ;;  %v797_v59 = vperm.slane %v594_v54, 0  ;;  %v800_v62 = vperm.slane %v594_v54, 1 }
  0x1a   : > { %313 = vmatpush.bf16.msra.mxu0 %v565_v22  ;;  %622 = vmatpush.bf16.msra.mxu2 %v565_v22  ;;  %v803_v0 = vperm.slane %v595_v57, 0  ;;  %v805_v2 = vperm.slane %v595_v57, 1 }
  0x1b   : > { %342 = vmatpush.bf16.msra.mxu1 %v569_v23  ;;  %630 = vmatpush.bf16.msra.mxu3 %v569_v23 }
  0x1e   : > { %314 = vmatpush.bf16.msra.mxu0 %v557_v28  ;;  %623 = vmatpush.bf16.msra.mxu2 %v557_v28 }
  0x1f   : > { %343 = vmatpush.bf16.msra.mxu1 %v561_v29  ;;  %631 = vmatpush.bf16.msra.mxu3 %v561_v29 }
  0x22   : > { %315 = vmatpush.bf16.msra.mxu0 %v549_v34  ;;  %624 = vmatpush.bf16.msra.mxu2 %v549_v34 }
  0x23   : > { %344 = vmatpush.bf16.msra.mxu1 %v553_v35  ;;  %632 = vmatpush.bf16.msra.mxu3 %v553_v35 }
  0x26   : > { %316 = vmatpush.bf16.msra.mxu0 %v541_v40  ;;  %625 = vmatpush.bf16.msra.mxu2 %v541_v40 }
  0x27   : > { %345 = vmatpush.bf16.msra.mxu1 %v545_v41  ;;  %633 = vmatpush.bf16.msra.mxu3 %v545_v41 }
  0x2a   : > { %317 = vmatpush.bf16.msra.mxu0 %v533_v46  ;;  %626 = vmatpush.bf16.msra.mxu2 %v533_v46 }
  0x2b   : > { %346 = vmatpush.bf16.msra.mxu1 %v537_v47  ;;  %634 = vmatpush.bf16.msra.mxu3 %v537_v47 }
  0x2d   : > { %318 = vmatmul.bf16.vlgmr.msra.gmra.mxu0 %v599_v48  ;;  %328 = vmatmul.bf16.vlgmr.msra.gmra.mxu2 %v601_v49 }
  0x2e   : > { %347 = vmatmul.bf16.vlgmr.msra.gmra.mxu1 %v599_v48  ;;  %357 = vmatmul.bf16.vlgmr.msra.gmra.mxu3 %v601_v49 }
  0x3d   : > { %323 = vmatmul.bf16.gmra.mxu0 %v600_v50  ;;  %333 = vmatmul.bf16.gmra.mxu2 %v602_v51 }
  0x3e   : > { %352 = vmatmul.bf16.gmra.mxu1 %v600_v50  ;;  %362 = vmatmul.bf16.gmra.mxu3 %v602_v51 }
  0xaa   : > { %v319_v56 = vpop.f32.mrf.mxu0 }
  0xab   : > { %v320_v58 = vadd.f32 %v319_v56, %v786_v53  ;;  %v348_v60 = vpop.f32.mrf.mxu1 }
  0xac   : > { %v349_v61 = vadd.f32 %v348_v60, %v791_v55 }
  0xad   : > { %v368_v63 = vmax.f32 %v320_v58, 0.0 }
  0xae   : > { %v369_v1 = vmax.f32 %v349_v61, 0.0 }
  0xaf   : > { %v391_v3 = vmul.f32 %v797_v59, %v368_v63 }
  0xb0   : > { %v392_v4 = vmul.f32 %v800_v62, %v369_v1  ;;  %v329_v5 = vpop.f32.mrf.mxu2 }
  0xb1   : > { %v414_v6 = vadd.f32 %v803_v0, %v391_v3  ;;  %v330_v7 = vadd.f32 %v329_v5, %v786_v53  ;;  %v358_v8 = vpop.f32.mrf.mxu3 }
  0xb2   : > { %v415_v9 = vadd.f32 %v805_v2, %v392_v4  ;;  %v359_v10 = vadd.f32 %v358_v8, %v791_v55  ;;  %v321_v11 = vpop.f32.mrf.mxu0 }
  0xb3   : > { %430 = vst [vmem:[%s811_s16] sm:$0xff] %v414_v6  ;;  %v376_v12 = vmax.f32 %v330_v7, 0.0  ;;  %v322_v13 = vadd.f32 %v321_v11, %v786_v53  ;;  %v350_v14 = vpop.f32.mrf.mxu1 }
  0xb4   : > { %431 = vst [vmem:[%s811_s16 + $0x8] sm:$0xff] %v415_v9  ;;  %v377_v15 = vmax.f32 %v359_v10, 0.0  ;;  %v351_v16 = vadd.f32 %v350_v14, %v791_v55 }
  0xb5   : > { %v399_v17 = vmul.f32 %v797_v59, %v376_v12  ;;  %v370_v18 = vmax.f32 %v322_v13, 0.0 }
  0xb6   : > { %v400_v19 = vmul.f32 %v800_v62, %v377_v15  ;;  %v371_v20 = vmax.f32 %v351_v16, 0.0 }
  0xb7   : > { %v422_v21 = vadd.f32 %v803_v0, %v399_v17  ;;  %v393_v22 = vmul.f32 %v797_v59, %v370_v18 }
  0xb8   : > { %v423_v23 = vadd.f32 %v805_v2, %v400_v19  ;;  %v394_v24 = vmul.f32 %v800_v62, %v371_v20  ;;  %v331_v25 = vpop.f32.mrf.mxu2 }
  0xb9   : > { %438 = vst [vmem:[%s811_s16 + $0x40] sm:$0xff] %v422_v21  ;;  %v416_v26 = vadd.f32 %v803_v0, %v393_v22  ;;  %v332_v27 = vadd.f32 %v331_v25, %v786_v53  ;;  %v360_v28 = vpop.f32.mrf.mxu3 }
  0xba   : > { %439 = vst [vmem:[%s811_s16 + $0x48] sm:$0xff] %v423_v23  ;;  %v417_v29 = vadd.f32 %v805_v2, %v394_v24  ;;  %v361_v30 = vadd.f32 %v360_v28, %v791_v55  ;;  %v324_v31 = vpop.f32.mrf.mxu0 }
  0xbb   : > { %432 = vst [vmem:[%s811_s16 + $0x10] sm:$0xff] %v416_v26  ;;  %v378_v32 = vmax.f32 %v332_v27, 0.0  ;;  %v325_v33 = vadd.f32 %v324_v31, %v786_v53  ;;  %v353_v34 = vpop.f32.mrf.mxu1 }
  0xbc   : > { %433 = vst [vmem:[%s811_s16 + $0x18] sm:$0xff] %v417_v29  ;;  %v379_v35 = vmax.f32 %v361_v30, 0.0  ;;  %v354_v36 = vadd.f32 %v353_v34, %v791_v55 }
  0xbd   : > { %v401_v37 = vmul.f32 %v797_v59, %v378_v32  ;;  %v372_v38 = vmax.f32 %v325_v33, 0.0 }
  0xbe   : > { %v402_v39 = vmul.f32 %v800_v62, %v379_v35  ;;  %v373_v40 = vmax.f32 %v354_v36, 0.0 }
  0xbf   : > { %v424_v41 = vadd.f32 %v803_v0, %v401_v37  ;;  %v395_v42 = vmul.f32 %v797_v59, %v372_v38 }
  0xc0   : > { %v425_v43 = vadd.f32 %v805_v2, %v402_v39  ;;  %v396_v44 = vmul.f32 %v800_v62, %v373_v40  ;;  %v334_v45 = vpop.f32.mrf.mxu2 }
  0xc1   : > { %440 = vst [vmem:[%s811_s16 + $0x50] sm:$0xff] %v424_v41  ;;  %v418_v46 = vadd.f32 %v803_v0, %v395_v42  ;;  %v335_v47 = vadd.f32 %v334_v45, %v786_v53  ;;  %v363_v48 = vpop.f32.mrf.mxu3 }
  0xc2   : > { %441 = vst [vmem:[%s811_s16 + $0x58] sm:$0xff] %v425_v43  ;;  %v419_v49 = vadd.f32 %v805_v2, %v396_v44  ;;  %v364_v50 = vadd.f32 %v363_v48, %v791_v55  ;;  %v326_v51 = vpop.f32.mrf.mxu0 }
  0xc3   : > { %434 = vst [vmem:[%s811_s16 + $0x20] sm:$0xff] %v418_v46  ;;  %v380_v52 = vmax.f32 %v335_v47, 0.0  ;;  %v327_v54 = vadd.f32 %v326_v51, %v786_v53  ;;  %v355_v56 = vpop.f32.mrf.mxu1 }
  0xc4   : > { %435 = vst [vmem:[%s811_s16 + $0x28] sm:$0xff] %v419_v49  ;;  %v381_v57 = vmax.f32 %v364_v50, 0.0  ;;  %v356_v58 = vadd.f32 %v355_v56, %v791_v55 }
  0xc5   : > { %v403_v60 = vmul.f32 %v797_v59, %v380_v52  ;;  %v374_v61 = vmax.f32 %v327_v54, 0.0 }
  0xc6   : > { %v404_v63 = vmul.f32 %v800_v62, %v381_v57  ;;  %v375_v1 = vmax.f32 %v356_v58, 0.0 }
  0xc7   : > { %v426_v3 = vadd.f32 %v803_v0, %v403_v60  ;;  %v397_v4 = vmul.f32 %v797_v59, %v374_v61 }
  0xc8   : > { %v427_v5 = vadd.f32 %v805_v2, %v404_v63  ;;  %v398_v6 = vmul.f32 %v800_v62, %v375_v1  ;;  %v336_v7 = vpop.f32.mrf.mxu2 }
  0xc9   : > { %442 = vst [vmem:[%s811_s16 + $0x60] sm:$0xff] %v426_v3  ;;  %v420_v8 = vadd.f32 %v803_v0, %v397_v4  ;;  %v337_v9 = vadd.f32 %v336_v7, %v786_v53  ;;  %v365_v10 = vpop.f32.mrf.mxu3 }
  0xca   : > { %443 = vst [vmem:[%s811_s16 + $0x68] sm:$0xff] %v427_v5  ;;  %v421_v11 = vadd.f32 %v805_v2, %v398_v6  ;;  %v366_v12 = vadd.f32 %v365_v10, %v791_v55 }
  0xcb   : > { %436 = vst [vmem:[%s811_s16 + $0x30] sm:$0xff] %v420_v8  ;;  %v382_v13 = vmax.f32 %v337_v9, 0.0 }
  0xcc   : > { %437 = vst [vmem:[%s811_s16 + $0x38] sm:$0xff] %v421_v11  ;;  %v383_v14 = vmax.f32 %v366_v12, 0.0 }
  0xcd   : > { %v405_v15 = vmul.f32 %v797_v59, %v382_v13 }
  0xce   : > { %v406_v16 = vmul.f32 %v800_v62, %v383_v14 }
  0xcf   : > { %v428_v17 = vadd.f32 %v803_v0, %v405_v15 }
  0xd0   : > { %v429_v18 = vadd.f32 %v805_v2, %v406_v16 }
  0xd1   : > { %444 = vst [vmem:[%s811_s16 + $0x70] sm:$0xff] %v428_v17 }
  0xd2   : > { %445 = vst [vmem:[%s811_s16 + $0x78] sm:$0xff] %v429_v18 }
  0xd3 PF: > { %s13_s12 = sadd.s32 1, %s649_s12  }
  0xd4   : > { %p10_p4 = scmp.ge.s32.totalorder %s13_s12, 4  }
  0xd6   :  { %12 = sbr.rel (!%p10_p4) target bundleno = 1 (0x1), region = 64 }

// kernel: _lambda_.11
= control target key start
LH: loop header
LB: loop body
LE: loop exit
PB: predicated region body
PF: predicated region fallthrough
CT: control target
= control target key end

     0   :  { %s943_s1 = inlined_call_operand.vmem [shape: bf16[256,256], index: 1, kind: input, shape index: {}]   ;;  %s944_s0 = inlined_call_operand.vmem [shape: bf16[48,256], index: 0, kind: input, shape index: {}]   ;;  %s945_s2 = inlined_call_operand.vmem [shape: f32[3,256], index: 2, kind: input, shape index: {}]   ;;  %s946_s3 = inlined_call_operand.vmem [shape: f32[48,256], index: 3, kind: output, shape index: {}]  }
   0x1   :  { %v492_v0 = vld [vmem:[%s943_s1 + $0x70] sm:$0xf]  ;;  %v585_v1 = vld [vmem:[%s943_s1 + $0x74] sm:$0xf0]  ;;  %v584_v5 = vld [vmem:[%s943_s1 + $0x74] sm:$0xf] }
   0x2   :  { %v556_v2 = vld [vmem:[%s943_s1 + $0xf0] sm:$0xf]  ;;  %v493_v3 = vor.u32 %v585_v1, %v492_v0  ;;  %v601_v4 = vld [vmem:[%s943_s1 + $0xf4] sm:$0xf0]  ;;  %v494_v6 = vld [vmem:[%s943_s1 + $0x78] sm:$0xf0] }
   0x3   :  { %v557_v7 = vor.u32 %v601_v4, %v556_v2  ;;  %v497_v8 = vor.u32 %v584_v5, %v494_v6  ;;  %v600_v9 = vld [vmem:[%s943_s1 + $0xf4] sm:$0xf]  ;;  %v558_v10 = vld [vmem:[%s943_s1 + $0xf8] sm:$0xf0]  ;;  %v484_v11 = vld [vmem:[%s943_s1 + $0x60] sm:$0xf] }
   0x4   :  { %248 = vmatpush.bf16.msra.mxu0 %v493_v3  ;;  %v561_v12 = vor.u32 %v600_v9, %v558_v10  ;;  %v583_v13 = vld [vmem:[%s943_s1 + $0x64] sm:$0xf0]  ;;  %v548_v14 = vld [vmem:[%s943_s1 + $0xe0] sm:$0xf]  ;;  %v582_v18 = vld [vmem:[%s943_s1 + $0x64] sm:$0xf] }
   0x5   :  { %v599_v15 = vld [vmem:[%s943_s1 + $0xe4] sm:$0xf0]  ;;  %272 = vmatpush.bf16.msra.mxu1 %v557_v7  ;;  %296 = vmatpush.bf16.msra.mxu2 %v497_v8  ;;  %v485_v16 = vor.u32 %v583_v13, %v484_v11  ;;  %v486_v19 = vld [vmem:[%s943_s1 + $0x68] sm:$0xf0]  ;;  %v598_v20 = vld [vmem:[%s943_s1 + $0xe4] sm:$0xf] }
   0x6   :  { %v549_v17 = vor.u32 %v599_v15, %v548_v14  ;;  %320 = vmatpush.bf16.msra.mxu3 %v561_v12  ;;  %v489_v21 = vor.u32 %v582_v18, %v486_v19  ;;  %v550_v22 = vld [vmem:[%s943_s1 + $0xe8] sm:$0xf0]  ;;  %v476_v23 = vld [vmem:[%s943_s1 + $0x50] sm:$0xf]  ;;  %v581_v24 = vld [vmem:[%s943_s1 + $0x54] sm:$0xf0] }
   0x7   :  { %v553_v25 = vor.u32 %v598_v20, %v550_v22  ;;  %v540_v26 = vld [vmem:[%s943_s1 + $0xd0] sm:$0xf]  ;;  %v597_v27 = vld [vmem:[%s943_s1 + $0xd4] sm:$0xf0]  ;;  %v580_v28 = vld [vmem:[%s943_s1 + $0x54] sm:$0xf]  ;;  %v477_v29 = vor.u32 %v581_v24, %v476_v23 }
   0x8   :  { %249 = vmatpush.bf16.msra.mxu0 %v485_v16  ;;  %v478_v30 = vld [vmem:[%s943_s1 + $0x58] sm:$0xf0]  ;;  %v596_v31 = vld [vmem:[%s943_s1 + $0xd4] sm:$0xf]  ;;  %v541_v33 = vor.u32 %v597_v27, %v540_v26  ;;  %v468_v35 = vld [vmem:[%s943_s1 + $0x40] sm:$0xf] }
   0x9   :  { %v542_v32 = vld [vmem:[%s943_s1 + $0xd8] sm:$0xf0]  ;;  %273 = vmatpush.bf16.msra.mxu1 %v549_v17  ;;  %297 = vmatpush.bf16.msra.mxu2 %v489_v21  ;;  %v481_v34 = vor.u32 %v580_v28, %v478_v30  ;;  %v579_v36 = vld [vmem:[%s943_s1 + $0x44] sm:$0xf0]  ;;  %v532_v37 = vld [vmem:[%s943_s1 + $0xc0] sm:$0xf] }
   0xa   :  { %321 = vmatpush.bf16.msra.mxu3 %v553_v25  ;;  %v545_v38 = vor.u32 %v596_v31, %v542_v32  ;;  %v595_v39 = vld [vmem:[%s943_s1 + $0xc4] sm:$0xf0]  ;;  %v578_v40 = vld [vmem:[%s943_s1 + $0x44] sm:$0xf]  ;;  %v470_v41 = vld [vmem:[%s943_s1 + $0x48] sm:$0xf0]  ;;  %v469_v44 = vor.u32 %v579_v36, %v468_v35 }
   0xb   :  { %v594_v42 = vld [vmem:[%s943_s1 + $0xc4] sm:$0xf]  ;;  %v534_v43 = vld [vmem:[%s943_s1 + $0xc8] sm:$0xf0]  ;;  %v533_v45 = vor.u32 %v595_v39, %v532_v37  ;;  %v473_v46 = vor.u32 %v578_v40, %v470_v41  ;;  %v460_v47 = vld [vmem:[%s943_s1 + $0x30] sm:$0xf] }
   0xc   :  { %250 = vmatpush.bf16.msra.mxu0 %v477_v29  ;;  %v577_v48 = vld [vmem:[%s943_s1 + $0x34] sm:$0xf0]  ;;  %v524_v49 = vld [vmem:[%s943_s1 + $0xb0] sm:$0xf]  ;;  %v537_v50 = vor.u32 %v594_v42, %v534_v43  ;;  %v576_v52 = vld [vmem:[%s943_s1 + $0x34] sm:$0xf] }
   0xd   :  { %274 = vmatpush.bf16.msra.mxu1 %v541_v33  ;;  %298 = vmatpush.bf16.msra.mxu2 %v481_v34  ;;  %v593_v51 = vld [vmem:[%s943_s1 + $0xb4] sm:$0xf0]  ;;  %v462_v53 = vld [vmem:[%s943_s1 + $0x38] sm:$0xf0]  ;;  %v592_v54 = vld [vmem:[%s943_s1 + $0xb4] sm:$0xf]  ;;  %v461_v56 = vor.u32 %v577_v48, %v460_v47 }
   0xe   :  { %322 = vmatpush.bf16.msra.mxu3 %v545_v38  ;;  %v526_v55 = vld [vmem:[%s943_s1 + $0xb8] sm:$0xf0]  ;;  %v525_v57 = vor.u32 %v593_v51, %v524_v49  ;;  %v465_v58 = vor.u32 %v576_v52, %v462_v53  ;;  %v452_v59 = vld [vmem:[%s943_s1 + $0x20] sm:$0xf]  ;;  %v575_v60 = vld [vmem:[%s943_s1 + $0x24] sm:$0xf0] }
   0xf   :  { %v516_v61 = vld [vmem:[%s943_s1 + $0xa0] sm:$0xf]  ;;  %v529_v62 = vor.u32 %v592_v54, %v526_v55  ;;  %v591_v63 = vld [vmem:[%s943_s1 + $0xa4] sm:$0xf0]  ;;  %v574_v0 = vld [vmem:[%s943_s1 + $0x24] sm:$0xf]  ;;  %v453_v4 = vor.u32 %v575_v60, %v452_v59 }
  0x10   :  { %251 = vmatpush.bf16.msra.mxu0 %v469_v44  ;;  %v454_v1 = vld [vmem:[%s943_s1 + $0x28] sm:$0xf0]  ;;  %v590_v2 = vld [vmem:[%s943_s1 + $0xa4] sm:$0xf]  ;;  %v517_v5 = vor.u32 %v591_v63, %v516_v61  ;;  %v444_v7 = vld [vmem:[%s943_s1 + $0x10] sm:$0xf] }
  0x11   :  { %275 = vmatpush.bf16.msra.mxu1 %v533_v45  ;;  %299 = vmatpush.bf16.msra.mxu2 %v473_v46  ;;  %v518_v3 = vld [vmem:[%s943_s1 + $0xa8] sm:$0xf0]  ;;  %v457_v6 = vor.u32 %v574_v0, %v454_v1  ;;  %v573_v8 = vld [vmem:[%s943_s1 + $0x14] sm:$0xf0]  ;;  %v508_v9 = vld [vmem:[%s943_s1 + $0x90] sm:$0xf] }
  0x12   :  { %323 = vmatpush.bf16.msra.mxu3 %v537_v50  ;;  %v521_v10 = vor.u32 %v590_v2, %v518_v3  ;;  %v589_v11 = vld [vmem:[%s943_s1 + $0x94] sm:$0xf0]  ;;  %v572_v12 = vld [vmem:[%s943_s1 + $0x14] sm:$0xf]  ;;  %v446_v13 = vld [vmem:[%s943_s1 + $0x18] sm:$0xf0]  ;;  %v445_v16 = vor.u32 %v573_v8, %v444_v7 }
  0x13   :  { %v588_v14 = vld [vmem:[%s943_s1 + $0x94] sm:$0xf]  ;;  %v510_v15 = vld [vmem:[%s943_s1 + $0x98] sm:$0xf0]  ;;  %v509_v17 = vor.u32 %v589_v11, %v508_v9  ;;  %v449_v18 = vor.u32 %v572_v12, %v446_v13  ;;  %v436_v19 = vld [vmem:[%s943_s1] sm:$0xf] }
  0x14   :  { %252 = vmatpush.bf16.msra.mxu0 %v461_v56  ;;  %v571_v20 = vld [vmem:[%s943_s1 + $0x4] sm:$0xf0]  ;;  %v500_v21 = vld [vmem:[%s943_s1 + $0x80] sm:$0xf]  ;;  %v513_v22 = vor.u32 %v588_v14, %v510_v15  ;;  %v570_v24 = vld [vmem:[%s943_s1 + $0x4] sm:$0xf] }
  0x15   :  { %276 = vmatpush.bf16.msra.mxu1 %v525_v57  ;;  %300 = vmatpush.bf16.msra.mxu2 %v465_v58  ;;  %v587_v23 = vld [vmem:[%s943_s1 + $0x84] sm:$0xf0]  ;;  %v438_v25 = vld [vmem:[%s943_s1 + $0x8] sm:$0xf0]  ;;  %v586_v26 = vld [vmem:[%s943_s1 + $0x84] sm:$0xf]  ;;  %v437_v28 = vor.u32 %v571_v20, %v436_v19 }
  0x16   :  { %324 = vmatpush.bf16.msra.mxu3 %v529_v62  ;;  %v502_v27 = vld [vmem:[%s943_s1 + $0x88] sm:$0xf0]  ;;  %v412_v29 = vld [vmem:[%s944_s0] sm:$0xf]  ;;  %v565_v30 = vld [vmem:[%s944_s0 + $0x4] sm:$0xf0]  ;;  %v501_v31 = vor.u32 %v587_v23, %v500_v21  ;;  %v441_v32 = vor.u32 %v570_v24, %v438_v25 }
  0x17   :  { %v564_v33 = vld [vmem:[%s944_s0 + $0x4] sm:$0xf]  ;;  %v414_v34 = vld [vmem:[%s944_s0 + $0x8] sm:$0xf0]  ;;  %v505_v35 = vor.u32 %v586_v26, %v502_v27  ;;  %v413_v36 = vor.u32 %v565_v30, %v412_v29  ;;  %v420_v38 = vld [vmem:[%s944_s0 + $0x10] sm:$0xf] }
  0x18   :  { %253 = vmatpush.bf16.msra.mxu0 %v453_v4  ;;  %v417_v37 = vor.u32 %v564_v33, %v414_v34  ;;  %v567_v39 = vld [vmem:[%s944_s0 + $0x14] sm:$0xf0]  ;;  %v566_v40 = vld [vmem:[%s944_s0 + $0x14] sm:$0xf]  ;;  %v422_v41 = vld [vmem:[%s944_s0 + $0x18] sm:$0xf0] }
  0x19   :  { %277 = vmatpush.bf16.msra.mxu1 %v517_v5  ;;  %301 = vmatpush.bf16.msra.mxu2 %v457_v6  ;;  %v421_v42 = vor.u32 %v567_v39, %v420_v38  ;;  %v425_v43 = vor.u32 %v566_v40, %v422_v41  ;;  %v428_v44 = vld [vmem:[%s944_s0 + $0x20] sm:$0xf]  ;;  %v569_v45 = vld [vmem:[%s944_s0 + $0x24] sm:$0xf0]  ;;  %v568_v46 = vld [vmem:[%s944_s0 + $0x24] sm:$0xf] }
  0x1a   :  { %325 = vmatpush.bf16.msra.mxu3 %v521_v10  ;;  %v430_v47 = vld [vmem:[%s944_s0 + $0x28] sm:$0xf0]  ;;  %v429_v48 = vor.u32 %v569_v45, %v428_v44  ;;  %v52_v50 = vld [vmem:[%s945_s2] ss:$4 sm:$0x3] }
  0x1b   :  { %v433_v49 = vor.u32 %v568_v46, %v430_v47  ;;  %v853_v51 = vperm.slane %v52_v50, 0  ;;  %v562_v53 = vld [vmem:[%s945_s2 + $0x1] ss:$4 sm:$0x3]  ;;  %v864_v59 = vperm.slane %v52_v50, 1 }
  0x1c   :  { %254 = vmatpush.bf16.msra.mxu0 %v445_v16  ;;  %v563_v56 = vld [vmem:[%s945_s2 + $0x2] ss:$4 sm:$0x3]  ;;  %v862_v58 = vperm.slane %v562_v53, 0  ;;  %v872_v7 = vperm.slane %v562_v53, 1 }
  0x1d   :  { %278 = vmatpush.bf16.msra.mxu1 %v509_v17  ;;  %302 = vmatpush.bf16.msra.mxu2 %v449_v18  ;;  %v866_v61 = vperm.slane %v563_v56, 0  ;;  %v877_v10 = vperm.slane %v563_v56, 1 }
  0x1e   :  { %326 = vmatpush.bf16.msra.mxu3 %v513_v22 }
  0x20   :  { %255 = vmatpush.bf16.msra.mxu0 %v437_v28 }
  0x21   :  { %279 = vmatpush.bf16.msra.mxu1 %v501_v31  ;;  %303 = vmatpush.bf16.msra.mxu2 %v441_v32 }
  0x22   :  { %327 = vmatpush.bf16.msra.mxu3 %v505_v35 }
  0x23   :  { %256 = vmatmul.bf16.vlgmr.msra.gmra.mxu0 %v413_v36 }
  0x24   :  { %280 = vmatmul.bf16.vlgmr.msra.gmra.mxu1 %v417_v37  ;;  %304 = vmatmul.bf16.vlgmr.msra.gmra.mxu2 %v413_v36 }
  0x25   :  { %328 = vmatmul.bf16.vlgmr.msra.gmra.mxu3 %v417_v37 }
  0x33   :  { %261 = vmatmul.bf16.gmra.mxu0 %v421_v42 }
  0x34   :  { %285 = vmatmul.bf16.gmra.mxu1 %v425_v43  ;;  %309 = vmatmul.bf16.gmra.mxu2 %v421_v42 }
  0x35   :  { %333 = vmatmul.bf16.gmra.mxu3 %v425_v43 }
  0x43   :  { %266 = vmatmul.bf16.gmra.mxu0 %v429_v48 }
  0x44   :  { %290 = vmatmul.bf16.gmra.mxu1 %v433_v49  ;;  %314 = vmatmul.bf16.gmra.mxu2 %v429_v48 }
  0x45   :  { %338 = vmatmul.bf16.gmra.mxu3 %v433_v49 }
  0xa0   :  { %v257_v52 = vpop.f32.mrf.mxu0 }
  0xa1   :  { %v258_v54 = vadd.f32 %v257_v52, %v853_v51  ;;  %v281_v55 = vpop.f32.mrf.mxu1 }
  0xa3   :  { %v282_v57 = vadd.f32 %v281_v55, %v258_v54 }
  0xa5   :  { %v344_v60 = vmax.f32 %v282_v57, 0.0 }
  0xa7   :  { %v363_v62 = vmul.f32 %v862_v58, %v344_v60  ;;  %v305_v63 = vpop.f32.mrf.mxu2 }
  0xa8   :  { %v306_v0 = vadd.f32 %v305_v63, %v864_v59  ;;  %v329_v1 = vpop.f32.mrf.mxu3  ;;  %v259_v2 = vpop.f32.mrf.mxu0 }
  0xa9   :  { %v382_v3 = vadd.f32 %v866_v61, %v363_v62  ;;  %v260_v4 = vadd.f32 %v259_v2, %v853_v51  ;;  %v283_v5 = vpop.f32.mrf.mxu1 }
  0xaa   :  { %v330_v6 = vadd.f32 %v329_v1, %v306_v0 }
  0xab   :  { %394 = vst [vmem:[%s946_s3] sm:$0xff] %v382_v3  ;;  %v284_v8 = vadd.f32 %v283_v5, %v260_v4 }
  0xac   :  { %v345_v9 = vmax.f32 %v330_v6, 0.0 }
  0xad   :  { %v346_v11 = vmax.f32 %v284_v8, 0.0 }
  0xae   :  { %v364_v12 = vmul.f32 %v872_v7, %v345_v9 }
  0xaf   :  { %v365_v13 = vmul.f32 %v862_v58, %v346_v11  ;;  %v307_v14 = vpop.f32.mrf.mxu2 }
  0xb0   :  { %v383_v15 = vadd.f32 %v877_v10, %v364_v12  ;;  %v308_v16 = vadd.f32 %v307_v14, %v864_v59  ;;  %v331_v17 = vpop.f32.mrf.mxu3  ;;  %v262_v18 = vpop.f32.mrf.mxu0 }
  0xb1   :  { %v384_v19 = vadd.f32 %v866_v61, %v365_v13  ;;  %v263_v20 = vadd.f32 %v262_v18, %v853_v51  ;;  %v286_v21 = vpop.f32.mrf.mxu1 }
  0xb2   :  { %395 = vst [vmem:[%s946_s3 + $0x8] sm:$0xff] %v383_v15  ;;  %v332_v22 = vadd.f32 %v331_v17, %v308_v16 }
  0xb3   :  { %396 = vst [vmem:[%s946_s3 + $0x10] sm:$0xff] %v384_v19  ;;  %v287_v23 = vadd.f32 %v286_v21, %v263_v20 }
  0xb4   :  { %v347_v24 = vmax.f32 %v332_v22, 0.0 }
  0xb5   :  { %v348_v25 = vmax.f32 %v287_v23, 0.0 }
  0xb6   :  { %v366_v26 = vmul.f32 %v872_v7, %v347_v24 }
  0xb7   :  { %v367_v27 = vmul.f32 %v862_v58, %v348_v25  ;;  %v310_v28 = vpop.f32.mrf.mxu2 }
  0xb8   :  { %v385_v29 = vadd.f32 %v877_v10, %v366_v26  ;;  %v311_v30 = vadd.f32 %v310_v28, %v864_v59  ;;  %v334_v31 = vpop.f32.mrf.mxu3  ;;  %v264_v32 = vpop.f32.mrf.mxu0 }
  0xb9   :  { %v386_v33 = vadd.f32 %v866_v61, %v367_v27  ;;  %v265_v34 = vadd.f32 %v264_v32, %v853_v51  ;;  %v288_v35 = vpop.f32.mrf.mxu1 }
  0xba   :  { %397 = vst [vmem:[%s946_s3 + $0x18] sm:$0xff] %v385_v29  ;;  %v335_v36 = vadd.f32 %v334_v31, %v311_v30 }
  0xbb   :  { %398 = vst [vmem:[%s946_s3 + $0x20] sm:$0xff] %v386_v33  ;;  %v289_v37 = vadd.f32 %v288_v35, %v265_v34 }
  0xbc   :  { %v349_v38 = vmax.f32 %v335_v36, 0.0 }
  0xbd   :  { %v350_v39 = vmax.f32 %v289_v37, 0.0 }
  0xbe   :  { %v368_v40 = vmul.f32 %v872_v7, %v349_v38 }
  0xbf   :  { %v369_v41 = vmul.f32 %v862_v58, %v350_v39  ;;  %v312_v42 = vpop.f32.mrf.mxu2 }
  0xc0   :  { %v387_v43 = vadd.f32 %v877_v10, %v368_v40  ;;  %v313_v44 = vadd.f32 %v312_v42, %v864_v59  ;;  %v336_v45 = vpop.f32.mrf.mxu3  ;;  %v267_v46 = vpop.f32.mrf.mxu0 }
  0xc1   :  { %v388_v47 = vadd.f32 %v866_v61, %v369_v41  ;;  %v268_v48 = vadd.f32 %v267_v46, %v853_v51  ;;  %v291_v49 = vpop.f32.mrf.mxu1 }
  0xc2   :  { %399 = vst [vmem:[%s946_s3 + $0x28] sm:$0xff] %v387_v43  ;;  %v337_v50 = vadd.f32 %v336_v45, %v313_v44 }
  0xc3   :  { %400 = vst [vmem:[%s946_s3 + $0x30] sm:$0xff] %v388_v47  ;;  %v292_v52 = vadd.f32 %v291_v49, %v268_v48 }
  0xc4   :  { %v351_v53 = vmax.f32 %v337_v50, 0.0 }
  0xc5   :  { %v352_v54 = vmax.f32 %v292_v52, 0.0 }
  0xc6   :  { %v370_v55 = vmul.f32 %v872_v7, %v351_v53 }
  0xc7   :  { %v371_v56 = vmul.f32 %v862_v58, %v352_v54  ;;  %v315_v57 = vpop.f32.mrf.mxu2 }
  0xc8   :  { %v389_v60 = vadd.f32 %v877_v10, %v370_v55  ;;  %v316_v62 = vadd.f32 %v315_v57, %v864_v59  ;;  %v339_v63 = vpop.f32.mrf.mxu3  ;;  %v269_v0 = vpop.f32.mrf.mxu0 }
  0xc9   :  { %v390_v1 = vadd.f32 %v866_v61, %v371_v56  ;;  %v270_v2 = vadd.f32 %v269_v0, %v853_v51  ;;  %v293_v4 = vpop.f32.mrf.mxu1 }
  0xca   :  { %401 = vst [vmem:[%s946_s3 + $0x38] sm:$0xff] %v389_v60  ;;  %v340_v3 = vadd.f32 %v339_v63, %v316_v62 }
  0xcb   :  { %402 = vst [vmem:[%s946_s3 + $0x40] sm:$0xff] %v390_v1  ;;  %v294_v5 = vadd.f32 %v293_v4, %v270_v2 }
  0xcc   :  { %v353_v6 = vmax.f32 %v340_v3, 0.0 }
  0xcd   :  { %v354_v8 = vmax.f32 %v294_v5, 0.0 }
  0xce   :  { %v372_v9 = vmul.f32 %v872_v7, %v353_v6 }
  0xcf   :  { %v373_v11 = vmul.f32 %v862_v58, %v354_v8  ;;  %v317_v12 = vpop.f32.mrf.mxu2 }
  0xd0   :  { %v391_v51 = vadd.f32 %v877_v10, %v372_v9  ;;  %v318_v13 = vadd.f32 %v317_v12, %v864_v59  ;;  %v341_v15 = vpop.f32.mrf.mxu3 }
  0xd1   :  { %v392_v14 = vadd.f32 %v866_v61, %v373_v11 }
  0xd2   :  { %403 = vst [vmem:[%s946_s3 + $0x48] sm:$0xff] %v391_v51  ;;  %v342_v16 = vadd.f32 %v341_v15, %v318_v13 }
  0xd3   :  { %404 = vst [vmem:[%s946_s3 + $0x50] sm:$0xff] %v392_v14 }
  0xd4   :  { %v355_v17 = vmax.f32 %v342_v16, 0.0 }
  0xd6   :  { %v374_v58 = vmul.f32 %v872_v7, %v355_v17 }
  0xd8   :  { %v393_v18 = vadd.f32 %v877_v10, %v374_v58 }
  0xda   :  { %405 = vst [vmem:[%s946_s3 + $0x58] sm:$0xff] %v393_v18 }

// kernel: _lambda_.13
= control target key start
LH: loop header
LB: loop body
LE: loop exit
PB: predicated region body
PF: predicated region fallthrough
CT: control target
= control target key end

     0   :  { %s5178_s1 = inlined_call_operand.vmem [shape: bf16[512,1024], index: 1, kind: input, shape index: {}]   ;;  %s5179_s0 = inlined_call_operand.vmem [shape: bf16[16,512], index: 0, kind: input, shape index: {}]   ;;  %s5180_s2 = inlined_call_operand.vmem [shape: f32[3,1024], index: 2, kind: input, shape index: {}]   ;;  %s5181_s3 = inlined_call_operand.vmem [shape: f32[16,1024], index: 3, kind: output, shape index: {}]  }
   0x1   :  { %v2388_v0 = vld [vmem:[%s5178_s1 + $0x1c0] sm:$0xf] }
   0x2   :  { %v3252_v1 = vld [vmem:[%s5178_s1 + $0x1dc] sm:$0xf0] }
   0x3   :  { %v2644_v2 = vld [vmem:[%s5178_s1 + $0x3c0] sm:$0xf]  ;;  %v2389_v3 = vor.u32 %v3252_v1, %v2388_v0 }
   0x4   :  { %v3316_v4 = vld [vmem:[%s5178_s1 + $0x3dc] sm:$0xf0] }
   0x5   :  { %v2900_v5 = vld [vmem:[%s5178_s1 + $0x5c0] sm:$0xf]  ;;  %v2645_v7 = vor.u32 %v3316_v4, %v2644_v2  ;;  %1592 = vmatpush.bf16.msra.mxu0 %v2389_v3 }
   0x6   :  { %v3380_v6 = vld [vmem:[%s5178_s1 + $0x5dc] sm:$0xf0] }
   0x7   :  { %v2901_v8 = vor.u32 %v3380_v6, %v2900_v5  ;;  %v3156_v9 = vld [vmem:[%s5178_s1 + $0x7c0] sm:$0xf]  ;;  %1606 = vmatpush.bf16.msra.mxu1 %v2645_v7 }
   0x8   :  { %v3444_v10 = vld [vmem:[%s5178_s1 + $0x7dc] sm:$0xf0] }
   0x9   :  { %v2356_v11 = vld [vmem:[%s5178_s1 + $0x180] sm:$0xf]  ;;  %v3157_v12 = vor.u32 %v3444_v10, %v3156_v9  ;;  %1620 = vmatpush.bf16.msra.mxu2 %v2901_v8 }
   0xa   :  { %v3244_v13 = vld [vmem:[%s5178_s1 + $0x19c] sm:$0xf0] }
   0xb   :  { %v2612_v14 = vld [vmem:[%s5178_s1 + $0x380] sm:$0xf]  ;;  %v2357_v16 = vor.u32 %v3244_v13, %v2356_v11  ;;  %1634 = vmatpush.bf16.msra.mxu3 %v3157_v12 }
   0xc   :  { %v3308_v15 = vld [vmem:[%s5178_s1 + $0x39c] sm:$0xf0] }
   0xd   :  { %v2613_v17 = vor.u32 %v3308_v15, %v2612_v14  ;;  %v2868_v18 = vld [vmem:[%s5178_s1 + $0x580] sm:$0xf]  ;;  %1593 = vmatpush.bf16.msra.mxu0 %v2357_v16 }
   0xe   :  { %v3372_v19 = vld [vmem:[%s5178_s1 + $0x59c] sm:$0xf0] }
   0xf   :  { %v3124_v20 = vld [vmem:[%s5178_s1 + $0x780] sm:$0xf]  ;;  %v2869_v21 = vor.u32 %v3372_v19, %v2868_v18  ;;  %1607 = vmatpush.bf16.msra.mxu1 %v2613_v17 }
  0x10   :  { %v3436_v22 = vld [vmem:[%s5178_s1 + $0x79c] sm:$0xf0] }
  0x11   :  { %v2324_v23 = vld [vmem:[%s5178_s1 + $0x140] sm:$0xf]  ;;  %v3125_v25 = vor.u32 %v3436_v22, %v3124_v20  ;;  %1621 = vmatpush.bf16.msra.mxu2 %v2869_v21 }
  0x12   :  { %v3236_v24 = vld [vmem:[%s5178_s1 + $0x15c] sm:$0xf0] }
  0x13   :  { %v2580_v26 = vld [vmem:[%s5178_s1 + $0x340] sm:$0xf]  ;;  %v2325_v29 = vor.u32 %v3236_v24, %v2324_v23  ;;  %1635 = vmatpush.bf16.msra.mxu3 %v3125_v25 }
  0x14   :  { %v3300_v27 = vld [vmem:[%s5178_s1 + $0x35c] sm:$0xf0] }
  0x15   :  { %v2836_v28 = vld [vmem:[%s5178_s1 + $0x540] sm:$0xf]  ;;  %v2581_v33 = vor.u32 %v3300_v27, %v2580_v26  ;;  %1594 = vmatpush.bf16.msra.mxu0 %v2325_v29  ;;  %v2390_v29 = vld [vmem:[%s5178_s1 + $0x1e0] sm:$0xf0] }
  0x16   :  { %v3364_v30 = vld [vmem:[%s5178_s1 + $0x55c] sm:$0xf0] }
  0x17   :  { %v3092_v31 = vld [vmem:[%s5178_s1 + $0x740] sm:$0xf]  ;;  %v2837_v34 = vor.u32 %v3364_v30, %v2836_v28  ;;  %1608 = vmatpush.bf16.msra.mxu1 %v2581_v33  ;;  %v3248_v28 = vld [vmem:[%s5178_s1 + $0x1c4] sm:$0xf] }
  0x18   :  { %v3428_v32 = vld [vmem:[%s5178_s1 + $0x75c] sm:$0xf0]  ;;  %v3312_v30 = vld [vmem:[%s5178_s1 + $0x3c4] sm:$0xf] }
  0x19   :  { %v2292_v35 = vld [vmem:[%s5178_s1 + $0x100] sm:$0xf]  ;;  %v3093_v38 = vor.u32 %v3428_v32, %v3092_v31  ;;  %1622 = vmatpush.bf16.msra.mxu2 %v2837_v34  ;;  %v2646_v32 = vld [vmem:[%s5178_s1 + $0x3e0] sm:$0xf0] }
  0x1a   :  { %v3228_v36 = vld [vmem:[%s5178_s1 + $0x11c] sm:$0xf0]  ;;  %v3376_v33 = vld [vmem:[%s5178_s1 + $0x5c4] sm:$0xf] }
  0x1b   :  { %v2548_v37 = vld [vmem:[%s5178_s1 + $0x300] sm:$0xf]  ;;  %v2293_v44 = vor.u32 %v3228_v36, %v2292_v35  ;;  %1636 = vmatpush.bf16.msra.mxu3 %v3093_v38  ;;  %v2902_v34 = vld [vmem:[%s5178_s1 + $0x5e0] sm:$0xf0] }
  0x1c   :  { %v3292_v39 = vld [vmem:[%s5178_s1 + $0x31c] sm:$0xf0]  ;;  %v3158_v38 = vld [vmem:[%s5178_s1 + $0x7e0] sm:$0xf0] }
  0x1d   :  { %v2804_v40 = vld [vmem:[%s5178_s1 + $0x500] sm:$0xf]  ;;  %v2549_v45 = vor.u32 %v3292_v39, %v2548_v37  ;;  %1595 = vmatpush.bf16.msra.mxu0 %v2293_v44  ;;  %v3440_v37 = vld [vmem:[%s5178_s1 + $0x7c4] sm:$0xf] }
  0x1e   :  { %v3356_v41 = vld [vmem:[%s5178_s1 + $0x51c] sm:$0xf0]  ;;  %v2358_v44 = vld [vmem:[%s5178_s1 + $0x1a0] sm:$0xf0] }
  0x1f   :  { %v3060_v42 = vld [vmem:[%s5178_s1 + $0x700] sm:$0xf]  ;;  %v2805_v46 = vor.u32 %v3356_v41, %v2804_v40  ;;  %1609 = vmatpush.bf16.msra.mxu1 %v2549_v45  ;;  %v2393_v40 = vor.u32 %v3248_v28, %v2390_v29  ;;  %v2649_v41 = vor.u32 %v3312_v30, %v2646_v32  ;;  %v3304_v45 = vld [vmem:[%s5178_s1 + $0x384] sm:$0xf]  ;;  %v2150_v28 = vld [vmem:[%s5179_s0 + $0x10] sm:$0xf0] }
  0x20   :  { %v3420_v43 = vld [vmem:[%s5178_s1 + $0x71c] sm:$0xf0]  ;;  %v2518_v30 = vld [vmem:[%s5178_s1 + $0x2e0] sm:$0xf0] }
  0x21   :  { %v2260_v47 = vld [vmem:[%s5178_s1 + $0xc0] sm:$0xf]  ;;  %v3061_v50 = vor.u32 %v3420_v43, %v3060_v42  ;;  %1623 = vmatpush.bf16.msra.mxu2 %v2805_v46  ;;  %v2905_v42 = vor.u32 %v3376_v33, %v2902_v34  ;;  %v3240_v43 = vld [vmem:[%s5178_s1 + $0x184] sm:$0xf]  ;;  %v3161_v46 = vor.u32 %v3440_v37, %v3158_v38 }
  0x22   :  { %v3220_v48 = vld [vmem:[%s5178_s1 + $0xdc] sm:$0xf0]  ;;  %v2774_v32 = vld [vmem:[%s5178_s1 + $0x4e0] sm:$0xf0] }
  0x23   :  { %v2516_v49 = vld [vmem:[%s5178_s1 + $0x2c0] sm:$0xf]  ;;  %v2261_v56 = vor.u32 %v3220_v48, %v2260_v47  ;;  %1637 = vmatpush.bf16.msra.mxu3 %v3061_v50  ;;  %v2614_v47 = vld [vmem:[%s5178_s1 + $0x3a0] sm:$0xf0] }
  0x24   :  { %v3284_v51 = vld [vmem:[%s5178_s1 + $0x2dc] sm:$0xf0]  ;;  %v3368_v48 = vld [vmem:[%s5178_s1 + $0x584] sm:$0xf] }
  0x25   :  { %v2772_v52 = vld [vmem:[%s5178_s1 + $0x4c0] sm:$0xf]  ;;  %v2517_v57 = vor.u32 %v3284_v51, %v2516_v49  ;;  %1596 = vmatpush.bf16.msra.mxu0 %v2261_v56  ;;  %v2870_v49 = vld [vmem:[%s5178_s1 + $0x5a0] sm:$0xf0] }
  0x26   :  { %v3348_v53 = vld [vmem:[%s5178_s1 + $0x4dc] sm:$0xf0]  ;;  %v3432_v50 = vld [vmem:[%s5178_s1 + $0x784] sm:$0xf] }
  0x27   :  { %v3028_v54 = vld [vmem:[%s5178_s1 + $0x6c0] sm:$0xf]  ;;  %v2773_v58 = vor.u32 %v3348_v53, %v2772_v52  ;;  %1610 = vmatpush.bf16.msra.mxu1 %v2517_v57  ;;  %v3126_v51 = vld [vmem:[%s5178_s1 + $0x7a0] sm:$0xf0]  ;;  %v2361_v52 = vor.u32 %v3240_v43, %v2358_v44 }
  0x28   :  { %v3412_v55 = vld [vmem:[%s5178_s1 + $0x6dc] sm:$0xf0]  ;;  %v3232_v53 = vld [vmem:[%s5178_s1 + $0x144] sm:$0xf] }
  0x29   :  { %v2228_v59 = vld [vmem:[%s5178_s1 + $0x80] sm:$0xf]  ;;  %v3029_v62 = vor.u32 %v3412_v55, %v3028_v54  ;;  %1624 = vmatpush.bf16.msra.mxu2 %v2773_v58  ;;  %v2617_v54 = vor.u32 %v3304_v45, %v2614_v47  ;;  %v2873_v55 = vor.u32 %v3368_v48, %v2870_v49  ;;  %v2326_v56 = vld [vmem:[%s5178_s1 + $0x160] sm:$0xf0] }
  0x2a   :  { %v3212_v60 = vld [vmem:[%s5178_s1 + $0x9c] sm:$0xf0]  ;;  %v3296_v57 = vld [vmem:[%s5178_s1 + $0x344] sm:$0xf] }
  0x2b   :  { %v2484_v61 = vld [vmem:[%s5178_s1 + $0x280] sm:$0xf]  ;;  %v2229_v4 = vor.u32 %v3212_v60, %v2228_v59  ;;  %1638 = vmatpush.bf16.msra.mxu3 %v3029_v62  ;;  %v2582_v58 = vld [vmem:[%s5178_s1 + $0x360] sm:$0xf0]  ;;  %v3129_v59 = vor.u32 %v3432_v50, %v3126_v51 }
  0x2c   :  { %v3276_v63 = vld [vmem:[%s5178_s1 + $0x29c] sm:$0xf0]  ;;  %v3360_v60 = vld [vmem:[%s5178_s1 + $0x544] sm:$0xf] }
  0x2d   :  { %v2740_v0 = vld [vmem:[%s5178_s1 + $0x480] sm:$0xf]  ;;  %v2485_v5 = vor.u32 %v3276_v63, %v2484_v61  ;;  %1597 = vmatpush.bf16.msra.mxu0 %v2229_v4  ;;  %v2838_v61 = vld [vmem:[%s5178_s1 + $0x560] sm:$0xf0] }
  0x2e   :  { %v3340_v1 = vld [vmem:[%s5178_s1 + $0x49c] sm:$0xf0]  ;;  %v3424_v62 = vld [vmem:[%s5178_s1 + $0x744] sm:$0xf] }
  0x2f   :  { %v2996_v2 = vld [vmem:[%s5178_s1 + $0x680] sm:$0xf]  ;;  %v2741_v6 = vor.u32 %v3340_v1, %v2740_v0  ;;  %1611 = vmatpush.bf16.msra.mxu1 %v2485_v5  ;;  %v3094_v63 = vld [vmem:[%s5178_s1 + $0x760] sm:$0xf0]  ;;  %v2156_v5 = vld [vmem:[%s5179_s0 + $0x8] sm:$0xf] }
  0x30   :  { %v3404_v3 = vld [vmem:[%s5178_s1 + $0x69c] sm:$0xf0]  ;;  %v3224_v0 = vld [vmem:[%s5178_s1 + $0x104] sm:$0xf] }
  0x31   :  { %v2196_v7 = vld [vmem:[%s5178_s1 + $0x40] sm:$0xf]  ;;  %v2997_v10 = vor.u32 %v3404_v3, %v2996_v2  ;;  %1625 = vmatpush.bf16.msra.mxu2 %v2741_v6  ;;  %v2294_v1 = vld [vmem:[%s5178_s1 + $0x120] sm:$0xf0]  ;;  %v2329_v2 = vor.u32 %v3232_v53, %v2326_v56  ;;  %v3191_v6 = vld [vmem:[%s5179_s0 + $0x14] sm:$0xf0] }
  0x32   :  { %v3204_v8 = vld [vmem:[%s5178_s1 + $0x5c] sm:$0xf0]  ;;  %v3288_v3 = vld [vmem:[%s5178_s1 + $0x304] sm:$0xf] }
  0x33   :  { %v2452_v9 = vld [vmem:[%s5178_s1 + $0x240] sm:$0xf]  ;;  %v2197_v16 = vor.u32 %v3204_v8, %v2196_v7  ;;  %1639 = vmatpush.bf16.msra.mxu3 %v2997_v10  ;;  %v2550_v4 = vld [vmem:[%s5178_s1 + $0x320] sm:$0xf0]  ;;  %v2585_v7 = vor.u32 %v3296_v57, %v2582_v58  ;;  %v2841_v8 = vor.u32 %v3360_v60, %v2838_v61 }
  0x34   :  { %v3268_v11 = vld [vmem:[%s5178_s1 + $0x25c] sm:$0xf0]  ;;  %v3408_v34 = vld [vmem:[%s5178_s1 + $0x6c4] sm:$0xf] }
  0x35   :  { %v2708_v12 = vld [vmem:[%s5178_s1 + $0x440] sm:$0xf]  ;;  %v2453_v19 = vor.u32 %v3268_v11, %v2452_v9  ;;  %1598 = vmatpush.bf16.msra.mxu0 %v2197_v16  ;;  %v3751_v9 = vor.u32 %v3191_v6, %v2156_v5  ;;  %v3190_v11 = vld [vmem:[%s5179_s0 + $0xc] sm:$0xf0]  ;;  %v2486_v43 = vld [vmem:[%s5178_s1 + $0x2a0] sm:$0xf0] }
  0x36   :  { %v3332_v13 = vld [vmem:[%s5178_s1 + $0x45c] sm:$0xf0]  ;;  %v3336_v44 = vld [vmem:[%s5178_s1 + $0x484] sm:$0xf] }
  0x37   :  { %v2964_v14 = vld [vmem:[%s5178_s1 + $0x640] sm:$0xf]  ;;  %v2709_v20 = vor.u32 %v3332_v13, %v2708_v12  ;;  %1612 = vmatpush.bf16.msra.mxu1 %v2453_v19  ;;  %v3189_v12 = vld [vmem:[%s5179_s0 + $0xc] sm:$0xf]  ;;  %v3097_v13 = vor.u32 %v3424_v62, %v3094_v63  ;;  %v3062_v19 = vld [vmem:[%s5178_s1 + $0x720] sm:$0xf0] }
  0x38   :  { %v3396_v15 = vld [vmem:[%s5178_s1 + $0x65c] sm:$0xf0]  ;;  %v2742_v45 = vld [vmem:[%s5178_s1 + $0x4a0] sm:$0xf0] }
  0x39   :  { %v2164_v17 = vld [vmem:[%s5178_s1] sm:$0xf]  ;;  %v2965_v24 = vor.u32 %v3396_v15, %v2964_v14  ;;  %1626 = vmatpush.bf16.msra.mxu2 %v2709_v20  ;;  %v3352_v14 = vld [vmem:[%s5178_s1 + $0x504] sm:$0xf]  ;;  %v2745_v50 = vor.u32 %v3336_v44, %v2742_v45  ;;  %v2844_v44 = vld [vmem:[%s5178_s1 + $0x548] sm:$0xf] }
  0x3a   :  { %v3196_v18 = vld [vmem:[%s5178_s1 + $0x1c] sm:$0xf0]  ;;  %v2806_v15 = vld [vmem:[%s5178_s1 + $0x520] sm:$0xf0]  ;;  %v3365_v45 = vld [vmem:[%s5178_s1 + $0x564] sm:$0xf0] }
  0x3b   :  { %v2420_v21 = vld [vmem:[%s5178_s1 + $0x200] sm:$0xf]  ;;  %v2165_v31 = vor.u32 %v3196_v18, %v2164_v17  ;;  %1640 = vmatpush.bf16.msra.mxu3 %v2965_v24  ;;  %v2158_v17 = vld [vmem:[%s5179_s0 + $0x18] sm:$0xf0]  ;;  %v3416_v18 = vld [vmem:[%s5178_s1 + $0x704] sm:$0xf]  ;;  %v2553_v24 = vor.u32 %v3288_v3, %v2550_v4 }
  0x3c   :  { %v3260_v22 = vld [vmem:[%s5178_s1 + $0x21c] sm:$0xf0]  ;;  %v3780_v20 = vor.u32 %v3189_v12, %v2158_v17  ;;  %v3065_v29 = vor.u32 %v3416_v18, %v3062_v19  ;;  %v2998_v47 = vld [vmem:[%s5178_s1 + $0x6a0] sm:$0xf0]  ;;  %v3164_v19 = vld [vmem:[%s5178_s1 + $0x7c8] sm:$0xf] }
  0x3d   :  { %v2676_v23 = vld [vmem:[%s5178_s1 + $0x400] sm:$0xf]  ;;  %v2421_v35 = vor.u32 %v3260_v22, %v2420_v21  ;;  %1599 = vmatpush.bf16.msra.mxu0 %v2165_v31  ;;  %v2297_v21 = vor.u32 %v3224_v0, %v2294_v1  ;;  %v3216_v22 = vld [vmem:[%s5178_s1 + $0xc4] sm:$0xf] }
  0x3e   :  { %v3324_v25 = vld [vmem:[%s5178_s1 + $0x41c] sm:$0xf0]  ;;  %v3344_v31 = vld [vmem:[%s5178_s1 + $0x4c4] sm:$0xf] }
  0x3f   :  { %v2932_v26 = vld [vmem:[%s5178_s1 + $0x600] sm:$0xf]  ;;  %v2677_v36 = vor.u32 %v3324_v25, %v2676_v23  ;;  %1613 = vmatpush.bf16.msra.mxu1 %v2421_v35  ;;  %v2262_v23 = vld [vmem:[%s5178_s1 + $0xe0] sm:$0xf0]  ;;  %v2809_v25 = vor.u32 %v3352_v14, %v2806_v15  ;;  %v2777_v38 = vor.u32 %v3344_v31, %v2774_v32  ;;  %v2908_v14 = vld [vmem:[%s5178_s1 + $0x5c8] sm:$0xf] }
  0x40   :  { %v3388_v27 = vld [vmem:[%s5178_s1 + $0x61c] sm:$0xf0]  ;;  %v3030_v35 = vld [vmem:[%s5178_s1 + $0x6e0] sm:$0xf0]  ;;  %v3381_v15 = vld [vmem:[%s5178_s1 + $0x5e4] sm:$0xf0] }
  0x41   :  { %v2933_v39 = vor.u32 %v3388_v27, %v2932_v26  ;;  %1627 = vmatpush.bf16.msra.mxu2 %v2677_v36  ;;  %1648 = vmatpush.bf16.msrb.mxu0 %v2393_v40  ;;  %v2148_v10 = vld [vmem:[%s5179_s0] sm:$0xf]  ;;  %v3280_v26 = vld [vmem:[%s5178_s1 + $0x2c4] sm:$0xf]  ;;  %v2265_v36 = vor.u32 %v3216_v22, %v2262_v23  ;;  %v2876_v31 = vld [vmem:[%s5178_s1 + $0x588] sm:$0xf] }
  0x42   :  { %v3768_v16 = vor.u32 %v3190_v11, %v2148_v10  ;;  %v3188_v27 = vld [vmem:[%s5179_s0 + $0x4] sm:$0xf]  ;;  %v2521_v37 = vor.u32 %v3280_v26, %v2518_v30  ;;  %v3253_v10 = vld [vmem:[%s5178_s1 + $0x1e4] sm:$0xf0] }
  0x43   :  { %1641 = vmatpush.bf16.msra.mxu3 %v2933_v39  ;;  %1662 = vmatpush.bf16.msrb.mxu1 %v2649_v41  ;;  %v3807_v33 = vor.u32 %v3188_v27, %v2150_v28  ;;  %v3208_v39 = vld [vmem:[%s5178_s1 + $0x84] sm:$0xf]  ;;  %v2652_v11 = vld [vmem:[%s5178_s1 + $0x3c8] sm:$0xf] }
  0x44   :  { %1628 = vmatmul.bf16.vlgmr.msra.gmra.mxu2 %v3751_v9  ;;  %1600 = vmatmul.bf16.vlgmr.msra.gmra.mxu0 %v3768_v16  ;;  %v2230_v40 = vld [vmem:[%s5178_s1 + $0xa0] sm:$0xf0]  ;;  %v2364_v26 = vld [vmem:[%s5178_s1 + $0x188] sm:$0xf] }
  0x45   :  { %1676 = vmatpush.bf16.msrb.mxu2 %v2905_v42  ;;  %1649 = vmatpush.bf16.msrb.mxu0 %v2361_v52  ;;  %v3272_v41 = vld [vmem:[%s5178_s1 + $0x284] sm:$0xf]  ;;  %v3033_v42 = vor.u32 %v3408_v34, %v3030_v35  ;;  %v2233_v48 = vor.u32 %v3208_v39, %v2230_v40  ;;  %v3245_v27 = vld [vmem:[%s5178_s1 + $0x1a4] sm:$0xf0] }
  0x46   :  { %1642 = vmatmul.bf16.vlgmr.msra.gmra.mxu3 %v3780_v20  ;;  %1614 = vmatmul.bf16.vlgmr.msra.gmra.mxu1 %v3807_v33  ;;  %v2489_v49 = vor.u32 %v3272_v41, %v2486_v43  ;;  %v3200_v51 = vld [vmem:[%s5178_s1 + $0x44] sm:$0xf]  ;;  %v2620_v28 = vld [vmem:[%s5178_s1 + $0x388] sm:$0xf] }
  0x47   :  { %1690 = vmatpush.bf16.msrb.mxu3 %v3161_v46  ;;  %1663 = vmatpush.bf16.msrb.mxu1 %v2617_v54  ;;  %v3400_v46 = vld [vmem:[%s5178_s1 + $0x684] sm:$0xf]  ;;  %v3309_v30 = vld [vmem:[%s5178_s1 + $0x3a4] sm:$0xf0] }
  0x48   :  { %v2198_v52 = vld [vmem:[%s5178_s1 + $0x60] sm:$0xf0]  ;;  %v3001_v54 = vor.u32 %v3400_v46, %v2998_v47  ;;  %v3373_v32 = vld [vmem:[%s5178_s1 + $0x5a4] sm:$0xf0] }
  0x49   :  { %1677 = vmatpush.bf16.msrb.mxu2 %v2873_v55  ;;  %1650 = vmatpush.bf16.msrb.mxu0 %v2329_v2  ;;  %v3264_v53 = vld [vmem:[%s5178_s1 + $0x244] sm:$0xf]  ;;  %v2201_v60 = vor.u32 %v3200_v51, %v2198_v52  ;;  %v3132_v34 = vld [vmem:[%s5178_s1 + $0x788] sm:$0xf] }
  0x4a   :  { %v2454_v55 = vld [vmem:[%s5178_s1 + $0x260] sm:$0xf0]  ;;  %v3437_v35 = vld [vmem:[%s5178_s1 + $0x7a4] sm:$0xf0] }
  0x4b   :  { %1691 = vmatpush.bf16.msrb.mxu3 %v3129_v59  ;;  %1664 = vmatpush.bf16.msrb.mxu1 %v2585_v7  ;;  %v3328_v56 = vld [vmem:[%s5178_s1 + $0x444] sm:$0xf]  ;;  %v2457_v63 = vor.u32 %v3264_v53, %v2454_v55  ;;  %v2332_v39 = vld [vmem:[%s5178_s1 + $0x148] sm:$0xf] }
  0x4c   :  { %v2710_v57 = vld [vmem:[%s5178_s1 + $0x460] sm:$0xf0]  ;;  %v3237_v40 = vld [vmem:[%s5178_s1 + $0x164] sm:$0xf0] }
  0x4d   :  { %1678 = vmatpush.bf16.msrb.mxu2 %v2841_v8  ;;  %1651 = vmatpush.bf16.msrb.mxu0 %v2297_v21  ;;  %v3392_v58 = vld [vmem:[%s5178_s1 + $0x644] sm:$0xf]  ;;  %v2713_v0 = vor.u32 %v3328_v56, %v2710_v57  ;;  %v2396_v8 = vld [vmem:[%s5178_s1 + $0x1c8] sm:$0xf] }
  0x4e   :  { %v2966_v59 = vld [vmem:[%s5178_s1 + $0x660] sm:$0xf0]  ;;  %v3445_v21 = vld [vmem:[%s5178_s1 + $0x7e4] sm:$0xf0]  ;;  %v2397_v23 = vor.u32 %v3253_v10, %v2396_v8 }
  0x4f   :  { %1692 = vmatpush.bf16.msrb.mxu3 %v3097_v13  ;;  %1665 = vmatpush.bf16.msrb.mxu1 %v2553_v24  ;;  %v3192_v61 = vld [vmem:[%s5178_s1 + $0x4] sm:$0xf]  ;;  %v2969_v4 = vor.u32 %v3392_v58, %v2966_v59  ;;  %v3317_v13 = vld [vmem:[%s5178_s1 + $0x3e4] sm:$0xf0] }
  0x50   :  { %v2166_v62 = vld [vmem:[%s5178_s1 + $0x20] sm:$0xf0]  ;;  %v2653_v24 = vor.u32 %v3317_v13, %v2652_v11  ;;  %v2588_v41 = vld [vmem:[%s5178_s1 + $0x348] sm:$0xf] }
  0x51   :  { %1679 = vmatpush.bf16.msrb.mxu2 %v2809_v25  ;;  %1652 = vmatpush.bf16.msrb.mxu0 %v2265_v36  ;;  %v3256_v1 = vld [vmem:[%s5178_s1 + $0x204] sm:$0xf]  ;;  %v2169_v12 = vor.u32 %v3192_v61, %v2166_v62  ;;  %v2909_v25 = vor.u32 %v3381_v15, %v2908_v14  ;;  %v2365_v36 = vor.u32 %v3245_v27, %v2364_v26  ;;  %v3301_v43 = vld [vmem:[%s5178_s1 + $0x364] sm:$0xf0] }
  0x52   :  { %v2422_v2 = vld [vmem:[%s5178_s1 + $0x220] sm:$0xf0]  ;;  %v3100_v46 = vld [vmem:[%s5178_s1 + $0x748] sm:$0xf] }
  0x53   :  { %1693 = vmatpush.bf16.msrb.mxu3 %v3065_v29  ;;  %1666 = vmatpush.bf16.msrb.mxu1 %v2521_v37  ;;  %v3320_v3 = vld [vmem:[%s5178_s1 + $0x404] sm:$0xf]  ;;  %v2425_v17 = vor.u32 %v3256_v1, %v2422_v2  ;;  %v3165_v29 = vor.u32 %v3445_v21, %v3164_v19  ;;  %v2621_v37 = vor.u32 %v3309_v30, %v2620_v28  ;;  %v3429_v47 = vld [vmem:[%s5178_s1 + $0x764] sm:$0xf0] }
  0x54   :  { %v2678_v5 = vld [vmem:[%s5178_s1 + $0x420] sm:$0xf0]  ;;  %v2300_v51 = vld [vmem:[%s5178_s1 + $0x108] sm:$0xf] }
  0x55   :  { %1680 = vmatpush.bf16.msrb.mxu2 %v2777_v38  ;;  %1653 = vmatpush.bf16.msrb.mxu0 %v2233_v48  ;;  %v3384_v6 = vld [vmem:[%s5178_s1 + $0x604] sm:$0xf]  ;;  %v2681_v18 = vor.u32 %v3320_v3, %v2678_v5  ;;  %v2877_v38 = vor.u32 %v3373_v32, %v2876_v31  ;;  %v2333_v48 = vor.u32 %v3237_v40, %v2332_v39  ;;  %v3229_v52 = vld [vmem:[%s5178_s1 + $0x124] sm:$0xf0] }
  0x56   :  { %v2934_v7 = vld [vmem:[%s5178_s1 + $0x620] sm:$0xf0]  ;;  %v2556_v53 = vld [vmem:[%s5178_s1 + $0x308] sm:$0xf] }
  0x57   :  { %1694 = vmatpush.bf16.msrb.mxu3 %v3033_v42  ;;  %1667 = vmatpush.bf16.msrb.mxu1 %v2489_v49  ;;  %v2937_v22 = vor.u32 %v3384_v6, %v2934_v7  ;;  %v3133_v42 = vor.u32 %v3437_v35, %v3132_v34  ;;  %v2589_v49 = vor.u32 %v3301_v43, %v2588_v41  ;;  %v3293_v55 = vld [vmem:[%s5178_s1 + $0x324] sm:$0xf0] }
  0x58   :  { %v2812_v56 = vld [vmem:[%s5178_s1 + $0x508] sm:$0xf]  ;;  %v2557_v61 = vor.u32 %v3293_v55, %v2556_v53  ;;  %v3377_v53 = vld [vmem:[%s5178_s1 + $0x5cc] sm:$0xf] }
  0x59   :  { %1681 = vmatpush.bf16.msrb.mxu2 %v2745_v50  ;;  %1654 = vmatpush.bf16.msrb.mxu0 %v2201_v60  ;;  %v2845_v50 = vor.u32 %v3365_v45, %v2844_v44  ;;  %v3357_v57 = vld [vmem:[%s5178_s1 + $0x524] sm:$0xf0]  ;;  %v2301_v60 = vor.u32 %v3229_v52, %v2300_v51  ;;  %v2654_v52 = vld [vmem:[%s5178_s1 + $0x3e8] sm:$0xf0] }
  0x5a   :  { %v3068_v58 = vld [vmem:[%s5178_s1 + $0x708] sm:$0xf]  ;;  %v2813_v62 = vor.u32 %v3357_v57, %v2812_v56  ;;  %v3441_v57 = vld [vmem:[%s5178_s1 + $0x7cc] sm:$0xf] }
  0x5b   :  { %1695 = vmatpush.bf16.msrb.mxu3 %v3001_v54  ;;  %1668 = vmatpush.bf16.msrb.mxu1 %v2457_v63  ;;  %v3101_v54 = vor.u32 %v3429_v47, %v3100_v46  ;;  %v3421_v59 = vld [vmem:[%s5178_s1 + $0x724] sm:$0xf0] }
  0x5c   :  { %v2268_v63 = vld [vmem:[%s5178_s1 + $0xc8] sm:$0xf]  ;;  %v3069_v2 = vor.u32 %v3421_v59, %v3068_v58  ;;  %v3166_v58 = vld [vmem:[%s5178_s1 + $0x7e8] sm:$0xf0] }
  0x5d   :  { %1682 = vmatpush.bf16.msrb.mxu2 %v2713_v0  ;;  %1655 = vmatpush.bf16.msrb.mxu0 %v2169_v12  ;;  %v3221_v0 = vld [vmem:[%s5178_s1 + $0xe4] sm:$0xf0] }
  0x5e   :  { %v2524_v1 = vld [vmem:[%s5178_s1 + $0x2c8] sm:$0xf]  ;;  %v2269_v8 = vor.u32 %v3221_v0, %v2268_v63  ;;  %v3241_v63 = vld [vmem:[%s5178_s1 + $0x18c] sm:$0xf] }
  0x5f   :  { %1696 = vmatpush.bf16.msrb.mxu3 %v2969_v4  ;;  %1669 = vmatpush.bf16.msrb.mxu1 %v2425_v17  ;;  %v3285_v3 = vld [vmem:[%s5178_s1 + $0x2e4] sm:$0xf0]  ;;  %v2366_v0 = vld [vmem:[%s5178_s1 + $0x1a8] sm:$0xf0] }
  0x60   :  { %1656 = vmatmul.bf16.vlgmr.msrb.gmra.mxu0 %v3768_v16  ;;  %v2780_v4 = vld [vmem:[%s5178_s1 + $0x4c8] sm:$0xf]  ;;  %v2525_v10 = vor.u32 %v3285_v3, %v2524_v1  ;;  %v3305_v1 = vld [vmem:[%s5178_s1 + $0x38c] sm:$0xf] }
  0x61   :  { %1683 = vmatpush.bf16.msrb.mxu2 %v2681_v18  ;;  %1704 = vmatpush.bf16.msra.mxu0 %v2397_v23  ;;  %v3349_v5 = vld [vmem:[%s5178_s1 + $0x4e4] sm:$0xf0]  ;;  %v2622_v3 = vld [vmem:[%s5178_s1 + $0x3a8] sm:$0xf0] }
  0x62   :  { %1670 = vmatmul.bf16.vlgmr.msrb.gmra.mxu1 %v3807_v33  ;;  %v3036_v6 = vld [vmem:[%s5178_s1 + $0x6c8] sm:$0xf]  ;;  %v2781_v11 = vor.u32 %v3349_v5, %v2780_v4  ;;  %v3369_v4 = vld [vmem:[%s5178_s1 + $0x58c] sm:$0xf] }
  0x63   :  { %1697 = vmatpush.bf16.msrb.mxu3 %v2937_v22  ;;  %1718 = vmatpush.bf16.msra.mxu1 %v2653_v24  ;;  %v3413_v7 = vld [vmem:[%s5178_s1 + $0x6e4] sm:$0xf0]  ;;  %v2878_v5 = vld [vmem:[%s5178_s1 + $0x5a8] sm:$0xf0] }
  0x64   :  { %1684 = vmatmul.bf16.vlgmr.msrb.gmra.mxu2 %v3751_v9  ;;  %v2236_v12 = vld [vmem:[%s5178_s1 + $0x88] sm:$0xf]  ;;  %v3037_v15 = vor.u32 %v3413_v7, %v3036_v6  ;;  %v3433_v6 = vld [vmem:[%s5178_s1 + $0x78c] sm:$0xf] }
  0x65   :  { %1732 = vmatpush.bf16.msra.mxu2 %v2909_v25  ;;  %1705 = vmatpush.bf16.msra.mxu0 %v2365_v36  ;;  %v3213_v13 = vld [vmem:[%s5178_s1 + $0xa4] sm:$0xf0]  ;;  %v3134_v7 = vld [vmem:[%s5178_s1 + $0x7a8] sm:$0xf0] }
  0x66   :  { %1698 = vmatmul.bf16.vlgmr.msrb.gmra.mxu3 %v3780_v20  ;;  %v2492_v14 = vld [vmem:[%s5178_s1 + $0x288] sm:$0xf]  ;;  %v2237_v23 = vor.u32 %v3213_v13, %v2236_v12  ;;  %v3233_v12 = vld [vmem:[%s5178_s1 + $0x14c] sm:$0xf] }
  0x67   :  { %1746 = vmatpush.bf16.msra.mxu3 %v3165_v29  ;;  %1719 = vmatpush.bf16.msra.mxu1 %v2621_v37  ;;  %v3277_v17 = vld [vmem:[%s5178_s1 + $0x2a4] sm:$0xf0]  ;;  %v2334_v13 = vld [vmem:[%s5178_s1 + $0x168] sm:$0xf0] }
  0x68   :  { %v2748_v18 = vld [vmem:[%s5178_s1 + $0x488] sm:$0xf]  ;;  %v2493_v24 = vor.u32 %v3277_v17, %v2492_v14  ;;  %v3297_v14 = vld [vmem:[%s5178_s1 + $0x34c] sm:$0xf] }
  0x69   :  { %1733 = vmatpush.bf16.msra.mxu2 %v2877_v38  ;;  %1706 = vmatpush.bf16.msra.mxu0 %v2333_v48  ;;  %v3341_v19 = vld [vmem:[%s5178_s1 + $0x4a4] sm:$0xf0]  ;;  %v3249_v48 = vld [vmem:[%s5178_s1 + $0x1cc] sm:$0xf] }
  0x6a   :  { %v3004_v21 = vld [vmem:[%s5178_s1 + $0x688] sm:$0xf]  ;;  %v2749_v25 = vor.u32 %v3341_v19, %v2748_v18  ;;  %v2590_v17 = vld [vmem:[%s5178_s1 + $0x368] sm:$0xf0] }
  0x6b   :  { %1747 = vmatpush.bf16.msra.mxu3 %v3133_v42  ;;  %1720 = vmatpush.bf16.msra.mxu1 %v2589_v49  ;;  %v3405_v22 = vld [vmem:[%s5178_s1 + $0x6a4] sm:$0xf0]  ;;  %v2398_v49 = vld [vmem:[%s5178_s1 + $0x1e8] sm:$0xf0] }
  0x6c   :  { %v2204_v26 = vld [vmem:[%s5178_s1 + $0x48] sm:$0xf]  ;;  %v3005_v29 = vor.u32 %v3405_v22, %v3004_v21  ;;  %v3361_v18 = vld [vmem:[%s5178_s1 + $0x54c] sm:$0xf] }
  0x6d   :  { %1734 = vmatpush.bf16.msra.mxu2 %v2845_v50  ;;  %1707 = vmatpush.bf16.msra.mxu0 %v2301_v60  ;;  %v3205_v27 = vld [vmem:[%s5178_s1 + $0x64] sm:$0xf0]  ;;  %v3313_v50 = vld [vmem:[%s5178_s1 + $0x3cc] sm:$0xf]  ;;  %v2401_v60 = vor.u32 %v3249_v48, %v2398_v49 }
  0x6e   :  { %v2460_v28 = vld [vmem:[%s5178_s1 + $0x248] sm:$0xf]  ;;  %v2205_v36 = vor.u32 %v3205_v27, %v2204_v26  ;;  %v2846_v19 = vld [vmem:[%s5178_s1 + $0x568] sm:$0xf0] }
  0x6f   :  { %1748 = vmatpush.bf16.msra.mxu3 %v3101_v54  ;;  %1721 = vmatpush.bf16.msra.mxu1 %v2557_v61  ;;  %v3269_v30 = vld [vmem:[%s5178_s1 + $0x264] sm:$0xf0]  ;;  %v2910_v54 = vld [vmem:[%s5178_s1 + $0x5e8] sm:$0xf0]  ;;  %v2657_v61 = vor.u32 %v3313_v50, %v2654_v52 }
  0x70   :  { %v2716_v31 = vld [vmem:[%s5178_s1 + $0x448] sm:$0xf]  ;;  %v2461_v39 = vor.u32 %v3269_v30, %v2460_v28  ;;  %v3425_v21 = vld [vmem:[%s5178_s1 + $0x74c] sm:$0xf] }
  0x71   :  { %1735 = vmatpush.bf16.msra.mxu2 %v2813_v62  ;;  %1708 = vmatpush.bf16.msra.mxu0 %v2269_v8  ;;  %v3333_v32 = vld [vmem:[%s5178_s1 + $0x464] sm:$0xf0]  ;;  %v2913_v62 = vor.u32 %v3377_v53, %v2910_v54  ;;  %v2369_v8 = vor.u32 %v3241_v63, %v2366_v0  ;;  %v3102_v22 = vld [vmem:[%s5178_s1 + $0x768] sm:$0xf0] }
  0x72   :  { %v2972_v34 = vld [vmem:[%s5178_s1 + $0x648] sm:$0xf]  ;;  %v2717_v40 = vor.u32 %v3333_v32, %v2716_v31  ;;  %v3225_v26 = vld [vmem:[%s5178_s1 + $0x10c] sm:$0xf] }
  0x73   :  { %1749 = vmatpush.bf16.msra.mxu3 %v3069_v2  ;;  %1722 = vmatpush.bf16.msra.mxu1 %v2525_v10  ;;  %v3397_v35 = vld [vmem:[%s5178_s1 + $0x664] sm:$0xf0]  ;;  %v3169_v2 = vor.u32 %v3441_v57, %v3166_v58  ;;  %v2625_v10 = vor.u32 %v3305_v1, %v2622_v3  ;;  %v2302_v27 = vld [vmem:[%s5178_s1 + $0x128] sm:$0xf0] }
  0x74   :  { %v2172_v37 = vld [vmem:[%s5178_s1 + $0x8] sm:$0xf]  ;;  %v2973_v44 = vor.u32 %v3397_v35, %v2972_v34  ;;  %v3289_v28 = vld [vmem:[%s5178_s1 + $0x30c] sm:$0xf] }
  0x75   :  { %1736 = vmatpush.bf16.msra.mxu2 %v2781_v11  ;;  %1709 = vmatpush.bf16.msra.mxu0 %v2237_v23  ;;  %v3197_v38 = vld [vmem:[%s5178_s1 + $0x24] sm:$0xf0]  ;;  %v2881_v11 = vor.u32 %v3369_v4, %v2878_v5  ;;  %v2337_v23 = vor.u32 %v3233_v12, %v2334_v13  ;;  %v2558_v30 = vld [vmem:[%s5178_s1 + $0x328] sm:$0xf0] }
  0x76   :  { %v2428_v41 = vld [vmem:[%s5178_s1 + $0x208] sm:$0xf]  ;;  %v2173_v51 = vor.u32 %v3197_v38, %v2172_v37  ;;  %v3353_v31 = vld [vmem:[%s5178_s1 + $0x50c] sm:$0xf]  ;;  %v2561_v37 = vor.u32 %v3289_v28, %v2558_v30  ;;  %v2916_v28 = vld [vmem:[%s5178_s1 + $0x5d0] sm:$0xf] }
  0x77   :  { %1750 = vmatpush.bf16.msra.mxu3 %v3037_v15  ;;  %1723 = vmatpush.bf16.msra.mxu1 %v2493_v24  ;;  %v3261_v42 = vld [vmem:[%s5178_s1 + $0x224] sm:$0xf0]  ;;  %v3137_v15 = vor.u32 %v3433_v6, %v3134_v7  ;;  %v2593_v24 = vor.u32 %v3297_v14, %v2590_v17  ;;  %v2814_v32 = vld [vmem:[%s5178_s1 + $0x528] sm:$0xf0] }
  0x78   :  { %v2684_v43 = vld [vmem:[%s5178_s1 + $0x408] sm:$0xf]  ;;  %v2429_v55 = vor.u32 %v3261_v42, %v2428_v41  ;;  %v3417_v34 = vld [vmem:[%s5178_s1 + $0x70c] sm:$0xf]  ;;  %v2817_v38 = vor.u32 %v3353_v31, %v2814_v32  ;;  %v3172_v32 = vld [vmem:[%s5178_s1 + $0x7d0] sm:$0xf] }
  0x79   :  { %1737 = vmatpush.bf16.msra.mxu2 %v2749_v25  ;;  %v3325_v45 = vld [vmem:[%s5178_s1 + $0x424] sm:$0xf0]  ;;  %1710 = vmatpush.bf16.msra.mxu0 %v2205_v36  ;;  %v2849_v25 = vor.u32 %v3361_v18, %v2846_v19  ;;  %v3070_v35 = vld [vmem:[%s5178_s1 + $0x728] sm:$0xf0]  ;;  %v2305_v36 = vor.u32 %v3225_v26, %v2302_v27  ;;  %v3318_v27 = vld [vmem:[%s5178_s1 + $0x3ec] sm:$0xf0] }
  0x7a   :  { %v2940_v46 = vld [vmem:[%s5178_s1 + $0x608] sm:$0xf]  ;;  %v2685_v56 = vor.u32 %v3325_v45, %v2684_v43  ;;  %v3281_v41 = vld [vmem:[%s5178_s1 + $0x2cc] sm:$0xf]  ;;  %v3073_v42 = vor.u32 %v3417_v34, %v3070_v35  ;;  %v3446_v34 = vld [vmem:[%s5178_s1 + $0x7ec] sm:$0xf0] }
  0x7b   :  { %1751 = vmatpush.bf16.msra.mxu3 %v3005_v29  ;;  %v3389_v47 = vld [vmem:[%s5178_s1 + $0x624] sm:$0xf0]  ;;  %1724 = vmatpush.bf16.msra.mxu1 %v2461_v39  ;;  %v3105_v29 = vor.u32 %v3425_v21, %v3102_v22  ;;  %v3217_v39 = vld [vmem:[%s5178_s1 + $0xcc] sm:$0xf] }
  0x7c   :  { %v2941_v59 = vor.u32 %v3389_v47, %v2940_v46  ;;  %v2526_v43 = vld [vmem:[%s5178_s1 + $0x2e8] sm:$0xf0] }
  0x7d   :  { %1738 = vmatpush.bf16.msra.mxu2 %v2717_v40  ;;  %1711 = vmatpush.bf16.msra.mxu0 %v2173_v51  ;;  %v2270_v40 = vld [vmem:[%s5178_s1 + $0xe8] sm:$0xf0]  ;;  %v2529_v49 = vor.u32 %v3281_v41, %v2526_v43  ;;  %v2628_v41 = vld [vmem:[%s5178_s1 + $0x390] sm:$0xf] }
  0x7e   :  { %v2782_v45 = vld [vmem:[%s5178_s1 + $0x4e8] sm:$0xf0]  ;;  %v2273_v48 = vor.u32 %v3217_v39, %v2270_v40  ;;  %v2372_v39 = vld [vmem:[%s5178_s1 + $0x190] sm:$0xf] }
  0x7f   :  { %1752 = vmatpush.bf16.msra.mxu3 %v2973_v44  ;;  %1725 = vmatpush.bf16.msra.mxu1 %v2429_v55  ;;  %v3345_v44 = vld [vmem:[%s5178_s1 + $0x4cc] sm:$0xf]  ;;  %v3246_v40 = vld [vmem:[%s5178_s1 + $0x1ac] sm:$0xf0] }
  0x80   :  { %1712 = vmatmul.bf16.vlgmr.msra.gmra.mxu0 %v3768_v16  ;;  %v3409_v46 = vld [vmem:[%s5178_s1 + $0x6cc] sm:$0xf]  ;;  %v2785_v50 = vor.u32 %v3345_v44, %v2782_v45  ;;  %v3310_v43 = vld [vmem:[%s5178_s1 + $0x3ac] sm:$0xf0] }
  0x81   :  { %1739 = vmatpush.bf16.msra.mxu2 %v2685_v56  ;;  %1760 = vmatpush.bf16.msrb.mxu0 %v2401_v60  ;;  %v3038_v47 = vld [vmem:[%s5178_s1 + $0x6e8] sm:$0xf0]  ;;  %v2884_v44 = vld [vmem:[%s5178_s1 + $0x590] sm:$0xf] }
  0x82   :  { %1726 = vmatmul.bf16.vlgmr.msra.gmra.mxu1 %v3807_v33  ;;  %v3209_v51 = vld [vmem:[%s5178_s1 + $0x8c] sm:$0xf]  ;;  %v3041_v54 = vor.u32 %v3409_v46, %v3038_v47  ;;  %v3374_v45 = vld [vmem:[%s5178_s1 + $0x5ac] sm:$0xf0] }
  0x83   :  { %1753 = vmatpush.bf16.msra.mxu3 %v2941_v59  ;;  %1774 = vmatpush.bf16.msrb.mxu1 %v2657_v61  ;;  %v2238_v52 = vld [vmem:[%s5178_s1 + $0xa8] sm:$0xf0]  ;;  %v3140_v46 = vld [vmem:[%s5178_s1 + $0x790] sm:$0xf] }
  0x84   :  { %1740 = vmatmul.bf16.vlgmr.msra.gmra.mxu2 %v3751_v9  ;;  %v3273_v53 = vld [vmem:[%s5178_s1 + $0x28c] sm:$0xf]  ;;  %v2241_v60 = vor.u32 %v3209_v51, %v2238_v52  ;;  %v3438_v47 = vld [vmem:[%s5178_s1 + $0x7ac] sm:$0xf0] }
  0x85   :  { %1788 = vmatpush.bf16.msrb.mxu2 %v2913_v62  ;;  %1761 = vmatpush.bf16.msrb.mxu0 %v2369_v8  ;;  %v2494_v55 = vld [vmem:[%s5178_s1 + $0x2a8] sm:$0xf0]  ;;  %v2340_v51 = vld [vmem:[%s5178_s1 + $0x150] sm:$0xf] }
  0x86   :  { %1754 = vmatmul.bf16.vlgmr.msra.gmra.mxu3 %v3780_v20  ;;  %v3337_v56 = vld [vmem:[%s5178_s1 + $0x48c] sm:$0xf]  ;;  %v2497_v61 = vor.u32 %v3273_v53, %v2494_v55  ;;  %v3238_v52 = vld [vmem:[%s5178_s1 + $0x16c] sm:$0xf0] }
  0x87   :  { %1802 = vmatpush.bf16.msrb.mxu3 %v3169_v2  ;;  %1775 = vmatpush.bf16.msrb.mxu1 %v2625_v10  ;;  %v2750_v57 = vld [vmem:[%s5178_s1 + $0x4a8] sm:$0xf0]  ;;  %v2596_v53 = vld [vmem:[%s5178_s1 + $0x350] sm:$0xf] }
  0x88   :  { %v3401_v58 = vld [vmem:[%s5178_s1 + $0x68c] sm:$0xf]  ;;  %v2753_v62 = vor.u32 %v3337_v56, %v2750_v57  ;;  %v3302_v55 = vld [vmem:[%s5178_s1 + $0x36c] sm:$0xf0] }
  0x89   :  { %1789 = vmatpush.bf16.msrb.mxu2 %v2881_v11  ;;  %1762 = vmatpush.bf16.msrb.mxu0 %v2337_v23  ;;  %v3006_v59 = vld [vmem:[%s5178_s1 + $0x6a8] sm:$0xf0]  ;;  %v2404_v23 = vld [vmem:[%s5178_s1 + $0x1d0] sm:$0xf] }
  0x8a   :  { %v3201_v63 = vld [vmem:[%s5178_s1 + $0x4c] sm:$0xf]  ;;  %v3009_v2 = vor.u32 %v3401_v58, %v3006_v59  ;;  %v2852_v56 = vld [vmem:[%s5178_s1 + $0x550] sm:$0xf] }
  0x8b   :  { %1803 = vmatpush.bf16.msrb.mxu3 %v3137_v15  ;;  %1776 = vmatpush.bf16.msrb.mxu1 %v2593_v24  ;;  %v2206_v0 = vld [vmem:[%s5178_s1 + $0x68] sm:$0xf0]  ;;  %v3254_v24 = vld [vmem:[%s5178_s1 + $0x1ec] sm:$0xf0] }
  0x8c   :  { %v3265_v1 = vld [vmem:[%s5178_s1 + $0x24c] sm:$0xf]  ;;  %v2209_v8 = vor.u32 %v3201_v63, %v2206_v0  ;;  %v3366_v57 = vld [vmem:[%s5178_s1 + $0x56c] sm:$0xf0] }
  0x8d   :  { %1790 = vmatpush.bf16.msrb.mxu2 %v2849_v25  ;;  %1763 = vmatpush.bf16.msrb.mxu0 %v2305_v36  ;;  %v2462_v3 = vld [vmem:[%s5178_s1 + $0x268] sm:$0xf0]  ;;  %v2660_v25 = vld [vmem:[%s5178_s1 + $0x3d0] sm:$0xf]  ;;  %v2405_v36 = vor.u32 %v3254_v24, %v2404_v23 }
  0x8e   :  { %v3329_v4 = vld [vmem:[%s5178_s1 + $0x44c] sm:$0xf]  ;;  %v2465_v12 = vor.u32 %v3265_v1, %v2462_v3  ;;  %v3108_v58 = vld [vmem:[%s5178_s1 + $0x750] sm:$0xf] }
  0x8f   :  { %1804 = vmatpush.bf16.msrb.mxu3 %v3105_v29  ;;  %1777 = vmatpush.bf16.msrb.mxu1 %v2561_v37  ;;  %v2718_v5 = vld [vmem:[%s5178_s1 + $0x468] sm:$0xf0]  ;;  %v3382_v29 = vld [vmem:[%s5178_s1 + $0x5ec] sm:$0xf0]  ;;  %v2661_v37 = vor.u32 %v3318_v27, %v2660_v25 }
  0x90   :  { %v3393_v6 = vld [vmem:[%s5178_s1 + $0x64c] sm:$0xf]  ;;  %v2721_v13 = vor.u32 %v3329_v4, %v2718_v5  ;;  %v3430_v59 = vld [vmem:[%s5178_s1 + $0x76c] sm:$0xf0] }
  0x91   :  { %1791 = vmatpush.bf16.msrb.mxu2 %v2817_v38  ;;  %1764 = vmatpush.bf16.msrb.mxu0 %v2273_v48  ;;  %v2974_v7 = vld [vmem:[%s5178_s1 + $0x668] sm:$0xf0]  ;;  %v2917_v38 = vor.u32 %v3382_v29, %v2916_v28  ;;  %v2373_v48 = vor.u32 %v3246_v40, %v2372_v39  ;;  %v2308_v63 = vld [vmem:[%s5178_s1 + $0x110] sm:$0xf] }
  0x92   :  { %v3193_v10 = vld [vmem:[%s5178_s1 + $0xc] sm:$0xf]  ;;  %v2977_v18 = vor.u32 %v3393_v6, %v2974_v7  ;;  %v3230_v0 = vld [vmem:[%s5178_s1 + $0x12c] sm:$0xf0] }
  0x93   :  { %1805 = vmatpush.bf16.msrb.mxu3 %v3073_v42  ;;  %1778 = vmatpush.bf16.msrb.mxu1 %v2529_v49  ;;  %v2174_v11 = vld [vmem:[%s5178_s1 + $0x28] sm:$0xf0]  ;;  %v3173_v42 = vor.u32 %v3446_v34, %v3172_v32  ;;  %v2629_v49 = vor.u32 %v3310_v43, %v2628_v41  ;;  %v2564_v1 = vld [vmem:[%s5178_s1 + $0x310] sm:$0xf] }
  0x94   :  { %v3257_v14 = vld [vmem:[%s5178_s1 + $0x20c] sm:$0xf]  ;;  %v2177_v26 = vor.u32 %v3193_v10, %v2174_v11  ;;  %v3294_v3 = vld [vmem:[%s5178_s1 + $0x32c] sm:$0xf0] }
  0x95   :  { %1792 = vmatpush.bf16.msrb.mxu2 %v2785_v50  ;;  %1765 = vmatpush.bf16.msrb.mxu0 %v2241_v60  ;;  %v2430_v15 = vld [vmem:[%s5178_s1 + $0x228] sm:$0xf0]  ;;  %v2885_v50 = vor.u32 %v3374_v45, %v2884_v44  ;;  %v2341_v60 = vor.u32 %v3238_v52, %v2340_v51  ;;  %v2820_v4 = vld [vmem:[%s5178_s1 + $0x510] sm:$0xf]  ;;  %v2565_v10 = vor.u32 %v3294_v3, %v2564_v1  ;;  %v3378_v1 = vld [vmem:[%s5178_s1 + $0x5d4] sm:$0xf] }
  0x96   :  { %v3321_v17 = vld [vmem:[%s5178_s1 + $0x40c] sm:$0xf]  ;;  %v2433_v30 = vor.u32 %v3257_v14, %v2430_v15  ;;  %v3358_v5 = vld [vmem:[%s5178_s1 + $0x52c] sm:$0xf0] }
  0x97   :  { %1806 = vmatpush.bf16.msrb.mxu3 %v3041_v54  ;;  %1779 = vmatpush.bf16.msrb.mxu1 %v2497_v61  ;;  %v2686_v19 = vld [vmem:[%s5178_s1 + $0x428] sm:$0xf0]  ;;  %v3141_v54 = vor.u32 %v3438_v47, %v3140_v46  ;;  %v2597_v61 = vor.u32 %v3302_v55, %v2596_v53  ;;  %v3076_v6 = vld [vmem:[%s5178_s1 + $0x710] sm:$0xf]  ;;  %v2821_v11 = vor.u32 %v3358_v5, %v2820_v4  ;;  %v3442_v5 = vld [vmem:[%s5178_s1 + $0x7d4] sm:$0xf] }
  0x98   :  { %v3385_v21 = vld [vmem:[%s5178_s1 + $0x60c] sm:$0xf]  ;;  %v2689_v31 = vor.u32 %v3321_v17, %v2686_v19  ;;  %v3422_v7 = vld [vmem:[%s5178_s1 + $0x72c] sm:$0xf0] }
  0x99   :  { %1793 = vmatpush.bf16.msrb.mxu2 %v2753_v62  ;;  %v2942_v22 = vld [vmem:[%s5178_s1 + $0x628] sm:$0xf0]  ;;  %1766 = vmatpush.bf16.msrb.mxu0 %v2209_v8  ;;  %v2853_v62 = vor.u32 %v3366_v57, %v2852_v56  ;;  %v2309_v8 = vor.u32 %v3230_v0, %v2308_v63  ;;  %v2532_v14 = vld [vmem:[%s5178_s1 + $0x2d0] sm:$0xf]  ;;  %v3077_v15 = vor.u32 %v3422_v7, %v3076_v6  ;;  %v2662_v0 = vld [vmem:[%s5178_s1 + $0x3f0] sm:$0xf0] }
  0x9a   :  { %v2945_v35 = vor.u32 %v3385_v21, %v2942_v22  ;;  %v3286_v17 = vld [vmem:[%s5178_s1 + $0x2ec] sm:$0xf0]  ;;  %v3174_v6 = vld [vmem:[%s5178_s1 + $0x7f0] sm:$0xf0] }
  0x9b   :  { %1807 = vmatpush.bf16.msrb.mxu3 %v3009_v2  ;;  %1780 = vmatpush.bf16.msrb.mxu1 %v2465_v12  ;;  %v3109_v2 = vor.u32 %v3430_v59, %v3108_v58  ;;  %v2276_v12 = vld [vmem:[%s5178_s1 + $0xd0] sm:$0xf]  ;;  %v2533_v24 = vor.u32 %v3286_v17, %v2532_v14  ;;  %v3306_v14 = vld [vmem:[%s5178_s1 + $0x394] sm:$0xf] }
  0x9c   :  { %v3350_v19 = vld [vmem:[%s5178_s1 + $0x4ec] sm:$0xf0]  ;;  %v2630_v17 = vld [vmem:[%s5178_s1 + $0x3b0] sm:$0xf0] }
  0x9d   :  { %1794 = vmatpush.bf16.msrb.mxu2 %v2721_v13  ;;  %1767 = vmatpush.bf16.msrb.mxu0 %v2177_v26  ;;  %v3222_v13 = vld [vmem:[%s5178_s1 + $0xec] sm:$0xf0] }
  0x9e   :  { %v3044_v21 = vld [vmem:[%s5178_s1 + $0x6d0] sm:$0xf]  ;;  %v2277_v23 = vor.u32 %v3222_v13, %v2276_v12  ;;  %v3242_v12 = vld [vmem:[%s5178_s1 + $0x194] sm:$0xf] }
  0x9f   :  { %1808 = vmatpush.bf16.msrb.mxu3 %v2977_v18  ;;  %1781 = vmatpush.bf16.msrb.mxu1 %v2433_v30  ;;  %v2788_v18 = vld [vmem:[%s5178_s1 + $0x4d0] sm:$0xf]  ;;  %v2374_v13 = vld [vmem:[%s5178_s1 + $0x1b0] sm:$0xf0] }
  0xa0   :  { %1768 = vmatmul.bf16.vlgmr.msrb.gmra.mxu0 %v3768_v16  ;;  %v3414_v22 = vld [vmem:[%s5178_s1 + $0x6ec] sm:$0xf0]  ;;  %v2789_v25 = vor.u32 %v3350_v19, %v2788_v18  ;;  %v3370_v18 = vld [vmem:[%s5178_s1 + $0x594] sm:$0xf] }
  0xa1   :  { %1795 = vmatpush.bf16.msrb.mxu2 %v2689_v31  ;;  %1816 = vmatpush.bf16.msra.mxu0 %v2405_v36  ;;  %v2244_v26 = vld [vmem:[%s5178_s1 + $0x90] sm:$0xf]  ;;  %v3045_v29 = vor.u32 %v3414_v22, %v3044_v21  ;;  %v2886_v19 = vld [vmem:[%s5178_s1 + $0x5b0] sm:$0xf0] }
  0xa2   :  { %1782 = vmatmul.bf16.vlgmr.msrb.gmra.mxu1 %v3807_v33  ;;  %v3214_v27 = vld [vmem:[%s5178_s1 + $0xac] sm:$0xf0]  ;;  %v3434_v21 = vld [vmem:[%s5178_s1 + $0x794] sm:$0xf] }
  0xa3   :  { %1809 = vmatpush.bf16.msrb.mxu3 %v2945_v35  ;;  %1830 = vmatpush.bf16.msra.mxu1 %v2661_v37  ;;  %v2500_v28 = vld [vmem:[%s5178_s1 + $0x290] sm:$0xf]  ;;  %v2245_v36 = vor.u32 %v3214_v27, %v2244_v26  ;;  %v3142_v22 = vld [vmem:[%s5178_s1 + $0x7b0] sm:$0xf0] }
  0xa4   :  { %1796 = vmatmul.bf16.vlgmr.msrb.gmra.mxu2 %v3751_v9  ;;  %v3278_v30 = vld [vmem:[%s5178_s1 + $0x2ac] sm:$0xf0]  ;;  %v3234_v26 = vld [vmem:[%s5178_s1 + $0x154] sm:$0xf] }
  0xa5   :  { %1844 = vmatpush.bf16.msra.mxu2 %v2917_v38  ;;  %1817 = vmatpush.bf16.msra.mxu0 %v2373_v48  ;;  %v2756_v31 = vld [vmem:[%s5178_s1 + $0x490] sm:$0xf]  ;;  %v2501_v37 = vor.u32 %v3278_v30, %v2500_v28  ;;  %v2342_v27 = vld [vmem:[%s5178_s1 + $0x170] sm:$0xf0] }
  0xa6   :  { %1810 = vmatmul.bf16.vlgmr.msrb.gmra.mxu3 %v3780_v20  ;;  %v3342_v32 = vld [vmem:[%s5178_s1 + $0x4ac] sm:$0xf0]  ;;  %v3298_v28 = vld [vmem:[%s5178_s1 + $0x354] sm:$0xf] }
  0xa7   :  { %1858 = vmatpush.bf16.msra.mxu3 %v3173_v42  ;;  %1831 = vmatpush.bf16.msra.mxu1 %v2629_v49  ;;  %v3012_v34 = vld [vmem:[%s5178_s1 + $0x690] sm:$0xf]  ;;  %v2757_v38 = vor.u32 %v3342_v32, %v2756_v31  ;;  %v2598_v30 = vld [vmem:[%s5178_s1 + $0x370] sm:$0xf0] }
  0xa8   :  { %v3406_v35 = vld [vmem:[%s5178_s1 + $0x6ac] sm:$0xf0]  ;;  %v3362_v31 = vld [vmem:[%s5178_s1 + $0x554] sm:$0xf] }
  0xa9   :  { %1845 = vmatpush.bf16.msra.mxu2 %v2885_v50  ;;  %1818 = vmatpush.bf16.msra.mxu0 %v2341_v60  ;;  %v2212_v39 = vld [vmem:[%s5178_s1 + $0x50] sm:$0xf]  ;;  %v3013_v42 = vor.u32 %v3406_v35, %v3012_v34  ;;  %v3250_v60 = vld [vmem:[%s5178_s1 + $0x1d4] sm:$0xf] }
  0xaa   :  { %v3206_v40 = vld [vmem:[%s5178_s1 + $0x6c] sm:$0xf0]  ;;  %v2854_v32 = vld [vmem:[%s5178_s1 + $0x570] sm:$0xf0] }
  0xab   :  { %1859 = vmatpush.bf16.msra.mxu3 %v3141_v54  ;;  %1832 = vmatpush.bf16.msra.mxu1 %v2597_v61  ;;  %v2468_v41 = vld [vmem:[%s5178_s1 + $0x250] sm:$0xf]  ;;  %v2213_v48 = vor.u32 %v3206_v40, %v2212_v39  ;;  %v2406_v61 = vld [vmem:[%s5178_s1 + $0x1f0] sm:$0xf0] }
  0xac   :  { %v3270_v43 = vld [vmem:[%s5178_s1 + $0x26c] sm:$0xf0]  ;;  %v3426_v34 = vld [vmem:[%s5178_s1 + $0x754] sm:$0xf] }
  0xad   :  { %1846 = vmatpush.bf16.msra.mxu2 %v2853_v62  ;;  %1819 = vmatpush.bf16.msra.mxu0 %v2309_v8  ;;  %v2724_v44 = vld [vmem:[%s5178_s1 + $0x450] sm:$0xf]  ;;  %v2469_v51 = vor.u32 %v3270_v43, %v2468_v41  ;;  %v3314_v62 = vld [vmem:[%s5178_s1 + $0x3d4] sm:$0xf]  ;;  %v2409_v8 = vor.u32 %v3250_v60, %v2406_v61 }
  0xae   :  { %v3334_v45 = vld [vmem:[%s5178_s1 + $0x46c] sm:$0xf0]  ;;  %v3110_v35 = vld [vmem:[%s5178_s1 + $0x770] sm:$0xf0] }
  0xaf   :  { %1860 = vmatpush.bf16.msra.mxu3 %v3109_v2  ;;  %1833 = vmatpush.bf16.msra.mxu1 %v2565_v10  ;;  %v2980_v46 = vld [vmem:[%s5178_s1 + $0x650] sm:$0xf]  ;;  %v2725_v52 = vor.u32 %v3334_v45, %v2724_v44  ;;  %v2918_v2 = vld [vmem:[%s5178_s1 + $0x5f0] sm:$0xf0]  ;;  %v2665_v10 = vor.u32 %v3314_v62, %v2662_v0 }
  0xb0   :  { %v3398_v47 = vld [vmem:[%s5178_s1 + $0x66c] sm:$0xf0]  ;;  %v3226_v39 = vld [vmem:[%s5178_s1 + $0x114] sm:$0xf] }
  0xb1   :  { %1847 = vmatpush.bf16.msra.mxu2 %v2821_v11  ;;  %1820 = vmatpush.bf16.msra.mxu0 %v2277_v23  ;;  %v2180_v49 = vld [vmem:[%s5178_s1 + $0x10] sm:$0xf]  ;;  %v2981_v56 = vor.u32 %v3398_v47, %v2980_v46  ;;  %v2921_v11 = vor.u32 %v3378_v1, %v2918_v2  ;;  %v2377_v23 = vor.u32 %v3242_v12, %v2374_v13  ;;  %v2310_v40 = vld [vmem:[%s5178_s1 + $0x130] sm:$0xf0] }
  0xb2   :  { %v3198_v50 = vld [vmem:[%s5178_s1 + $0x2c] sm:$0xf0]  ;;  %v3290_v41 = vld [vmem:[%s5178_s1 + $0x314] sm:$0xf] }
  0xb3   :  { %1861 = vmatpush.bf16.msra.mxu3 %v3077_v15  ;;  %1834 = vmatpush.bf16.msra.mxu1 %v2533_v24  ;;  %v2436_v53 = vld [vmem:[%s5178_s1 + $0x210] sm:$0xf]  ;;  %v2181_v63 = vor.u32 %v3198_v50, %v2180_v49  ;;  %v3177_v15 = vor.u32 %v3442_v5, %v3174_v6  ;;  %v2633_v24 = vor.u32 %v3306_v14, %v2630_v17  ;;  %v2566_v43 = vld [vmem:[%s5178_s1 + $0x330] sm:$0xf0] }
  0xb4   :  { %v3262_v54 = vld [vmem:[%s5178_s1 + $0x22c] sm:$0xf0]  ;;  %v3354_v44 = vld [vmem:[%s5178_s1 + $0x514] sm:$0xf]  ;;  %v2569_v50 = vor.u32 %v3290_v41, %v2566_v43 }
  0xb5   :  { %1848 = vmatpush.bf16.msra.mxu2 %v2789_v25  ;;  %1821 = vmatpush.bf16.msra.mxu0 %v2245_v36  ;;  %v2692_v55 = vld [vmem:[%s5178_s1 + $0x410] sm:$0xf]  ;;  %v2437_v3 = vor.u32 %v3262_v54, %v2436_v53  ;;  %v2889_v25 = vor.u32 %v3370_v18, %v2886_v19  ;;  %v2345_v36 = vor.u32 %v3234_v26, %v2342_v27  ;;  %v2822_v45 = vld [vmem:[%s5178_s1 + $0x530] sm:$0xf0] }
  0xb6   :  { %v3326_v57 = vld [vmem:[%s5178_s1 + $0x42c] sm:$0xf0]  ;;  %v3418_v46 = vld [vmem:[%s5178_s1 + $0x714] sm:$0xf] }
  0xb7   :  { %1862 = vmatpush.bf16.msra.mxu3 %v3045_v29  ;;  %1835 = vmatpush.bf16.msra.mxu1 %v2501_v37  ;;  %v2948_v58 = vld [vmem:[%s5178_s1 + $0x610] sm:$0xf]  ;;  %v2693_v4 = vor.u32 %v3326_v57, %v2692_v55  ;;  %v3145_v29 = vor.u32 %v3434_v21, %v3142_v22  ;;  %v2601_v37 = vor.u32 %v3298_v28, %v2598_v30  ;;  %v3078_v47 = vld [vmem:[%s5178_s1 + $0x730] sm:$0xf0] }
  0xb8   :  { %v3390_v59 = vld [vmem:[%s5178_s1 + $0x62c] sm:$0xf0]  ;;  %v3218_v49 = vld [vmem:[%s5178_s1 + $0xd4] sm:$0xf]  ;;  %v3081_v55 = vor.u32 %v3418_v46, %v3078_v47 }
  0xb9   :  { %1849 = vmatpush.bf16.msra.mxu2 %v2757_v38  ;;  %1822 = vmatpush.bf16.msra.mxu0 %v2213_v48  ;;  %v2949_v7 = vor.u32 %v3390_v59, %v2948_v58  ;;  %v2857_v38 = vor.u32 %v3362_v31, %v2854_v32  ;;  %v2313_v48 = vor.u32 %v3226_v39, %v2310_v40  ;;  %v3282_v53 = vld [vmem:[%s5178_s1 + $0x2d4] sm:$0xf] }
  0xba   :  { %v4589_v54 = vld [vmem:[%s5180_s2] ss:$4 sm:$0xff]  ;;  %v4692_v47 = vld [vmem:[%s5180_s2 + $0x2] ss:$4 sm:$0xff] }
  0xbb   :  { %1863 = vmatpush.bf16.msra.mxu3 %v3013_v42  ;;  %1836 = vmatpush.bf16.msra.mxu1 %v2469_v51  ;;  %v3113_v42 = vor.u32 %v3426_v34, %v3110_v35  ;;  %v2825_v51 = vor.u32 %v3354_v44, %v2822_v45  ;;  %v3346_v57 = vld [vmem:[%s5178_s1 + $0x4d4] sm:$0xf]  ;;  %v276_v62 = vperm.slane %v4589_v54, 0  ;;  %v2412_v45 = vld [vmem:[%s5178_s1 + $0x1d8] sm:$0xf] }
  0xbc   :  { %v2790_v58 = vld [vmem:[%s5178_s1 + $0x4f0] sm:$0xf0] }
  0xbd   :  { %1850 = vmatpush.bf16.msra.mxu2 %v2725_v52  ;;  %1823 = vmatpush.bf16.msra.mxu0 %v2181_v63  ;;  %v2278_v52 = vld [vmem:[%s5178_s1 + $0xf0] sm:$0xf0]  ;;  %v2793_v0 = vor.u32 %v3346_v57, %v2790_v58  ;;  %v3383_v57 = vld [vmem:[%s5178_s1 + $0x5f4] sm:$0xf0] }
  0xbe   :  { %v3410_v59 = vld [vmem:[%s5178_s1 + $0x6d4] sm:$0xf]  ;;  %v2281_v61 = vor.u32 %v3218_v49, %v2278_v52  ;;  %v2668_v49 = vld [vmem:[%s5178_s1 + $0x3d8] sm:$0xf] }
  0xbf   :  { %1864 = vmatpush.bf16.msra.mxu3 %v2981_v56  ;;  %1837 = vmatpush.bf16.msra.mxu1 %v2437_v3  ;;  %v2534_v56 = vld [vmem:[%s5178_s1 + $0x2f0] sm:$0xf0] }
  0xc0   :  { %1824 = vmatmul.bf16.vlgmr.msra.gmra.mxu0 %v3768_v16  ;;  %v3046_v60 = vld [vmem:[%s5178_s1 + $0x6f0] sm:$0xf0]  ;;  %v2537_v63 = vor.u32 %v3282_v53, %v2534_v56  ;;  %v2924_v56 = vld [vmem:[%s5178_s1 + $0x5d8] sm:$0xf] }
  0xc1   :  { %1851 = vmatpush.bf16.msra.mxu2 %v2693_v4  ;;  %1872 = vmatpush.bf16.msrb.mxu0 %v2409_v8  ;;  %v3210_v1 = vld [vmem:[%s5178_s1 + $0x94] sm:$0xf]  ;;  %v3049_v4 = vor.u32 %v3410_v59, %v3046_v60 }
  0xc2   :  { %1838 = vmatmul.bf16.vlgmr.msra.gmra.mxu1 %v3807_v33  ;;  %v2246_v2 = vld [vmem:[%s5178_s1 + $0xb0] sm:$0xf0] }
  0xc3   :  { %1865 = vmatpush.bf16.msra.mxu3 %v2949_v7  ;;  %1886 = vmatpush.bf16.msrb.mxu1 %v2665_v10  ;;  %v3274_v3 = vld [vmem:[%s5178_s1 + $0x294] sm:$0xf]  ;;  %v2249_v12 = vor.u32 %v3210_v1, %v2246_v2  ;;  %v1615_v22 = vpop.f32.mrf.mxu1  ;;  %v2094_v1 = vperm.slane %v4692_v47, 0 }
  0xc4   :  { %1852 = vmatmul.bf16.vlgmr.msra.gmra.mxu2 %v3751_v9  ;;  %v2502_v5 = vld [vmem:[%s5178_s1 + $0x2b0] sm:$0xf0] }
  0xc5   :  { %1900 = vmatpush.bf16.msrb.mxu2 %v2921_v11  ;;  %1873 = vmatpush.bf16.msrb.mxu0 %v2377_v23  ;;  %v3338_v6 = vld [vmem:[%s5178_s1 + $0x494] sm:$0xf]  ;;  %v1601_v11 = vpop.f32.mrf.mxu0 }
  0xc6   :  { %1866 = vmatmul.bf16.vlgmr.msra.gmra.mxu3 %v3780_v20  ;;  %v2758_v7 = vld [vmem:[%s5178_s1 + $0x4b0] sm:$0xf0]  ;;  %v1602_v14 = vadd.f32 %v1601_v11, %v276_v62  ;;  %v2636_v11 = vld [vmem:[%s5178_s1 + $0x398] sm:$0xf] }
  0xc7   :  { %1914 = vmatpush.bf16.msrb.mxu3 %v3177_v15  ;;  %1887 = vmatpush.bf16.msrb.mxu1 %v2633_v24  ;;  %v3402_v8 = vld [vmem:[%s5178_s1 + $0x694] sm:$0xf]  ;;  %v2505_v15 = vor.u32 %v3274_v3, %v2502_v5  ;;  %v2761_v17 = vor.u32 %v3338_v6, %v2758_v7  ;;  %v1629_v28 = vpop.f32.mrf.mxu2  ;;  %v2925_v7 = vor.u32 %v3383_v57, %v2924_v56 }
  0xc8   :  { %v3014_v10 = vld [vmem:[%s5178_s1 + $0x6b0] sm:$0xf0]  ;;  %v1616_v27 = vadd.f32 %v1615_v22, %v1602_v14  ;;  %v3311_v14 = vld [vmem:[%s5178_s1 + $0x3b4] sm:$0xf0] }
  0xc9   :  { %1901 = vmatpush.bf16.msrb.mxu2 %v2889_v25  ;;  %1874 = vmatpush.bf16.msrb.mxu0 %v2345_v36  ;;  %v3202_v13 = vld [vmem:[%s5178_s1 + $0x54] sm:$0xf]  ;;  %v3017_v23 = vor.u32 %v3402_v8, %v3014_v10  ;;  %v1643_v46 = vpop.f32.mrf.mxu3  ;;  %v2380_v8 = vld [vmem:[%s5178_s1 + $0x198] sm:$0xf] }
  0xca   :  { %v2214_v18 = vld [vmem:[%s5178_s1 + $0x70] sm:$0xf0]  ;;  %v1630_v36 = vadd.f32 %v1629_v28, %v1616_v27  ;;  %v3247_v10 = vld [vmem:[%s5178_s1 + $0x1b4] sm:$0xf0] }
  0xcb   :  { %1915 = vmatpush.bf16.msrb.mxu3 %v3145_v29  ;;  %1888 = vmatpush.bf16.msrb.mxu1 %v2601_v37  ;;  %v3266_v19 = vld [vmem:[%s5178_s1 + $0x254] sm:$0xf]  ;;  %v2217_v32 = vor.u32 %v3202_v13, %v2214_v18  ;;  %v1617_v2 = vpop.f32.mrf.mxu1  ;;  %v2348_v27 = vld [vmem:[%s5178_s1 + $0x158] sm:$0xf] }
  0xcc   :  { %v2470_v21 = vld [vmem:[%s5178_s1 + $0x270] sm:$0xf0]  ;;  %v3239_v28 = vld [vmem:[%s5178_s1 + $0x174] sm:$0xf0] }
  0xcd   :  { %1902 = vmatpush.bf16.msrb.mxu2 %v2857_v38  ;;  %1875 = vmatpush.bf16.msrb.mxu0 %v2313_v48  ;;  %v3330_v24 = vld [vmem:[%s5178_s1 + $0x454] sm:$0xf]  ;;  %v2473_v38 = vor.u32 %v3266_v19, %v2470_v21  ;;  %v3255_v48 = vld [vmem:[%s5178_s1 + $0x1f4] sm:$0xf0]  ;;  %v1603_v52 = vpop.f32.mrf.mxu0 }
  0xce   :  { %v2726_v25 = vld [vmem:[%s5178_s1 + $0x470] sm:$0xf0]  ;;  %v1604_v58 = vadd.f32 %v1603_v52, %v276_v62  ;;  %v3148_v19 = vld [vmem:[%s5178_s1 + $0x798] sm:$0xf] }
  0xcf   :  { %1916 = vmatpush.bf16.msrb.mxu3 %v3113_v42  ;;  %1889 = vmatpush.bf16.msrb.mxu1 %v2569_v50  ;;  %v3394_v26 = vld [vmem:[%s5178_s1 + $0x654] sm:$0xf]  ;;  %v2729_v39 = vor.u32 %v3330_v24, %v2726_v25  ;;  %v1644_v50 = vadd.f32 %v1643_v46, %v1630_v36  ;;  %v1631_v5 = vpop.f32.mrf.mxu2  ;;  %v3439_v21 = vld [vmem:[%s5178_s1 + $0x7b4] sm:$0xf0]  ;;  %v2637_v25 = vor.u32 %v3311_v14, %v2636_v11 }
  0xd0   :  { %v2982_v29 = vld [vmem:[%s5178_s1 + $0x670] sm:$0xf0]  ;;  %v1618_v62 = vadd.f32 %v1617_v2, %v1604_v58  ;;  %v3116_v36 = vld [vmem:[%s5178_s1 + $0x758] sm:$0xf] }
  0xd1   :  { %1903 = vmatpush.bf16.msrb.mxu2 %v2825_v51  ;;  %1876 = vmatpush.bf16.msrb.mxu0 %v2281_v61  ;;  %v3194_v30 = vld [vmem:[%s5178_s1 + $0x14] sm:$0xf]  ;;  %v2985_v43 = vor.u32 %v3394_v26, %v2982_v29  ;;  %v3180_v61 = vld [vmem:[%s5178_s1 + $0x7d8] sm:$0xf]  ;;  %v1645_v24 = vpop.f32.mrf.mxu3 }
  0xd2   :  { %v2182_v31 = vld [vmem:[%s5178_s1 + $0x30] sm:$0xf0]  ;;  %v1632_v18 = vadd.f32 %v1631_v5, %v1618_v62  ;;  %v2604_v29 = vld [vmem:[%s5178_s1 + $0x358] sm:$0xf] }
  0xd3   :  { %1917 = vmatpush.bf16.msrb.mxu3 %v3081_v55  ;;  %1890 = vmatpush.bf16.msrb.mxu1 %v2537_v63  ;;  %v3258_v34 = vld [vmem:[%s5178_s1 + $0x214] sm:$0xf]  ;;  %v2185_v53 = vor.u32 %v3194_v30, %v2182_v31  ;;  %v3319_v55 = vld [vmem:[%s5178_s1 + $0x3f4] sm:$0xf0]  ;;  %v3149_v31 = vor.u32 %v3439_v21, %v3148_v19 }
  0xd4   :  { %v2438_v35 = vld [vmem:[%s5178_s1 + $0x230] sm:$0xf0]  ;;  %v3447_v63 = vld [vmem:[%s5178_s1 + $0x7f4] sm:$0xf0]  ;;  %v2669_v6 = vor.u32 %v3319_v55, %v2668_v49  ;;  %v1646_v30 = vadd.f32 %v1645_v24, %v1632_v18 }
  0xd5   :  { %1904 = vmatpush.bf16.msrb.mxu2 %v2793_v0  ;;  %1877 = vmatpush.bf16.msrb.mxu0 %v2249_v12  ;;  %v4672_v37 = vld [vmem:[%s5180_s2 + $0x1] ss:$4 sm:$0xff]  ;;  %v2441_v59 = vor.u32 %v3258_v34, %v2438_v35  ;;  %v2040_v0 = vmax.f32 %v1644_v50, 0.0  ;;  %v3181_v13 = vor.u32 %v3447_v63, %v3180_v61 }
  0xd6   :  { %v3322_v40 = vld [vmem:[%s5178_s1 + $0x414] sm:$0xf]  ;;  %v2059_v51 = vperm.slane %v4672_v37, 0  ;;  %v2860_v34 = vld [vmem:[%s5178_s1 + $0x558] sm:$0xf] }
  0xd7   :  { %1918 = vmatpush.bf16.msrb.mxu3 %v3049_v4  ;;  %1891 = vmatpush.bf16.msrb.mxu1 %v2505_v15  ;;  %v2694_v41 = vld [vmem:[%s5178_s1 + $0x430] sm:$0xf0]  ;;  %v2413_v4 = vor.u32 %v3255_v48, %v2412_v45  ;;  %v2892_v15 = vld [vmem:[%s5178_s1 + $0x598] sm:$0xf]  ;;  %v277_v48 = vperm.slane %v4589_v54, 1 }
  0xd8   :  { %v3386_v42 = vld [vmem:[%s5178_s1 + $0x614] sm:$0xf]  ;;  %v2697_v60 = vor.u32 %v3322_v40, %v2694_v41  ;;  %v2075_v12 = vmul.f32 %v2059_v51, %v2040_v0  ;;  %v3367_v35 = vld [vmem:[%s5178_s1 + $0x574] sm:$0xf0]  ;;  %v2349_v40 = vor.u32 %v3239_v28, %v2348_v27 }
  0xd9   :  { %1905 = vmatpush.bf16.msrb.mxu2 %v2761_v17  ;;  %v2950_v44 = vld [vmem:[%s5178_s1 + $0x630] sm:$0xf0]  ;;  %1878 = vmatpush.bf16.msrb.mxu0 %v2217_v32  ;;  %v3375_v17 = vld [vmem:[%s5178_s1 + $0x5b4] sm:$0xf0] }
  0xda   :  { %v2953_v3 = vor.u32 %v3386_v42, %v2950_v44  ;;  %v2110_v22 = vadd.f32 %v2094_v1, %v2075_v12  ;;  %v2893_v26 = vor.u32 %v3375_v17, %v2892_v15  ;;  %v3303_v32 = vld [vmem:[%s5178_s1 + $0x374] sm:$0xf0] }
  0xdb   :  { %1919 = vmatpush.bf16.msrb.mxu3 %v3017_v23  ;;  %1892 = vmatpush.bf16.msrb.mxu1 %v2473_v38  ;;  %v2381_v23 = vor.u32 %v3247_v10, %v2380_v8  ;;  %v3431_v38 = vld [vmem:[%s5178_s1 + $0x774] sm:$0xf0]  ;;  %v2605_v42 = vor.u32 %v3303_v32, %v2604_v29 }
  0xdc   :  { %2126 = vst [vmem:[%s5181_s3] sm:$0xff] %v2110_v22  ;;  %v2316_v41 = vld [vmem:[%s5178_s1 + $0x118] sm:$0xf]  ;;  %v3117_v49 = vor.u32 %v3431_v38, %v3116_v36 }
  0xdd   :  { %1906 = vmatpush.bf16.msrb.mxu2 %v2729_v39  ;;  %1879 = vmatpush.bf16.msrb.mxu0 %v2185_v53  ;;  %v2048_v39 = vmax.f32 %v1646_v30, 0.0  ;;  %v3231_v44 = vld [vmem:[%s5178_s1 + $0x134] sm:$0xf0]  ;;  %v2060_v30 = vperm.slane %v4672_v37, 1 }
  0xde   :  { %v2572_v45 = vld [vmem:[%s5178_s1 + $0x318] sm:$0xf]  ;;  %v2317_v57 = vor.u32 %v3231_v44, %v2316_v41 }
  0xdf   :  { %1920 = vmatpush.bf16.msrb.mxu3 %v2985_v43  ;;  %1893 = vmatpush.bf16.msrb.mxu1 %v2441_v59  ;;  %v2861_v43 = vor.u32 %v3367_v35, %v2860_v34  ;;  %v2083_v46 = vmul.f32 %v2059_v51, %v2048_v39  ;;  %v3295_v50 = vld [vmem:[%s5178_s1 + $0x334] sm:$0xf0]  ;;  %v1657_v59 = vpop.f32.mrf.mxu0  ;;  %v1671_v2 = vpop.f32.mrf.mxu1 }
  0xe0   :  { %1880 = vmatmul.bf16.vlgmr.msrb.gmra.mxu0 %v3768_v16  ;;  %v2828_v52 = vld [vmem:[%s5178_s1 + $0x518] sm:$0xf] }
  0xe1   :  { %1907 = vmatpush.bf16.msrb.mxu2 %v2697_v60  ;;  %1928 = vmatpush.bf16.msra.mxu0 %v2413_v4  ;;  %v3359_v53 = vld [vmem:[%s5178_s1 + $0x534] sm:$0xf0]  ;;  %v2118_v56 = vadd.f32 %v2094_v1, %v2083_v46  ;;  %v2573_v60 = vor.u32 %v3295_v50, %v2572_v45  ;;  %v1658_v1 = vadd.f32 %v1657_v59, %v277_v48  ;;  %v2095_v45 = vperm.slane %v4692_v47, 1 }
  0xe2   :  { %1894 = vmatmul.bf16.vlgmr.msrb.gmra.mxu1 %v3807_v33  ;;  %v3084_v51 = vld [vmem:[%s5178_s1 + $0x718] sm:$0xf]  ;;  %v2829_v61 = vor.u32 %v3359_v53, %v2828_v52 }
  0xe3   :  { %1921 = vmatpush.bf16.msrb.mxu3 %v2953_v3  ;;  %1942 = vmatpush.bf16.msra.mxu1 %v2669_v6  ;;  %v3423_v55 = vld [vmem:[%s5178_s1 + $0x734] sm:$0xf0]  ;;  %2134 = vst [vmem:[%s5181_s3 + $0x40] sm:$0xff] %v2118_v56  ;;  %v1672_v8 = vadd.f32 %v1671_v2, %v1658_v1  ;;  %v3251_v2 = vld [vmem:[%s5178_s1 + $0x1dc] sm:$0xf] }
  0xe4   :  { %1908 = vmatmul.bf16.vlgmr.msrb.gmra.mxu2 %v3751_v9  ;;  %v2284_v58 = vld [vmem:[%s5178_s1 + $0xd8] sm:$0xf]  ;;  %v3085_v3 = vor.u32 %v3423_v55, %v3084_v51 }
  0xe5   :  { %1956 = vmatpush.bf16.msra.mxu2 %v2925_v7  ;;  %1929 = vmatpush.bf16.msra.mxu0 %v2381_v23  ;;  %v3223_v63 = vld [vmem:[%s5178_s1 + $0xf4] sm:$0xf0] }
  0xe6   :  { %1922 = vmatmul.bf16.vlgmr.msrb.gmra.mxu3 %v3780_v20  ;;  %v2540_v0 = vld [vmem:[%s5178_s1 + $0x2d8] sm:$0xf]  ;;  %v2285_v10 = vor.u32 %v3223_v63, %v2284_v58 }
  0xe7   :  { %1970 = vmatpush.bf16.msra.mxu3 %v3181_v13  ;;  %1943 = vmatpush.bf16.msra.mxu1 %v2637_v25  ;;  %v3287_v4 = vld [vmem:[%s5178_s1 + $0x2f4] sm:$0xf0]  ;;  %v1685_v17 = vpop.f32.mrf.mxu2 }
  0xe8   :  { %v2796_v62 = vld [vmem:[%s5178_s1 + $0x4d8] sm:$0xf]  ;;  %v2541_v11 = vor.u32 %v3287_v4, %v2540_v0  ;;  %v1686_v23 = vadd.f32 %v1685_v17, %v1672_v8  ;;  %v3182_v17 = vld [vmem:[%s5178_s1 + $0x7f8] sm:$0xf0] }
  0xe9   :  { %1957 = vmatpush.bf16.msra.mxu2 %v2893_v26  ;;  %1930 = vmatpush.bf16.msra.mxu0 %v2349_v40  ;;  %v3351_v5 = vld [vmem:[%s5178_s1 + $0x4f4] sm:$0xf0]  ;;  %v1699_v24 = vpop.f32.mrf.mxu3  ;;  %v1673_v40 = vpop.f32.mrf.mxu1 }
  0xea   :  { %v3052_v6 = vld [vmem:[%s5178_s1 + $0x6d8] sm:$0xf]  ;;  %v2797_v12 = vor.u32 %v3351_v5, %v2796_v62  ;;  %v1700_v29 = vadd.f32 %v1699_v24, %v1686_v23  ;;  %v2414_v5 = vld [vmem:[%s5178_s1 + $0x1f8] sm:$0xf0] }
  0xeb   :  { %1971 = vmatpush.bf16.msra.mxu3 %v3149_v31  ;;  %1944 = vmatpush.bf16.msra.mxu1 %v2605_v42  ;;  %v3415_v7 = vld [vmem:[%s5178_s1 + $0x6f4] sm:$0xf0]  ;;  %v1659_v31 = vpop.f32.mrf.mxu0  ;;  %v3243_v24 = vld [vmem:[%s5178_s1 + $0x19c] sm:$0xf] }
  0xec   :  { %v2252_v13 = vld [vmem:[%s5178_s1 + $0x98] sm:$0xf]  ;;  %v3053_v18 = vor.u32 %v3415_v7, %v3052_v6  ;;  %v1660_v39 = vadd.f32 %v1659_v31, %v277_v48  ;;  %v2041_v44 = vmax.f32 %v1700_v29, 0.0  ;;  %v3315_v6 = vld [vmem:[%s5178_s1 + $0x3dc] sm:$0xf] }
  0xed   :  { %1958 = vmatpush.bf16.msra.mxu2 %v2861_v43  ;;  %1931 = vmatpush.bf16.msra.mxu0 %v2317_v57  ;;  %v3215_v14 = vld [vmem:[%s5178_s1 + $0xb4] sm:$0xf0]  ;;  %v2670_v7 = vld [vmem:[%s5178_s1 + $0x3f8] sm:$0xf0] }
  0xee   :  { %v2508_v15 = vld [vmem:[%s5178_s1 + $0x298] sm:$0xf]  ;;  %v2253_v27 = vor.u32 %v3215_v14, %v2252_v13  ;;  %v2076_v55 = vmul.f32 %v2060_v30, %v2041_v44  ;;  %v3371_v29 = vld [vmem:[%s5178_s1 + $0x59c] sm:$0xf] }
  0xef   :  { %1972 = vmatpush.bf16.msra.mxu3 %v3117_v49  ;;  %1945 = vmatpush.bf16.msra.mxu1 %v2573_v60  ;;  %v3279_v19 = vld [vmem:[%s5178_s1 + $0x2b4] sm:$0xf0]  ;;  %v1674_v49 = vadd.f32 %v1673_v40, %v1660_v39  ;;  %v2894_v31 = vld [vmem:[%s5178_s1 + $0x5b8] sm:$0xf0] }
  0xf0   :  { %v2764_v21 = vld [vmem:[%s5178_s1 + $0x498] sm:$0xf]  ;;  %v2509_v32 = vor.u32 %v3279_v19, %v2508_v15  ;;  %v3443_v15 = vld [vmem:[%s5178_s1 + $0x7dc] sm:$0xf]  ;;  %v2417_v19 = vor.u32 %v3251_v2, %v2414_v5  ;;  %v2897_v40 = vor.u32 %v3371_v29, %v2894_v31 }
  0xf1   :  { %1959 = vmatpush.bf16.msra.mxu2 %v2829_v61  ;;  %v3343_v22 = vld [vmem:[%s5178_s1 + $0x4b4] sm:$0xf0]  ;;  %1932 = vmatpush.bf16.msra.mxu0 %v2285_v10  ;;  %v1687_v61 = vpop.f32.mrf.mxu2  ;;  %v1701_v62 = vpop.f32.mrf.mxu3  ;;  %v3379_v10 = vld [vmem:[%s5178_s1 + $0x5dc] sm:$0xf] }
  0xf2   :  { %v3020_v25 = vld [vmem:[%s5178_s1 + $0x698] sm:$0xf]  ;;  %v2765_v34 = vor.u32 %v3343_v22, %v2764_v21  ;;  %v1688_v4 = vadd.f32 %v1687_v61, %v1674_v49  ;;  %v2673_v22 = vor.u32 %v3315_v6, %v2670_v7  ;;  %v3118_v49 = vld [vmem:[%s5178_s1 + $0x778] sm:$0xf0] }
  0xf3   :  { %1973 = vmatpush.bf16.msra.mxu3 %v3085_v3  ;;  %v3407_v26 = vld [vmem:[%s5178_s1 + $0x6b4] sm:$0xf0]  ;;  %1946 = vmatpush.bf16.msra.mxu1 %v2541_v11  ;;  %v2111_v3 = vadd.f32 %v2095_v45, %v2076_v55  ;;  %v2926_v11 = vld [vmem:[%s5178_s1 + $0x5f8] sm:$0xf0] }
  0xf4   :  { %v2220_v28 = vld [vmem:[%s5178_s1 + $0x58] sm:$0xf]  ;;  %v3021_v41 = vor.u32 %v3407_v26, %v3020_v25  ;;  %v2929_v23 = vor.u32 %v3379_v10, %v2926_v11  ;;  %v2382_v25 = vld [vmem:[%s5178_s1 + $0x1b8] sm:$0xf0] }
  0xf5   :  { %1960 = vmatpush.bf16.msra.mxu2 %v2797_v12  ;;  %v3207_v35 = vld [vmem:[%s5178_s1 + $0x74] sm:$0xf0]  ;;  %1933 = vmatpush.bf16.msra.mxu0 %v2253_v27  ;;  %2127 = vst [vmem:[%s5181_s3 + $0x8] sm:$0xff] %v2111_v3  ;;  %v1702_v12 = vadd.f32 %v1701_v62, %v1688_v4  ;;  %v3307_v26 = vld [vmem:[%s5178_s1 + $0x39c] sm:$0xf]  ;;  %v3185_v27 = vor.u32 %v3443_v15, %v3182_v17 }
  0xf6   :  { %v2476_v36 = vld [vmem:[%s5178_s1 + $0x258] sm:$0xf]  ;;  %v2221_v50 = vor.u32 %v3207_v35, %v2220_v28  ;;  %v2638_v28 = vld [vmem:[%s5178_s1 + $0x3b8] sm:$0xf0] }
  0xf7   :  { %v3271_v38 = vld [vmem:[%s5178_s1 + $0x274] sm:$0xf0]  ;;  %1974 = vmatpush.bf16.msra.mxu3 %v3053_v18  ;;  %1947 = vmatpush.bf16.msra.mxu1 %v2509_v32  ;;  %v2049_v21 = vmax.f32 %v1702_v12, 0.0  ;;  %v3150_v35 = vld [vmem:[%s5178_s1 + $0x7b8] sm:$0xf0]  ;;  %v2641_v39 = vor.u32 %v3307_v26, %v2638_v28 }
  0xf8   :  { %v2732_v42 = vld [vmem:[%s5178_s1 + $0x458] sm:$0xf]  ;;  %v2477_v56 = vor.u32 %v3271_v38, %v2476_v36  ;;  %v2385_v36 = vor.u32 %v3243_v24, %v2382_v25  ;;  %v3235_v38 = vld [vmem:[%s5178_s1 + $0x15c] sm:$0xf] }
  0xf9   :  { %v3335_v43 = vld [vmem:[%s5178_s1 + $0x474] sm:$0xf0]  ;;  %1961 = vmatpush.bf16.msra.mxu2 %v2765_v34  ;;  %1934 = vmatpush.bf16.msra.mxu0 %v2221_v50  ;;  %v2084_v32 = vmul.f32 %v2060_v30, %v2049_v21  ;;  %v3435_v34 = vld [vmem:[%s5178_s1 + $0x79c] sm:$0xf] }
  0xfa   :  { %v2988_v46 = vld [vmem:[%s5178_s1 + $0x658] sm:$0xf]  ;;  %v2733_v57 = vor.u32 %v3335_v43, %v2732_v42  ;;  %v3299_v42 = vld [vmem:[%s5178_s1 + $0x35c] sm:$0xf]  ;;  %v3153_v44 = vor.u32 %v3435_v34, %v3150_v35 }
  0xfb   :  { %v3399_v48 = vld [vmem:[%s5178_s1 + $0x674] sm:$0xf0]  ;;  %1975 = vmatpush.bf16.msra.mxu3 %v3021_v41  ;;  %1948 = vmatpush.bf16.msra.mxu1 %v2477_v56  ;;  %v2119_v30 = vadd.f32 %v2095_v45, %v2084_v32  ;;  %v2350_v41 = vld [vmem:[%s5178_s1 + $0x178] sm:$0xf0] }
  0xfc   :  { %v2188_v52 = vld [vmem:[%s5178_s1 + $0x18] sm:$0xf]  ;;  %v2989_v63 = vor.u32 %v3399_v48, %v2988_v46  ;;  %v2606_v43 = vld [vmem:[%s5178_s1 + $0x378] sm:$0xf0]  ;;  %v2353_v50 = vor.u32 %v3235_v38, %v2350_v41 }
  0xfd   :  { %v3199_v53 = vld [vmem:[%s5178_s1 + $0x34] sm:$0xf0]  ;;  %1962 = vmatpush.bf16.msra.mxu2 %v2733_v57  ;;  %v3363_v45 = vld [vmem:[%s5178_s1 + $0x55c] sm:$0xf]  ;;  %2135 = vst [vmem:[%s5181_s3 + $0x48] sm:$0xff] %v2119_v30  ;;  %v278_v57 = vperm.slane %v4589_v54, 2  ;;  %v1713_v2 = vpop.f32.mrf.mxu0 }
  0xfe   :  { %v2444_v51 = vld [vmem:[%s5178_s1 + $0x218] sm:$0xf]  ;;  %v2189_v8 = vor.u32 %v3199_v53, %v2188_v52  ;;  %v2862_v46 = vld [vmem:[%s5178_s1 + $0x578] sm:$0xf0]  ;;  %v2609_v53 = vor.u32 %v3299_v42, %v2606_v43 }
  0xff   :  { %v3263_v58 = vld [vmem:[%s5178_s1 + $0x234] sm:$0xf0]  ;;  %1976 = vmatpush.bf16.msra.mxu3 %v2989_v63  ;;  %v3427_v48 = vld [vmem:[%s5178_s1 + $0x75c] sm:$0xf]  ;;  %v1714_v7 = vadd.f32 %v1713_v2, %v278_v57 }
 0x100   :  { %v2700_v59 = vld [vmem:[%s5178_s1 + $0x418] sm:$0xf]  ;;  %v2445_v13 = vor.u32 %v3263_v58, %v2444_v51  ;;  %1935 = vmatpush.bf16.msra.mxu0 %v2189_v8  ;;  %v3227_v52 = vld [vmem:[%s5178_s1 + $0x11c] sm:$0xf]  ;;  %v2865_v51 = vor.u32 %v3363_v45, %v2862_v46  ;;  %v3121_v58 = vor.u32 %v3427_v48, %v3118_v49  ;;  %v1727_v8 = vpop.f32.mrf.mxu1 }
 0x101   :  { %v3327_v60 = vld [vmem:[%s5178_s1 + $0x434] sm:$0xf0]  ;;  %v2318_v55 = vld [vmem:[%s5178_s1 + $0x138] sm:$0xf0]  ;;  %v1728_v17 = vadd.f32 %v1727_v8, %v1714_v7 }
 0x102   :  { %v2956_v0 = vld [vmem:[%s5178_s1 + $0x618] sm:$0xf]  ;;  %v2701_v14 = vor.u32 %v3327_v60, %v2700_v59  ;;  %1949 = vmatpush.bf16.msra.mxu1 %v2445_v13  ;;  %v3291_v56 = vld [vmem:[%s5178_s1 + $0x31c] sm:$0xf] }
 0x103   :  { %v3391_v1 = vld [vmem:[%s5178_s1 + $0x634] sm:$0xf0]  ;;  %1936 = vmatmul.bf16.vlgmr.msra.gmra.mxu0 %v3768_v16  ;;  %v2574_v59 = vld [vmem:[%s5178_s1 + $0x338] sm:$0xf0] }
 0x104   :  { %v2957_v18 = vor.u32 %v3391_v1, %v2956_v0  ;;  %1963 = vmatpush.bf16.msra.mxu2 %v2701_v14  ;;  %1984 = vmatpush.bf16.msrb.mxu0 %v2417_v19  ;;  %v3355_v60 = vld [vmem:[%s5178_s1 + $0x51c] sm:$0xf]  ;;  %v2321_v1 = vor.u32 %v3227_v52, %v2318_v55  ;;  %v2577_v3 = vor.u32 %v3291_v56, %v2574_v59 }
 0x105   :  { %1950 = vmatmul.bf16.vlgmr.msra.gmra.mxu1 %v3807_v33  ;;  %v2830_v61 = vld [vmem:[%s5178_s1 + $0x538] sm:$0xf0] }
 0x106   :  { %1977 = vmatpush.bf16.msra.mxu3 %v2957_v18  ;;  %1998 = vmatpush.bf16.msrb.mxu1 %v2673_v22  ;;  %v3419_v63 = vld [vmem:[%s5178_s1 + $0x71c] sm:$0xf]  ;;  %v2833_v4 = vor.u32 %v3355_v60, %v2830_v61 }
 0x107   :  { %1964 = vmatmul.bf16.vlgmr.msra.gmra.mxu2 %v3751_v9  ;;  %v3086_v0 = vld [vmem:[%s5178_s1 + $0x738] sm:$0xf0]  ;;  %v1741_v25 = vpop.f32.mrf.mxu2 }
 0x108   :  { %2012 = vmatpush.bf16.msrb.mxu2 %v2929_v23  ;;  %1985 = vmatpush.bf16.msrb.mxu0 %v2385_v36  ;;  %v3219_v62 = vld [vmem:[%s5178_s1 + $0xdc] sm:$0xf]  ;;  %v3089_v10 = vor.u32 %v3419_v63, %v3086_v0  ;;  %v1742_v31 = vadd.f32 %v1741_v25, %v1728_v17  ;;  %v1729_v48 = vpop.f32.mrf.mxu1 }
 0x109   :  { %1978 = vmatmul.bf16.vlgmr.msra.gmra.mxu3 %v3780_v20  ;;  %v2286_v5 = vld [vmem:[%s5178_s1 + $0xf8] sm:$0xf0]  ;;  %v1755_v32 = vpop.f32.mrf.mxu3 }
 0x10a   :  { %2026 = vmatpush.bf16.msrb.mxu3 %v3185_v27  ;;  %1999 = vmatpush.bf16.msrb.mxu1 %v2641_v39  ;;  %v3283_v6 = vld [vmem:[%s5178_s1 + $0x2dc] sm:$0xf]  ;;  %v2289_v18 = vor.u32 %v3219_v62, %v2286_v5  ;;  %v1756_v30 = vadd.f32 %v1755_v32, %v1742_v31  ;;  %v2061_v39 = vperm.slane %v4672_v37, 2 }
 0x10b   :  { %v2542_v11 = vld [vmem:[%s5178_s1 + $0x2f8] sm:$0xf0] }
 0x10c   :  { %2013 = vmatpush.bf16.msrb.mxu2 %v2897_v40  ;;  %1986 = vmatpush.bf16.msrb.mxu0 %v2353_v50  ;;  %v3347_v12 = vld [vmem:[%s5178_s1 + $0x4dc] sm:$0xf]  ;;  %v2545_v19 = vor.u32 %v3283_v6, %v2542_v11  ;;  %v1715_v40 = vpop.f32.mrf.mxu0 }
 0x10d   :  { %v2798_v13 = vld [vmem:[%s5178_s1 + $0x4f8] sm:$0xf0]  ;;  %v1716_v46 = vadd.f32 %v1715_v40, %v278_v57 }
 0x10e   :  { %2027 = vmatpush.bf16.msrb.mxu3 %v3153_v44  ;;  %2000 = vmatpush.bf16.msrb.mxu1 %v2609_v53  ;;  %v3411_v14 = vld [vmem:[%s5178_s1 + $0x6dc] sm:$0xf]  ;;  %v2801_v21 = vor.u32 %v3347_v12, %v2798_v13  ;;  %v2042_v53 = vmax.f32 %v1756_v30, 0.0 }
 0x10f   :  { %v3054_v15 = vld [vmem:[%s5178_s1 + $0x6f8] sm:$0xf0]  ;;  %v1730_v57 = vadd.f32 %v1729_v48, %v1716_v46  ;;  %v1743_v2 = vpop.f32.mrf.mxu2 }
 0x110   :  { %2014 = vmatpush.bf16.msrb.mxu2 %v2865_v51  ;;  %1987 = vmatpush.bf16.msrb.mxu0 %v2321_v1  ;;  %v3211_v22 = vld [vmem:[%s5178_s1 + $0x9c] sm:$0xf]  ;;  %v3057_v26 = vor.u32 %v3411_v14, %v3054_v15  ;;  %v2096_v51 = vperm.slane %v4692_v47, 2  ;;  %v2077_v59 = vmul.f32 %v2061_v39, %v2042_v53 }
 0x111   :  { %v2254_v23 = vld [vmem:[%s5178_s1 + $0xb8] sm:$0xf0]  ;;  %v1744_v7 = vadd.f32 %v1743_v2, %v1730_v57  ;;  %v1757_v8 = vpop.f32.mrf.mxu3 }
 0x112   :  { %2028 = vmatpush.bf16.msrb.mxu3 %v3121_v58  ;;  %2001 = vmatpush.bf16.msrb.mxu1 %v2577_v3  ;;  %v3275_v24 = vld [vmem:[%s5178_s1 + $0x29c] sm:$0xf]  ;;  %v2257_v36 = vor.u32 %v3211_v22, %v2254_v23  ;;  %v2112_v6 = vadd.f32 %v2096_v51, %v2077_v59  ;;  %v279_v22 = vperm.slane %v4589_v54, 3 }
 0x113   :  { %v2510_v27 = vld [vmem:[%s5178_s1 + $0x2b8] sm:$0xf0]  ;;  %v1758_v13 = vadd.f32 %v1757_v8, %v1744_v7  ;;  %v281_v8 = vperm.slane %v4589_v54, 5 }
 0x114   :  { %2015 = vmatpush.bf16.msrb.mxu2 %v2833_v4  ;;  %v3339_v28 = vld [vmem:[%s5178_s1 + $0x49c] sm:$0xf]  ;;  %1988 = vmatpush.bf16.msrb.mxu0 %v2289_v18  ;;  %v2513_v41 = vor.u32 %v3275_v24, %v2510_v27  ;;  %2128 = vst [vmem:[%s5181_s3 + $0x10] sm:$0xff] %v2112_v6 }
 0x115   :  { %v2766_v29 = vld [vmem:[%s5178_s1 + $0x4b8] sm:$0xf0]  ;;  %v2050_v18 = vmax.f32 %v1758_v13, 0.0 }
 0x116   :  { %2029 = vmatpush.bf16.msrb.mxu3 %v3089_v10  ;;  %v3403_v34 = vld [vmem:[%s5178_s1 + $0x69c] sm:$0xf]  ;;  %2002 = vmatpush.bf16.msrb.mxu1 %v2545_v19  ;;  %v2769_v42 = vor.u32 %v3339_v28, %v2766_v29 }
 0x117   :  { %v3022_v35 = vld [vmem:[%s5178_s1 + $0x6b8] sm:$0xf0]  ;;  %v2085_v19 = vmul.f32 %v2061_v39, %v2050_v18 }
 0x118   :  { %v3203_v38 = vld [vmem:[%s5178_s1 + $0x5c] sm:$0xf]  ;;  %2016 = vmatpush.bf16.msrb.mxu2 %v2801_v21  ;;  %v3025_v49 = vor.u32 %v3403_v34, %v3022_v35  ;;  %1989 = vmatpush.bf16.msrb.mxu0 %v2257_v36  ;;  %v2097_v35 = vperm.slane %v4692_v47, 3 }
 0x119   :  { %v2222_v43 = vld [vmem:[%s5178_s1 + $0x78] sm:$0xf0]  ;;  %v2120_v21 = vadd.f32 %v2096_v51, %v2085_v19  ;;  %v2064_v19 = vperm.slane %v4672_v37, 5 }
 0x11a   :  { %v3267_v44 = vld [vmem:[%s5178_s1 + $0x25c] sm:$0xf]  ;;  %2030 = vmatpush.bf16.msrb.mxu3 %v3057_v26  ;;  %v2225_v58 = vor.u32 %v3203_v38, %v2222_v43  ;;  %2003 = vmatpush.bf16.msrb.mxu1 %v2513_v41 }
 0x11b   :  { %v2478_v45 = vld [vmem:[%s5178_s1 + $0x278] sm:$0xf0]  ;;  %2136 = vst [vmem:[%s5181_s3 + $0x50] sm:$0xff] %v2120_v21 }
 0x11c   :  { %v3331_v50 = vld [vmem:[%s5178_s1 + $0x45c] sm:$0xf]  ;;  %2017 = vmatpush.bf16.msrb.mxu2 %v2769_v42  ;;  %v2481_v60 = vor.u32 %v3267_v44, %v2478_v45  ;;  %1990 = vmatpush.bf16.msrb.mxu0 %v2225_v58  ;;  %v280_v45 = vperm.slane %v4589_v54, 4 }
 0x11d   :  { %v2734_v52 = vld [vmem:[%s5178_s1 + $0x478] sm:$0xf0]  ;;  %v1769_v23 = vpop.f32.mrf.mxu0 }
 0x11e   :  { %v3395_v55 = vld [vmem:[%s5178_s1 + $0x65c] sm:$0xf]  ;;  %v2737_v61 = vor.u32 %v3331_v50, %v2734_v52  ;;  %2031 = vmatpush.bf16.msrb.mxu3 %v3025_v49  ;;  %2004 = vmatpush.bf16.msrb.mxu1 %v2481_v60  ;;  %v1770_v24 = vadd.f32 %v1769_v23, %v279_v22 }
 0x11f   :  { %v2990_v56 = vld [vmem:[%s5178_s1 + $0x678] sm:$0xf0]  ;;  %v1783_v25 = vpop.f32.mrf.mxu1 }
 0x120   :  { %v3195_v63 = vld [vmem:[%s5178_s1 + $0x1c] sm:$0xf]  ;;  %v2993_v3 = vor.u32 %v3395_v55, %v2990_v56  ;;  %2018 = vmatpush.bf16.msrb.mxu2 %v2737_v61  ;;  %v1784_v26 = vadd.f32 %v1783_v25, %v1770_v24  ;;  %v2063_v56 = vperm.slane %v4672_v37, 4  ;;  %v2098_v61 = vperm.slane %v4692_v47, 4 }
 0x121   :  { %v2190_v0 = vld [vmem:[%s5178_s1 + $0x38] sm:$0xf0]  ;;  %v2099_v25 = vperm.slane %v4692_v47, 5 }
 0x122   :  { %v3259_v1 = vld [vmem:[%s5178_s1 + $0x21c] sm:$0xf]  ;;  %v2193_v12 = vor.u32 %v3195_v63, %v2190_v0  ;;  %2032 = vmatpush.bf16.msrb.mxu3 %v2993_v3 }
 0x123   :  { %v2446_v4 = vld [vmem:[%s5178_s1 + $0x238] sm:$0xf0] }
 0x124   :  { %v3323_v62 = vld [vmem:[%s5178_s1 + $0x41c] sm:$0xf]  ;;  %v2449_v14 = vor.u32 %v3259_v1, %v2446_v4  ;;  %1991 = vmatpush.bf16.msrb.mxu0 %v2193_v12 }
 0x125   :  { %v2702_v5 = vld [vmem:[%s5178_s1 + $0x438] sm:$0xf0]  ;;  %v1771_v31 = vpop.f32.mrf.mxu0 }
 0x126   :  { %v3387_v10 = vld [vmem:[%s5178_s1 + $0x61c] sm:$0xf]  ;;  %v2705_v15 = vor.u32 %v3323_v62, %v2702_v5  ;;  %2005 = vmatpush.bf16.msrb.mxu1 %v2449_v14 }
 0x127   :  { %v2958_v11 = vld [vmem:[%s5178_s1 + $0x638] sm:$0xf0]  ;;  %1992 = vmatmul.bf16.vlgmr.msrb.gmra.mxu0 %v3768_v16  ;;  %v1797_v27 = vpop.f32.mrf.mxu2  ;;  %v1785_v32 = vpop.f32.mrf.mxu1 }
 0x128   :  { %v2961_v17 = vor.u32 %v3387_v10, %v2958_v11  ;;  %2019 = vmatpush.bf16.msrb.mxu2 %v2705_v15  ;;  %v1798_v28 = vadd.f32 %v1797_v27, %v1784_v26 }
 0x129   :  { %2006 = vmatmul.bf16.vlgmr.msrb.gmra.mxu1 %v3807_v33  ;;  %v1811_v29 = vpop.f32.mrf.mxu3  ;;  %v2062_v33 = vperm.slane %v4672_v37, 3 }
 0x12a   :  { %2033 = vmatpush.bf16.msrb.mxu3 %v2961_v17  ;;  %v1812_v16 = vadd.f32 %v1811_v29, %v1798_v28 }
 0x12b   :  { %2020 = vmatmul.bf16.vlgmr.msrb.gmra.mxu2 %v3751_v9  ;;  %v1772_v9 = vadd.f32 %v1771_v31, %v279_v22 }
 0x12c   :  { %v2043_v34 = vmax.f32 %v1812_v16, 0.0 }
 0x12d   :  { %2034 = vmatmul.bf16.vlgmr.msrb.gmra.mxu3 %v3780_v20  ;;  %v1786_v36 = vadd.f32 %v1785_v32, %v1772_v9 }
 0x12e   :  { %v2078_v20 = vmul.f32 %v2062_v33, %v2043_v34 }
 0x12f   :  { %v1799_v38 = vpop.f32.mrf.mxu2 }
 0x130   :  { %v2113_v30 = vadd.f32 %v2097_v35, %v2078_v20  ;;  %v1800_v39 = vadd.f32 %v1799_v38, %v1786_v36 }
 0x131   :  { %v1813_v40 = vpop.f32.mrf.mxu3 }
 0x132   :  { %2129 = vst [vmem:[%s5181_s3 + $0x18] sm:$0xff] %v2113_v30  ;;  %v1814_v41 = vadd.f32 %v1813_v40, %v1800_v39 }
 0x134   :  { %v2051_v42 = vmax.f32 %v1814_v41, 0.0 }
 0x136   :  { %v2086_v43 = vmul.f32 %v2062_v33, %v2051_v42 }
 0x138   :  { %v2121_v44 = vadd.f32 %v2097_v35, %v2086_v43  ;;  %v282_v35 = vperm.slane %v4589_v54, 6  ;;  %v2065_v43 = vperm.slane %v4672_v37, 6 }
 0x13a   :  { %2137 = vst [vmem:[%s5181_s3 + $0x58] sm:$0xff] %v2121_v44 }
 0x13d   :  { %v1825_v46 = vpop.f32.mrf.mxu0 }
 0x13e   :  { %v1826_v48 = vadd.f32 %v1825_v46, %v280_v45 }
 0x13f   :  { %v1839_v49 = vpop.f32.mrf.mxu1 }
 0x140   :  { %v1840_v50 = vadd.f32 %v1839_v49, %v1826_v48  ;;  %v2100_v49 = vperm.slane %v4692_v47, 6 }
 0x145   :  { %v1827_v57 = vpop.f32.mrf.mxu0 }
 0x146   :  { %v1828_v58 = vadd.f32 %v1827_v57, %v280_v45 }
 0x147   :  { %v1853_v52 = vpop.f32.mrf.mxu2  ;;  %v1841_v59 = vpop.f32.mrf.mxu1 }
 0x148   :  { %v1854_v53 = vadd.f32 %v1853_v52, %v1840_v50  ;;  %v1842_v63 = vadd.f32 %v1841_v59, %v1828_v58 }
 0x149   :  { %v1867_v51 = vpop.f32.mrf.mxu3 }
 0x14a   :  { %v1868_v55 = vadd.f32 %v1867_v51, %v1854_v53 }
 0x14c   :  { %v2044_v60 = vmax.f32 %v1868_v55, 0.0 }
 0x14e   :  { %v2079_v0 = vmul.f32 %v2063_v56, %v2044_v60  ;;  %v3448_v60 = vld [vmem:[%s5180_s2] ss:$4 sm:$0xff] }
 0x14f   :  { %v1855_v1 = vpop.f32.mrf.mxu2 }
 0x150   :  { %v2114_v2 = vadd.f32 %v2098_v61, %v2079_v0  ;;  %v1856_v3 = vadd.f32 %v1855_v1, %v1842_v63 }
 0x151   :  { %v1869_v4 = vpop.f32.mrf.mxu3 }
 0x152   :  { %2130 = vst [vmem:[%s5181_s3 + $0x20] sm:$0xff] %v2114_v2  ;;  %v1870_v62 = vadd.f32 %v1869_v4, %v1856_v3 }
 0x154   :  { %v2052_v5 = vmax.f32 %v1870_v62, 0.0 }
 0x156   :  { %v2087_v6 = vmul.f32 %v2063_v56, %v2052_v5 }
 0x158   :  { %v2122_v7 = vadd.f32 %v2098_v61, %v2087_v6  ;;  %v283_v61 = vperm.slane %v3448_v60, 7 }
 0x15a   :  { %2138 = vst [vmem:[%s5181_s3 + $0x60] sm:$0xff] %v2122_v7  ;;  %v2066_v7 = vperm.slane %v4672_v37, 7 }
 0x15d   :  { %v1881_v10 = vpop.f32.mrf.mxu0 }
 0x15e   :  { %v1882_v11 = vadd.f32 %v1881_v10, %v281_v8 }
 0x15f   :  { %v1895_v12 = vpop.f32.mrf.mxu1 }
 0x160   :  { %v1896_v13 = vadd.f32 %v1895_v12, %v1882_v11  ;;  %v2101_v11 = vperm.slane %v4692_v47, 7 }
 0x165   :  { %v1883_v21 = vpop.f32.mrf.mxu0 }
 0x166   :  { %v1884_v22 = vadd.f32 %v1883_v21, %v281_v8 }
 0x167   :  { %v1909_v14 = vpop.f32.mrf.mxu2  ;;  %v1897_v23 = vpop.f32.mrf.mxu1 }
 0x168   :  { %v1910_v15 = vadd.f32 %v1909_v14, %v1896_v13  ;;  %v1898_v26 = vadd.f32 %v1897_v23, %v1884_v22 }
 0x169   :  { %v1923_v17 = vpop.f32.mrf.mxu3 }
 0x16a   :  { %v1924_v18 = vadd.f32 %v1923_v17, %v1910_v15 }
 0x16c   :  { %v2045_v24 = vmax.f32 %v1924_v18, 0.0 }
 0x16e   :  { %v2080_v27 = vmul.f32 %v2064_v19, %v2045_v24 }
 0x16f   :  { %v1911_v28 = vpop.f32.mrf.mxu2 }
 0x170   :  { %v2115_v29 = vadd.f32 %v2099_v25, %v2080_v27  ;;  %v1912_v16 = vadd.f32 %v1911_v28, %v1898_v26 }
 0x171   :  { %v1925_v33 = vpop.f32.mrf.mxu3 }
 0x172   :  { %2131 = vst [vmem:[%s5181_s3 + $0x28] sm:$0xff] %v2115_v29  ;;  %v1926_v31 = vadd.f32 %v1925_v33, %v1912_v16 }
 0x174   :  { %v2053_v9 = vmax.f32 %v1926_v31, 0.0 }
 0x176   :  { %v2088_v32 = vmul.f32 %v2064_v19, %v2053_v9 }
 0x178   :  { %v2123_v34 = vadd.f32 %v2099_v25, %v2088_v32 }
 0x17a   :  { %2139 = vst [vmem:[%s5181_s3 + $0x68] sm:$0xff] %v2123_v34 }
 0x180   :  { %v1937_v36 = vpop.f32.mrf.mxu0 }
 0x181   :  { %v1938_v20 = vadd.f32 %v1937_v36, %v282_v35 }
 0x182   :  { %v1951_v38 = vpop.f32.mrf.mxu1 }
 0x183   :  { %v1952_v30 = vadd.f32 %v1951_v38, %v1938_v20 }
 0x188   :  { %v1939_v44 = vpop.f32.mrf.mxu0 }
 0x189   :  { %v1940_v45 = vadd.f32 %v1939_v44, %v282_v35 }
 0x18a   :  { %v1965_v39 = vpop.f32.mrf.mxu2  ;;  %v1953_v46 = vpop.f32.mrf.mxu1 }
 0x18b   :  { %v1966_v40 = vadd.f32 %v1965_v39, %v1952_v30  ;;  %v1954_v50 = vadd.f32 %v1953_v46, %v1940_v45 }
 0x18c   :  { %v1979_v41 = vpop.f32.mrf.mxu3 }
 0x18d   :  { %v1980_v42 = vadd.f32 %v1979_v41, %v1966_v40 }
 0x18f   :  { %v2046_v48 = vmax.f32 %v1980_v42, 0.0 }
 0x191   :  { %v2081_v52 = vmul.f32 %v2065_v43, %v2046_v48 }
 0x192   :  { %v1967_v53 = vpop.f32.mrf.mxu2 }
 0x193   :  { %v2116_v54 = vadd.f32 %v2100_v49, %v2081_v52  ;;  %v1968_v51 = vadd.f32 %v1967_v53, %v1954_v50 }
 0x194   :  { %v1981_v55 = vpop.f32.mrf.mxu3 }
 0x195   :  { %2132 = vst [vmem:[%s5181_s3 + $0x30] sm:$0xff] %v2116_v54  ;;  %v1982_v56 = vadd.f32 %v1981_v55, %v1968_v51 }
 0x197   :  { %v2054_v57 = vmax.f32 %v1982_v56, 0.0 }
 0x199   :  { %v2089_v58 = vmul.f32 %v2065_v43, %v2054_v57 }
 0x19b   :  { %v2124_v59 = vadd.f32 %v2100_v49, %v2089_v58 }
 0x19d   :  { %2140 = vst [vmem:[%s5181_s3 + $0x70] sm:$0xff] %v2124_v59 }
 0x1a4   :  { %v1993_v63 = vpop.f32.mrf.mxu0 }
 0x1a5   :  { %v1994_v0 = vadd.f32 %v1993_v63, %v283_v61 }
 0x1a6   :  { %v2007_v1 = vpop.f32.mrf.mxu1 }
 0x1a7   :  { %v2008_v2 = vadd.f32 %v2007_v1, %v1994_v0 }
 0x1ac   :  { %v1995_v5 = vpop.f32.mrf.mxu0 }
 0x1ad   :  { %v1996_v8 = vadd.f32 %v1995_v5, %v283_v61 }
 0x1ae   :  { %v2021_v3 = vpop.f32.mrf.mxu2  ;;  %v2009_v12 = vpop.f32.mrf.mxu1 }
 0x1af   :  { %v2022_v4 = vadd.f32 %v2021_v3, %v2008_v2  ;;  %v2010_v14 = vadd.f32 %v2009_v12, %v1996_v8 }
 0x1b0   :  { %v2035_v62 = vpop.f32.mrf.mxu3 }
 0x1b1   :  { %v2036_v6 = vadd.f32 %v2035_v62, %v2022_v4 }
 0x1b3   :  { %v2047_v10 = vmax.f32 %v2036_v6, 0.0 }
 0x1b5   :  { %v2082_v13 = vmul.f32 %v2066_v7, %v2047_v10 }
 0x1b6   :  { %v2023_v15 = vpop.f32.mrf.mxu2 }
 0x1b7   :  { %v2117_v17 = vadd.f32 %v2101_v11, %v2082_v13  ;;  %v2024_v18 = vadd.f32 %v2023_v15, %v2010_v14 }
 0x1b8   :  { %v2037_v19 = vpop.f32.mrf.mxu3 }
 0x1b9   :  { %2133 = vst [vmem:[%s5181_s3 + $0x38] sm:$0xff] %v2117_v17  ;;  %v2038_v21 = vadd.f32 %v2037_v19, %v2024_v18 }
 0x1bb   :  { %v2055_v22 = vmax.f32 %v2038_v21, 0.0 }
 0x1bd   :  { %v2090_v23 = vmul.f32 %v2066_v7, %v2055_v22 }
 0x1bf   :  { %v2125_v24 = vadd.f32 %v2101_v11, %v2090_v23 }
 0x1c1   :  { %2141 = vst [vmem:[%s5181_s3 + $0x78] sm:$0xff] %v2125_v24 }

// kernel: _lambda_.12
= control target key start
LH: loop header
LB: loop body
LE: loop exit
PB: predicated region body
PF: predicated region fallthrough
CT: control target
= control target key end

     0   :  { %s11603_s1 = inlined_call_operand.vmem [shape: bf16[2304,512], index: 1, kind: input, shape index: {}]   ;;  %s11604_s0 = inlined_call_operand.vmem [shape: bf16[16,2304], index: 0, kind: input, shape index: {}]   ;;  %s11605_s2 = inlined_call_operand.vmem [shape: f32[3,512], index: 2, kind: input, shape index: {}]   ;;  %s11606_s3 = inlined_call_operand.vmem [shape: f32[16,512], index: 3, kind: output, shape index: {}]  }
   0x1   :  { %v4840_v0 = vld [vmem:[%s11603_s1 + $0xe0] sm:$0xf]  ;;  %v7080_v1 = vld [vmem:[%s11603_s1 + $0xec] sm:$0xf0] }
   0x2   :  { %v4968_v2 = vld [vmem:[%s11603_s1 + $0x1e0] sm:$0xf]  ;;  %v4841_v3 = vor.u32 %v7080_v1, %v4840_v0  ;;  %v7112_v4 = vld [vmem:[%s11603_s1 + $0x1ec] sm:$0xf0] }
   0x3   :  { %v5096_v5 = vld [vmem:[%s11603_s1 + $0x2e0] sm:$0xf]  ;;  %v7144_v6 = vld [vmem:[%s11603_s1 + $0x2ec] sm:$0xf0]  ;;  %v4969_v7 = vor.u32 %v7112_v4, %v4968_v2 }
   0x4   :  { %v5097_v8 = vor.u32 %v7144_v6, %v5096_v5  ;;  %v5224_v9 = vld [vmem:[%s11603_s1 + $0x3e0] sm:$0xf]  ;;  %v7176_v10 = vld [vmem:[%s11603_s1 + $0x3ec] sm:$0xf0]  ;;  %3588 = vmatpush.bf16.msra.mxu0 %v4841_v3 }
   0x5   :  { %v4824_v11 = vld [vmem:[%s11603_s1 + $0xc0] sm:$0xf]  ;;  %v5225_v12 = vor.u32 %v7176_v10, %v5224_v9  ;;  %v7076_v13 = vld [vmem:[%s11603_s1 + $0xcc] sm:$0xf0]  ;;  %3602 = vmatpush.bf16.msra.mxu1 %v4969_v7 }
   0x6   :  { %v4952_v14 = vld [vmem:[%s11603_s1 + $0x1c0] sm:$0xf]  ;;  %v7108_v15 = vld [vmem:[%s11603_s1 + $0x1cc] sm:$0xf0]  ;;  %3616 = vmatpush.bf16.msra.mxu2 %v5097_v8  ;;  %v4825_v16 = vor.u32 %v7076_v13, %v4824_v11 }
   0x7   :  { %v4953_v17 = vor.u32 %v7108_v15, %v4952_v14  ;;  %v5080_v18 = vld [vmem:[%s11603_s1 + $0x2c0] sm:$0xf]  ;;  %v7140_v19 = vld [vmem:[%s11603_s1 + $0x2cc] sm:$0xf0]  ;;  %3630 = vmatpush.bf16.msra.mxu3 %v5225_v12 }
   0x8   :  { %v5208_v20 = vld [vmem:[%s11603_s1 + $0x3c0] sm:$0xf]  ;;  %v5081_v21 = vor.u32 %v7140_v19, %v5080_v18  ;;  %v7172_v22 = vld [vmem:[%s11603_s1 + $0x3cc] sm:$0xf0]  ;;  %3589 = vmatpush.bf16.msra.mxu0 %v4825_v16 }
   0x9   :  { %v4808_v23 = vld [vmem:[%s11603_s1 + $0xa0] sm:$0xf]  ;;  %v7072_v24 = vld [vmem:[%s11603_s1 + $0xac] sm:$0xf0]  ;;  %v5209_v25 = vor.u32 %v7172_v22, %v5208_v20  ;;  %3603 = vmatpush.bf16.msra.mxu1 %v4953_v17 }
   0xa   :  { %v4936_v26 = vld [vmem:[%s11603_s1 + $0x1a0] sm:$0xf]  ;;  %v7104_v27 = vld [vmem:[%s11603_s1 + $0x1ac] sm:$0xf0]  ;;  %v4809_v29 = vor.u32 %v7072_v24, %v4808_v23  ;;  %3617 = vmatpush.bf16.msra.mxu2 %v5081_v21 }
   0xb   :  { %v5064_v28 = vld [vmem:[%s11603_s1 + $0x2a0] sm:$0xf]  ;;  %v7136_v30 = vld [vmem:[%s11603_s1 + $0x2ac] sm:$0xf0]  ;;  %v4937_v33 = vor.u32 %v7104_v27, %v4936_v26  ;;  %3631 = vmatpush.bf16.msra.mxu3 %v5209_v25 }
   0xc   :  { %v5192_v31 = vld [vmem:[%s11603_s1 + $0x3a0] sm:$0xf]  ;;  %v7168_v32 = vld [vmem:[%s11603_s1 + $0x3ac] sm:$0xf0]  ;;  %v5065_v34 = vor.u32 %v7136_v30, %v5064_v28  ;;  %3590 = vmatpush.bf16.msra.mxu0 %v4809_v29 }
   0xd   :  { %v4792_v35 = vld [vmem:[%s11603_s1 + $0x80] sm:$0xf]  ;;  %v7068_v36 = vld [vmem:[%s11603_s1 + $0x8c] sm:$0xf0]  ;;  %v5193_v38 = vor.u32 %v7168_v32, %v5192_v31  ;;  %3604 = vmatpush.bf16.msra.mxu1 %v4937_v33 }
   0xe   :  { %v4920_v37 = vld [vmem:[%s11603_s1 + $0x180] sm:$0xf]  ;;  %v7100_v39 = vld [vmem:[%s11603_s1 + $0x18c] sm:$0xf0]  ;;  %v4793_v44 = vor.u32 %v7068_v36, %v4792_v35  ;;  %3618 = vmatpush.bf16.msra.mxu2 %v5065_v34 }
   0xf   :  { %v5048_v40 = vld [vmem:[%s11603_s1 + $0x280] sm:$0xf]  ;;  %v7132_v41 = vld [vmem:[%s11603_s1 + $0x28c] sm:$0xf0]  ;;  %v4921_v45 = vor.u32 %v7100_v39, %v4920_v37  ;;  %3632 = vmatpush.bf16.msra.mxu3 %v5193_v38 }
  0x10   :  { %v5176_v42 = vld [vmem:[%s11603_s1 + $0x380] sm:$0xf]  ;;  %v7164_v43 = vld [vmem:[%s11603_s1 + $0x38c] sm:$0xf0]  ;;  %v5049_v46 = vor.u32 %v7132_v41, %v5048_v40  ;;  %3591 = vmatpush.bf16.msra.mxu0 %v4793_v44 }
  0x11   :  { %v4776_v47 = vld [vmem:[%s11603_s1 + $0x60] sm:$0xf]  ;;  %v7064_v48 = vld [vmem:[%s11603_s1 + $0x6c] sm:$0xf0]  ;;  %v5177_v50 = vor.u32 %v7164_v43, %v5176_v42  ;;  %3605 = vmatpush.bf16.msra.mxu1 %v4921_v45 }
  0x12   :  { %v4904_v49 = vld [vmem:[%s11603_s1 + $0x160] sm:$0xf]  ;;  %v7096_v51 = vld [vmem:[%s11603_s1 + $0x16c] sm:$0xf0]  ;;  %v4777_v56 = vor.u32 %v7064_v48, %v4776_v47  ;;  %3619 = vmatpush.bf16.msra.mxu2 %v5049_v46 }
  0x13   :  { %v5032_v52 = vld [vmem:[%s11603_s1 + $0x260] sm:$0xf]  ;;  %v7128_v53 = vld [vmem:[%s11603_s1 + $0x26c] sm:$0xf0]  ;;  %v4905_v57 = vor.u32 %v7096_v51, %v4904_v49  ;;  %3633 = vmatpush.bf16.msra.mxu3 %v5177_v50 }
  0x14   :  { %v5160_v54 = vld [vmem:[%s11603_s1 + $0x360] sm:$0xf]  ;;  %v7160_v55 = vld [vmem:[%s11603_s1 + $0x36c] sm:$0xf0]  ;;  %v5033_v58 = vor.u32 %v7128_v53, %v5032_v52  ;;  %3592 = vmatpush.bf16.msra.mxu0 %v4777_v56  ;;  %v7041_v53 = vld [vmem:[%s11604_s0 + $0x44] sm:$0xf0] }
  0x15   :  { %v4760_v59 = vld [vmem:[%s11603_s1 + $0x40] sm:$0xf]  ;;  %v7060_v60 = vld [vmem:[%s11603_s1 + $0x4c] sm:$0xf0]  ;;  %v5161_v62 = vor.u32 %v7160_v55, %v5160_v54  ;;  %3606 = vmatpush.bf16.msra.mxu1 %v4905_v57  ;;  %v4664_v54 = vld [vmem:[%s11604_s0 + $0x8] sm:$0xf] }
  0x16   :  { %v4888_v61 = vld [vmem:[%s11603_s1 + $0x140] sm:$0xf]  ;;  %v7092_v63 = vld [vmem:[%s11603_s1 + $0x14c] sm:$0xf0]  ;;  %v4761_v4 = vor.u32 %v7060_v60, %v4760_v59  ;;  %3620 = vmatpush.bf16.msra.mxu2 %v5033_v58 }
  0x17   :  { %v5016_v0 = vld [vmem:[%s11603_s1 + $0x240] sm:$0xf]  ;;  %v7124_v1 = vld [vmem:[%s11603_s1 + $0x24c] sm:$0xf0]  ;;  %v4889_v5 = vor.u32 %v7092_v63, %v4888_v61  ;;  %3634 = vmatpush.bf16.msra.mxu3 %v5161_v62 }
  0x18   :  { %v5144_v2 = vld [vmem:[%s11603_s1 + $0x340] sm:$0xf]  ;;  %v7156_v3 = vld [vmem:[%s11603_s1 + $0x34c] sm:$0xf0]  ;;  %v5017_v6 = vor.u32 %v7124_v1, %v5016_v0  ;;  %3593 = vmatpush.bf16.msra.mxu0 %v4761_v4 }
  0x19   :  { %v4744_v7 = vld [vmem:[%s11603_s1 + $0x20] sm:$0xf]  ;;  %v7056_v8 = vld [vmem:[%s11603_s1 + $0x2c] sm:$0xf0]  ;;  %v5145_v10 = vor.u32 %v7156_v3, %v5144_v2  ;;  %3607 = vmatpush.bf16.msra.mxu1 %v4889_v5 }
  0x1a   :  { %v4872_v9 = vld [vmem:[%s11603_s1 + $0x120] sm:$0xf]  ;;  %v7088_v11 = vld [vmem:[%s11603_s1 + $0x12c] sm:$0xf0]  ;;  %v4745_v16 = vor.u32 %v7056_v8, %v4744_v7  ;;  %3621 = vmatpush.bf16.msra.mxu2 %v5017_v6  ;;  %v7032_v6 = vld [vmem:[%s11604_s0 + $0x4] sm:$0xf] }
  0x1b   :  { %v5000_v12 = vld [vmem:[%s11603_s1 + $0x220] sm:$0xf]  ;;  %v7120_v13 = vld [vmem:[%s11603_s1 + $0x22c] sm:$0xf0]  ;;  %v4873_v19 = vor.u32 %v7088_v11, %v4872_v9  ;;  %3635 = vmatpush.bf16.msra.mxu3 %v5145_v10  ;;  %v4658_v7 = vld [vmem:[%s11604_s0 + $0x48] sm:$0xf0] }
  0x1c   :  { %v5128_v14 = vld [vmem:[%s11603_s1 + $0x320] sm:$0xf]  ;;  %v7152_v15 = vld [vmem:[%s11603_s1 + $0x32c] sm:$0xf0]  ;;  %v5001_v20 = vor.u32 %v7120_v13, %v5000_v12  ;;  %3594 = vmatpush.bf16.msra.mxu0 %v4745_v16  ;;  %v7033_v8 = vld [vmem:[%s11604_s0 + $0xc] sm:$0xf]  ;;  %v7943_v10 = vor.u32 %v7032_v6, %v4658_v7 }
  0x1d   :  { %v4728_v17 = vld [vmem:[%s11603_s1] sm:$0xf]  ;;  %v7052_v18 = vld [vmem:[%s11603_s1 + $0xc] sm:$0xf0]  ;;  %v5129_v24 = vor.u32 %v7152_v15, %v5128_v14  ;;  %3608 = vmatpush.bf16.msra.mxu1 %v4873_v19  ;;  %v4666_v11 = vld [vmem:[%s11604_s0 + $0x50] sm:$0xf0] }
  0x1e   :  { %v4856_v21 = vld [vmem:[%s11603_s1 + $0x100] sm:$0xf]  ;;  %v7084_v22 = vld [vmem:[%s11603_s1 + $0x10c] sm:$0xf0]  ;;  %v4729_v31 = vor.u32 %v7052_v18, %v4728_v17  ;;  %3622 = vmatpush.bf16.msra.mxu2 %v5001_v20  ;;  %v7957_v17 = vor.u32 %v7033_v8, %v4666_v11 }
  0x1f   :  { %v4984_v23 = vld [vmem:[%s11603_s1 + $0x200] sm:$0xf]  ;;  %v7116_v25 = vld [vmem:[%s11603_s1 + $0x20c] sm:$0xf0]  ;;  %v4857_v35 = vor.u32 %v7084_v22, %v4856_v21  ;;  %3636 = vmatpush.bf16.msra.mxu3 %v5129_v24 }
  0x20   :  { %v5112_v26 = vld [vmem:[%s11603_s1 + $0x300] sm:$0xf]  ;;  %v7148_v27 = vld [vmem:[%s11603_s1 + $0x30c] sm:$0xf0]  ;;  %v4985_v36 = vor.u32 %v7116_v25, %v4984_v23  ;;  %3595 = vmatpush.bf16.msra.mxu0 %v4729_v31 }
  0x21   :  { %v5352_v28 = vld [vmem:[%s11603_s1 + $0x4e0] sm:$0xf]  ;;  %v7208_v29 = vld [vmem:[%s11603_s1 + $0x4ec] sm:$0xf0]  ;;  %v5113_v39 = vor.u32 %v7148_v27, %v5112_v26  ;;  %3609 = vmatpush.bf16.msra.mxu1 %v4857_v35 }
  0x22   :  { %v5480_v30 = vld [vmem:[%s11603_s1 + $0x5e0] sm:$0xf]  ;;  %v7240_v32 = vld [vmem:[%s11603_s1 + $0x5ec] sm:$0xf0]  ;;  %v5353_v40 = vor.u32 %v7208_v29, %v5352_v28  ;;  %3623 = vmatpush.bf16.msra.mxu2 %v4985_v36 }
  0x23   :  { %v5608_v33 = vld [vmem:[%s11603_s1 + $0x6e0] sm:$0xf]  ;;  %v7272_v34 = vld [vmem:[%s11603_s1 + $0x6ec] sm:$0xf0]  ;;  %v5481_v43 = vor.u32 %v7240_v32, %v5480_v30  ;;  %3637 = vmatpush.bf16.msra.mxu3 %v5113_v39 }
  0x24   :  { %v5736_v37 = vld [vmem:[%s11603_s1 + $0x7e0] sm:$0xf]  ;;  %v7304_v38 = vld [vmem:[%s11603_s1 + $0x7ec] sm:$0xf0]  ;;  %v5609_v44 = vor.u32 %v7272_v34, %v5608_v33  ;;  %3644 = vmatpush.bf16.msrb.mxu0 %v5353_v40  ;;  %3610 = vmatmul.bf16.vlgmr.msra.gmra.mxu1 %v7943_v10 }
  0x25   :  { %v5336_v41 = vld [vmem:[%s11603_s1 + $0x4c0] sm:$0xf]  ;;  %v7204_v42 = vld [vmem:[%s11603_s1 + $0x4cc] sm:$0xf0]  ;;  %v5737_v48 = vor.u32 %v7304_v38, %v5736_v37  ;;  %3658 = vmatpush.bf16.msrb.mxu1 %v5481_v43 }
  0x26   :  { %v5464_v45 = vld [vmem:[%s11603_s1 + $0x5c0] sm:$0xf]  ;;  %v7236_v46 = vld [vmem:[%s11603_s1 + $0x5cc] sm:$0xf0]  ;;  %v5337_v55 = vor.u32 %v7204_v42, %v5336_v41  ;;  %3672 = vmatpush.bf16.msrb.mxu2 %v5609_v44  ;;  %3638 = vmatmul.bf16.vlgmr.msra.gmra.mxu3 %v7957_v17 }
  0x27   :  { %v5592_v47 = vld [vmem:[%s11603_s1 + $0x6c0] sm:$0xf]  ;;  %v7268_v49 = vld [vmem:[%s11603_s1 + $0x6cc] sm:$0xf0]  ;;  %v5465_v60 = vor.u32 %v7236_v46, %v5464_v45  ;;  %3686 = vmatpush.bf16.msrb.mxu3 %v5737_v48 }
  0x28   :  { %v5720_v50 = vld [vmem:[%s11603_s1 + $0x7c0] sm:$0xf]  ;;  %v7300_v51 = vld [vmem:[%s11603_s1 + $0x7cc] sm:$0xf0]  ;;  %v5593_v61 = vor.u32 %v7268_v49, %v5592_v47  ;;  %3645 = vmatpush.bf16.msrb.mxu0 %v5337_v55 }
  0x29   :  { %v4656_v52 = vld [vmem:[%s11604_s0] sm:$0xf]  ;;  %v7200_v57 = vld [vmem:[%s11603_s1 + $0x4ac] sm:$0xf0]  ;;  %v5721_v2 = vor.u32 %v7300_v51, %v5720_v50  ;;  %3659 = vmatpush.bf16.msrb.mxu1 %v5465_v60 }
  0x2a   :  { %v5320_v56 = vld [vmem:[%s11603_s1 + $0x4a0] sm:$0xf]  ;;  %v7907_v58 = vor.u32 %v7041_v53, %v4656_v52  ;;  %v7042_v59 = vld [vmem:[%s11604_s0 + $0x4c] sm:$0xf0]  ;;  %3673 = vmatpush.bf16.msrb.mxu2 %v5593_v61 }
  0x2b   :  { %v5448_v62 = vld [vmem:[%s11603_s1 + $0x5a0] sm:$0xf]  ;;  %v7232_v63 = vld [vmem:[%s11603_s1 + $0x5ac] sm:$0xf0]  ;;  %v7921_v1 = vor.u32 %v7042_v59, %v4664_v54  ;;  %v5321_v9 = vor.u32 %v7200_v57, %v5320_v56  ;;  %3687 = vmatpush.bf16.msrb.mxu3 %v5721_v2 }
  0x2c   :  { %v5576_v0 = vld [vmem:[%s11603_s1 + $0x6a0] sm:$0xf]  ;;  %v7264_v3 = vld [vmem:[%s11603_s1 + $0x6ac] sm:$0xf0]  ;;  %3596 = vmatmul.bf16.vlgmr.msra.gmra.mxu0 %v7907_v58  ;;  %v5449_v12 = vor.u32 %v7232_v63, %v5448_v62 }
  0x2d   :  { %v5704_v4 = vld [vmem:[%s11603_s1 + $0x7a0] sm:$0xf]  ;;  %v7296_v5 = vld [vmem:[%s11603_s1 + $0x7ac] sm:$0xf0]  ;;  %3624 = vmatmul.bf16.vlgmr.msra.gmra.mxu2 %v7921_v1  ;;  %v5577_v13 = vor.u32 %v7264_v3, %v5576_v0  ;;  %3646 = vmatpush.bf16.msrb.mxu0 %v5321_v9 }
  0x2e   :  { %v5304_v14 = vld [vmem:[%s11603_s1 + $0x480] sm:$0xf]  ;;  %v7196_v15 = vld [vmem:[%s11603_s1 + $0x48c] sm:$0xf0]  ;;  %v5705_v18 = vor.u32 %v7296_v5, %v5704_v4  ;;  %3660 = vmatpush.bf16.msrb.mxu1 %v5449_v12 }
  0x2f   :  { %v5432_v16 = vld [vmem:[%s11603_s1 + $0x580] sm:$0xf]  ;;  %v7228_v19 = vld [vmem:[%s11603_s1 + $0x58c] sm:$0xf0]  ;;  %v5305_v24 = vor.u32 %v7196_v15, %v5304_v14  ;;  %3674 = vmatpush.bf16.msrb.mxu2 %v5577_v13 }
  0x30   :  { %v5560_v20 = vld [vmem:[%s11603_s1 + $0x680] sm:$0xf]  ;;  %v7260_v21 = vld [vmem:[%s11603_s1 + $0x68c] sm:$0xf0]  ;;  %v5433_v25 = vor.u32 %v7228_v19, %v5432_v16  ;;  %3688 = vmatpush.bf16.msrb.mxu3 %v5705_v18 }
  0x31   :  { %v5688_v22 = vld [vmem:[%s11603_s1 + $0x780] sm:$0xf]  ;;  %v7292_v23 = vld [vmem:[%s11603_s1 + $0x78c] sm:$0xf0]  ;;  %v5561_v26 = vor.u32 %v7260_v21, %v5560_v20  ;;  %3647 = vmatpush.bf16.msrb.mxu0 %v5305_v24 }
  0x32   :  { %v5288_v27 = vld [vmem:[%s11603_s1 + $0x460] sm:$0xf]  ;;  %v7192_v28 = vld [vmem:[%s11603_s1 + $0x46c] sm:$0xf0]  ;;  %v5689_v30 = vor.u32 %v7292_v23, %v5688_v22  ;;  %3661 = vmatpush.bf16.msrb.mxu1 %v5433_v25  ;;  %v7043_v22 = vld [vmem:[%s11604_s0 + $0x54] sm:$0xf0] }
  0x33   :  { %v5416_v29 = vld [vmem:[%s11603_s1 + $0x560] sm:$0xf]  ;;  %v7224_v31 = vld [vmem:[%s11603_s1 + $0x56c] sm:$0xf0]  ;;  %v5289_v36 = vor.u32 %v7192_v28, %v5288_v27  ;;  %3675 = vmatpush.bf16.msrb.mxu2 %v5561_v26  ;;  %v4680_v25 = vld [vmem:[%s11604_s0 + $0x18] sm:$0xf] }
  0x34   :  { %v5544_v32 = vld [vmem:[%s11603_s1 + $0x660] sm:$0xf]  ;;  %v7256_v33 = vld [vmem:[%s11603_s1 + $0x66c] sm:$0xf0]  ;;  %v5417_v37 = vor.u32 %v7224_v31, %v5416_v29  ;;  %3689 = vmatpush.bf16.msrb.mxu3 %v5689_v30  ;;  %v7034_v27 = vld [vmem:[%s11604_s0 + $0x14] sm:$0xf] }
  0x35   :  { %v5672_v34 = vld [vmem:[%s11603_s1 + $0x760] sm:$0xf]  ;;  %v7288_v35 = vld [vmem:[%s11603_s1 + $0x76c] sm:$0xf0]  ;;  %v5545_v38 = vor.u32 %v7256_v33, %v5544_v32  ;;  %3648 = vmatpush.bf16.msrb.mxu0 %v5289_v36  ;;  %v4674_v30 = vld [vmem:[%s11604_s0 + $0x58] sm:$0xf0] }
  0x36   :  { %v5272_v39 = vld [vmem:[%s11603_s1 + $0x440] sm:$0xf]  ;;  %v7188_v40 = vld [vmem:[%s11603_s1 + $0x44c] sm:$0xf0]  ;;  %v5673_v42 = vor.u32 %v7288_v35, %v5672_v34  ;;  %3662 = vmatpush.bf16.msrb.mxu1 %v5417_v37  ;;  %v7035_v31 = vld [vmem:[%s11604_s0 + $0x1c] sm:$0xf] }
  0x37   :  { %v5400_v41 = vld [vmem:[%s11603_s1 + $0x540] sm:$0xf]  ;;  %v7220_v43 = vld [vmem:[%s11603_s1 + $0x54c] sm:$0xf0]  ;;  %v5273_v48 = vor.u32 %v7188_v40, %v5272_v39  ;;  %3676 = vmatpush.bf16.msrb.mxu2 %v5545_v38  ;;  %v4682_v32 = vld [vmem:[%s11604_s0 + $0x60] sm:$0xf0] }
  0x38   :  { %v5528_v44 = vld [vmem:[%s11603_s1 + $0x640] sm:$0xf]  ;;  %v7252_v45 = vld [vmem:[%s11603_s1 + $0x64c] sm:$0xf0]  ;;  %v5401_v50 = vor.u32 %v7220_v43, %v5400_v41  ;;  %3690 = vmatpush.bf16.msrb.mxu3 %v5673_v42 }
  0x39   :  { %v5656_v46 = vld [vmem:[%s11603_s1 + $0x740] sm:$0xf]  ;;  %v7284_v47 = vld [vmem:[%s11603_s1 + $0x74c] sm:$0xf0]  ;;  %v5529_v51 = vor.u32 %v7252_v45, %v5528_v44  ;;  %3649 = vmatpush.bf16.msrb.mxu0 %v5273_v48  ;;  %v8142_v44 = vor.u32 %v7034_v27, %v4674_v30 }
  0x3a   :  { %v5256_v49 = vld [vmem:[%s11603_s1 + $0x420] sm:$0xf]  ;;  %v7184_v52 = vld [vmem:[%s11603_s1 + $0x42c] sm:$0xf0]  ;;  %v5657_v55 = vor.u32 %v7284_v47, %v5656_v46  ;;  %3663 = vmatpush.bf16.msrb.mxu1 %v5401_v50  ;;  %v8150_v47 = vor.u32 %v7035_v31, %v4682_v32 }
  0x3b   :  { %v5384_v53 = vld [vmem:[%s11603_s1 + $0x520] sm:$0xf]  ;;  %v7216_v54 = vld [vmem:[%s11603_s1 + $0x52c] sm:$0xf0]  ;;  %v5257_v63 = vor.u32 %v7184_v52, %v5256_v49  ;;  %3677 = vmatpush.bf16.msrb.mxu2 %v5529_v51 }
  0x3c   :  { %v5512_v56 = vld [vmem:[%s11603_s1 + $0x620] sm:$0xf]  ;;  %v7248_v57 = vld [vmem:[%s11603_s1 + $0x62c] sm:$0xf0]  ;;  %v5385_v5 = vor.u32 %v7216_v54, %v5384_v53  ;;  %3691 = vmatpush.bf16.msrb.mxu3 %v5657_v55 }
  0x3d   :  { %v5640_v59 = vld [vmem:[%s11603_s1 + $0x720] sm:$0xf]  ;;  %v7280_v60 = vld [vmem:[%s11603_s1 + $0x72c] sm:$0xf0]  ;;  %v5513_v6 = vor.u32 %v7248_v57, %v5512_v56  ;;  %3650 = vmatpush.bf16.msrb.mxu0 %v5257_v63 }
  0x3e   :  { %v5240_v61 = vld [vmem:[%s11603_s1 + $0x400] sm:$0xf]  ;;  %v7180_v62 = vld [vmem:[%s11603_s1 + $0x40c] sm:$0xf0]  ;;  %v5641_v11 = vor.u32 %v7280_v60, %v5640_v59  ;;  %3664 = vmatpush.bf16.msrb.mxu1 %v5385_v5 }
  0x3f   :  { %v5368_v0 = vld [vmem:[%s11603_s1 + $0x500] sm:$0xf]  ;;  %v7212_v2 = vld [vmem:[%s11603_s1 + $0x50c] sm:$0xf0]  ;;  %v5241_v19 = vor.u32 %v7180_v62, %v5240_v61  ;;  %3678 = vmatpush.bf16.msrb.mxu2 %v5513_v6 }
  0x40   :  { %v5496_v3 = vld [vmem:[%s11603_s1 + $0x600] sm:$0xf]  ;;  %v7244_v4 = vld [vmem:[%s11603_s1 + $0x60c] sm:$0xf0]  ;;  %v5369_v23 = vor.u32 %v7212_v2, %v5368_v0  ;;  %3692 = vmatpush.bf16.msrb.mxu3 %v5641_v11 }
  0x41   :  { %v5624_v7 = vld [vmem:[%s11603_s1 + $0x700] sm:$0xf]  ;;  %v7276_v8 = vld [vmem:[%s11603_s1 + $0x70c] sm:$0xf0]  ;;  %v5497_v24 = vor.u32 %v7244_v4, %v5496_v3  ;;  %3651 = vmatpush.bf16.msrb.mxu0 %v5241_v19 }
  0x42   :  { %v5864_v9 = vld [vmem:[%s11603_s1 + $0x8e0] sm:$0xf]  ;;  %v7336_v12 = vld [vmem:[%s11603_s1 + $0x8ec] sm:$0xf0]  ;;  %v5625_v28 = vor.u32 %v7276_v8, %v5624_v7  ;;  %3665 = vmatpush.bf16.msrb.mxu1 %v5369_v23 }
  0x43   :  { %v5992_v13 = vld [vmem:[%s11603_s1 + $0x9e0] sm:$0xf]  ;;  %v7368_v14 = vld [vmem:[%s11603_s1 + $0x9ec] sm:$0xf0]  ;;  %v5865_v29 = vor.u32 %v7336_v12, %v5864_v9  ;;  %3679 = vmatpush.bf16.msrb.mxu2 %v5497_v24 }
  0x44   :  { %v6120_v15 = vld [vmem:[%s11603_s1 + $0xae0] sm:$0xf]  ;;  %v7400_v16 = vld [vmem:[%s11603_s1 + $0xaec] sm:$0xf0]  ;;  %v5993_v33 = vor.u32 %v7368_v14, %v5992_v13  ;;  %3693 = vmatpush.bf16.msrb.mxu3 %v5625_v28 }
  0x45   :  { %v6248_v18 = vld [vmem:[%s11603_s1 + $0xbe0] sm:$0xf]  ;;  %v7432_v20 = vld [vmem:[%s11603_s1 + $0xbec] sm:$0xf0]  ;;  %v6121_v34 = vor.u32 %v7400_v16, %v6120_v15  ;;  %3700 = vmatpush.bf16.msra.mxu0 %v5865_v29  ;;  %3666 = vmatmul.bf16.vlgmr.msrb.gmra.mxu1 %v8142_v44 }
  0x46   :  { %v4672_v21 = vld [vmem:[%s11604_s0 + $0x10] sm:$0xf]  ;;  %v7044_v26 = vld [vmem:[%s11604_s0 + $0x5c] sm:$0xf0]  ;;  %v6249_v38 = vor.u32 %v7432_v20, %v6248_v18  ;;  %3714 = vmatpush.bf16.msra.mxu1 %v5993_v33 }
  0x47   :  { %v5848_v35 = vld [vmem:[%s11603_s1 + $0x8c0] sm:$0xf]  ;;  %v7332_v36 = vld [vmem:[%s11603_s1 + $0x8cc] sm:$0xf0]  ;;  %v8129_v39 = vor.u32 %v7043_v22, %v4672_v21  ;;  %v8140_v43 = vor.u32 %v7044_v26, %v4680_v25  ;;  %3728 = vmatpush.bf16.msra.mxu2 %v6121_v34  ;;  %3694 = vmatmul.bf16.vlgmr.msrb.gmra.mxu3 %v8150_v47 }
  0x48   :  { %v5976_v37 = vld [vmem:[%s11603_s1 + $0x9c0] sm:$0xf]  ;;  %v7364_v40 = vld [vmem:[%s11603_s1 + $0x9cc] sm:$0xf0]  ;;  %v5849_v48 = vor.u32 %v7332_v36, %v5848_v35  ;;  %3742 = vmatpush.bf16.msra.mxu3 %v6249_v38 }
  0x49   :  { %v6104_v41 = vld [vmem:[%s11603_s1 + $0xac0] sm:$0xf]  ;;  %v7396_v42 = vld [vmem:[%s11603_s1 + $0xacc] sm:$0xf0]  ;;  %v5977_v49 = vor.u32 %v7364_v40, %v5976_v37  ;;  %3652 = vmatmul.bf16.vlgmr.msrb.gmra.mxu0 %v8129_v39  ;;  %3680 = vmatmul.bf16.vlgmr.msrb.gmra.mxu2 %v8140_v43 }
  0x4a   :  { %v6232_v45 = vld [vmem:[%s11603_s1 + $0xbc0] sm:$0xf]  ;;  %v7428_v46 = vld [vmem:[%s11603_s1 + $0xbcc] sm:$0xf0]  ;;  %v6105_v50 = vor.u32 %v7396_v42, %v6104_v41  ;;  %3701 = vmatpush.bf16.msra.mxu0 %v5849_v48 }
  0x4b   :  { %v5832_v51 = vld [vmem:[%s11603_s1 + $0x8a0] sm:$0xf]  ;;  %v7328_v52 = vld [vmem:[%s11603_s1 + $0x8ac] sm:$0xf0]  ;;  %v6233_v54 = vor.u32 %v7428_v46, %v6232_v45  ;;  %3715 = vmatpush.bf16.msra.mxu1 %v5977_v49 }
  0x4c   :  { %v5960_v53 = vld [vmem:[%s11603_s1 + $0x9a0] sm:$0xf]  ;;  %v7360_v55 = vld [vmem:[%s11603_s1 + $0x9ac] sm:$0xf0]  ;;  %v5833_v61 = vor.u32 %v7328_v52, %v5832_v51  ;;  %3729 = vmatpush.bf16.msra.mxu2 %v6105_v50 }
  0x4d   :  { %v6088_v56 = vld [vmem:[%s11603_s1 + $0xaa0] sm:$0xf]  ;;  %v7392_v57 = vld [vmem:[%s11603_s1 + $0xaac] sm:$0xf0]  ;;  %v5961_v62 = vor.u32 %v7360_v55, %v5960_v53  ;;  %3743 = vmatpush.bf16.msra.mxu3 %v6233_v54 }
  0x4e   :  { %v6216_v59 = vld [vmem:[%s11603_s1 + $0xba0] sm:$0xf]  ;;  %v7424_v60 = vld [vmem:[%s11603_s1 + $0xbac] sm:$0xf0]  ;;  %v6089_v63 = vor.u32 %v7392_v57, %v6088_v56  ;;  %3702 = vmatpush.bf16.msra.mxu0 %v5833_v61 }
  0x4f   :  { %v5816_v0 = vld [vmem:[%s11603_s1 + $0x880] sm:$0xf]  ;;  %v7324_v2 = vld [vmem:[%s11603_s1 + $0x88c] sm:$0xf0]  ;;  %v6217_v4 = vor.u32 %v7424_v60, %v6216_v59  ;;  %3716 = vmatpush.bf16.msra.mxu1 %v5961_v62 }
  0x50   :  { %v5944_v3 = vld [vmem:[%s11603_s1 + $0x980] sm:$0xf]  ;;  %v7356_v5 = vld [vmem:[%s11603_s1 + $0x98c] sm:$0xf0]  ;;  %v5817_v11 = vor.u32 %v7324_v2, %v5816_v0  ;;  %3730 = vmatpush.bf16.msra.mxu2 %v6089_v63 }
  0x51   :  { %v6072_v6 = vld [vmem:[%s11603_s1 + $0xa80] sm:$0xf]  ;;  %v7388_v7 = vld [vmem:[%s11603_s1 + $0xa8c] sm:$0xf0]  ;;  %v5945_v12 = vor.u32 %v7356_v5, %v5944_v3  ;;  %3744 = vmatpush.bf16.msra.mxu3 %v6217_v4 }
  0x52   :  { %v6200_v8 = vld [vmem:[%s11603_s1 + $0xb80] sm:$0xf]  ;;  %v7420_v9 = vld [vmem:[%s11603_s1 + $0xb8c] sm:$0xf0]  ;;  %v6073_v13 = vor.u32 %v7388_v7, %v6072_v6  ;;  %3703 = vmatpush.bf16.msra.mxu0 %v5817_v11 }
  0x53   :  { %v5800_v14 = vld [vmem:[%s11603_s1 + $0x860] sm:$0xf]  ;;  %v7320_v15 = vld [vmem:[%s11603_s1 + $0x86c] sm:$0xf0]  ;;  %v6201_v18 = vor.u32 %v7420_v9, %v6200_v8  ;;  %3717 = vmatpush.bf16.msra.mxu1 %v5945_v12 }
  0x54   :  { %v5928_v16 = vld [vmem:[%s11603_s1 + $0x960] sm:$0xf]  ;;  %v7352_v19 = vld [vmem:[%s11603_s1 + $0x96c] sm:$0xf0]  ;;  %v5801_v24 = vor.u32 %v7320_v15, %v5800_v14  ;;  %3731 = vmatpush.bf16.msra.mxu2 %v6073_v13  ;;  %v7045_v13 = vld [vmem:[%s11604_s0 + $0x64] sm:$0xf0] }
  0x55   :  { %v6056_v20 = vld [vmem:[%s11603_s1 + $0xa60] sm:$0xf]  ;;  %v7384_v21 = vld [vmem:[%s11603_s1 + $0xa6c] sm:$0xf0]  ;;  %v5929_v25 = vor.u32 %v7352_v19, %v5928_v16  ;;  %3745 = vmatpush.bf16.msra.mxu3 %v6201_v18  ;;  %v4696_v16 = vld [vmem:[%s11604_s0 + $0x28] sm:$0xf] }
  0x56   :  { %v6184_v22 = vld [vmem:[%s11603_s1 + $0xb60] sm:$0xf]  ;;  %v7416_v23 = vld [vmem:[%s11603_s1 + $0xb6c] sm:$0xf0]  ;;  %v6057_v26 = vor.u32 %v7384_v21, %v6056_v20  ;;  %3704 = vmatpush.bf16.msra.mxu0 %v5801_v24  ;;  %v7036_v19 = vld [vmem:[%s11604_s0 + $0x24] sm:$0xf] }
  0x57   :  { %v5784_v27 = vld [vmem:[%s11603_s1 + $0x840] sm:$0xf]  ;;  %v7316_v28 = vld [vmem:[%s11603_s1 + $0x84c] sm:$0xf0]  ;;  %v6185_v30 = vor.u32 %v7416_v23, %v6184_v22  ;;  %3718 = vmatpush.bf16.msra.mxu1 %v5929_v25  ;;  %v4690_v22 = vld [vmem:[%s11604_s0 + $0x68] sm:$0xf0] }
  0x58   :  { %v5912_v29 = vld [vmem:[%s11603_s1 + $0x940] sm:$0xf]  ;;  %v7348_v31 = vld [vmem:[%s11603_s1 + $0x94c] sm:$0xf0]  ;;  %v5785_v36 = vor.u32 %v7316_v28, %v5784_v27  ;;  %3732 = vmatpush.bf16.msra.mxu2 %v6057_v26  ;;  %v7037_v23 = vld [vmem:[%s11604_s0 + $0x2c] sm:$0xf] }
  0x59   :  { %v6040_v32 = vld [vmem:[%s11603_s1 + $0xa40] sm:$0xf]  ;;  %v7380_v33 = vld [vmem:[%s11603_s1 + $0xa4c] sm:$0xf0]  ;;  %v5913_v38 = vor.u32 %v7348_v31, %v5912_v29  ;;  %3746 = vmatpush.bf16.msra.mxu3 %v6185_v30  ;;  %v4698_v24 = vld [vmem:[%s11604_s0 + $0x70] sm:$0xf0] }
  0x5a   :  { %v6168_v34 = vld [vmem:[%s11603_s1 + $0xb40] sm:$0xf]  ;;  %v7412_v35 = vld [vmem:[%s11603_s1 + $0xb4c] sm:$0xf0]  ;;  %v6041_v40 = vor.u32 %v7380_v33, %v6040_v32  ;;  %3705 = vmatpush.bf16.msra.mxu0 %v5785_v36  ;;  %v8370_v36 = vor.u32 %v7036_v19, %v4690_v22 }
  0x5b   :  { %v5768_v37 = vld [vmem:[%s11603_s1 + $0x820] sm:$0xf]  ;;  %v7312_v41 = vld [vmem:[%s11603_s1 + $0x82c] sm:$0xf0]  ;;  %v6169_v46 = vor.u32 %v7412_v35, %v6168_v34  ;;  %3719 = vmatpush.bf16.msra.mxu1 %v5913_v38 }
  0x5c   :  { %v5896_v42 = vld [vmem:[%s11603_s1 + $0x920] sm:$0xf]  ;;  %v7344_v45 = vld [vmem:[%s11603_s1 + $0x92c] sm:$0xf0]  ;;  %v5769_v54 = vor.u32 %v7312_v41, %v5768_v37  ;;  %3733 = vmatpush.bf16.msra.mxu2 %v6041_v40  ;;  %v8378_v40 = vor.u32 %v7037_v23, %v4698_v24 }
  0x5d   :  { %v6024_v48 = vld [vmem:[%s11603_s1 + $0xa20] sm:$0xf]  ;;  %v7376_v49 = vld [vmem:[%s11603_s1 + $0xa2c] sm:$0xf0]  ;;  %v5897_v60 = vor.u32 %v7344_v45, %v5896_v42  ;;  %3747 = vmatpush.bf16.msra.mxu3 %v6169_v46 }
  0x5e   :  { %v6152_v50 = vld [vmem:[%s11603_s1 + $0xb20] sm:$0xf]  ;;  %v7408_v51 = vld [vmem:[%s11603_s1 + $0xb2c] sm:$0xf0]  ;;  %v6025_v61 = vor.u32 %v7376_v49, %v6024_v48  ;;  %3706 = vmatpush.bf16.msra.mxu0 %v5769_v54 }
  0x5f   :  { %v5752_v52 = vld [vmem:[%s11603_s1 + $0x800] sm:$0xf]  ;;  %v7308_v53 = vld [vmem:[%s11603_s1 + $0x80c] sm:$0xf0]  ;;  %v6153_v2 = vor.u32 %v7408_v51, %v6152_v50  ;;  %3720 = vmatpush.bf16.msra.mxu1 %v5897_v60 }
  0x60   :  { %v5880_v55 = vld [vmem:[%s11603_s1 + $0x900] sm:$0xf]  ;;  %v7340_v56 = vld [vmem:[%s11603_s1 + $0x90c] sm:$0xf0]  ;;  %v5753_v9 = vor.u32 %v7308_v53, %v5752_v52  ;;  %3734 = vmatpush.bf16.msra.mxu2 %v6025_v61 }
  0x61   :  { %v6008_v57 = vld [vmem:[%s11603_s1 + $0xa00] sm:$0xf]  ;;  %v7372_v59 = vld [vmem:[%s11603_s1 + $0xa0c] sm:$0xf0]  ;;  %v5881_v14 = vor.u32 %v7340_v56, %v5880_v55  ;;  %3748 = vmatpush.bf16.msra.mxu3 %v6153_v2 }
  0x62   :  { %v6136_v62 = vld [vmem:[%s11603_s1 + $0xb00] sm:$0xf]  ;;  %v7404_v63 = vld [vmem:[%s11603_s1 + $0xb0c] sm:$0xf0]  ;;  %v6009_v15 = vor.u32 %v7372_v59, %v6008_v57  ;;  %3707 = vmatpush.bf16.msra.mxu0 %v5753_v9 }
  0x63   :  { %v6376_v0 = vld [vmem:[%s11603_s1 + $0xce0] sm:$0xf]  ;;  %v7464_v3 = vld [vmem:[%s11603_s1 + $0xcec] sm:$0xf0]  ;;  %v6137_v20 = vor.u32 %v7404_v63, %v6136_v62  ;;  %3721 = vmatpush.bf16.msra.mxu1 %v5881_v14 }
  0x64   :  { %v6504_v4 = vld [vmem:[%s11603_s1 + $0xde0] sm:$0xf]  ;;  %v7496_v5 = vld [vmem:[%s11603_s1 + $0xdec] sm:$0xf0]  ;;  %v6377_v21 = vor.u32 %v7464_v3, %v6376_v0  ;;  %3735 = vmatpush.bf16.msra.mxu2 %v6009_v15 }
  0x65   :  { %v6632_v6 = vld [vmem:[%s11603_s1 + $0xee0] sm:$0xf]  ;;  %v7528_v7 = vld [vmem:[%s11603_s1 + $0xeec] sm:$0xf0]  ;;  %v6505_v25 = vor.u32 %v7496_v5, %v6504_v4  ;;  %3749 = vmatpush.bf16.msra.mxu3 %v6137_v20 }
  0x66   :  { %v6760_v8 = vld [vmem:[%s11603_s1 + $0xfe0] sm:$0xf]  ;;  %v7560_v11 = vld [vmem:[%s11603_s1 + $0xfec] sm:$0xf0]  ;;  %v6633_v26 = vor.u32 %v7528_v7, %v6632_v6  ;;  %3756 = vmatpush.bf16.msrb.mxu0 %v6377_v21  ;;  %3722 = vmatmul.bf16.vlgmr.msra.gmra.mxu1 %v8370_v36 }
  0x67   :  { %v4688_v12 = vld [vmem:[%s11604_s0 + $0x20] sm:$0xf]  ;;  %v7046_v18 = vld [vmem:[%s11604_s0 + $0x6c] sm:$0xf0]  ;;  %v6761_v30 = vor.u32 %v7560_v11, %v6760_v8  ;;  %3770 = vmatpush.bf16.msrb.mxu1 %v6505_v25 }
  0x68   :  { %v6360_v27 = vld [vmem:[%s11603_s1 + $0xcc0] sm:$0xf]  ;;  %v7460_v28 = vld [vmem:[%s11603_s1 + $0xccc] sm:$0xf0]  ;;  %v8357_v31 = vor.u32 %v7045_v13, %v4688_v12  ;;  %v8368_v35 = vor.u32 %v7046_v18, %v4696_v16  ;;  %3784 = vmatpush.bf16.msrb.mxu2 %v6633_v26  ;;  %3750 = vmatmul.bf16.vlgmr.msra.gmra.mxu3 %v8378_v40 }
  0x69   :  { %v6488_v29 = vld [vmem:[%s11603_s1 + $0xdc0] sm:$0xf]  ;;  %v7492_v32 = vld [vmem:[%s11603_s1 + $0xdcc] sm:$0xf0]  ;;  %v6361_v41 = vor.u32 %v7460_v28, %v6360_v27  ;;  %3798 = vmatpush.bf16.msrb.mxu3 %v6761_v30 }
  0x6a   :  { %v6616_v33 = vld [vmem:[%s11603_s1 + $0xec0] sm:$0xf]  ;;  %v7524_v34 = vld [vmem:[%s11603_s1 + $0xecc] sm:$0xf0]  ;;  %v6489_v42 = vor.u32 %v7492_v32, %v6488_v29  ;;  %3708 = vmatmul.bf16.vlgmr.msra.gmra.mxu0 %v8357_v31  ;;  %3736 = vmatmul.bf16.vlgmr.msra.gmra.mxu2 %v8368_v35 }
  0x6b   :  { %v6744_v37 = vld [vmem:[%s11603_s1 + $0xfc0] sm:$0xf]  ;;  %v7556_v38 = vld [vmem:[%s11603_s1 + $0xfcc] sm:$0xf0]  ;;  %v6617_v45 = vor.u32 %v7524_v34, %v6616_v33  ;;  %3757 = vmatpush.bf16.msrb.mxu0 %v6361_v41 }
  0x6c   :  { %v6344_v46 = vld [vmem:[%s11603_s1 + $0xca0] sm:$0xf]  ;;  %v7456_v48 = vld [vmem:[%s11603_s1 + $0xcac] sm:$0xf0]  ;;  %v6745_v50 = vor.u32 %v7556_v38, %v6744_v37  ;;  %3771 = vmatpush.bf16.msrb.mxu1 %v6489_v42 }
  0x6d   :  { %v6472_v49 = vld [vmem:[%s11603_s1 + $0xda0] sm:$0xf]  ;;  %v7488_v51 = vld [vmem:[%s11603_s1 + $0xdac] sm:$0xf0]  ;;  %v6345_v56 = vor.u32 %v7456_v48, %v6344_v46  ;;  %3785 = vmatpush.bf16.msrb.mxu2 %v6617_v45 }
  0x6e   :  { %v6600_v52 = vld [vmem:[%s11603_s1 + $0xea0] sm:$0xf]  ;;  %v7520_v53 = vld [vmem:[%s11603_s1 + $0xeac] sm:$0xf0]  ;;  %v6473_v57 = vor.u32 %v7488_v51, %v6472_v49  ;;  %3799 = vmatpush.bf16.msrb.mxu3 %v6745_v50 }
  0x6f   :  { %v6728_v54 = vld [vmem:[%s11603_s1 + $0xfa0] sm:$0xf]  ;;  %v7552_v55 = vld [vmem:[%s11603_s1 + $0xfac] sm:$0xf0]  ;;  %v6601_v59 = vor.u32 %v7520_v53, %v6600_v52  ;;  %3758 = vmatpush.bf16.msrb.mxu0 %v6345_v56 }
  0x70   :  { %v6328_v60 = vld [vmem:[%s11603_s1 + $0xc80] sm:$0xf]  ;;  %v7452_v61 = vld [vmem:[%s11603_s1 + $0xc8c] sm:$0xf0]  ;;  %v6729_v63 = vor.u32 %v7552_v55, %v6728_v54  ;;  %3772 = vmatpush.bf16.msrb.mxu1 %v6473_v57 }
  0x71   :  { %v6456_v62 = vld [vmem:[%s11603_s1 + $0xd80] sm:$0xf]  ;;  %v7484_v0 = vld [vmem:[%s11603_s1 + $0xd8c] sm:$0xf0]  ;;  %v6329_v6 = vor.u32 %v7452_v61, %v6328_v60  ;;  %3786 = vmatpush.bf16.msrb.mxu2 %v6601_v59 }
  0x72   :  { %v6584_v2 = vld [vmem:[%s11603_s1 + $0xe80] sm:$0xf]  ;;  %v7516_v3 = vld [vmem:[%s11603_s1 + $0xe8c] sm:$0xf0]  ;;  %v6457_v7 = vor.u32 %v7484_v0, %v6456_v62  ;;  %3800 = vmatpush.bf16.msrb.mxu3 %v6729_v63 }
  0x73   :  { %v6712_v4 = vld [vmem:[%s11603_s1 + $0xf80] sm:$0xf]  ;;  %v7548_v5 = vld [vmem:[%s11603_s1 + $0xf8c] sm:$0xf0]  ;;  %v6585_v8 = vor.u32 %v7516_v3, %v6584_v2  ;;  %3759 = vmatpush.bf16.msrb.mxu0 %v6329_v6  ;;  %v7078_v6 = vld [vmem:[%s11603_s1 + $0xe4] sm:$0xf] }
  0x74   :  { %v6312_v9 = vld [vmem:[%s11603_s1 + $0xc60] sm:$0xf]  ;;  %v7448_v11 = vld [vmem:[%s11603_s1 + $0xc6c] sm:$0xf0]  ;;  %v6713_v13 = vor.u32 %v7548_v5, %v6712_v4  ;;  %3773 = vmatpush.bf16.msrb.mxu1 %v6457_v7  ;;  %v4842_v7 = vld [vmem:[%s11603_s1 + $0xf0] sm:$0xf0] }
  0x75   :  { %v6440_v12 = vld [vmem:[%s11603_s1 + $0xd60] sm:$0xf]  ;;  %v7480_v14 = vld [vmem:[%s11603_s1 + $0xd6c] sm:$0xf0]  ;;  %v6313_v20 = vor.u32 %v7448_v11, %v6312_v9  ;;  %3787 = vmatpush.bf16.msrb.mxu2 %v6585_v8  ;;  %v7110_v8 = vld [vmem:[%s11603_s1 + $0x1e4] sm:$0xf] }
  0x76   :  { %v6568_v15 = vld [vmem:[%s11603_s1 + $0xe60] sm:$0xf]  ;;  %v7512_v16 = vld [vmem:[%s11603_s1 + $0xe6c] sm:$0xf0]  ;;  %v6441_v21 = vor.u32 %v7480_v14, %v6440_v12  ;;  %3801 = vmatpush.bf16.msrb.mxu3 %v6713_v13  ;;  %v4970_v11 = vld [vmem:[%s11603_s1 + $0x1f0] sm:$0xf0] }
  0x77   :  { %v6696_v18 = vld [vmem:[%s11603_s1 + $0xf60] sm:$0xf]  ;;  %v7544_v19 = vld [vmem:[%s11603_s1 + $0xf6c] sm:$0xf0]  ;;  %v6569_v22 = vor.u32 %v7512_v16, %v6568_v15  ;;  %3760 = vmatpush.bf16.msrb.mxu0 %v6313_v20  ;;  %v7047_v13 = vld [vmem:[%s11604_s0 + $0x74] sm:$0xf0] }
  0x78   :  { %v6296_v23 = vld [vmem:[%s11603_s1 + $0xc40] sm:$0xf]  ;;  %v7444_v24 = vld [vmem:[%s11603_s1 + $0xc4c] sm:$0xf0]  ;;  %v6697_v26 = vor.u32 %v7544_v19, %v6696_v18  ;;  %3774 = vmatpush.bf16.msrb.mxu1 %v6441_v21  ;;  %v4712_v16 = vld [vmem:[%s11604_s0 + $0x38] sm:$0xf] }
  0x79   :  { %v6424_v25 = vld [vmem:[%s11603_s1 + $0xd40] sm:$0xf]  ;;  %v7476_v27 = vld [vmem:[%s11603_s1 + $0xd4c] sm:$0xf0]  ;;  %v6297_v33 = vor.u32 %v7444_v24, %v6296_v23  ;;  %3788 = vmatpush.bf16.msrb.mxu2 %v6569_v22  ;;  %v7038_v19 = vld [vmem:[%s11604_s0 + $0x34] sm:$0xf] }
  0x7a   :  { %v6552_v28 = vld [vmem:[%s11603_s1 + $0xe40] sm:$0xf]  ;;  %v7508_v29 = vld [vmem:[%s11603_s1 + $0xe4c] sm:$0xf0]  ;;  %v6425_v37 = vor.u32 %v7476_v27, %v6424_v25  ;;  %3802 = vmatpush.bf16.msrb.mxu3 %v6697_v26  ;;  %v4706_v22 = vld [vmem:[%s11604_s0 + $0x78] sm:$0xf0]  ;;  %v4845_v26 = vor.u32 %v7078_v6, %v4842_v7 }
  0x7b   :  { %v6680_v30 = vld [vmem:[%s11603_s1 + $0xf40] sm:$0xf]  ;;  %v7540_v32 = vld [vmem:[%s11603_s1 + $0xf4c] sm:$0xf0]  ;;  %v6553_v38 = vor.u32 %v7508_v29, %v6552_v28  ;;  %3761 = vmatpush.bf16.msrb.mxu0 %v6297_v33  ;;  %v7039_v23 = vld [vmem:[%s11604_s0 + $0x3c] sm:$0xf] }
  0x7c   :  { %v6280_v34 = vld [vmem:[%s11603_s1 + $0xc20] sm:$0xf]  ;;  %v7440_v41 = vld [vmem:[%s11603_s1 + $0xc2c] sm:$0xf0]  ;;  %v6681_v46 = vor.u32 %v7540_v32, %v6680_v30  ;;  %3775 = vmatpush.bf16.msrb.mxu1 %v6425_v37  ;;  %v4714_v24 = vld [vmem:[%s11604_s0 + $0x80] sm:$0xf0]  ;;  %v4973_v30 = vor.u32 %v7110_v8, %v4970_v11 }
  0x7d   :  { %v6408_v42 = vld [vmem:[%s11603_s1 + $0xd20] sm:$0xf]  ;;  %v7472_v45 = vld [vmem:[%s11603_s1 + $0xd2c] sm:$0xf0]  ;;  %v6281_v54 = vor.u32 %v7440_v41, %v6280_v34  ;;  %3789 = vmatpush.bf16.msrb.mxu2 %v6553_v38  ;;  %v7074_v34 = vld [vmem:[%s11603_s1 + $0xc4] sm:$0xf]  ;;  %v8598_v41 = vor.u32 %v7038_v19, %v4706_v22 }
  0x7e   :  { %v6536_v48 = vld [vmem:[%s11603_s1 + $0xe20] sm:$0xf]  ;;  %v7504_v49 = vld [vmem:[%s11603_s1 + $0xe2c] sm:$0xf0]  ;;  %v6409_v60 = vor.u32 %v7472_v45, %v6408_v42  ;;  %3803 = vmatpush.bf16.msrb.mxu3 %v6681_v46  ;;  %v4826_v37 = vld [vmem:[%s11603_s1 + $0xd0] sm:$0xf0]  ;;  %v8606_v46 = vor.u32 %v7039_v23, %v4714_v24 }
  0x7f   :  { %v6664_v50 = vld [vmem:[%s11603_s1 + $0xf20] sm:$0xf]  ;;  %v7536_v51 = vld [vmem:[%s11603_s1 + $0xf2c] sm:$0xf0]  ;;  %v6537_v61 = vor.u32 %v7504_v49, %v6536_v48  ;;  %3762 = vmatpush.bf16.msrb.mxu0 %v6281_v54  ;;  %v7106_v42 = vld [vmem:[%s11603_s1 + $0x1c4] sm:$0xf] }
  0x80   :  { %v6264_v52 = vld [vmem:[%s11603_s1 + $0xc00] sm:$0xf]  ;;  %v7436_v53 = vld [vmem:[%s11603_s1 + $0xc0c] sm:$0xf0]  ;;  %v6665_v2 = vor.u32 %v7536_v51, %v6664_v50  ;;  %3776 = vmatpush.bf16.msrb.mxu1 %v6409_v60  ;;  %v4954_v45 = vld [vmem:[%s11603_s1 + $0x1d0] sm:$0xf0]  ;;  %v4829_v50 = vor.u32 %v7074_v34, %v4826_v37 }
  0x81   :  { %v6392_v55 = vld [vmem:[%s11603_s1 + $0xd00] sm:$0xf]  ;;  %v7468_v56 = vld [vmem:[%s11603_s1 + $0xd0c] sm:$0xf0]  ;;  %v6265_v9 = vor.u32 %v7436_v53, %v6264_v52  ;;  %3790 = vmatpush.bf16.msrb.mxu2 %v6537_v61  ;;  %v4957_v54 = vor.u32 %v7106_v42, %v4954_v45  ;;  %v4938_v60 = vld [vmem:[%s11603_s1 + $0x1b0] sm:$0xf0] }
  0x82   :  { %v6520_v57 = vld [vmem:[%s11603_s1 + $0xe00] sm:$0xf]  ;;  %v7500_v59 = vld [vmem:[%s11603_s1 + $0xe0c] sm:$0xf0]  ;;  %v6393_v14 = vor.u32 %v7468_v56, %v6392_v55  ;;  %3804 = vmatpush.bf16.msrb.mxu3 %v6665_v2  ;;  %v7070_v56 = vld [vmem:[%s11603_s1 + $0xa4] sm:$0xf] }
  0x83   :  { %v6648_v62 = vld [vmem:[%s11603_s1 + $0xf00] sm:$0xf]  ;;  %v7532_v63 = vld [vmem:[%s11603_s1 + $0xf0c] sm:$0xf0]  ;;  %v6521_v15 = vor.u32 %v7500_v59, %v6520_v57  ;;  %3763 = vmatpush.bf16.msrb.mxu0 %v6265_v9  ;;  %v4810_v57 = vld [vmem:[%s11603_s1 + $0xb0] sm:$0xf0] }
  0x84   :  { %v6888_v0 = vld [vmem:[%s11603_s1 + $0x10e0] sm:$0xf]  ;;  %v7592_v3 = vld [vmem:[%s11603_s1 + $0x10ec] sm:$0xf0]  ;;  %v6649_v20 = vor.u32 %v7532_v63, %v6648_v62  ;;  %3777 = vmatpush.bf16.msrb.mxu1 %v6393_v14  ;;  %v7102_v59 = vld [vmem:[%s11603_s1 + $0x1a4] sm:$0xf]  ;;  %v4813_v63 = vor.u32 %v7070_v56, %v4810_v57 }
  0x85   :  { %v7016_v4 = vld [vmem:[%s11603_s1 + $0x11e0] sm:$0xf]  ;;  %v7624_v5 = vld [vmem:[%s11603_s1 + $0x11ec] sm:$0xf0]  ;;  %v6889_v21 = vor.u32 %v7592_v3, %v6888_v0  ;;  %3791 = vmatpush.bf16.msrb.mxu2 %v6521_v15  ;;  %v7066_v6 = vld [vmem:[%s11603_s1 + $0x84] sm:$0xf] }
  0x86   :  { %v4704_v12 = vld [vmem:[%s11604_s0 + $0x30] sm:$0xf]  ;;  %v7048_v18 = vld [vmem:[%s11604_s0 + $0x7c] sm:$0xf0]  ;;  %v7017_v25 = vor.u32 %v7624_v5, %v7016_v4  ;;  %3805 = vmatpush.bf16.msrb.mxu3 %v6649_v20  ;;  %v4941_v4 = vor.u32 %v7102_v59, %v4938_v60  ;;  %v4794_v7 = vld [vmem:[%s11603_s1 + $0x90] sm:$0xf0] }
  0x87   :  { %v6872_v27 = vld [vmem:[%s11603_s1 + $0x10c0] sm:$0xf]  ;;  %v7588_v28 = vld [vmem:[%s11603_s1 + $0x10cc] sm:$0xf0]  ;;  %v8585_v32 = vor.u32 %v7047_v13, %v4704_v12  ;;  %v8596_v38 = vor.u32 %v7048_v18, %v4712_v16  ;;  %3812 = vmatpush.bf16.msra.mxu0 %v6889_v21  ;;  %3778 = vmatmul.bf16.vlgmr.msrb.gmra.mxu1 %v8598_v41  ;;  %v7098_v8 = vld [vmem:[%s11603_s1 + $0x184] sm:$0xf]  ;;  %v4797_v13 = vor.u32 %v7066_v6, %v4794_v7 }
  0x88   :  { %v7000_v29 = vld [vmem:[%s11603_s1 + $0x11c0] sm:$0xf]  ;;  %v7620_v33 = vld [vmem:[%s11603_s1 + $0x11cc] sm:$0xf0]  ;;  %v6873_v48 = vor.u32 %v7588_v28, %v6872_v27  ;;  %3826 = vmatpush.bf16.msra.mxu1 %v7017_v25  ;;  %v4922_v9 = vld [vmem:[%s11603_s1 + $0x190] sm:$0xf0] }
  0x89   :  { %3840 = vmatpush.bf16.msra.mxu2 %v4845_v26  ;;  %v7001_v49 = vor.u32 %v7620_v33, %v7000_v29  ;;  %v6856_v51 = vld [vmem:[%s11603_s1 + $0x10a0] sm:$0xf]  ;;  %v7584_v52 = vld [vmem:[%s11603_s1 + $0x10ac] sm:$0xf0]  ;;  %3764 = vmatmul.bf16.vlgmr.msrb.gmra.mxu0 %v8585_v32  ;;  %v4925_v18 = vor.u32 %v7098_v8, %v4922_v9  ;;  %v7062_v20 = vld [vmem:[%s11603_s1 + $0x64] sm:$0xf] }
  0x8a   :  { %v6984_v53 = vld [vmem:[%s11603_s1 + $0x11a0] sm:$0xf]  ;;  %3854 = vmatpush.bf16.msra.mxu3 %v4973_v30  ;;  %v7616_v55 = vld [vmem:[%s11603_s1 + $0x11ac] sm:$0xf0]  ;;  %3792 = vmatmul.bf16.vlgmr.msrb.gmra.mxu2 %v8596_v38  ;;  %v6857_v61 = vor.u32 %v7584_v52, %v6856_v51  ;;  %v4778_v21 = vld [vmem:[%s11603_s1 + $0x70] sm:$0xf0] }
  0x8b   :  { %3806 = vmatmul.bf16.vlgmr.msrb.gmra.mxu3 %v8606_v46  ;;  %3813 = vmatpush.bf16.msra.mxu0 %v6873_v48  ;;  %v6985_v62 = vor.u32 %v7616_v55, %v6984_v53  ;;  %v6840_v0 = vld [vmem:[%s11603_s1 + $0x1080] sm:$0xf]  ;;  %v7580_v2 = vld [vmem:[%s11603_s1 + $0x108c] sm:$0xf0]  ;;  %v7094_v22 = vld [vmem:[%s11603_s1 + $0x164] sm:$0xf]  ;;  %v4781_v26 = vor.u32 %v7062_v20, %v4778_v21 }
  0x8c   :  { %3827 = vmatpush.bf16.msra.mxu1 %v7001_v49  ;;  %v6968_v3 = vld [vmem:[%s11603_s1 + $0x1180] sm:$0xf]  ;;  %v7612_v5 = vld [vmem:[%s11603_s1 + $0x118c] sm:$0xf0]  ;;  %v6841_v11 = vor.u32 %v7580_v2, %v6840_v0  ;;  %v4906_v23 = vld [vmem:[%s11603_s1 + $0x170] sm:$0xf0] }
  0x8d   :  { %3841 = vmatpush.bf16.msra.mxu2 %v4829_v50  ;;  %v6969_v12 = vor.u32 %v7612_v5, %v6968_v3  ;;  %v6824_v14 = vld [vmem:[%s11603_s1 + $0x1060] sm:$0xf]  ;;  %v7576_v15 = vld [vmem:[%s11603_s1 + $0x106c] sm:$0xf0]  ;;  %v4909_v30 = vor.u32 %v7094_v22, %v4906_v23  ;;  %v7058_v34 = vld [vmem:[%s11603_s1 + $0x44] sm:$0xf] }
  0x8e   :  { %3855 = vmatpush.bf16.msra.mxu3 %v4957_v54  ;;  %v6952_v16 = vld [vmem:[%s11603_s1 + $0x1160] sm:$0xf]  ;;  %v7608_v19 = vld [vmem:[%s11603_s1 + $0x116c] sm:$0xf0]  ;;  %v6825_v24 = vor.u32 %v7576_v15, %v6824_v14  ;;  %v4762_v37 = vld [vmem:[%s11603_s1 + $0x50] sm:$0xf0] }
  0x8f   :  { %3814 = vmatpush.bf16.msra.mxu0 %v6857_v61  ;;  %v6953_v25 = vor.u32 %v7608_v19, %v6952_v16  ;;  %v6808_v27 = vld [vmem:[%s11603_s1 + $0x1040] sm:$0xf]  ;;  %v7572_v28 = vld [vmem:[%s11603_s1 + $0x104c] sm:$0xf0]  ;;  %v7090_v42 = vld [vmem:[%s11603_s1 + $0x144] sm:$0xf]  ;;  %v4765_v50 = vor.u32 %v7058_v34, %v4762_v37 }
  0x90   :  { %3828 = vmatpush.bf16.msra.mxu1 %v6985_v62  ;;  %v6936_v29 = vld [vmem:[%s11603_s1 + $0x1140] sm:$0xf]  ;;  %v7604_v33 = vld [vmem:[%s11603_s1 + $0x114c] sm:$0xf0]  ;;  %v4890_v45 = vld [vmem:[%s11603_s1 + $0x150] sm:$0xf0]  ;;  %v6809_v48 = vor.u32 %v7572_v28, %v6808_v27 }
  0x91   :  { %3842 = vmatpush.bf16.msra.mxu2 %v4813_v63  ;;  %v6937_v49 = vor.u32 %v7604_v33, %v6936_v29  ;;  %v6792_v51 = vld [vmem:[%s11603_s1 + $0x1020] sm:$0xf]  ;;  %v7568_v52 = vld [vmem:[%s11603_s1 + $0x102c] sm:$0xf0]  ;;  %v4893_v54 = vor.u32 %v7090_v42, %v4890_v45  ;;  %v7054_v56 = vld [vmem:[%s11603_s1 + $0x24] sm:$0xf] }
  0x92   :  { %3856 = vmatpush.bf16.msra.mxu3 %v4941_v4  ;;  %v6920_v53 = vld [vmem:[%s11603_s1 + $0x1120] sm:$0xf]  ;;  %v7600_v55 = vld [vmem:[%s11603_s1 + $0x112c] sm:$0xf0]  ;;  %v4746_v57 = vld [vmem:[%s11603_s1 + $0x30] sm:$0xf0]  ;;  %v6793_v61 = vor.u32 %v7568_v52, %v6792_v51 }
  0x93   :  { %3815 = vmatpush.bf16.msra.mxu0 %v6841_v11  ;;  %v7086_v59 = vld [vmem:[%s11603_s1 + $0x124] sm:$0xf]  ;;  %v4874_v60 = vld [vmem:[%s11603_s1 + $0x130] sm:$0xf0]  ;;  %v6776_v62 = vld [vmem:[%s11603_s1 + $0x1000] sm:$0xf]  ;;  %v6921_v2 = vor.u32 %v7600_v55, %v6920_v53  ;;  %v4749_v3 = vor.u32 %v7054_v56, %v4746_v57 }
  0x94   :  { %3829 = vmatpush.bf16.msra.mxu1 %v6969_v12  ;;  %v7564_v63 = vld [vmem:[%s11603_s1 + $0x100c] sm:$0xf0]  ;;  %v6904_v0 = vld [vmem:[%s11603_s1 + $0x1100] sm:$0xf]  ;;  %v7050_v5 = vld [vmem:[%s11603_s1 + $0x4] sm:$0xf]  ;;  %v4877_v7 = vor.u32 %v7086_v59, %v4874_v60 }
  0x95   :  { %3843 = vmatpush.bf16.msra.mxu2 %v4797_v13  ;;  %v7596_v4 = vld [vmem:[%s11603_s1 + $0x110c] sm:$0xf0]  ;;  %v4730_v6 = vld [vmem:[%s11603_s1 + $0x10] sm:$0xf0]  ;;  %v7082_v8 = vld [vmem:[%s11603_s1 + $0x104] sm:$0xf]  ;;  %v6777_v15 = vor.u32 %v7564_v63, %v6776_v62 }
  0x96   :  { %3857 = vmatpush.bf16.msra.mxu3 %v4925_v18  ;;  %v4858_v9 = vld [vmem:[%s11603_s1 + $0x110] sm:$0xf0]  ;;  %v7142_v11 = vld [vmem:[%s11603_s1 + $0x2e4] sm:$0xf]  ;;  %v6905_v20 = vor.u32 %v7596_v4, %v6904_v0  ;;  %v4733_v21 = vor.u32 %v7050_v5, %v4730_v6  ;;  %v4720_v23 = vld [vmem:[%s11604_s0 + $0x40] sm:$0xf] }
  0x97   :  { %3816 = vmatpush.bf16.msra.mxu0 %v6825_v24  ;;  %v5098_v12 = vld [vmem:[%s11603_s1 + $0x2f0] sm:$0xf0]  ;;  %v7174_v13 = vld [vmem:[%s11603_s1 + $0x3e4] sm:$0xf]  ;;  %v7049_v24 = vld [vmem:[%s11604_s0 + $0x84] sm:$0xf0] }
  0x98   :  { %3830 = vmatpush.bf16.msra.mxu1 %v6953_v25  ;;  %v5226_v14 = vld [vmem:[%s11603_s1 + $0x3f0] sm:$0xf0]  ;;  %v7206_v16 = vld [vmem:[%s11603_s1 + $0x4e4] sm:$0xf]  ;;  %v4861_v25 = vor.u32 %v7082_v8, %v4858_v9  ;;  %v4722_v28 = vld [vmem:[%s11604_s0 + $0x88] sm:$0xf0]  ;;  %v8801_v45 = vor.u32 %v7049_v24, %v4720_v23 }
  0x99   :  { %3844 = vmatpush.bf16.msra.mxu2 %v4781_v26  ;;  %v5354_v18 = vld [vmem:[%s11603_s1 + $0x4f0] sm:$0xf0]  ;;  %v7238_v19 = vld [vmem:[%s11603_s1 + $0x5e4] sm:$0xf]  ;;  %v5101_v26 = vor.u32 %v7142_v11, %v5098_v12  ;;  %v5229_v29 = vor.u32 %v7174_v13, %v5226_v14 }
  0x9a   :  { %3858 = vmatpush.bf16.msra.mxu3 %v4909_v30  ;;  %v5482_v22 = vld [vmem:[%s11603_s1 + $0x5f0] sm:$0xf0]  ;;  %v7040_v27 = vld [vmem:[%s11604_s0 + $0x44] sm:$0xf]  ;;  %v5357_v30 = vor.u32 %v7206_v16, %v5354_v18 }
  0x9b   :  { %3817 = vmatpush.bf16.msra.mxu0 %v6809_v48  ;;  %v7138_v33 = vld [vmem:[%s11603_s1 + $0x2c4] sm:$0xf]  ;;  %v5082_v34 = vld [vmem:[%s11603_s1 + $0x2d0] sm:$0xf0]  ;;  %v5485_v42 = vor.u32 %v7238_v19, %v5482_v22  ;;  %v8812_v51 = vor.u32 %v7040_v27, %v4722_v28 }
  0x9c   :  { %3831 = vmatpush.bf16.msra.mxu1 %v6937_v49  ;;  %v7170_v37 = vld [vmem:[%s11603_s1 + $0x3c4] sm:$0xf]  ;;  %v5210_v48 = vld [vmem:[%s11603_s1 + $0x3d0] sm:$0xf0] }
  0x9d   :  { %3845 = vmatpush.bf16.msra.mxu2 %v4765_v50  ;;  %v7202_v49 = vld [vmem:[%s11603_s1 + $0x4c4] sm:$0xf]  ;;  %v5338_v50 = vld [vmem:[%s11603_s1 + $0x4d0] sm:$0xf0]  ;;  %v5213_v55 = vor.u32 %v7170_v37, %v5210_v48 }
  0x9e   :  { %3859 = vmatpush.bf16.msra.mxu3 %v4893_v54  ;;  %v7234_v52 = vld [vmem:[%s11603_s1 + $0x5c4] sm:$0xf]  ;;  %v5466_v53 = vld [vmem:[%s11603_s1 + $0x5d0] sm:$0xf0]  ;;  %v5085_v54 = vor.u32 %v7138_v33, %v5082_v34  ;;  %v5341_v56 = vor.u32 %v7202_v49, %v5338_v50 }
  0x9f   :  { %3818 = vmatpush.bf16.msra.mxu0 %v6793_v61  ;;  %v7134_v57 = vld [vmem:[%s11603_s1 + $0x2a4] sm:$0xf]  ;;  %v5066_v59 = vld [vmem:[%s11603_s1 + $0x2b0] sm:$0xf0]  ;;  %v5469_v61 = vor.u32 %v7234_v52, %v5466_v53 }
  0xa0   :  { %3832 = vmatpush.bf16.msra.mxu1 %v6921_v2  ;;  %v7166_v60 = vld [vmem:[%s11603_s1 + $0x3a4] sm:$0xf]  ;;  %v5194_v62 = vld [vmem:[%s11603_s1 + $0x3b0] sm:$0xf0]  ;;  %v5069_v4 = vor.u32 %v7134_v57, %v5066_v59 }
  0xa1   :  { %3846 = vmatpush.bf16.msra.mxu2 %v4749_v3  ;;  %v7198_v63 = vld [vmem:[%s11603_s1 + $0x4a4] sm:$0xf]  ;;  %v5322_v0 = vld [vmem:[%s11603_s1 + $0x4b0] sm:$0xf0]  ;;  %v5197_v5 = vor.u32 %v7166_v60, %v5194_v62 }
  0xa2   :  { %3860 = vmatpush.bf16.msra.mxu3 %v4877_v7  ;;  %v7230_v2 = vld [vmem:[%s11603_s1 + $0x5a4] sm:$0xf]  ;;  %v5450_v3 = vld [vmem:[%s11603_s1 + $0x5b0] sm:$0xf0]  ;;  %v5325_v6 = vor.u32 %v7198_v63, %v5322_v0 }
  0xa3   :  { %3819 = vmatpush.bf16.msra.mxu0 %v6777_v15  ;;  %v7130_v7 = vld [vmem:[%s11603_s1 + $0x284] sm:$0xf]  ;;  %v5050_v8 = vld [vmem:[%s11603_s1 + $0x290] sm:$0xf0]  ;;  %v5453_v11 = vor.u32 %v7230_v2, %v5450_v3 }
  0xa4   :  { %3833 = vmatpush.bf16.msra.mxu1 %v6905_v20  ;;  %v7162_v9 = vld [vmem:[%s11603_s1 + $0x384] sm:$0xf]  ;;  %v5178_v12 = vld [vmem:[%s11603_s1 + $0x390] sm:$0xf0]  ;;  %v5053_v18 = vor.u32 %v7130_v7, %v5050_v8 }
  0xa5   :  { %3847 = vmatpush.bf16.msra.mxu2 %v4733_v21  ;;  %v7194_v13 = vld [vmem:[%s11603_s1 + $0x484] sm:$0xf]  ;;  %v5306_v14 = vld [vmem:[%s11603_s1 + $0x490] sm:$0xf0]  ;;  %v5181_v19 = vor.u32 %v7162_v9, %v5178_v12 }
  0xa6   :  { %3861 = vmatpush.bf16.msra.mxu3 %v4861_v25  ;;  %3820 = vmatmul.bf16.vlgmr.msra.gmra.mxu0 %v8801_v45  ;;  %v7226_v15 = vld [vmem:[%s11603_s1 + $0x584] sm:$0xf]  ;;  %v5434_v16 = vld [vmem:[%s11603_s1 + $0x590] sm:$0xf0]  ;;  %v5309_v20 = vor.u32 %v7194_v13, %v5306_v14 }
  0xa7   :  { %3868 = vmatpush.bf16.msrb.mxu0 %v5101_v26  ;;  %3834 = vmatmul.bf16.vlgmr.msra.gmra.mxu1 %v8812_v51  ;;  %v7126_v21 = vld [vmem:[%s11603_s1 + $0x264] sm:$0xf]  ;;  %v5034_v22 = vld [vmem:[%s11603_s1 + $0x270] sm:$0xf0]  ;;  %v5437_v24 = vor.u32 %v7226_v15, %v5434_v16 }
  0xa8   :  { %3882 = vmatpush.bf16.msrb.mxu1 %v5229_v29  ;;  %3848 = vmatmul.bf16.vlgmr.msra.gmra.mxu2 %v7907_v58  ;;  %v7158_v23 = vld [vmem:[%s11603_s1 + $0x364] sm:$0xf]  ;;  %v5162_v25 = vld [vmem:[%s11603_s1 + $0x370] sm:$0xf0] }
  0xa9   :  { %3896 = vmatpush.bf16.msrb.mxu2 %v5357_v30  ;;  %3862 = vmatmul.bf16.vlgmr.msra.gmra.mxu3 %v7943_v10  ;;  %v7190_v26 = vld [vmem:[%s11603_s1 + $0x464] sm:$0xf]  ;;  %v5290_v27 = vld [vmem:[%s11603_s1 + $0x470] sm:$0xf0]  ;;  %v5037_v30 = vor.u32 %v7126_v21, %v5034_v22  ;;  %v5165_v33 = vor.u32 %v7158_v23, %v5162_v25 }
  0xaa   :  { %3910 = vmatpush.bf16.msrb.mxu3 %v5485_v42  ;;  %v7222_v28 = vld [vmem:[%s11603_s1 + $0x564] sm:$0xf]  ;;  %v5418_v29 = vld [vmem:[%s11603_s1 + $0x570] sm:$0xf0]  ;;  %v5293_v34 = vor.u32 %v7190_v26, %v5290_v27 }
  0xab   :  { %3869 = vmatpush.bf16.msrb.mxu0 %v5085_v54  ;;  %v7122_v37 = vld [vmem:[%s11603_s1 + $0x244] sm:$0xf]  ;;  %v5018_v42 = vld [vmem:[%s11603_s1 + $0x250] sm:$0xf0]  ;;  %v5421_v49 = vor.u32 %v7222_v28, %v5418_v29 }
  0xac   :  { %3883 = vmatpush.bf16.msrb.mxu1 %v5213_v55  ;;  %v7154_v48 = vld [vmem:[%s11603_s1 + $0x344] sm:$0xf]  ;;  %v5146_v50 = vld [vmem:[%s11603_s1 + $0x350] sm:$0xf0] }
  0xad   :  { %3897 = vmatpush.bf16.msrb.mxu2 %v5341_v56  ;;  %v7186_v52 = vld [vmem:[%s11603_s1 + $0x444] sm:$0xf]  ;;  %v5274_v53 = vld [vmem:[%s11603_s1 + $0x450] sm:$0xf0]  ;;  %v5021_v56 = vor.u32 %v7122_v37, %v5018_v42  ;;  %v5149_v57 = vor.u32 %v7154_v48, %v5146_v50 }
  0xae   :  { %3911 = vmatpush.bf16.msrb.mxu3 %v5469_v61  ;;  %v7218_v54 = vld [vmem:[%s11603_s1 + $0x544] sm:$0xf]  ;;  %v5402_v55 = vld [vmem:[%s11603_s1 + $0x550] sm:$0xf0]  ;;  %v5277_v59 = vor.u32 %v7186_v52, %v5274_v53 }
  0xaf   :  { %3870 = vmatpush.bf16.msrb.mxu0 %v5069_v4  ;;  %v7118_v60 = vld [vmem:[%s11603_s1 + $0x224] sm:$0xf]  ;;  %v5002_v61 = vld [vmem:[%s11603_s1 + $0x230] sm:$0xf0]  ;;  %v5405_v63 = vor.u32 %v7218_v54, %v5402_v55 }
  0xb0   :  { %3884 = vmatpush.bf16.msrb.mxu1 %v5197_v5  ;;  %v7150_v62 = vld [vmem:[%s11603_s1 + $0x324] sm:$0xf]  ;;  %v5130_v0 = vld [vmem:[%s11603_s1 + $0x330] sm:$0xf0] }
  0xb1   :  { %3898 = vmatpush.bf16.msrb.mxu2 %v5325_v6  ;;  %v7182_v2 = vld [vmem:[%s11603_s1 + $0x424] sm:$0xf]  ;;  %v5258_v3 = vld [vmem:[%s11603_s1 + $0x430] sm:$0xf0]  ;;  %v5005_v6 = vor.u32 %v7118_v60, %v5002_v61  ;;  %v5133_v9 = vor.u32 %v7150_v62, %v5130_v0 }
  0xb2   :  { %3912 = vmatpush.bf16.msrb.mxu3 %v5453_v11  ;;  %v7214_v4 = vld [vmem:[%s11603_s1 + $0x524] sm:$0xf]  ;;  %v5386_v5 = vld [vmem:[%s11603_s1 + $0x530] sm:$0xf0]  ;;  %v5261_v11 = vor.u32 %v7182_v2, %v5258_v3 }
  0xb3   :  { %3871 = vmatpush.bf16.msrb.mxu0 %v5053_v18  ;;  %v7114_v7 = vld [vmem:[%s11603_s1 + $0x204] sm:$0xf]  ;;  %v4986_v8 = vld [vmem:[%s11603_s1 + $0x210] sm:$0xf0]  ;;  %v5389_v15 = vor.u32 %v7214_v4, %v5386_v5 }
  0xb4   :  { %3885 = vmatpush.bf16.msrb.mxu1 %v5181_v19  ;;  %v7146_v12 = vld [vmem:[%s11603_s1 + $0x304] sm:$0xf]  ;;  %v5114_v13 = vld [vmem:[%s11603_s1 + $0x310] sm:$0xf0]  ;;  %v4989_v23 = vor.u32 %v7114_v7, %v4986_v8 }
  0xb5   :  { %3899 = vmatpush.bf16.msrb.mxu2 %v5309_v20  ;;  %v7178_v14 = vld [vmem:[%s11603_s1 + $0x404] sm:$0xf]  ;;  %v5242_v16 = vld [vmem:[%s11603_s1 + $0x410] sm:$0xf0]  ;;  %v5117_v27 = vor.u32 %v7146_v12, %v5114_v13 }
  0xb6   :  { %3913 = vmatpush.bf16.msrb.mxu3 %v5437_v24  ;;  %v7210_v18 = vld [vmem:[%s11603_s1 + $0x504] sm:$0xf]  ;;  %v5370_v19 = vld [vmem:[%s11603_s1 + $0x510] sm:$0xf0]  ;;  %v5245_v28 = vor.u32 %v7178_v14, %v5242_v16 }
  0xb7   :  { %3872 = vmatpush.bf16.msrb.mxu0 %v5037_v30  ;;  %v7270_v20 = vld [vmem:[%s11603_s1 + $0x6e4] sm:$0xf]  ;;  %v5610_v21 = vld [vmem:[%s11603_s1 + $0x6f0] sm:$0xf0] }
  0xb8   :  { %3886 = vmatpush.bf16.msrb.mxu1 %v5165_v33  ;;  %v7302_v22 = vld [vmem:[%s11603_s1 + $0x7e4] sm:$0xf]  ;;  %v5738_v24 = vld [vmem:[%s11603_s1 + $0x7f0] sm:$0xf0]  ;;  %v5373_v33 = vor.u32 %v7210_v18, %v5370_v19 }
  0xb9   :  { %3900 = vmatpush.bf16.msrb.mxu2 %v5293_v34  ;;  %v7334_v25 = vld [vmem:[%s11603_s1 + $0x8e4] sm:$0xf]  ;;  %v5866_v26 = vld [vmem:[%s11603_s1 + $0x8f0] sm:$0xf0]  ;;  %v5613_v34 = vor.u32 %v7270_v20, %v5610_v21  ;;  %v5741_v37 = vor.u32 %v7302_v22, %v5738_v24 }
  0xba   :  { %3914 = vmatpush.bf16.msrb.mxu3 %v5421_v49  ;;  %v7366_v29 = vld [vmem:[%s11603_s1 + $0x9e4] sm:$0xf]  ;;  %v5994_v30 = vld [vmem:[%s11603_s1 + $0x9f0] sm:$0xf0]  ;;  %v5869_v42 = vor.u32 %v7334_v25, %v5866_v26 }
  0xbb   :  { %3873 = vmatpush.bf16.msrb.mxu0 %v5021_v56  ;;  %v7266_v48 = vld [vmem:[%s11603_s1 + $0x6c4] sm:$0xf]  ;;  %v5594_v49 = vld [vmem:[%s11603_s1 + $0x6d0] sm:$0xf0]  ;;  %v5997_v52 = vor.u32 %v7366_v29, %v5994_v30 }
  0xbc   :  { %3887 = vmatpush.bf16.msrb.mxu1 %v5149_v57  ;;  %v7298_v50 = vld [vmem:[%s11603_s1 + $0x7c4] sm:$0xf]  ;;  %v5722_v53 = vld [vmem:[%s11603_s1 + $0x7d0] sm:$0xf0] }
  0xbd   :  { %3901 = vmatpush.bf16.msrb.mxu2 %v5277_v59  ;;  %v7330_v54 = vld [vmem:[%s11603_s1 + $0x8c4] sm:$0xf]  ;;  %v5850_v55 = vld [vmem:[%s11603_s1 + $0x8d0] sm:$0xf0]  ;;  %v5597_v59 = vor.u32 %v7266_v48, %v5594_v49  ;;  %v5725_v60 = vor.u32 %v7298_v50, %v5722_v53 }
  0xbe   :  { %3915 = vmatpush.bf16.msrb.mxu3 %v5405_v63  ;;  %v7362_v56 = vld [vmem:[%s11603_s1 + $0x9c4] sm:$0xf]  ;;  %v5978_v57 = vld [vmem:[%s11603_s1 + $0x9d0] sm:$0xf0]  ;;  %v5853_v61 = vor.u32 %v7330_v54, %v5850_v55 }
  0xbf   :  { %3874 = vmatpush.bf16.msrb.mxu0 %v5005_v6  ;;  %v7262_v62 = vld [vmem:[%s11603_s1 + $0x6a4] sm:$0xf]  ;;  %v5578_v63 = vld [vmem:[%s11603_s1 + $0x6b0] sm:$0xf0]  ;;  %v5981_v2 = vor.u32 %v7362_v56, %v5978_v57 }
  0xc0   :  { %3888 = vmatpush.bf16.msrb.mxu1 %v5133_v9  ;;  %v7294_v0 = vld [vmem:[%s11603_s1 + $0x7a4] sm:$0xf]  ;;  %v5706_v3 = vld [vmem:[%s11603_s1 + $0x7b0] sm:$0xf0]  ;;  %v5581_v8 = vor.u32 %v7262_v62, %v5578_v63 }
  0xc1   :  { %3902 = vmatpush.bf16.msrb.mxu2 %v5261_v11  ;;  %v7326_v4 = vld [vmem:[%s11603_s1 + $0x8a4] sm:$0xf]  ;;  %v5834_v5 = vld [vmem:[%s11603_s1 + $0x8b0] sm:$0xf0]  ;;  %v5709_v9 = vor.u32 %v7294_v0, %v5706_v3 }
  0xc2   :  { %3916 = vmatpush.bf16.msrb.mxu3 %v5389_v15  ;;  %v7358_v6 = vld [vmem:[%s11603_s1 + $0x9a4] sm:$0xf]  ;;  %v5962_v7 = vld [vmem:[%s11603_s1 + $0x9b0] sm:$0xf0]  ;;  %v5837_v11 = vor.u32 %v7326_v4, %v5834_v5 }
  0xc3   :  { %3875 = vmatpush.bf16.msrb.mxu0 %v4989_v23  ;;  %v7258_v12 = vld [vmem:[%s11603_s1 + $0x684] sm:$0xf]  ;;  %v5562_v13 = vld [vmem:[%s11603_s1 + $0x690] sm:$0xf0]  ;;  %v5965_v15 = vor.u32 %v7358_v6, %v5962_v7 }
  0xc4   :  { %3889 = vmatpush.bf16.msrb.mxu1 %v5117_v27  ;;  %v7290_v14 = vld [vmem:[%s11603_s1 + $0x784] sm:$0xf]  ;;  %v5690_v16 = vld [vmem:[%s11603_s1 + $0x790] sm:$0xf0]  ;;  %v5565_v22 = vor.u32 %v7258_v12, %v5562_v13 }
  0xc5   :  { %3903 = vmatpush.bf16.msrb.mxu2 %v5245_v28  ;;  %v7322_v18 = vld [vmem:[%s11603_s1 + $0x884] sm:$0xf]  ;;  %v5818_v19 = vld [vmem:[%s11603_s1 + $0x890] sm:$0xf0]  ;;  %v5693_v23 = vor.u32 %v7290_v14, %v5690_v16 }
  0xc6   :  { %3917 = vmatpush.bf16.msrb.mxu3 %v5373_v33  ;;  %3876 = vmatmul.bf16.vlgmr.msrb.gmra.mxu0 %v7921_v1  ;;  %v7354_v20 = vld [vmem:[%s11603_s1 + $0x984] sm:$0xf]  ;;  %v5946_v21 = vld [vmem:[%s11603_s1 + $0x990] sm:$0xf0]  ;;  %v5821_v24 = vor.u32 %v7322_v18, %v5818_v19 }
  0xc7   :  { %3924 = vmatpush.bf16.msra.mxu0 %v5613_v34  ;;  %3890 = vmatmul.bf16.vlgmr.msrb.gmra.mxu1 %v7957_v17  ;;  %v7254_v25 = vld [vmem:[%s11603_s1 + $0x664] sm:$0xf]  ;;  %v5546_v26 = vld [vmem:[%s11603_s1 + $0x670] sm:$0xf0]  ;;  %v5949_v28 = vor.u32 %v7354_v20, %v5946_v21 }
  0xc8   :  { %3938 = vmatpush.bf16.msra.mxu1 %v5741_v37  ;;  %3904 = vmatmul.bf16.vlgmr.msrb.gmra.mxu2 %v8129_v39  ;;  %v7286_v27 = vld [vmem:[%s11603_s1 + $0x764] sm:$0xf]  ;;  %v5674_v29 = vld [vmem:[%s11603_s1 + $0x770] sm:$0xf0] }
  0xc9   :  { %3952 = vmatpush.bf16.msra.mxu2 %v5869_v42  ;;  %3918 = vmatmul.bf16.vlgmr.msrb.gmra.mxu3 %v8142_v44  ;;  %v7318_v30 = vld [vmem:[%s11603_s1 + $0x864] sm:$0xf]  ;;  %v5802_v33 = vld [vmem:[%s11603_s1 + $0x870] sm:$0xf0]  ;;  %v5549_v42 = vor.u32 %v7254_v25, %v5546_v26  ;;  %v5677_v48 = vor.u32 %v7286_v27, %v5674_v29 }
  0xca   :  { %3966 = vmatpush.bf16.msra.mxu3 %v5997_v52  ;;  %v7350_v34 = vld [vmem:[%s11603_s1 + $0x964] sm:$0xf]  ;;  %v5930_v37 = vld [vmem:[%s11603_s1 + $0x970] sm:$0xf0]  ;;  %v5805_v49 = vor.u32 %v7318_v30, %v5802_v33 }
  0xcb   :  { %3925 = vmatpush.bf16.msra.mxu0 %v5597_v59  ;;  %v7250_v50 = vld [vmem:[%s11603_s1 + $0x644] sm:$0xf]  ;;  %v5530_v52 = vld [vmem:[%s11603_s1 + $0x650] sm:$0xf0]  ;;  %v5933_v54 = vor.u32 %v7350_v34, %v5930_v37 }
  0xcc   :  { %3939 = vmatpush.bf16.msra.mxu1 %v5725_v60  ;;  %v7282_v53 = vld [vmem:[%s11603_s1 + $0x744] sm:$0xf]  ;;  %v5658_v55 = vld [vmem:[%s11603_s1 + $0x750] sm:$0xf0] }
  0xcd   :  { %3953 = vmatpush.bf16.msra.mxu2 %v5853_v61  ;;  %v7314_v56 = vld [vmem:[%s11603_s1 + $0x844] sm:$0xf]  ;;  %v5786_v57 = vld [vmem:[%s11603_s1 + $0x850] sm:$0xf0]  ;;  %v5533_v61 = vor.u32 %v7250_v50, %v5530_v52  ;;  %v5661_v62 = vor.u32 %v7282_v53, %v5658_v55 }
  0xce   :  { %3967 = vmatpush.bf16.msra.mxu3 %v5981_v2  ;;  %v7346_v59 = vld [vmem:[%s11603_s1 + $0x944] sm:$0xf]  ;;  %v5914_v60 = vld [vmem:[%s11603_s1 + $0x950] sm:$0xf0]  ;;  %v5789_v63 = vor.u32 %v7314_v56, %v5786_v57 }
  0xcf   :  { %3926 = vmatpush.bf16.msra.mxu0 %v5581_v8  ;;  %v7246_v0 = vld [vmem:[%s11603_s1 + $0x624] sm:$0xf]  ;;  %v5514_v2 = vld [vmem:[%s11603_s1 + $0x630] sm:$0xf0]  ;;  %v5917_v4 = vor.u32 %v7346_v59, %v5914_v60 }
  0xd0   :  { %3940 = vmatpush.bf16.msra.mxu1 %v5709_v9  ;;  %v7278_v3 = vld [vmem:[%s11603_s1 + $0x724] sm:$0xf]  ;;  %v5642_v5 = vld [vmem:[%s11603_s1 + $0x730] sm:$0xf0] }
  0xd1   :  { %3954 = vmatpush.bf16.msra.mxu2 %v5837_v11  ;;  %v7310_v6 = vld [vmem:[%s11603_s1 + $0x824] sm:$0xf]  ;;  %v5770_v7 = vld [vmem:[%s11603_s1 + $0x830] sm:$0xf0]  ;;  %v5517_v11 = vor.u32 %v7246_v0, %v5514_v2  ;;  %v5645_v14 = vor.u32 %v7278_v3, %v5642_v5  ;;  %v9216_v3 = vpop.f32.mrf.mxu2 }
  0xd2   :  { %3968 = vmatpush.bf16.msra.mxu3 %v5965_v15  ;;  %v7342_v8 = vld [vmem:[%s11603_s1 + $0x924] sm:$0xf]  ;;  %v5898_v9 = vld [vmem:[%s11603_s1 + $0x930] sm:$0xf0]  ;;  %v5773_v15 = vor.u32 %v7310_v6, %v5770_v7 }
  0xd3   :  { %3927 = vmatpush.bf16.msra.mxu0 %v5565_v22  ;;  %v7242_v12 = vld [vmem:[%s11603_s1 + $0x604] sm:$0xf]  ;;  %v5498_v13 = vld [vmem:[%s11603_s1 + $0x610] sm:$0xf0]  ;;  %v5901_v20 = vor.u32 %v7342_v8, %v5898_v9 }
  0xd4   :  { %3941 = vmatpush.bf16.msra.mxu1 %v5693_v23  ;;  %v7274_v16 = vld [vmem:[%s11603_s1 + $0x704] sm:$0xf]  ;;  %v5626_v18 = vld [vmem:[%s11603_s1 + $0x710] sm:$0xf0]  ;;  %v5501_v29 = vor.u32 %v7242_v12, %v5498_v13 }
  0xd5   :  { %3955 = vmatpush.bf16.msra.mxu2 %v5821_v24  ;;  %v7306_v19 = vld [vmem:[%s11603_s1 + $0x804] sm:$0xf]  ;;  %v5754_v21 = vld [vmem:[%s11603_s1 + $0x810] sm:$0xf0]  ;;  %v9164_v24 = vpop.f32.mrf.mxu0  ;;  %v5629_v37 = vor.u32 %v7274_v16, %v5626_v18 }
  0xd6   :  { %3969 = vmatpush.bf16.msra.mxu3 %v5949_v28  ;;  %v7338_v22 = vld [vmem:[%s11603_s1 + $0x904] sm:$0xf]  ;;  %v5882_v23 = vld [vmem:[%s11603_s1 + $0x910] sm:$0xf0]  ;;  %v9175_v28 = vpop.f32.mrf.mxu1 }
  0xd7   :  { %3928 = vmatpush.bf16.msra.mxu0 %v5549_v42  ;;  %v7398_v25 = vld [vmem:[%s11603_s1 + $0xae4] sm:$0xf]  ;;  %v6122_v26 = vld [vmem:[%s11603_s1 + $0xaf0] sm:$0xf0]  ;;  %v5757_v42 = vor.u32 %v7306_v19, %v5754_v21  ;;  %v5885_v50 = vor.u32 %v7338_v22, %v5882_v23  ;;  %v9255_v21 = vpop.f32.mrf.mxu3 }
  0xd8   :  { %3942 = vmatpush.bf16.msra.mxu1 %v5677_v48  ;;  %v7430_v27 = vld [vmem:[%s11603_s1 + $0xbe4] sm:$0xf]  ;;  %v6250_v30 = vld [vmem:[%s11603_s1 + $0xbf0] sm:$0xf0]  ;;  %v6125_v52 = vor.u32 %v7398_v25, %v6122_v26 }
  0xd9   :  { %3956 = vmatpush.bf16.msra.mxu2 %v5805_v49  ;;  %v7462_v33 = vld [vmem:[%s11603_s1 + $0xce4] sm:$0xf]  ;;  %v6378_v34 = vld [vmem:[%s11603_s1 + $0xcf0] sm:$0xf0]  ;;  %v6253_v53 = vor.u32 %v7430_v27, %v6250_v30 }
  0xda   :  { %3970 = vmatpush.bf16.msra.mxu3 %v5933_v54  ;;  %v7494_v48 = vld [vmem:[%s11603_s1 + $0xde4] sm:$0xf]  ;;  %v6506_v49 = vld [vmem:[%s11603_s1 + $0xdf0] sm:$0xf0]  ;;  %v6381_v54 = vor.u32 %v7462_v33, %v6378_v34 }
  0xdb   :  { %3929 = vmatpush.bf16.msra.mxu0 %v5533_v61  ;;  %v7394_v55 = vld [vmem:[%s11603_s1 + $0xac4] sm:$0xf]  ;;  %v6106_v56 = vld [vmem:[%s11603_s1 + $0xad0] sm:$0xf0]  ;;  %v6509_v59 = vor.u32 %v7494_v48, %v6506_v49 }
  0xdc   :  { %3943 = vmatpush.bf16.msra.mxu1 %v5661_v62  ;;  %v7426_v57 = vld [vmem:[%s11603_s1 + $0xbc4] sm:$0xf]  ;;  %v6234_v60 = vld [vmem:[%s11603_s1 + $0xbd0] sm:$0xf0]  ;;  %v6109_v2 = vor.u32 %v7394_v55, %v6106_v56 }
  0xdd   :  { %3957 = vmatpush.bf16.msra.mxu2 %v5789_v63  ;;  %v7458_v61 = vld [vmem:[%s11603_s1 + $0xcc4] sm:$0xf]  ;;  %v6362_v62 = vld [vmem:[%s11603_s1 + $0xcd0] sm:$0xf0] }
  0xde   :  { %3971 = vmatpush.bf16.msra.mxu3 %v5917_v4  ;;  %v7490_v63 = vld [vmem:[%s11603_s1 + $0xdc4] sm:$0xf]  ;;  %v6490_v0 = vld [vmem:[%s11603_s1 + $0xdd0] sm:$0xf0]  ;;  %v6237_v4 = vor.u32 %v7426_v57, %v6234_v60  ;;  %v6365_v5 = vor.u32 %v7458_v61, %v6362_v62  ;;  %v9252_v19 = vpop.f32.mrf.mxu1  ;;  %v9300_v61 = vpop.f32.mrf.mxu2 }
  0xdf   :  { %3930 = vmatpush.bf16.msra.mxu0 %v5517_v11  ;;  %v7390_v6 = vld [vmem:[%s11603_s1 + $0xaa4] sm:$0xf]  ;;  %v6090_v7 = vld [vmem:[%s11603_s1 + $0xab0] sm:$0xf0]  ;;  %v6493_v9 = vor.u32 %v7490_v63, %v6490_v0 }
  0xe0   :  { %3944 = vmatpush.bf16.msra.mxu1 %v5645_v14  ;;  %v7422_v8 = vld [vmem:[%s11603_s1 + $0xba4] sm:$0xf]  ;;  %v6218_v11 = vld [vmem:[%s11603_s1 + $0xbb0] sm:$0xf0]  ;;  %v9237_v14 = vpop.f32.mrf.mxu0 }
  0xe1   :  { %3958 = vmatpush.bf16.msra.mxu2 %v5773_v15  ;;  %v7454_v12 = vld [vmem:[%s11603_s1 + $0xca4] sm:$0xf]  ;;  %v6346_v13 = vld [vmem:[%s11603_s1 + $0xcb0] sm:$0xf0]  ;;  %v6221_v22 = vor.u32 %v7422_v8, %v6218_v11 }
  0xe2   :  { %3972 = vmatpush.bf16.msra.mxu3 %v5901_v20  ;;  %v7486_v15 = vld [vmem:[%s11603_s1 + $0xda4] sm:$0xf]  ;;  %v6474_v16 = vld [vmem:[%s11603_s1 + $0xdb0] sm:$0xf0]  ;;  %v6093_v20 = vor.u32 %v7390_v6, %v6090_v7  ;;  %v6349_v23 = vor.u32 %v7454_v12, %v6346_v13 }
  0xe3   :  { %3931 = vmatpush.bf16.msra.mxu0 %v5501_v29  ;;  %v9250_v18 = vld [vmem:[%s11605_s2] ss:$4 sm:$0xf]  ;;  %v6074_v26 = vld [vmem:[%s11603_s1 + $0xa90] sm:$0xf0]  ;;  %v6477_v29 = vor.u32 %v7486_v15, %v6474_v16 }
  0xe4   :  { %3945 = vmatpush.bf16.msra.mxu1 %v5629_v37  ;;  %v7386_v25 = vld [vmem:[%s11603_s1 + $0xa84] sm:$0xf]  ;;  %v6202_v30 = vld [vmem:[%s11603_s1 + $0xb90] sm:$0xf0]  ;;  %v610_v48 = vperm.slane %v9250_v18, 0 }
  0xe5   :  { %3959 = vmatpush.bf16.msra.mxu2 %v5757_v42  ;;  %v7418_v27 = vld [vmem:[%s11603_s1 + $0xb84] sm:$0xf]  ;;  %v6330_v34 = vld [vmem:[%s11603_s1 + $0xc90] sm:$0xf0]  ;;  %v6077_v49 = vor.u32 %v7386_v25, %v6074_v26 }
  0xe6   :  { %3973 = vmatpush.bf16.msra.mxu3 %v5885_v50  ;;  %3932 = vmatmul.bf16.vlgmr.msra.gmra.mxu0 %v8140_v43  ;;  %v7450_v33 = vld [vmem:[%s11603_s1 + $0xc84] sm:$0xf]  ;;  %v6458_v42 = vld [vmem:[%s11603_s1 + $0xd90] sm:$0xf0]  ;;  %v6205_v50 = vor.u32 %v7418_v27, %v6202_v30  ;;  %v9322_v11 = vpop.f32.mrf.mxu1 }
  0xe7   :  { %3980 = vmatpush.bf16.msrb.mxu0 %v6125_v52  ;;  %3946 = vmatmul.bf16.vlgmr.msra.gmra.mxu1 %v8150_v47  ;;  %v7482_v37 = vld [vmem:[%s11603_s1 + $0xd84] sm:$0xf]  ;;  %v6333_v52 = vor.u32 %v7450_v33, %v6330_v34  ;;  %v6186_v57 = vld [vmem:[%s11603_s1 + $0xb70] sm:$0xf0] }
  0xe8   :  { %3994 = vmatpush.bf16.msrb.mxu1 %v6253_v53  ;;  %3960 = vmatmul.bf16.vlgmr.msra.gmra.mxu2 %v8357_v31  ;;  %v7382_v53 = vld [vmem:[%s11603_s1 + $0xa64] sm:$0xf]  ;;  %v6461_v56 = vor.u32 %v7482_v37, %v6458_v42  ;;  %v6314_v60 = vld [vmem:[%s11603_s1 + $0xc70] sm:$0xf0] }
  0xe9   :  { %4008 = vmatpush.bf16.msrb.mxu2 %v6381_v54  ;;  %3974 = vmatmul.bf16.vlgmr.msra.gmra.mxu3 %v8370_v36  ;;  %v6058_v54 = vld [vmem:[%s11603_s1 + $0xa70] sm:$0xf0]  ;;  %v7414_v55 = vld [vmem:[%s11603_s1 + $0xb64] sm:$0xf] }
  0xea   :  { %4022 = vmatpush.bf16.msrb.mxu3 %v6509_v59  ;;  %v7446_v59 = vld [vmem:[%s11603_s1 + $0xc64] sm:$0xf]  ;;  %v6442_v63 = vld [vmem:[%s11603_s1 + $0xd70] sm:$0xf0]  ;;  %v6061_v0 = vor.u32 %v7382_v53, %v6058_v54 }
  0xeb   :  { %3981 = vmatpush.bf16.msrb.mxu0 %v6109_v2  ;;  %v7478_v62 = vld [vmem:[%s11603_s1 + $0xd64] sm:$0xf]  ;;  %v9308_v2 = vpop.f32.mrf.mxu0  ;;  %v6042_v7 = vld [vmem:[%s11603_s1 + $0xa50] sm:$0xf0] }
  0xec   :  { %3995 = vmatpush.bf16.msrb.mxu1 %v6237_v4  ;;  %v6189_v4 = vor.u32 %v7414_v55, %v6186_v57  ;;  %v7378_v6 = vld [vmem:[%s11603_s1 + $0xa44] sm:$0xf]  ;;  %v6445_v12 = vor.u32 %v7478_v62, %v6442_v63  ;;  %v6170_v13 = vld [vmem:[%s11603_s1 + $0xb50] sm:$0xf0]  ;;  %v9372_v55 = vpop.f32.mrf.mxu2 }
  0xed   :  { %4009 = vmatpush.bf16.msrb.mxu2 %v6365_v5  ;;  %v6317_v5 = vor.u32 %v7446_v59, %v6314_v60  ;;  %v7410_v8 = vld [vmem:[%s11603_s1 + $0xb44] sm:$0xf]  ;;  %v6298_v16 = vld [vmem:[%s11603_s1 + $0xc50] sm:$0xf0] }
  0xee   :  { %4023 = vmatpush.bf16.msrb.mxu3 %v6493_v9  ;;  %v3598_v9 = vadd.f32 %v9164_v24, %v610_v48  ;;  %v7442_v15 = vld [vmem:[%s11603_s1 + $0xc44] sm:$0xf]  ;;  %v6173_v25 = vor.u32 %v7410_v8, %v6170_v13  ;;  %v6154_v37 = vld [vmem:[%s11603_s1 + $0xb30] sm:$0xf0]  ;;  %v9407_v13 = vpop.f32.mrf.mxu1 }
  0xef   :  { %3982 = vmatpush.bf16.msrb.mxu0 %v6093_v20  ;;  %v9333_v20 = vpop.f32.mrf.mxu3  ;;  %v7474_v24 = vld [vmem:[%s11603_s1 + $0xd44] sm:$0xf]  ;;  %v6301_v26 = vor.u32 %v7442_v15, %v6298_v16  ;;  %v6010_v54 = vld [vmem:[%s11603_s1 + $0xa10] sm:$0xf0] }
  0xf0   :  { %3996 = vmatpush.bf16.msrb.mxu1 %v6221_v22  ;;  %v6426_v22 = vld [vmem:[%s11603_s1 + $0xd50] sm:$0xf0]  ;;  %v7374_v27 = vld [vmem:[%s11603_s1 + $0xa24] sm:$0xf]  ;;  %v3612_v33 = vadd.f32 %v9175_v28, %v3598_v9 }
  0xf1   :  { %4010 = vmatpush.bf16.msrb.mxu2 %v6349_v23  ;;  %v6045_v23 = vor.u32 %v7378_v6, %v6042_v7  ;;  %v7406_v30 = vld [vmem:[%s11603_s1 + $0xb24] sm:$0xf]  ;;  %v6429_v34 = vor.u32 %v7474_v24, %v6426_v22  ;;  %v6410_v28 = vld [vmem:[%s11603_s1 + $0xd30] sm:$0xf0] }
  0xf2   :  { %4024 = vmatpush.bf16.msrb.mxu3 %v6477_v29  ;;  %v6026_v29 = vld [vmem:[%s11603_s1 + $0xa30] sm:$0xf0]  ;;  %v7438_v42 = vld [vmem:[%s11603_s1 + $0xc24] sm:$0xf]  ;;  %v3626_v63 = vadd.f32 %v9216_v3, %v3612_v33 }
  0xf3   :  { %3983 = vmatpush.bf16.msrb.mxu0 %v6077_v49  ;;  %v6282_v49 = vld [vmem:[%s11603_s1 + $0xc30] sm:$0xf0]  ;;  %v7370_v53 = vld [vmem:[%s11603_s1 + $0xa04] sm:$0xf]  ;;  %v9393_v7 = vpop.f32.mrf.mxu0 }
  0xf4   :  { %3997 = vmatpush.bf16.msrb.mxu1 %v6205_v50  ;;  %v7470_v50 = vld [vmem:[%s11603_s1 + $0xd24] sm:$0xf]  ;;  %v6285_v57 = vor.u32 %v7438_v42, %v6282_v49  ;;  %v6138_v60 = vld [vmem:[%s11603_s1 + $0xb10] sm:$0xf0]  ;;  %v6013_v15 = vor.u32 %v7370_v53, %v6010_v54 }
  0xf5   :  { %4011 = vmatpush.bf16.msrb.mxu2 %v6333_v52  ;;  %v6029_v52 = vor.u32 %v7374_v27, %v6026_v29  ;;  %v7402_v59 = vld [vmem:[%s11603_s1 + $0xb04] sm:$0xf]  ;;  %v6394_v6 = vld [vmem:[%s11603_s1 + $0xd10] sm:$0xf0] }
  0xf6   :  { %4025 = vmatpush.bf16.msrb.mxu3 %v6461_v56  ;;  %v6157_v56 = vor.u32 %v7406_v30, %v6154_v37  ;;  %v7434_v62 = vld [vmem:[%s11603_s1 + $0xc04] sm:$0xf]  ;;  %v6634_v8 = vld [vmem:[%s11603_s1 + $0xef0] sm:$0xf0] }
  0xf7   :  { %3984 = vmatpush.bf16.msrb.mxu0 %v6061_v0  ;;  %v6413_v0 = vor.u32 %v7470_v50, %v6410_v28  ;;  %v7526_v3 = vld [vmem:[%s11603_s1 + $0xee4] sm:$0xf]  ;;  %v6762_v16 = vld [vmem:[%s11603_s1 + $0xff0] sm:$0xf0] }
  0xf8   :  { %3998 = vmatpush.bf16.msrb.mxu1 %v6189_v4  ;;  %v6266_v4 = vld [vmem:[%s11603_s1 + $0xc10] sm:$0xf0]  ;;  %v7558_v9 = vld [vmem:[%s11603_s1 + $0xfe4] sm:$0xf]  ;;  %v6637_v29 = vor.u32 %v7526_v3, %v6634_v8 }
  0xf9   :  { %4012 = vmatpush.bf16.msrb.mxu2 %v6317_v5  ;;  %v7466_v5 = vld [vmem:[%s11603_s1 + $0xd04] sm:$0xf]  ;;  %v6890_v22 = vld [vmem:[%s11603_s1 + $0x10f0] sm:$0xf0]  ;;  %v6269_v18 = vor.u32 %v7434_v62, %v6266_v4  ;;  %v6765_v30 = vor.u32 %v7558_v9, %v6762_v16 }
  0xfa   :  { %4026 = vmatpush.bf16.msrb.mxu3 %v6445_v12  ;;  %v3600_v12 = vadd.f32 %v9237_v14, %v610_v48  ;;  %v7590_v24 = vld [vmem:[%s11603_s1 + $0x10e4] sm:$0xf]  ;;  %v6141_v14 = vor.u32 %v7402_v59, %v6138_v60  ;;  %v6397_v27 = vor.u32 %v7466_v5, %v6394_v6  ;;  %v6618_v37 = vld [vmem:[%s11603_s1 + $0xed0] sm:$0xf0]  ;;  %v9467_v5 = vpop.f32.mrf.mxu1 }
  0xfb   :  { %3985 = vmatpush.bf16.msrb.mxu0 %v6045_v23  ;;  %v9418_v23 = vpop.f32.mrf.mxu3  ;;  %v7622_v48 = vld [vmem:[%s11603_s1 + $0x11e4] sm:$0xf]  ;;  %v6893_v33 = vor.u32 %v7590_v24, %v6890_v22  ;;  %v6746_v50 = vld [vmem:[%s11603_s1 + $0xfd0] sm:$0xf0]  ;;  %v9455_v59 = vpop.f32.mrf.mxu0 }
  0xfc   :  { %3999 = vmatpush.bf16.msrb.mxu1 %v6173_v25  ;;  %v7018_v25 = vld [vmem:[%s11603_s1 + $0x11f0] sm:$0xf0]  ;;  %v7554_v42 = vld [vmem:[%s11603_s1 + $0xfc4] sm:$0xf]  ;;  %v3614_v49 = vadd.f32 %v9252_v19, %v3600_v12 }
  0xfd   :  { %4013 = vmatpush.bf16.msrb.mxu2 %v6301_v26  ;;  %v3640_v26 = vadd.f32 %v9255_v21, %v3626_v63  ;;  %v7021_v21 = vor.u32 %v7622_v48, %v7018_v25  ;;  %v7586_v28 = vld [vmem:[%s11603_s1 + $0x10c4] sm:$0xf]  ;;  %v7002_v53 = vld [vmem:[%s11603_s1 + $0x11d0] sm:$0xf0]  ;;  %v6749_v60 = vor.u32 %v7554_v42, %v6746_v50 }
  0xfe   :  { %4027 = vmatpush.bf16.msrb.mxu3 %v6429_v34  ;;  %v7522_v34 = vld [vmem:[%s11603_s1 + $0xec4] sm:$0xf]  ;;  %v3628_v4 = vadd.f32 %v9300_v61, %v3614_v49  ;;  %v6730_v3 = vld [vmem:[%s11603_s1 + $0xfb0] sm:$0xf0] }
  0xff   :  { %3986 = vmatpush.bf16.msrb.mxu0 %v6029_v52  ;;  %v6874_v52 = vld [vmem:[%s11603_s1 + $0x10d0] sm:$0xf0]  ;;  %v7618_v19 = vld [vmem:[%s11603_s1 + $0x11c4] sm:$0xf]  ;;  %v3654_v54 = vadd.f32 %v9308_v2, %v3640_v26 }
 0x100   :  { %4000 = vmatpush.bf16.msrb.mxu1 %v6157_v56  ;;  %v6621_v56 = vor.u32 %v7522_v34, %v6618_v37  ;;  %v6877_v62 = vor.u32 %v7586_v28, %v6874_v52  ;;  %v7518_v63 = vld [vmem:[%s11603_s1 + $0xea4] sm:$0xf]  ;;  %v7005_v6 = vor.u32 %v7618_v19, %v7002_v53  ;;  %v6858_v9 = vld [vmem:[%s11603_s1 + $0x10b0] sm:$0xf0]  ;;  %v3642_v25 = vadd.f32 %v9333_v20, %v3628_v4 }
 0x101   :  { %4014 = vmatpush.bf16.msrb.mxu2 %v6285_v57  ;;  %v9453_v57 = vpop.f32.mrf.mxu2  ;;  %v7550_v2 = vld [vmem:[%s11603_s1 + $0xfa4] sm:$0xf]  ;;  %v6986_v12 = vld [vmem:[%s11603_s1 + $0x11b0] sm:$0xf0] }
 0x102   :  { %4028 = vmatpush.bf16.msrb.mxu3 %v6413_v0  ;;  %v6602_v0 = vld [vmem:[%s11603_s1 + $0xeb0] sm:$0xf0]  ;;  %v7582_v8 = vld [vmem:[%s11603_s1 + $0x10a4] sm:$0xf]  ;;  %v6733_v22 = vor.u32 %v7550_v2, %v6730_v3 }
 0x103   :  { %3987 = vmatpush.bf16.msrb.mxu0 %v6013_v15  ;;  %v7614_v61 = vld [vmem:[%s11603_s1 + $0x11a4] sm:$0xf]  ;;  %v3668_v15 = vadd.f32 %v9322_v11, %v3654_v54  ;;  %v6605_v16 = vor.u32 %v7518_v63, %v6602_v0  ;;  %v9489_v24 = vpop.f32.mrf.mxu3  ;;  %v6586_v48 = vld [vmem:[%s11603_s1 + $0xe90] sm:$0xf0]  ;;  %v9543_v0 = vpop.f32.mrf.mxu1 }
 0x104   :  { %4001 = vmatpush.bf16.msrb.mxu1 %v6141_v14  ;;  %v6861_v14 = vor.u32 %v7582_v8, %v6858_v9  ;;  %v7546_v11 = vld [vmem:[%s11603_s1 + $0xf84] sm:$0xf]  ;;  %v6989_v26 = vor.u32 %v7614_v61, %v6986_v12  ;;  %v6970_v20 = vld [vmem:[%s11603_s1 + $0x1190] sm:$0xf0] }
 0x105   :  { %4015 = vmatpush.bf16.msrb.mxu2 %v6269_v18  ;;  %v7514_v18 = vld [vmem:[%s11603_s1 + $0xe84] sm:$0xf]  ;;  %v3682_v34 = vadd.f32 %v9372_v55, %v3668_v15  ;;  %v6570_v28 = vld [vmem:[%s11603_s1 + $0xe70] sm:$0xf0]  ;;  %v3656_v55 = vadd.f32 %v9393_v7, %v3642_v25 }
 0x106   :  { %4029 = vmatpush.bf16.msrb.mxu3 %v6397_v27  ;;  %3988 = vmatmul.bf16.vlgmr.msrb.gmra.mxu0 %v8368_v35  ;;  %v6714_v27 = vld [vmem:[%s11603_s1 + $0xf90] sm:$0xf0]  ;;  %v6589_v37 = vor.u32 %v7514_v18, %v6586_v48  ;;  %v7510_v50 = vld [vmem:[%s11603_s1 + $0xe64] sm:$0xf] }
 0x107   :  { %4036 = vmatpush.bf16.msra.mxu0 %v6637_v29  ;;  %4002 = vmatmul.bf16.vlgmr.msrb.gmra.mxu1 %v8378_v40  ;;  %v7578_v29 = vld [vmem:[%s11603_s1 + $0x1084] sm:$0xf]  ;;  %v6717_v49 = vor.u32 %v7546_v11, %v6714_v27  ;;  %v6698_v53 = vld [vmem:[%s11603_s1 + $0xf70] sm:$0xf0]  ;;  %v3696_v63 = vadd.f32 %v9418_v23, %v3682_v34  ;;  %v6573_v2 = vor.u32 %v7510_v50, %v6570_v28 }
 0x108   :  { %4050 = vmatpush.bf16.msra.mxu1 %v6765_v30  ;;  %4016 = vmatmul.bf16.vlgmr.msrb.gmra.mxu2 %v8585_v32  ;;  %v6842_v30 = vld [vmem:[%s11603_s1 + $0x1090] sm:$0xf0]  ;;  %v7542_v52 = vld [vmem:[%s11603_s1 + $0xf64] sm:$0xf]  ;;  %v3670_v61 = vadd.f32 %v9407_v13, %v3656_v55 }
 0x109   :  { %4064 = vmatpush.bf16.msra.mxu2 %v6893_v33  ;;  %4030 = vmatmul.bf16.vlgmr.msrb.gmra.mxu3 %v8598_v41  ;;  %v7610_v33 = vld [vmem:[%s11603_s1 + $0x1184] sm:$0xf]  ;;  %v3737_v42 = vpop.f32.mrf.mxu2  ;;  %v6954_v7 = vld [vmem:[%s11603_s1 + $0x1170] sm:$0xf0]  ;;  %v3710_v12 = vadd.f32 %v9455_v59, %v3696_v63 }
 0x10a   :  { %4078 = vmatpush.bf16.msra.mxu3 %v7021_v21  ;;  %v6845_v21 = vor.u32 %v7578_v29, %v6842_v30  ;;  %v6973_v19 = vor.u32 %v7610_v33, %v6970_v20  ;;  %v7574_v54 = vld [vmem:[%s11603_s1 + $0x1064] sm:$0xf]  ;;  %v6554_v9 = vld [vmem:[%s11603_s1 + $0xe50] sm:$0xf0]  ;;  %v3684_v18 = vadd.f32 %v9453_v57, %v3670_v61 }
 0x10b   :  { %4037 = vmatpush.bf16.msra.mxu0 %v6621_v56  ;;  %v6826_v56 = vld [vmem:[%s11603_s1 + $0x1070] sm:$0xf0]  ;;  %v3751_v4 = vpop.f32.mrf.mxu3  ;;  %v7506_v8 = vld [vmem:[%s11603_s1 + $0xe44] sm:$0xf]  ;;  %v3724_v57 = vadd.f32 %v9467_v5, %v3710_v12 }
 0x10c   :  { %4051 = vmatpush.bf16.msra.mxu1 %v6749_v60  ;;  %v3711_v60 = vpop.f32.mrf.mxu0  ;;  %v6829_v3 = vor.u32 %v7574_v54, %v6826_v56  ;;  %v7538_v23 = vld [vmem:[%s11603_s1 + $0xf44] sm:$0xf]  ;;  %v6938_v59 = vld [vmem:[%s11603_s1 + $0x1150] sm:$0xf0]  ;;  %v6557_v48 = vor.u32 %v7506_v8, %v6554_v9  ;;  %v3698_v50 = vadd.f32 %v9489_v24, %v3684_v18  ;;  %v4848_v9 = vld [vmem:[%s11603_s1 + $0xe8] sm:$0xf] }
 0x10d   :  { %4065 = vmatpush.bf16.msra.mxu2 %v6877_v62  ;;  %v7606_v62 = vld [vmem:[%s11603_s1 + $0x1164] sm:$0xf]  ;;  %v6538_v27 = vld [vmem:[%s11603_s1 + $0xe30] sm:$0xf0]  ;;  %v3738_v28 = vadd.f32 %v3737_v42, %v3724_v57  ;;  %v4832_v57 = vld [vmem:[%s11603_s1 + $0xc8] sm:$0xf] }
 0x10e   :  { %4079 = vmatpush.bf16.msra.mxu3 %v7005_v6  ;;  %v6701_v6 = vor.u32 %v7542_v52, %v6698_v53  ;;  %v6957_v15 = vor.u32 %v7606_v62, %v6954_v7  ;;  %v7602_v13 = vld [vmem:[%s11603_s1 + $0x1144] sm:$0xf]  ;;  %v6666_v33 = vld [vmem:[%s11603_s1 + $0xf30] sm:$0xf0]  ;;  %v3779_v52 = vpop.f32.mrf.mxu1  ;;  %v3712_v7 = vadd.f32 %v3711_v60, %v3698_v50  ;;  %v7081_v60 = vld [vmem:[%s11603_s1 + $0xf4] sm:$0xf0] }
 0x10f   :  { %4038 = vmatpush.bf16.msra.mxu0 %v6605_v16  ;;  %v6682_v16 = vld [vmem:[%s11603_s1 + $0xf50] sm:$0xf0]  ;;  %v7534_v29 = vld [vmem:[%s11603_s1 + $0xf24] sm:$0xf]  ;;  %v6941_v30 = vor.u32 %v7602_v13, %v6938_v59  ;;  %v3752_v61 = vadd.f32 %v3751_v4, %v3738_v28  ;;  %v5232_v4 = vld [vmem:[%s11603_s1 + $0x3e8] sm:$0xf] }
 0x110   :  { %4052 = vmatpush.bf16.msra.mxu1 %v6733_v22  ;;  %v7570_v22 = vld [vmem:[%s11603_s1 + $0x1044] sm:$0xf]  ;;  %v6685_v11 = vor.u32 %v7538_v23, %v6682_v16  ;;  %v6794_v34 = vld [vmem:[%s11603_s1 + $0x1030] sm:$0xf0]  ;;  %v6669_v54 = vor.u32 %v7534_v29, %v6666_v33  ;;  %v4976_v23 = vld [vmem:[%s11603_s1 + $0x1e8] sm:$0xf]  ;;  %v3726_v18 = vadd.f32 %v9543_v0, %v3712_v7 }
 0x111   :  { %4066 = vmatpush.bf16.msra.mxu2 %v6861_v14  ;;  %v6810_v14 = vld [vmem:[%s11603_s1 + $0x1050] sm:$0xf0]  ;;  %v7566_v20 = vld [vmem:[%s11603_s1 + $0x1024] sm:$0xf]  ;;  %v5104_v16 = vld [vmem:[%s11603_s1 + $0x2e8] sm:$0xf] }
 0x112   :  { %4080 = vmatpush.bf16.msra.mxu3 %v6989_v26  ;;  %v6813_v25 = vor.u32 %v7570_v22, %v6810_v14  ;;  %v7502_v26 = vld [vmem:[%s11603_s1 + $0xe24] sm:$0xf]  ;;  %v6522_v53 = vld [vmem:[%s11603_s1 + $0xe10] sm:$0xf0]  ;;  %v6797_v56 = vor.u32 %v7566_v20, %v6794_v34  ;;  %v7145_v22 = vld [vmem:[%s11603_s1 + $0x2f4] sm:$0xf0] }
 0x113   :  { %4039 = vmatpush.bf16.msra.mxu0 %v6589_v37  ;;  %v3739_v37 = vpop.f32.mrf.mxu2  ;;  %v7598_v5 = vld [vmem:[%s11603_s1 + $0x1124] sm:$0xf]  ;;  %v6541_v55 = vor.u32 %v7502_v26, %v6538_v27  ;;  %v6650_v42 = vld [vmem:[%s11603_s1 + $0xf10] sm:$0xf0]  ;;  %v3753_v8 = vpop.f32.mrf.mxu3  ;;  %v7177_v59 = vld [vmem:[%s11603_s1 + $0x3f4] sm:$0xf0]  ;;  %v5105_v29 = vor.u32 %v7145_v22, %v5104_v16 }
 0x114   :  { %4053 = vmatpush.bf16.msra.mxu1 %v6717_v49  ;;  %v3765_v49 = vpop.f32.mrf.mxu0  ;;  %v7530_v24 = vld [vmem:[%s11603_s1 + $0xf04] sm:$0xf]  ;;  %v4960_v33 = vld [vmem:[%s11603_s1 + $0x1c8] sm:$0xf]  ;;  %v3740_v0 = vadd.f32 %v3739_v37, %v3726_v18  ;;  %v5233_v20 = vor.u32 %v7177_v59, %v5232_v4  ;;  %v7109_v34 = vld [vmem:[%s11603_s1 + $0x1d4] sm:$0xf0] }
 0x115   :  { %4067 = vmatpush.bf16.msra.mxu2 %v6845_v21  ;;  %v6922_v21 = vld [vmem:[%s11603_s1 + $0x1130] sm:$0xf0]  ;;  %v7562_v62 = vld [vmem:[%s11603_s1 + $0x1004] sm:$0xf]  ;;  %v6653_v14 = vor.u32 %v7530_v24, %v6650_v42  ;;  %v5216_v37 = vld [vmem:[%s11603_s1 + $0x3c8] sm:$0xf] }
 0x116   :  { %4081 = vmatpush.bf16.msra.mxu3 %v6973_v19  ;;  %v7498_v19 = vld [vmem:[%s11603_s1 + $0xe04] sm:$0xf]  ;;  %v6925_v63 = vor.u32 %v7598_v5, %v6922_v21  ;;  %v7141_v5 = vld [vmem:[%s11603_s1 + $0x2d4] sm:$0xf0]  ;;  %v4816_v24 = vld [vmem:[%s11603_s1 + $0xa8] sm:$0xf] }
 0x117   :  { %4040 = vmatpush.bf16.msra.mxu0 %v6573_v2  ;;  %v6778_v2 = vld [vmem:[%s11603_s1 + $0x1010] sm:$0xf0]  ;;  %v6525_v12 = vor.u32 %v7498_v19, %v6522_v53  ;;  %v7173_v50 = vld [vmem:[%s11603_s1 + $0x3d4] sm:$0xf0]  ;;  %v4928_v22 = vld [vmem:[%s11603_s1 + $0x188] sm:$0xf] }
 0x118   :  { %4054 = vmatpush.bf16.msra.mxu1 %v6701_v6  ;;  %v7594_v6 = vld [vmem:[%s11603_s1 + $0x1104] sm:$0xf]  ;;  %v6781_v13 = vor.u32 %v7562_v62, %v6778_v2  ;;  %v7073_v42 = vld [vmem:[%s11603_s1 + $0xb4] sm:$0xf0]  ;;  %v3754_v62 = vadd.f32 %v3753_v8, %v3740_v0  ;;  %v5200_v8 = vld [vmem:[%s11603_s1 + $0x3a8] sm:$0xf] }
 0x119   :  { %4068 = vmatpush.bf16.msra.mxu2 %v6829_v3  ;;  %v6906_v3 = vld [vmem:[%s11603_s1 + $0x1110] sm:$0xf0]  ;;  %v7105_v2 = vld [vmem:[%s11603_s1 + $0x1b4] sm:$0xf0]  ;;  %v5056_v18 = vld [vmem:[%s11603_s1 + $0x288] sm:$0xf] }
 0x11a   :  { %4082 = vmatpush.bf16.msra.mxu3 %v6957_v15  ;;  %v7113_v15 = vld [vmem:[%s11603_s1 + $0x1f4] sm:$0xf0] }
 0x11b   :  { %4041 = vmatpush.bf16.msra.mxu0 %v6557_v48  ;;  %v3766_v48 = vadd.f32 %v3765_v49, %v3752_v61  ;;  %v3793_v26 = vpop.f32.mrf.mxu2  ;;  %v4977_v27 = vor.u32 %v7113_v15, %v4976_v23  ;;  %v5088_v49 = vld [vmem:[%s11603_s1 + $0x2c8] sm:$0xf]  ;;  %v3807_v53 = vpop.f32.mrf.mxu3  ;;  %v4817_v23 = vor.u32 %v7073_v42, %v4816_v24  ;;  %v7101_v59 = vld [vmem:[%s11603_s1 + $0x194] sm:$0xf0] }
 0x11c   :  { %4055 = vmatpush.bf16.msra.mxu1 %v6685_v11  ;;  %v6909_v11 = vor.u32 %v7594_v6, %v6906_v3  ;;  %v3767_v21 = vpop.f32.mrf.mxu0  ;;  %v5072_v6 = vld [vmem:[%s11603_s1 + $0x2a8] sm:$0xf]  ;;  %v7137_v3 = vld [vmem:[%s11603_s1 + $0x2b4] sm:$0xf0] }
 0x11d   :  { %4069 = vmatpush.bf16.msra.mxu2 %v6813_v25  ;;  %v4849_v25 = vor.u32 %v7081_v60, %v4848_v9  ;;  %v3780_v28 = vadd.f32 %v3779_v52, %v3766_v48  ;;  %v4944_v52 = vld [vmem:[%s11603_s1 + $0x1a8] sm:$0xf]  ;;  %v7169_v9 = vld [vmem:[%s11603_s1 + $0x3b4] sm:$0xf0]  ;;  %v3768_v60 = vadd.f32 %v3767_v21, %v3754_v62  ;;  %v5073_v16 = vor.u32 %v7137_v3, %v5072_v6 }
 0x11e   :  { %4083 = vmatpush.bf16.msra.mxu3 %v6941_v30  ;;  %v7077_v30 = vld [vmem:[%s11603_s1 + $0xd4] sm:$0xf0]  ;;  %v4800_v61 = vld [vmem:[%s11603_s1 + $0x88] sm:$0xf]  ;;  %v4945_v15 = vor.u32 %v7105_v2, %v4944_v52  ;;  %v5201_v4 = vor.u32 %v7169_v9, %v5200_v8 }
 0x11f   :  { %4042 = vmatpush.bf16.msra.mxu0 %v6541_v55  ;;  %v3781_v55 = vpop.f32.mrf.mxu1  ;;  %v4833_v19 = vor.u32 %v7077_v30, %v4832_v57  ;;  %v3794_v7 = vadd.f32 %v3793_v26, %v3780_v28  ;;  %v7133_v48 = vld [vmem:[%s11603_s1 + $0x294] sm:$0xf0]  ;;  %v5184_v26 = vld [vmem:[%s11603_s1 + $0x388] sm:$0xf] }
 0x120   :  { %4056 = vmatpush.bf16.msra.mxu1 %v6669_v54  ;;  %v4961_v54 = vor.u32 %v7109_v34, %v4960_v33  ;;  %v4929_v34 = vor.u32 %v7101_v59, %v4928_v22  ;;  %v7065_v21 = vld [vmem:[%s11603_s1 + $0x74] sm:$0xf0]  ;;  %v5168_v24 = vld [vmem:[%s11603_s1 + $0x368] sm:$0xf] }
 0x121   :  { %4070 = vmatpush.bf16.msra.mxu2 %v6797_v56  ;;  %v5089_v56 = vor.u32 %v7141_v5, %v5088_v49  ;;  %v5057_v49 = vor.u32 %v7133_v48, %v5056_v18  ;;  %v4784_v5 = vld [vmem:[%s11603_s1 + $0x68] sm:$0xf]  ;;  %v7161_v42 = vld [vmem:[%s11603_s1 + $0x374] sm:$0xf0] }
 0x122   :  { %4084 = vmatpush.bf16.msra.mxu3 %v6925_v63  ;;  %v5217_v63 = vor.u32 %v7173_v50, %v5216_v37  ;;  %v4912_v37 = vld [vmem:[%s11603_s1 + $0x168] sm:$0xf]  ;;  %v7061_v3 = vld [vmem:[%s11603_s1 + $0x54] sm:$0xf0] }
 0x123   :  { %4043 = vmatpush.bf16.msra.mxu0 %v6525_v12  ;;  %v7069_v12 = vld [vmem:[%s11603_s1 + $0x94] sm:$0xf0]  ;;  %v4768_v6 = vld [vmem:[%s11603_s1 + $0x48] sm:$0xf] }
 0x124   :  { %4057 = vmatpush.bf16.msra.mxu1 %v6653_v14  ;;  %v9711_v14 = vld [vmem:[%s11605_s2 + $0x1] ss:$4 sm:$0xf]  ;;  %v4801_v30 = vor.u32 %v7069_v12, %v4800_v61  ;;  %v7093_v61 = vld [vmem:[%s11603_s1 + $0x154] sm:$0xf0]  ;;  %v4769_v18 = vor.u32 %v7061_v3, %v4768_v6 }
 0x125   :  { %4071 = vmatpush.bf16.msra.mxu2 %v6781_v13  ;;  %v3808_v13 = vadd.f32 %v3807_v53, %v3794_v7  ;;  %v4607_v0 = vperm.slane %v9711_v14, 0  ;;  %v5040_v53 = vld [vmem:[%s11603_s1 + $0x268] sm:$0xf]  ;;  %v4785_v7 = vor.u32 %v7065_v21, %v4784_v5  ;;  %v7153_v5 = vld [vmem:[%s11603_s1 + $0x334] sm:$0xf0] }
 0x126   :  { %4085 = vmatpush.bf16.msra.mxu3 %v6909_v11  ;;  %4044 = vmatmul.bf16.vlgmr.msra.gmra.mxu0 %v8596_v38  ;;  %v3795_v11 = vpop.f32.mrf.mxu2  ;;  %v4896_v8 = vld [vmem:[%s11603_s1 + $0x148] sm:$0xf]  ;;  %v7209_v14 = vld [vmem:[%s11603_s1 + $0x4f4] sm:$0xf0] }
 0x127   :  { %4092 = vmatpush.bf16.msrb.mxu0 %v4849_v25  ;;  %4058 = vmatmul.bf16.vlgmr.msra.gmra.mxu1 %v8606_v46  ;;  %v3821_v25 = vpop.f32.mrf.mxu0  ;;  %v3835_v33 = vpop.f32.mrf.mxu1  ;;  %v5024_v12 = vld [vmem:[%s11603_s1 + $0x248] sm:$0xf] }
 0x128   :  { %4106 = vmatpush.bf16.msrb.mxu1 %v4977_v27  ;;  %4072 = vmatmul.bf16.vlgmr.msra.gmra.mxu2 %v8801_v45  ;;  %v7165_v27 = vld [vmem:[%s11603_s1 + $0x394] sm:$0xf0]  ;;  %v3822_v57 = vadd.f32 %v3821_v25, %v3808_v13  ;;  %v5152_v22 = vld [vmem:[%s11603_s1 + $0x348] sm:$0xf] }
 0x129   :  { %4120 = vmatpush.bf16.msrb.mxu2 %v5105_v29  ;;  %4086 = vmatmul.bf16.vlgmr.msra.gmra.mxu3 %v8812_v51  ;;  %v3782_v29 = vadd.f32 %v3781_v55, %v3768_v60  ;;  %v5185_v28 = vor.u32 %v7165_v27, %v5184_v26  ;;  %v7157_v13 = vld [vmem:[%s11603_s1 + $0x354] sm:$0xf0]  ;;  %v4752_v26 = vld [vmem:[%s11603_s1 + $0x28] sm:$0xf] }
 0x12a   :  { %4134 = vmatpush.bf16.msrb.mxu3 %v5233_v20  ;;  %v9732_v20 = vld [vmem:[%s11605_s2 + $0x2] ss:$4 sm:$0xf]  ;;  %v3836_v55 = vadd.f32 %v3835_v33, %v3822_v57  ;;  %v7057_v27 = vld [vmem:[%s11603_s1 + $0x34] sm:$0xf0]  ;;  %v5153_v57 = vor.u32 %v7157_v13, %v5152_v22 }
 0x12b   :  { %4093 = vmatpush.bf16.msrb.mxu0 %v4833_v19  ;;  %v3796_v50 = vadd.f32 %v3795_v11, %v3782_v29  ;;  %v7097_v19 = vld [vmem:[%s11603_s1 + $0x174] sm:$0xf0]  ;;  %v4626_v62 = vperm.slane %v9732_v20, 0  ;;  %v4897_v11 = vor.u32 %v7093_v61, %v4896_v8  ;;  %v4880_v29 = vld [vmem:[%s11603_s1 + $0x128] sm:$0xf] }
 0x12c   :  { %4107 = vmatpush.bf16.msrb.mxu1 %v4961_v54  ;;  %v7129_v54 = vld [vmem:[%s11603_s1 + $0x274] sm:$0xf0]  ;;  %v4596_v52 = vmax.f32 %v3836_v55, 0.0  ;;  %v5008_v20 = vld [vmem:[%s11603_s1 + $0x228] sm:$0xf] }
 0x12d   :  { %4121 = vmatpush.bf16.msrb.mxu2 %v5089_v56  ;;  %v3809_v56 = vpop.f32.mrf.mxu3  ;;  %v5041_v2 = vor.u32 %v7129_v54, %v5040_v53  ;;  %v7089_v33 = vld [vmem:[%s11603_s1 + $0x134] sm:$0xf0]  ;;  %v4864_v53 = vld [vmem:[%s11603_s1 + $0x108] sm:$0xf] }
 0x12e   :  { %4135 = vmatpush.bf16.msrb.mxu3 %v5217_v63  ;;  %v4913_v63 = vor.u32 %v7097_v19, %v4912_v37  ;;  %v3810_v9 = vadd.f32 %v3809_v56, %v3796_v50  ;;  %v4615_v60 = vmul.f32 %v4607_v0, %v4596_v52  ;;  %v4753_v37 = vor.u32 %v7057_v27, %v4752_v26  ;;  %v4736_v50 = vld [vmem:[%s11603_s1 + $0x8] sm:$0xf]  ;;  %v7085_v54 = vld [vmem:[%s11603_s1 + $0x114] sm:$0xf0] }
 0x12f   :  { %4094 = vmatpush.bf16.msrb.mxu0 %v4817_v23  ;;  %v5169_v23 = vor.u32 %v7161_v42, %v5168_v24  ;;  %v3837_v48 = vpop.f32.mrf.mxu1  ;;  %v4881_v55 = vor.u32 %v7089_v33, %v4880_v29  ;;  %v4992_v56 = vld [vmem:[%s11603_s1 + $0x208] sm:$0xf]  ;;  %v7117_v52 = vld [vmem:[%s11603_s1 + $0x214] sm:$0xf0] }
 0x130   :  { %4108 = vmatpush.bf16.msrb.mxu1 %v4945_v15  ;;  %v7125_v15 = vld [vmem:[%s11603_s1 + $0x254] sm:$0xf0]  ;;  %v4993_v61 = vor.u32 %v7117_v52, %v4992_v56  ;;  %v5728_v27 = vld [vmem:[%s11603_s1 + $0x7c8] sm:$0xf] }
 0x131   :  { %4122 = vmatpush.bf16.msrb.mxu2 %v5073_v16  ;;  %v3823_v16 = vpop.f32.mrf.mxu0  ;;  %v5025_v25 = vor.u32 %v7125_v15, %v5024_v12  ;;  %v7241_v8 = vld [vmem:[%s11603_s1 + $0x5f4] sm:$0xf0]  ;;  %v5312_v56 = vld [vmem:[%s11603_s1 + $0x488] sm:$0xf] }
 0x132   :  { %4136 = vmatpush.bf16.msrb.mxu3 %v5201_v4  ;;  %v4634_v4 = vadd.f32 %v4626_v62, %v4615_v60  ;;  %v3824_v59 = vadd.f32 %v3823_v16, %v3810_v9  ;;  %v5616_v9 = vld [vmem:[%s11603_s1 + $0x6e8] sm:$0xf]  ;;  %v7273_v60 = vld [vmem:[%s11603_s1 + $0x6f4] sm:$0xf0] }
 0x133   :  { %4095 = vmatpush.bf16.msrb.mxu0 %v4801_v30  ;;  %v7305_v12 = vld [vmem:[%s11603_s1 + $0x7f4] sm:$0xf0]  ;;  %v5617_v13 = vor.u32 %v7273_v60, %v5616_v9  ;;  %v5296_v9 = vld [vmem:[%s11603_s1 + $0x468] sm:$0xf] }
 0x134   :  { %4109 = vmatpush.bf16.msrb.mxu1 %v4929_v34  ;;  %4642 = vst [vmem:[%s11606_s3] sm:$0xff] %v4634_v4  ;;  %v3838_v30 = vadd.f32 %v3837_v48, %v3824_v59  ;;  %v7121_v34 = vld [vmem:[%s11603_s1 + $0x234] sm:$0xf0]  ;;  %v5344_v4 = vld [vmem:[%s11603_s1 + $0x4c8] sm:$0xf] }
 0x135   :  { %4123 = vmatpush.bf16.msrb.mxu2 %v5057_v49  ;;  %v5136_v49 = vld [vmem:[%s11603_s1 + $0x328] sm:$0xf]  ;;  %v5009_v19 = vor.u32 %v7121_v34, %v5008_v20  ;;  %v7205_v59 = vld [vmem:[%s11603_s1 + $0x4d4] sm:$0xf0] }
 0x136   :  { %4137 = vmatpush.bf16.msrb.mxu3 %v5185_v28  ;;  %v4600_v21 = vmax.f32 %v3838_v30, 0.0  ;;  %v7053_v28 = vld [vmem:[%s11603_s1 + $0x14] sm:$0xf0]  ;;  %v5137_v42 = vor.u32 %v7153_v5, %v5136_v49  ;;  %v5328_v20 = vld [vmem:[%s11603_s1 + $0x4a8] sm:$0xf] }
 0x137   :  { %4096 = vmatpush.bf16.msrb.mxu0 %v4785_v7  ;;  %v5120_v7 = vld [vmem:[%s11603_s1 + $0x308] sm:$0xf]  ;;  %v4737_v3 = vor.u32 %v7053_v28, %v4736_v50  ;;  %v7269_v26 = vld [vmem:[%s11603_s1 + $0x6d4] sm:$0xf0] }
 0x138   :  { %4110 = vmatpush.bf16.msrb.mxu1 %v4913_v63  ;;  %v4619_v24 = vmul.f32 %v4607_v0, %v4600_v21  ;;  %v7149_v63 = vld [vmem:[%s11603_s1 + $0x314] sm:$0xf0]  ;;  %v5488_v0 = vld [vmem:[%s11603_s1 + $0x5e8] sm:$0xf] }
 0x139   :  { %4124 = vmatpush.bf16.msrb.mxu2 %v5041_v2  ;;  %v5360_v2 = vld [vmem:[%s11603_s1 + $0x4e8] sm:$0xf]  ;;  %v5121_v15 = vor.u32 %v7149_v63, %v5120_v7  ;;  %v5489_v22 = vor.u32 %v7241_v8, %v5488_v0  ;;  %v7301_v29 = vld [vmem:[%s11603_s1 + $0x7d4] sm:$0xf0] }
 0x13a   :  { %4138 = vmatpush.bf16.msrb.mxu3 %v5169_v23  ;;  %v4638_v6 = vadd.f32 %v4626_v62, %v4619_v24  ;;  %v4865_v23 = vor.u32 %v7085_v54, %v4864_v53  ;;  %v5744_v62 = vld [vmem:[%s11603_s1 + $0x7e8] sm:$0xf]  ;;  %v5361_v16 = vor.u32 %v7209_v14, %v5360_v2  ;;  %v7201_v34 = vld [vmem:[%s11603_s1 + $0x4b4] sm:$0xf0]  ;;  %v5729_v5 = vor.u32 %v7301_v29, %v5728_v27 }
 0x13b   :  { %4097 = vmatpush.bf16.msrb.mxu0 %v4769_v18  ;;  %v5472_v18 = vld [vmem:[%s11603_s1 + $0x5c8] sm:$0xf]  ;;  %v5745_v48 = vor.u32 %v7305_v12, %v5744_v62  ;;  %v7233_v21 = vld [vmem:[%s11603_s1 + $0x5b4] sm:$0xf0] }
 0x13c   :  { %4111 = vmatpush.bf16.msrb.mxu1 %v4897_v11  ;;  %4646 = vst [vmem:[%s11606_s3 + $0x20] sm:$0xff] %v4638_v6  ;;  %v7237_v11 = vld [vmem:[%s11603_s1 + $0x5d4] sm:$0xf0]  ;;  %v5456_v49 = vld [vmem:[%s11603_s1 + $0x5a8] sm:$0xf] }
 0x13d   :  { %4125 = vmatpush.bf16.msrb.mxu2 %v5025_v25  ;;  %v5600_v25 = vld [vmem:[%s11603_s1 + $0x6c8] sm:$0xf]  ;;  %v5473_v30 = vor.u32 %v7237_v11, %v5472_v18  ;;  %v7265_v50 = vld [vmem:[%s11603_s1 + $0x6b4] sm:$0xf0]  ;;  %v5457_v53 = vor.u32 %v7233_v21, %v5456_v49 }
 0x13e   :  { %4139 = vmatpush.bf16.msrb.mxu3 %v5153_v57  ;;  %v5345_v57 = vor.u32 %v7205_v59, %v5344_v4  ;;  %v5601_v33 = vor.u32 %v7269_v26, %v5600_v25  ;;  %v5712_v28 = vld [vmem:[%s11603_s1 + $0x7a8] sm:$0xf]  ;;  %v7197_v24 = vld [vmem:[%s11603_s1 + $0x494] sm:$0xf0] }
 0x13f   :  { %4098 = vmatpush.bf16.msrb.mxu0 %v4753_v37  ;;  %v5584_v37 = vld [vmem:[%s11603_s1 + $0x6a8] sm:$0xf]  ;;  %v7229_v7 = vld [vmem:[%s11603_s1 + $0x594] sm:$0xf0]  ;;  %v5313_v6 = vor.u32 %v7197_v24, %v5312_v56 }
 0x140   :  { %4112 = vmatpush.bf16.msrb.mxu1 %v4881_v55  ;;  %v7297_v55 = vld [vmem:[%s11603_s1 + $0x7b4] sm:$0xf0]  ;;  %v5585_v54 = vor.u32 %v7265_v50, %v5584_v37  ;;  %v5568_v63 = vld [vmem:[%s11603_s1 + $0x688] sm:$0xf] }
 0x141   :  { %4126 = vmatpush.bf16.msrb.mxu2 %v5009_v19  ;;  %v5329_v19 = vor.u32 %v7201_v34, %v5328_v20  ;;  %v5713_v52 = vor.u32 %v7297_v55, %v5712_v28  ;;  %v7261_v2 = vld [vmem:[%s11603_s1 + $0x694] sm:$0xf0]  ;;  %v5696_v14 = vld [vmem:[%s11603_s1 + $0x788] sm:$0xf] }
 0x142   :  { %4140 = vmatpush.bf16.msrb.mxu3 %v5137_v42  ;;  %v5440_v42 = vld [vmem:[%s11603_s1 + $0x588] sm:$0xf]  ;;  %v7293_v0 = vld [vmem:[%s11603_s1 + $0x794] sm:$0xf0]  ;;  %v5569_v8 = vor.u32 %v7261_v2, %v5568_v63 }
 0x143   :  { %4099 = vmatpush.bf16.msrb.mxu0 %v4737_v3  ;;  %v5441_v3 = vor.u32 %v7229_v7, %v5440_v42  ;;  %v7193_v60 = vld [vmem:[%s11603_s1 + $0x474] sm:$0xf0]  ;;  %v5552_v12 = vld [vmem:[%s11603_s1 + $0x668] sm:$0xf] }
 0x144   :  { %4113 = vmatpush.bf16.msrb.mxu1 %v4865_v23  ;;  %v5424_v23 = vld [vmem:[%s11603_s1 + $0x568] sm:$0xf]  ;;  %v7225_v62 = vld [vmem:[%s11603_s1 + $0x574] sm:$0xf0] }
 0x145   :  { %4127 = vmatpush.bf16.msrb.mxu2 %v4993_v61  ;;  %v5697_v61 = vor.u32 %v7293_v0, %v5696_v14  ;;  %v5425_v4 = vor.u32 %v7225_v62, %v5424_v23  ;;  %v5280_v18 = vld [vmem:[%s11603_s1 + $0x448] sm:$0xf]  ;;  %v7221_v26 = vld [vmem:[%s11603_s1 + $0x554] sm:$0xf0] }
 0x146   :  { %4141 = vmatpush.bf16.msrb.mxu3 %v5121_v15  ;;  %4100 = vmatmul.bf16.vlgmr.msrb.gmra.mxu0 %v7907_v58  ;;  %v7257_v15 = vld [vmem:[%s11603_s1 + $0x674] sm:$0xf0]  ;;  %v5408_v11 = vld [vmem:[%s11603_s1 + $0x548] sm:$0xf] }
 0x147   :  { %4148 = vmatpush.bf16.msra.mxu0 %v5361_v16  ;;  %4114 = vmatmul.bf16.vlgmr.msrb.gmra.mxu1 %v7943_v10  ;;  %v5680_v16 = vld [vmem:[%s11603_s1 + $0x768] sm:$0xf]  ;;  %v5553_v59 = vor.u32 %v7257_v15, %v5552_v12  ;;  %v7253_v29 = vld [vmem:[%s11603_s1 + $0x654] sm:$0xf0]  ;;  %v5409_v20 = vor.u32 %v7221_v26, %v5408_v11 }
 0x148   :  { %4162 = vmatpush.bf16.msra.mxu1 %v5489_v22  ;;  %4128 = vmatmul.bf16.vlgmr.msrb.gmra.mxu2 %v7921_v1  ;;  %v7289_v22 = vld [vmem:[%s11603_s1 + $0x774] sm:$0xf0]  ;;  %v5536_v27 = vld [vmem:[%s11603_s1 + $0x648] sm:$0xf] }
 0x149   :  { %4176 = vmatpush.bf16.msra.mxu2 %v5617_v13  ;;  %4142 = vmatmul.bf16.vlgmr.msrb.gmra.mxu3 %v7957_v17  ;;  %v5297_v13 = vor.u32 %v7193_v60, %v5296_v9  ;;  %v5681_v25 = vor.u32 %v7289_v22, %v5680_v16  ;;  %v5537_v34 = vor.u32 %v7253_v29, %v5536_v27  ;;  %v5264_v49 = vld [vmem:[%s11603_s1 + $0x428] sm:$0xf]  ;;  %v7217_v50 = vld [vmem:[%s11603_s1 + $0x534] sm:$0xf0] }
 0x14a   :  { %4190 = vmatpush.bf16.msra.mxu3 %v5745_v48  ;;  %v7189_v48 = vld [vmem:[%s11603_s1 + $0x454] sm:$0xf0]  ;;  %v5392_v21 = vld [vmem:[%s11603_s1 + $0x528] sm:$0xf] }
 0x14b   :  { %4149 = vmatpush.bf16.msra.mxu0 %v5345_v57  ;;  %v5664_v57 = vld [vmem:[%s11603_s1 + $0x748] sm:$0xf]  ;;  %v7249_v55 = vld [vmem:[%s11603_s1 + $0x634] sm:$0xf0]  ;;  %v5393_v42 = vor.u32 %v7217_v50, %v5392_v21 }
 0x14c   :  { %4163 = vmatpush.bf16.msra.mxu1 %v5473_v30  ;;  %v7285_v30 = vld [vmem:[%s11603_s1 + $0x754] sm:$0xf0]  ;;  %v5520_v28 = vld [vmem:[%s11603_s1 + $0x628] sm:$0xf] }
 0x14d   :  { %4177 = vmatpush.bf16.msra.mxu2 %v5601_v33  ;;  %v5281_v33 = vor.u32 %v7189_v48, %v5280_v18  ;;  %v5665_v37 = vor.u32 %v7285_v30, %v5664_v57  ;;  %v5248_v56 = vld [vmem:[%s11603_s1 + $0x408] sm:$0xf]  ;;  %v7181_v24 = vld [vmem:[%s11603_s1 + $0x414] sm:$0xf0] }
 0x14e   :  { %4191 = vmatpush.bf16.msra.mxu3 %v5729_v5  ;;  %v7185_v5 = vld [vmem:[%s11603_s1 + $0x434] sm:$0xf0]  ;;  %v5376_v7 = vld [vmem:[%s11603_s1 + $0x508] sm:$0xf]  ;;  %v5249_v23 = vor.u32 %v7181_v24, %v5248_v56 }
 0x14f   :  { %4150 = vmatpush.bf16.msra.mxu0 %v5329_v19  ;;  %v5648_v19 = vld [vmem:[%s11603_s1 + $0x728] sm:$0xf]  ;;  %v7213_v63 = vld [vmem:[%s11603_s1 + $0x514] sm:$0xf0] }
 0x150   :  { %4164 = vmatpush.bf16.msra.mxu1 %v5457_v53  ;;  %v7281_v53 = vld [vmem:[%s11603_s1 + $0x734] sm:$0xf0]  ;;  %v5504_v2 = vld [vmem:[%s11603_s1 + $0x608] sm:$0xf]  ;;  %v5377_v15 = vor.u32 %v7213_v63, %v5376_v7 }
 0x151   :  { %4178 = vmatpush.bf16.msra.mxu2 %v5585_v54  ;;  %v5265_v54 = vor.u32 %v7185_v5, %v5264_v49  ;;  %v5649_v14 = vor.u32 %v7281_v53, %v5648_v19  ;;  %v7245_v0 = vld [vmem:[%s11603_s1 + $0x614] sm:$0xf0]  ;;  %v6000_v60 = vld [vmem:[%s11603_s1 + $0x9e8] sm:$0xf]  ;;  %v10087_v5 = vpop.f32.mrf.mxu3 }
 0x152   :  { %4192 = vmatpush.bf16.msra.mxu3 %v5713_v52  ;;  %v5521_v52 = vor.u32 %v7249_v55, %v5520_v28  ;;  %v7337_v9 = vld [vmem:[%s11603_s1 + $0x8f4] sm:$0xf0]  ;;  %v6128_v62 = vld [vmem:[%s11603_s1 + $0xae8] sm:$0xf]  ;;  %v5505_v16 = vor.u32 %v7245_v0, %v5504_v2 }
 0x153   :  { %4151 = vmatpush.bf16.msra.mxu0 %v5313_v6  ;;  %v5632_v6 = vld [vmem:[%s11603_s1 + $0x708] sm:$0xf]  ;;  %v7401_v12 = vld [vmem:[%s11603_s1 + $0xaf4] sm:$0xf0] }
 0x154   :  { %4165 = vmatpush.bf16.msra.mxu1 %v5441_v3  ;;  %v7277_v3 = vld [vmem:[%s11603_s1 + $0x714] sm:$0xf0]  ;;  %v6256_v22 = vld [vmem:[%s11603_s1 + $0xbe8] sm:$0xf]  ;;  %v6129_v48 = vor.u32 %v7401_v12, %v6128_v62 }
 0x155   :  { %4179 = vmatpush.bf16.msra.mxu2 %v5569_v8  ;;  %v5872_v8 = vld [vmem:[%s11603_s1 + $0x8e8] sm:$0xf]  ;;  %v7365_v29 = vld [vmem:[%s11603_s1 + $0x9d4] sm:$0xf0] }
 0x156   :  { %4193 = vmatpush.bf16.msra.mxu3 %v5697_v61  ;;  %v7369_v61 = vld [vmem:[%s11603_s1 + $0x9f4] sm:$0xf0]  ;;  %v5856_v11 = vld [vmem:[%s11603_s1 + $0x8c8] sm:$0xf] }
 0x157   :  { %4152 = vmatpush.bf16.msra.mxu0 %v5297_v13  ;;  %v7433_v13 = vld [vmem:[%s11603_s1 + $0xbf4] sm:$0xf0]  ;;  %v6001_v18 = vor.u32 %v7369_v61, %v6000_v60  ;;  %v5984_v26 = vld [vmem:[%s11603_s1 + $0x9c8] sm:$0xf] }
 0x158   :  { %4166 = vmatpush.bf16.msra.mxu1 %v5425_v4  ;;  %v5633_v4 = vor.u32 %v7277_v3, %v5632_v6  ;;  %v6257_v27 = vor.u32 %v7433_v13, %v6256_v22  ;;  %v6112_v57 = vld [vmem:[%s11603_s1 + $0xac8] sm:$0xf]  ;;  %v7397_v30 = vld [vmem:[%s11603_s1 + $0xad4] sm:$0xf0]  ;;  %v5985_v21 = vor.u32 %v7365_v29, %v5984_v26  ;;  %v10169_v29 = vpop.f32.mrf.mxu0 }
 0x159   :  { %4180 = vmatpush.bf16.msra.mxu2 %v5553_v59  ;;  %v5873_v59 = vor.u32 %v7337_v9, %v5872_v8  ;;  %v5840_v50 = vld [vmem:[%s11603_s1 + $0x8a8] sm:$0xf]  ;;  %v7329_v28 = vld [vmem:[%s11603_s1 + $0x8b4] sm:$0xf0] }
 0x15a   :  { %4194 = vmatpush.bf16.msra.mxu3 %v5681_v25  ;;  %v7333_v25 = vld [vmem:[%s11603_s1 + $0x8d4] sm:$0xf0]  ;;  %v5968_v55 = vld [vmem:[%s11603_s1 + $0x9a8] sm:$0xf] }
 0x15b   :  { %4153 = vmatpush.bf16.msra.mxu0 %v5281_v33  ;;  %v6240_v33 = vld [vmem:[%s11603_s1 + $0xbc8] sm:$0xf]  ;;  %v5857_v49 = vor.u32 %v7333_v25, %v5856_v11  ;;  %v7361_v53 = vld [vmem:[%s11603_s1 + $0x9b4] sm:$0xf0]  ;;  %v10161_v11 = vpop.f32.mrf.mxu3 }
 0x15c   :  { %4167 = vmatpush.bf16.msra.mxu1 %v5409_v20  ;;  %v7429_v20 = vld [vmem:[%s11603_s1 + $0xbd4] sm:$0xf0]  ;;  %v6224_v24 = vld [vmem:[%s11603_s1 + $0xba8] sm:$0xf]  ;;  %v5969_v7 = vor.u32 %v7361_v53, %v5968_v55 }
 0x15d   :  { %4181 = vmatpush.bf16.msra.mxu2 %v5537_v34  ;;  %v10085_v34 = vpop.f32.mrf.mxu2  ;;  %v6241_v19 = vor.u32 %v7429_v20, %v6240_v33  ;;  %v7393_v56 = vld [vmem:[%s11603_s1 + $0xab4] sm:$0xf0]  ;;  %v5824_v2 = vld [vmem:[%s11603_s1 + $0x888] sm:$0xf] }
 0x15e   :  { %4195 = vmatpush.bf16.msra.mxu3 %v5665_v37  ;;  %v6113_v37 = vor.u32 %v7397_v30, %v6112_v57  ;;  %v5952_v0 = vld [vmem:[%s11603_s1 + $0x988] sm:$0xf]  ;;  %v7357_v3 = vld [vmem:[%s11603_s1 + $0x994] sm:$0xf0] }
 0x15f   :  { %4154 = vmatpush.bf16.msra.mxu0 %v5265_v54  ;;  %v6096_v54 = vld [vmem:[%s11603_s1 + $0xaa8] sm:$0xf]  ;;  %v7389_v9 = vld [vmem:[%s11603_s1 + $0xa94] sm:$0xf0]  ;;  %v5953_v62 = vor.u32 %v7357_v3, %v5952_v0 }
 0x160   :  { %4168 = vmatpush.bf16.msra.mxu1 %v5393_v42  ;;  %v7425_v42 = vld [vmem:[%s11603_s1 + $0xbb4] sm:$0xf0]  ;;  %v6097_v63 = vor.u32 %v7393_v56, %v6096_v54  ;;  %v6080_v8 = vld [vmem:[%s11603_s1 + $0xa88] sm:$0xf] }
 0x161   :  { %4182 = vmatpush.bf16.msra.mxu2 %v5521_v52  ;;  %v5841_v52 = vor.u32 %v7329_v28, %v5840_v50  ;;  %v6225_v6 = vor.u32 %v7425_v42, %v6224_v24  ;;  %v6208_v60 = vld [vmem:[%s11603_s1 + $0xb88] sm:$0xf]  ;;  %v6081_v12 = vor.u32 %v7389_v9, %v6080_v8  ;;  %v7417_v26 = vld [vmem:[%s11603_s1 + $0xb74] sm:$0xf0] }
 0x162   :  { %4196 = vmatpush.bf16.msra.mxu3 %v5649_v14  ;;  %v7325_v14 = vld [vmem:[%s11603_s1 + $0x894] sm:$0xf0]  ;;  %v5936_v22 = vld [vmem:[%s11603_s1 + $0x968] sm:$0xf] }
 0x163   :  { %4155 = vmatpush.bf16.msra.mxu0 %v5249_v23  ;;  %v7421_v23 = vld [vmem:[%s11603_s1 + $0xb94] sm:$0xf0]  ;;  %v5825_v61 = vor.u32 %v7325_v14, %v5824_v2  ;;  %v6192_v25 = vld [vmem:[%s11603_s1 + $0xb68] sm:$0xf] }
 0x164   :  { %4169 = vmatpush.bf16.msra.mxu1 %v5377_v15  ;;  %v5808_v15 = vld [vmem:[%s11603_s1 + $0x868] sm:$0xf]  ;;  %v7317_v20 = vld [vmem:[%s11603_s1 + $0x854] sm:$0xf0] }
 0x165   :  { %4183 = vmatpush.bf16.msra.mxu2 %v5505_v16  ;;  %v7321_v16 = vld [vmem:[%s11603_s1 + $0x874] sm:$0xf0]  ;;  %v10150_v13 = vpop.f32.mrf.mxu2  ;;  %v5792_v33 = vld [vmem:[%s11603_s1 + $0x848] sm:$0xf] }
 0x166   :  { %4197 = vmatpush.bf16.msra.mxu3 %v5633_v4  ;;  %4156 = vmatmul.bf16.vlgmr.msra.gmra.mxu0 %v8129_v39  ;;  %v6209_v4 = vor.u32 %v7421_v23, %v6208_v60  ;;  %v7349_v50 = vld [vmem:[%s11603_s1 + $0x954] sm:$0xf0]  ;;  %v6048_v28 = vld [vmem:[%s11603_s1 + $0xa48] sm:$0xf]  ;;  %v5793_v54 = vor.u32 %v7317_v20, %v5792_v33 }
 0x167   :  { %4204 = vmatpush.bf16.msrb.mxu0 %v5873_v59  ;;  %4170 = vmatmul.bf16.vlgmr.msra.gmra.mxu1 %v8142_v44  ;;  %v7353_v59 = vld [vmem:[%s11603_s1 + $0x974] sm:$0xf0]  ;;  %v5776_v42 = vld [vmem:[%s11603_s1 + $0x828] sm:$0xf] }
 0x168   :  { %4218 = vmatpush.bf16.msrb.mxu1 %v6001_v18  ;;  %4184 = vmatmul.bf16.vlgmr.msra.gmra.mxu2 %v8140_v43  ;;  %v6064_v18 = vld [vmem:[%s11603_s1 + $0xa68] sm:$0xf]  ;;  %v5937_v57 = vor.u32 %v7353_v59, %v5936_v22  ;;  %v7381_v55 = vld [vmem:[%s11603_s1 + $0xa54] sm:$0xf0] }
 0x169   :  { %4232 = vmatpush.bf16.msrb.mxu2 %v6129_v48  ;;  %4198 = vmatmul.bf16.vlgmr.msra.gmra.mxu3 %v8150_v47  ;;  %v7385_v48 = vld [vmem:[%s11603_s1 + $0xa74] sm:$0xf0]  ;;  %v6049_v24 = vor.u32 %v7381_v55, %v6048_v28  ;;  %v6032_v14 = vld [vmem:[%s11603_s1 + $0xa28] sm:$0xf] }
 0x16a   :  { %4246 = vmatpush.bf16.msrb.mxu3 %v6257_v27  ;;  %v5809_v27 = vor.u32 %v7321_v16, %v5808_v15  ;;  %v6065_v30 = vor.u32 %v7385_v48, %v6064_v18  ;;  %v7413_v53 = vld [vmem:[%s11603_s1 + $0xb54] sm:$0xf0]  ;;  %v6160_v8 = vld [vmem:[%s11603_s1 + $0xb28] sm:$0xf] }
 0x16b   :  { %4205 = vmatpush.bf16.msrb.mxu0 %v5857_v49  ;;  %v5920_v49 = vld [vmem:[%s11603_s1 + $0x948] sm:$0xf]  ;;  %v7345_v2 = vld [vmem:[%s11603_s1 + $0x934] sm:$0xf0] }
 0x16c   :  { %4219 = vmatpush.bf16.msrb.mxu1 %v5985_v21  ;;  %v10180_v21 = vpop.f32.mrf.mxu1  ;;  %v5921_v56 = vor.u32 %v7349_v50, %v5920_v49  ;;  %v7377_v0 = vld [vmem:[%s11603_s1 + $0xa34] sm:$0xf0]  ;;  %v5888_v22 = vld [vmem:[%s11603_s1 + $0x908] sm:$0xf] }
 0x16d   :  { %4233 = vmatpush.bf16.msrb.mxu2 %v6113_v37  ;;  %v6193_v37 = vor.u32 %v7417_v26, %v6192_v25  ;;  %v7409_v9 = vld [vmem:[%s11603_s1 + $0xb34] sm:$0xf0]  ;;  %v10227_v60 = vpop.f32.mrf.mxu2  ;;  %v6033_v16 = vor.u32 %v7377_v0, %v6032_v14  ;;  %v6016_v59 = vld [vmem:[%s11603_s1 + $0xa08] sm:$0xf] }
 0x16e   :  { %4247 = vmatpush.bf16.msrb.mxu3 %v6241_v19  ;;  %v6176_v19 = vld [vmem:[%s11603_s1 + $0xb48] sm:$0xf]  ;;  %v6161_v18 = vor.u32 %v7409_v9, %v6160_v8  ;;  %v7373_v48 = vld [vmem:[%s11603_s1 + $0xa14] sm:$0xf0] }
 0x16f   :  { %4206 = vmatpush.bf16.msrb.mxu0 %v5841_v52  ;;  %v7313_v52 = vld [vmem:[%s11603_s1 + $0x834] sm:$0xf0]  ;;  %v6144_v25 = vld [vmem:[%s11603_s1 + $0xb08] sm:$0xf] }
 0x170   :  { %4220 = vmatpush.bf16.msrb.mxu1 %v5969_v7  ;;  %v5904_v7 = vld [vmem:[%s11603_s1 + $0x928] sm:$0xf]  ;;  %v5777_v23 = vor.u32 %v7313_v52, %v5776_v42  ;;  %v7405_v26 = vld [vmem:[%s11603_s1 + $0xb14] sm:$0xf0] }
 0x171   :  { %4234 = vmatpush.bf16.msrb.mxu2 %v6097_v63  ;;  %v6177_v63 = vor.u32 %v7413_v53, %v6176_v19  ;;  %v5905_v15 = vor.u32 %v7345_v2, %v5904_v7  ;;  %v7465_v33 = vld [vmem:[%s11603_s1 + $0xcf4] sm:$0xf0]  ;;  %v6512_v20 = vld [vmem:[%s11603_s1 + $0xde8] sm:$0xf]  ;;  %v6017_v19 = vor.u32 %v7373_v48, %v6016_v59 }
 0x172   :  { %4248 = vmatpush.bf16.msrb.mxu3 %v6225_v6  ;;  %v10218_v6 = vld [vmem:[%s11605_s2] ss:$4 sm:$0xf]  ;;  %v7529_v28 = vld [vmem:[%s11603_s1 + $0xef4] sm:$0xf0] }
 0x173   :  { %4207 = vmatpush.bf16.msrb.mxu0 %v5825_v61  ;;  %v611_v3 = vperm.slane %v10218_v6, 1  ;;  %v5760_v61 = vld [vmem:[%s11603_s1 + $0x808] sm:$0xf]  ;;  %v7461_v2 = vld [vmem:[%s11603_s1 + $0xcd4] sm:$0xf0] }
 0x174   :  { %4221 = vmatpush.bf16.msrb.mxu1 %v5953_v62  ;;  %v7309_v62 = vld [vmem:[%s11603_s1 + $0x814] sm:$0xf0]  ;;  %v10269_v49 = vpop.f32.mrf.mxu1  ;;  %v6640_v50 = vld [vmem:[%s11603_s1 + $0xee8] sm:$0xf] }
 0x175   :  { %4235 = vmatpush.bf16.msrb.mxu2 %v6081_v12  ;;  %v10235_v12 = vpop.f32.mrf.mxu3  ;;  %v6768_v53 = vld [vmem:[%s11603_s1 + $0xfe8] sm:$0xf]  ;;  %v6641_v7 = vor.u32 %v7529_v28, %v6640_v50  ;;  %v7525_v9 = vld [vmem:[%s11603_s1 + $0xed4] sm:$0xf0] }
 0x176   :  { %4249 = vmatpush.bf16.msrb.mxu3 %v6209_v4  ;;  %v7341_v4 = vld [vmem:[%s11603_s1 + $0x914] sm:$0xf0]  ;;  %v6496_v14 = vld [vmem:[%s11603_s1 + $0xdc8] sm:$0xf] }
 0x177   :  { %4208 = vmatpush.bf16.msrb.mxu0 %v5809_v27  ;;  %v3850_v27 = vadd.f32 %v10085_v34, %v611_v3  ;;  %v7497_v34 = vld [vmem:[%s11603_s1 + $0xdf4] sm:$0xf0]  ;;  %v5889_v55 = vor.u32 %v7341_v4, %v5888_v22  ;;  %v6624_v8 = vld [vmem:[%s11603_s1 + $0xec8] sm:$0xf] }
 0x178   :  { %4222 = vmatpush.bf16.msrb.mxu1 %v5937_v57  ;;  %v10258_v57 = vpop.f32.mrf.mxu0  ;;  %v6513_v52 = vor.u32 %v7497_v34, %v6512_v20  ;;  %v6352_v48 = vld [vmem:[%s11603_s1 + $0xca8] sm:$0xf]  ;;  %v7521_v6 = vld [vmem:[%s11603_s1 + $0xeb4] sm:$0xf0] }
 0x179   :  { %4236 = vmatpush.bf16.msrb.mxu2 %v6065_v30  ;;  %v6384_v30 = vld [vmem:[%s11603_s1 + $0xce8] sm:$0xf]  ;;  %v3864_v42 = vadd.f32 %v10087_v5, %v3850_v27  ;;  %v7493_v5 = vld [vmem:[%s11603_s1 + $0xdd4] sm:$0xf0] }
 0x17a   :  { %4250 = vmatpush.bf16.msrb.mxu3 %v6193_v37  ;;  %v5761_v37 = vor.u32 %v7309_v62, %v5760_v61  ;;  %v7557_v61 = vld [vmem:[%s11603_s1 + $0xfd4] sm:$0xf0]  ;;  %v10311_v62 = vpop.f32.mrf.mxu2  ;;  %v6497_v59 = vor.u32 %v7493_v5, %v6496_v14  ;;  %v6608_v20 = vld [vmem:[%s11603_s1 + $0xea8] sm:$0xf] }
 0x17b   :  { %4209 = vmatpush.bf16.msrb.mxu0 %v5793_v54  ;;  %v7561_v54 = vld [vmem:[%s11603_s1 + $0xff4] sm:$0xf0]  ;;  %v6609_v28 = vor.u32 %v7521_v6, %v6608_v20  ;;  %v6304_v20 = vld [vmem:[%s11603_s1 + $0xc48] sm:$0xf] }
 0x17c   :  { %4223 = vmatpush.bf16.msrb.mxu1 %v5921_v56  ;;  %v6145_v56 = vor.u32 %v7405_v26, %v6144_v25  ;;  %v6769_v0 = vor.u32 %v7561_v54, %v6768_v53  ;;  %v7457_v25 = vld [vmem:[%s11603_s1 + $0xcb4] sm:$0xf0]  ;;  %v3852_v26 = vadd.f32 %v10150_v13, %v611_v3  ;;  %v10330_v27 = vpop.f32.mrf.mxu1  ;;  %v6736_v13 = vld [vmem:[%s11603_s1 + $0xfa8] sm:$0xf] }
 0x17d   :  { %4237 = vmatpush.bf16.msrb.mxu2 %v6049_v24  ;;  %v6385_v24 = vor.u32 %v7465_v33, %v6384_v30  ;;  %v10314_v22 = vpop.f32.mrf.mxu3  ;;  %v7489_v33 = vld [vmem:[%s11603_s1 + $0xdb4] sm:$0xf0]  ;;  %v6464_v53 = vld [vmem:[%s11603_s1 + $0xd88] sm:$0xf] }
 0x17e   :  { %4251 = vmatpush.bf16.msrb.mxu3 %v6177_v63  ;;  %v6368_v63 = vld [vmem:[%s11603_s1 + $0xcc8] sm:$0xf]  ;;  %v7553_v3 = vld [vmem:[%s11603_s1 + $0xfb4] sm:$0xf0]  ;;  %v3866_v54 = vadd.f32 %v10161_v11, %v3852_v26 }
 0x17f   :  { %4210 = vmatpush.bf16.msrb.mxu0 %v5777_v23  ;;  %v6752_v23 = vld [vmem:[%s11603_s1 + $0xfc8] sm:$0xf]  ;;  %v7549_v11 = vld [vmem:[%s11603_s1 + $0xf94] sm:$0xf0] }
 0x180   :  { %4224 = vmatpush.bf16.msrb.mxu1 %v5905_v15  ;;  %v6369_v15 = vor.u32 %v7461_v2, %v6368_v63  ;;  %v10316_v4 = vpop.f32.mrf.mxu0  ;;  %v6753_v30 = vor.u32 %v7557_v61, %v6752_v23  ;;  %v6448_v23 = vld [vmem:[%s11603_s1 + $0xd68] sm:$0xf]  ;;  %v7445_v6 = vld [vmem:[%s11603_s1 + $0xc54] sm:$0xf0] }
 0x181   :  { %4238 = vmatpush.bf16.msrb.mxu2 %v6033_v16  ;;  %v3878_v16 = vadd.f32 %v10169_v29, %v3864_v42  ;;  %v6480_v29 = vld [vmem:[%s11603_s1 + $0xda8] sm:$0xf]  ;;  %v7517_v42 = vld [vmem:[%s11603_s1 + $0xe94] sm:$0xf0] }
 0x182   :  { %4252 = vmatpush.bf16.msrb.mxu3 %v6161_v18  ;;  %v6625_v18 = vor.u32 %v7525_v9, %v6624_v8  ;;  %v6481_v50 = vor.u32 %v7489_v33, %v6480_v29  ;;  %v6320_v8 = vld [vmem:[%s11603_s1 + $0xc68] sm:$0xf]  ;;  %v7449_v9 = vld [vmem:[%s11603_s1 + $0xc74] sm:$0xf0] }
 0x183   :  { %4211 = vmatpush.bf16.msrb.mxu0 %v5761_v37  ;;  %v6353_v37 = vor.u32 %v7457_v25, %v6352_v48  ;;  %v3892_v34 = vadd.f32 %v10180_v21, %v3878_v16  ;;  %v6737_v21 = vor.u32 %v7553_v3, %v6736_v13  ;;  %v6576_v16 = vld [vmem:[%s11603_s1 + $0xe68] sm:$0xf]  ;;  %v7545_v48 = vld [vmem:[%s11603_s1 + $0xf74] sm:$0xf0]  ;;  %v6321_v29 = vor.u32 %v7449_v9, %v6320_v8 }
 0x184   :  { %4225 = vmatpush.bf16.msrb.mxu1 %v5889_v55  ;;  %v6336_v55 = vld [vmem:[%s11603_s1 + $0xc88] sm:$0xf]  ;;  %v10409_v25 = vpop.f32.mrf.mxu1  ;;  %v7537_v9 = vld [vmem:[%s11603_s1 + $0xf34] sm:$0xf0] }
 0x185   :  { %4239 = vmatpush.bf16.msrb.mxu2 %v6017_v19  ;;  %v7453_v19 = vld [vmem:[%s11603_s1 + $0xc94] sm:$0xf0]  ;;  %v3906_v2 = vadd.f32 %v10227_v60, %v3892_v34  ;;  %v10380_v14 = vpop.f32.mrf.mxu3  ;;  %v3880_v60 = vadd.f32 %v10258_v57, %v3866_v54  ;;  %v6704_v57 = vld [vmem:[%s11603_s1 + $0xf68] sm:$0xf] }
 0x186   :  { %4253 = vmatpush.bf16.msrb.mxu3 %v6145_v56  ;;  %4212 = vmatmul.bf16.vlgmr.msrb.gmra.mxu0 %v8357_v31  ;;  %v7485_v56 = vld [vmem:[%s11603_s1 + $0xd94] sm:$0xf0]  ;;  %v6337_v63 = vor.u32 %v7453_v19, %v6336_v55  ;;  %v6432_v13 = vld [vmem:[%s11603_s1 + $0xd48] sm:$0xf] }
 0x187   :  { %4260 = vmatpush.bf16.msra.mxu0 %v6385_v24  ;;  %4226 = vmatmul.bf16.vlgmr.msrb.gmra.mxu1 %v8370_v36  ;;  %v6592_v24 = vld [vmem:[%s11603_s1 + $0xe88] sm:$0xf]  ;;  %v3920_v26 = vadd.f32 %v10235_v12, %v3906_v2  ;;  %v3894_v3 = vadd.f32 %v10269_v49, %v3880_v60  ;;  %v6705_v12 = vor.u32 %v7545_v48, %v6704_v57  ;;  %v7541_v55 = vld [vmem:[%s11603_s1 + $0xf54] sm:$0xf0] }
 0x188   :  { %4274 = vmatpush.bf16.msra.mxu1 %v6513_v52  ;;  %4240 = vmatmul.bf16.vlgmr.msrb.gmra.mxu2 %v8368_v35  ;;  %v6720_v52 = vld [vmem:[%s11603_s1 + $0xf88] sm:$0xf]  ;;  %v6593_v5 = vor.u32 %v7517_v42, %v6592_v24  ;;  %v7469_v48 = vld [vmem:[%s11603_s1 + $0xd14] sm:$0xf0] }
 0x189   :  { %4288 = vmatpush.bf16.msra.mxu2 %v6641_v7  ;;  %4254 = vmatmul.bf16.vlgmr.msrb.gmra.mxu3 %v8378_v40  ;;  %v10377_v7 = vpop.f32.mrf.mxu2  ;;  %v6721_v61 = vor.u32 %v7549_v11, %v6720_v52  ;;  %v6560_v34 = vld [vmem:[%s11603_s1 + $0xe48] sm:$0xf]  ;;  %v3908_v19 = vadd.f32 %v10311_v62, %v3894_v3  ;;  %v7473_v52 = vld [vmem:[%s11603_s1 + $0xd34] sm:$0xf0] }
 0x18a   :  { %4302 = vmatpush.bf16.msra.mxu3 %v6769_v0  ;;  %v6465_v0 = vor.u32 %v7485_v56, %v6464_v53  ;;  %v6688_v49 = vld [vmem:[%s11603_s1 + $0xf48] sm:$0xf]  ;;  %v6305_v53 = vor.u32 %v7445_v6, %v6304_v20  ;;  %v7441_v56 = vld [vmem:[%s11603_s1 + $0xc34] sm:$0xf0] }
 0x18b   :  { %4261 = vmatpush.bf16.msra.mxu0 %v6369_v15  ;;  %v7481_v15 = vld [vmem:[%s11603_s1 + $0xd74] sm:$0xf0]  ;;  %v6416_v24 = vld [vmem:[%s11603_s1 + $0xd28] sm:$0xf]  ;;  %v6689_v62 = vor.u32 %v7541_v55, %v6688_v49  ;;  %v7111_v55 = vld [vmem:[%s11603_s1 + $0x1ec] sm:$0xf] }
 0x18c   :  { %4275 = vmatpush.bf16.msra.mxu1 %v6497_v59  ;;  %v7513_v59 = vld [vmem:[%s11603_s1 + $0xe74] sm:$0xf0]  ;;  %v6544_v11 = vld [vmem:[%s11603_s1 + $0xe28] sm:$0xf]  ;;  %v4003_v60 = vpop.f32.mrf.mxu1 }
 0x18d   :  { %4289 = vmatpush.bf16.msra.mxu2 %v6625_v18  ;;  %v10401_v18 = vpop.f32.mrf.mxu0  ;;  %v6577_v33 = vor.u32 %v7513_v59, %v6576_v16  ;;  %v6672_v8 = vld [vmem:[%s11603_s1 + $0xf28] sm:$0xf]  ;;  %v6417_v59 = vor.u32 %v7473_v52, %v6416_v24 }
 0x18e   :  { %4303 = vmatpush.bf16.msra.mxu3 %v6753_v30  ;;  %v6449_v30 = vor.u32 %v7481_v15, %v6448_v23  ;;  %v3922_v23 = vadd.f32 %v10314_v22, %v3908_v19  ;;  %v7437_v15 = vld [vmem:[%s11603_s1 + $0xc14] sm:$0xf0]  ;;  %v6400_v22 = vld [vmem:[%s11603_s1 + $0xd08] sm:$0xf]  ;;  %v4978_v19 = vld [vmem:[%s11603_s1 + $0x1f8] sm:$0xf0] }
 0x18f   :  { %4262 = vmatpush.bf16.msra.mxu0 %v6353_v37  ;;  %v7477_v37 = vld [vmem:[%s11603_s1 + $0xd54] sm:$0xf0]  ;;  %v6896_v6 = vld [vmem:[%s11603_s1 + $0x10e8] sm:$0xf] }
 0x190   :  { %4276 = vmatpush.bf16.msra.mxu1 %v6481_v50  ;;  %v7509_v50 = vld [vmem:[%s11603_s1 + $0xe54] sm:$0xf0]  ;;  %v6433_v54 = vor.u32 %v7477_v37, %v6432_v13  ;;  %v3936_v20 = vadd.f32 %v10401_v18, %v3922_v23  ;;  %v7024_v3 = vld [vmem:[%s11603_s1 + $0x11e8] sm:$0xf]  ;;  %v7079_v18 = vld [vmem:[%s11603_s1 + $0xec] sm:$0xf] }
 0x191   :  { %4290 = vmatpush.bf16.msra.mxu2 %v6609_v28  ;;  %v3934_v28 = vadd.f32 %v10316_v4, %v3920_v26  ;;  %v6288_v4 = vld [vmem:[%s11603_s1 + $0xc28] sm:$0xf]  ;;  %v10448_v42 = vpop.f32.mrf.mxu2  ;;  %v6673_v26 = vor.u32 %v7537_v9, %v6672_v8  ;;  %v7593_v13 = vld [vmem:[%s11603_s1 + $0x10f4] sm:$0xf0]  ;;  %v4834_v8 = vld [vmem:[%s11603_s1 + $0xd8] sm:$0xf0] }
 0x192   :  { %4304 = vmatpush.bf16.msra.mxu3 %v6737_v21  ;;  %v6561_v21 = vor.u32 %v7509_v50, %v6560_v34  ;;  %v7625_v37 = vld [vmem:[%s11603_s1 + $0x11f4] sm:$0xf0]  ;;  %v4850_v34 = vld [vmem:[%s11603_s1 + $0xf8] sm:$0xf0]  ;;  %v6880_v52 = vld [vmem:[%s11603_s1 + $0x10c8] sm:$0xf] }
 0x193   :  { %4263 = vmatpush.bf16.msra.mxu0 %v6337_v63  ;;  %v7505_v63 = vld [vmem:[%s11603_s1 + $0xe34] sm:$0xf0]  ;;  %v3948_v2 = vadd.f32 %v10330_v27, %v3934_v28  ;;  %v6272_v27 = vld [vmem:[%s11603_s1 + $0xc08] sm:$0xf]  ;;  %v6401_v28 = vor.u32 %v7469_v48, %v6400_v22  ;;  %v7025_v24 = vor.u32 %v7625_v37, %v7024_v3 }
 0x194   :  { %4277 = vmatpush.bf16.msra.mxu1 %v6465_v0  ;;  %v10460_v0 = vpop.f32.mrf.mxu3  ;;  %v6545_v57 = vor.u32 %v7505_v63, %v6544_v11  ;;  %v7589_v11 = vld [vmem:[%s11603_s1 + $0x10d4] sm:$0xf0]  ;;  %v7008_v63 = vld [vmem:[%s11603_s1 + $0x11c8] sm:$0xf] }
 0x195   :  { %4291 = vmatpush.bf16.msra.mxu2 %v6593_v5  ;;  %v3989_v5 = vpop.f32.mrf.mxu0  ;;  %v3962_v16 = vadd.f32 %v10377_v7, %v3948_v2  ;;  %v7501_v7 = vld [vmem:[%s11603_s1 + $0xe14] sm:$0xf0]  ;;  %v4981_v2 = vor.u32 %v7111_v55, %v4978_v19  ;;  %v6864_v22 = vld [vmem:[%s11603_s1 + $0x10a8] sm:$0xf]  ;;  %v7067_v19 = vld [vmem:[%s11603_s1 + $0x8c] sm:$0xf] }
 0x196   :  { %4305 = vmatpush.bf16.msra.mxu3 %v6721_v61  ;;  %v6289_v61 = vor.u32 %v7441_v56, %v6288_v4  ;;  %v3950_v4 = vadd.f32 %v10409_v25, %v3936_v20  ;;  %v7621_v25 = vld [vmem:[%s11603_s1 + $0x11d4] sm:$0xf0] }
 0x197   :  { %4264 = vmatpush.bf16.msra.mxu0 %v6321_v29  ;;  %v6528_v29 = vld [vmem:[%s11603_s1 + $0xe08] sm:$0xf]  ;;  %v3976_v50 = vadd.f32 %v10380_v14, %v3962_v16  ;;  %v6881_v16 = vor.u32 %v7589_v11, %v6880_v52  ;;  %v7585_v48 = vld [vmem:[%s11603_s1 + $0x10b4] sm:$0xf0] }
 0x198   :  { %4278 = vmatpush.bf16.msra.mxu1 %v6449_v30  ;;  %v6656_v30 = vld [vmem:[%s11603_s1 + $0xf08] sm:$0xf]  ;;  %v6529_v49 = vor.u32 %v7501_v7, %v6528_v29  ;;  %v3964_v9 = vadd.f32 %v10448_v42, %v3950_v4  ;;  %v7071_v7 = vld [vmem:[%s11603_s1 + $0xac] sm:$0xf]  ;;  %v6865_v3 = vor.u32 %v7585_v48, %v6864_v22 }
 0x199   :  { %4292 = vmatpush.bf16.msra.mxu2 %v6577_v33  ;;  %v7533_v33 = vld [vmem:[%s11603_s1 + $0xf14] sm:$0xf0]  ;;  %v3990_v56 = vadd.f32 %v3989_v5, %v3976_v50  ;;  %v7075_v5 = vld [vmem:[%s11603_s1 + $0xcc] sm:$0xf]  ;;  %v6992_v29 = vld [vmem:[%s11603_s1 + $0x11a8] sm:$0xf] }
 0x19a   :  { %4306 = vmatpush.bf16.msra.mxu3 %v6705_v12  ;;  %v6273_v12 = vor.u32 %v7437_v15, %v6272_v27  ;;  %v4962_v27 = vld [vmem:[%s11603_s1 + $0x1d8] sm:$0xf0]  ;;  %v4005_v15 = vpop.f32.mrf.mxu1  ;;  %v4837_v42 = vor.u32 %v7075_v5, %v4834_v8  ;;  %v6976_v50 = vld [vmem:[%s11603_s1 + $0x1188] sm:$0xf]  ;;  %v7577_v5 = vld [vmem:[%s11603_s1 + $0x1074] sm:$0xf0] }
 0x19b   :  { %4265 = vmatpush.bf16.msra.mxu0 %v6305_v53  ;;  %v4017_v53 = vpop.f32.mrf.mxu2  ;;  %v6960_v8 = vld [vmem:[%s11603_s1 + $0x1168] sm:$0xf] }
 0x19c   :  { %4279 = vmatpush.bf16.msra.mxu1 %v6433_v54  ;;  %v6657_v54 = vor.u32 %v7533_v33, %v6656_v30  ;;  %v4031_v14 = vpop.f32.mrf.mxu3  ;;  %v4818_v30 = vld [vmem:[%s11603_s1 + $0xb8] sm:$0xf0]  ;;  %v3978_v33 = vadd.f32 %v10460_v0, %v3964_v9  ;;  %v6848_v0 = vld [vmem:[%s11603_s1 + $0x1088] sm:$0xf] }
 0x19d   :  { %4293 = vmatpush.bf16.msra.mxu2 %v6561_v21  ;;  %v6897_v21 = vor.u32 %v7593_v13, %v6896_v6  ;;  %v3991_v23 = vpop.f32.mrf.mxu0  ;;  %v7103_v6 = vld [vmem:[%s11603_s1 + $0x1ac] sm:$0xf]  ;;  %v4946_v13 = vld [vmem:[%s11603_s1 + $0x1b8] sm:$0xf0] }
 0x19e   :  { %4307 = vmatpush.bf16.msra.mxu3 %v6689_v62  ;;  %v4853_v62 = vor.u32 %v7079_v18, %v4850_v34  ;;  %v4821_v18 = vor.u32 %v7071_v7, %v4818_v30  ;;  %v7581_v34 = vld [vmem:[%s11603_s1 + $0x1094] sm:$0xf0]  ;;  %v4949_v55 = vor.u32 %v7103_v6, %v4946_v13  ;;  %v4770_v6 = vld [vmem:[%s11603_s1 + $0x58] sm:$0xf0] }
 0x19f   :  { %4266 = vmatpush.bf16.msra.mxu0 %v6289_v61  ;;  %v7107_v61 = vld [vmem:[%s11603_s1 + $0x1cc] sm:$0xf]  ;;  %v7605_v7 = vld [vmem:[%s11603_s1 + $0x1154] sm:$0xf0] }
 0x1a0   :  { %4280 = vmatpush.bf16.msra.mxu1 %v6417_v59  ;;  %v4004_v59 = vadd.f32 %v4003_v60, %v3990_v56  ;;  %v4965_v60 = vor.u32 %v7107_v61, %v4962_v27  ;;  %v7099_v56 = vld [vmem:[%s11603_s1 + $0x18c] sm:$0xf]  ;;  %v4786_v27 = vld [vmem:[%s11603_s1 + $0x78] sm:$0xf0] }
 0x1a1   :  { %4294 = vmatpush.bf16.msra.mxu2 %v6545_v57  ;;  %v7009_v57 = vor.u32 %v7621_v25, %v7008_v63  ;;  %v7063_v61 = vld [vmem:[%s11603_s1 + $0x6c] sm:$0xf] }
 0x1a2   :  { %4308 = vmatpush.bf16.msra.mxu3 %v6673_v26  ;;  %v7617_v26 = vld [vmem:[%s11603_s1 + $0x11b4] sm:$0xf0]  ;;  %v4018_v20 = vadd.f32 %v4017_v53, %v4004_v59  ;;  %v4802_v53 = vld [vmem:[%s11603_s1 + $0x98] sm:$0xf0] }
 0x1a3   :  { %4267 = vmatpush.bf16.msra.mxu0 %v6273_v12  ;;  %v3992_v12 = vadd.f32 %v3991_v23, %v3978_v33  ;;  %v6993_v37 = vor.u32 %v7617_v26, %v6992_v29  ;;  %v4805_v25 = vor.u32 %v7067_v19, %v4802_v53  ;;  %v7609_v23 = vld [vmem:[%s11603_s1 + $0x1174] sm:$0xf0]  ;;  %v4914_v59 = vld [vmem:[%s11603_s1 + $0x178] sm:$0xf0]  ;;  %v4789_v29 = vor.u32 %v7063_v61, %v4786_v27  ;;  %v6944_v26 = vld [vmem:[%s11603_s1 + $0x1148] sm:$0xf] }
 0x1a4   :  { %4281 = vmatpush.bf16.msra.mxu1 %v6401_v28  ;;  %v7613_v28 = vld [vmem:[%s11603_s1 + $0x1194] sm:$0xf0]  ;;  %v4059_v11 = vpop.f32.mrf.mxu1  ;;  %v6961_v48 = vor.u32 %v7609_v23, %v6960_v8  ;;  %v6784_v23 = vld [vmem:[%s11603_s1 + $0x1008] sm:$0xf] }
 0x1a5   :  { %4295 = vmatpush.bf16.msra.mxu2 %v6529_v49  ;;  %v4019_v49 = vpop.f32.mrf.mxu2  ;;  %v4045_v4 = vpop.f32.mrf.mxu0  ;;  %v6977_v52 = vor.u32 %v7613_v28, %v6976_v50  ;;  %v4006_v63 = vadd.f32 %v4005_v15, %v3992_v12  ;;  %v7565_v61 = vld [vmem:[%s11603_s1 + $0x1014] sm:$0xf0] }
 0x1a6   :  { %4309 = vmatpush.bf16.msra.mxu3 %v6657_v54  ;;  %4268 = vmatmul.bf16.vlgmr.msra.gmra.mxu0 %v8585_v32  ;;  %v4032_v54 = vadd.f32 %v4031_v14, %v4018_v20  ;;  %v6832_v14 = vld [vmem:[%s11603_s1 + $0x1068] sm:$0xf]  ;;  %v7059_v20 = vld [vmem:[%s11603_s1 + $0x4c] sm:$0xf] }
 0x1a7   :  { %4316 = vmatpush.bf16.msrb.mxu0 %v6897_v21  ;;  %4282 = vmatmul.bf16.vlgmr.msra.gmra.mxu1 %v8598_v41  ;;  %v4033_v21 = vpop.f32.mrf.mxu3  ;;  %v4020_v15 = vadd.f32 %v4019_v49, %v4006_v63  ;;  %v6945_v49 = vor.u32 %v7605_v7, %v6944_v26  ;;  %v4866_v26 = vld [vmem:[%s11603_s1 + $0x118] sm:$0xf0] }
 0x1a8   :  { %4330 = vmatpush.bf16.msrb.mxu1 %v7025_v24  ;;  %4296 = vmatmul.bf16.vlgmr.msra.gmra.mxu2 %v8596_v38  ;;  %v4930_v24 = vld [vmem:[%s11603_s1 + $0x198] sm:$0xf0] }
 0x1a9   :  { %4344 = vmatpush.bf16.msrb.mxu2 %v4853_v62  ;;  %4310 = vmatmul.bf16.vlgmr.msra.gmra.mxu3 %v8606_v46  ;;  %v6849_v62 = vor.u32 %v7581_v34, %v6848_v0  ;;  %v4933_v9 = vor.u32 %v7099_v56, %v4930_v24  ;;  %v4034_v13 = vadd.f32 %v4033_v21, %v4020_v15  ;;  %v10650_v34 = vld [vmem:[%s11605_s2 + $0x1] ss:$4 sm:$0xf]  ;;  %v7569_v21 = vld [vmem:[%s11603_s1 + $0x1034] sm:$0xf0] }
 0x1aa   :  { %4358 = vmatpush.bf16.msrb.mxu3 %v4981_v2  ;;  %v4046_v2 = vadd.f32 %v4045_v4, %v4032_v54  ;;  %v4608_v50 = vperm.slane %v10650_v34, 1  ;;  %v4773_v54 = vor.u32 %v7059_v20, %v4770_v6  ;;  %v6928_v4 = vld [vmem:[%s11603_s1 + $0x1128] sm:$0xf]  ;;  %v7601_v56 = vld [vmem:[%s11603_s1 + $0x1134] sm:$0xf0] }
 0x1ab   :  { %4317 = vmatpush.bf16.msrb.mxu0 %v6881_v16  ;;  %v7095_v16 = vld [vmem:[%s11603_s1 + $0x16c] sm:$0xf]  ;;  %v5106_v6 = vld [vmem:[%s11603_s1 + $0x2f8] sm:$0xf0] }
 0x1ac   :  { %4331 = vmatpush.bf16.msrb.mxu1 %v7009_v57  ;;  %v6833_v57 = vor.u32 %v7577_v5, %v6832_v14  ;;  %v4060_v22 = vadd.f32 %v4059_v11, %v4046_v2  ;;  %v4917_v30 = vor.u32 %v7095_v16, %v4914_v59  ;;  %v4754_v11 = vld [vmem:[%s11603_s1 + $0x38] sm:$0xf0]  ;;  %v10674_v2 = vld [vmem:[%s11605_s2 + $0x2] ss:$4 sm:$0xf] }
 0x1ad   :  { %4345 = vmatpush.bf16.msrb.mxu2 %v4837_v42  ;;  %v6816_v42 = vld [vmem:[%s11603_s1 + $0x1048] sm:$0xf]  ;;  %v4073_v33 = vpop.f32.mrf.mxu2  ;;  %v4047_v0 = vpop.f32.mrf.mxu0  ;;  %v7087_v14 = vld [vmem:[%s11603_s1 + $0x12c] sm:$0xf]  ;;  %v4882_v5 = vld [vmem:[%s11603_s1 + $0x138] sm:$0xf0] }
 0x1ae   :  { %4359 = vmatpush.bf16.msrb.mxu3 %v4965_v60  ;;  %v7573_v60 = vld [vmem:[%s11603_s1 + $0x1054] sm:$0xf0]  ;;  %v4048_v19 = vadd.f32 %v4047_v0, %v4034_v13  ;;  %v6912_v59 = vld [vmem:[%s11603_s1 + $0x1108] sm:$0xf]  ;;  %v7143_v20 = vld [vmem:[%s11603_s1 + $0x2ec] sm:$0xf] }
 0x1af   :  { %4318 = vmatpush.bf16.msrb.mxu0 %v6865_v3  ;;  %v4074_v3 = vadd.f32 %v4073_v33, %v4060_v22  ;;  %v4087_v12 = vpop.f32.mrf.mxu3  ;;  %v6817_v28 = vor.u32 %v7573_v60, %v6816_v42  ;;  %v7051_v42 = vld [vmem:[%s11603_s1 + $0xc] sm:$0xf]  ;;  %v4885_v22 = vor.u32 %v7087_v14, %v4882_v5  ;;  %v5234_v0 = vld [vmem:[%s11603_s1 + $0x3f8] sm:$0xf0] }
 0x1b0   :  { %4332 = vmatpush.bf16.msrb.mxu1 %v6993_v37  ;;  %v7091_v37 = vld [vmem:[%s11603_s1 + $0x14c] sm:$0xf]  ;;  %v5346_v5 = vld [vmem:[%s11603_s1 + $0x4d8] sm:$0xf0] }
 0x1b1   :  { %4346 = vmatpush.bf16.msrb.mxu2 %v4821_v18  ;;  %v4898_v18 = vld [vmem:[%s11603_s1 + $0x158] sm:$0xf0]  ;;  %v4088_v53 = vadd.f32 %v4087_v12, %v4074_v3  ;;  %v7083_v60 = vld [vmem:[%s11603_s1 + $0x10c] sm:$0xf]  ;;  %v6785_v3 = vor.u32 %v7565_v61, %v6784_v23 }
 0x1b2   :  { %4360 = vmatpush.bf16.msrb.mxu3 %v4949_v55  ;;  %v6800_v55 = vld [vmem:[%s11603_s1 + $0x1028] sm:$0xf]  ;;  %v4901_v24 = vor.u32 %v7091_v37, %v4898_v18  ;;  %v7175_v13 = vld [vmem:[%s11603_s1 + $0x3ec] sm:$0xf]  ;;  %v5362_v37 = vld [vmem:[%s11603_s1 + $0x4f8] sm:$0xf0] }
 0x1b3   :  { %4319 = vmatpush.bf16.msrb.mxu0 %v6849_v62  ;;  %v4061_v62 = vpop.f32.mrf.mxu1  ;;  %v4597_v63 = vmax.f32 %v4088_v53, 0.0  ;;  %v6801_v8 = vor.u32 %v7569_v21, %v6800_v55  ;;  %v7207_v12 = vld [vmem:[%s11603_s1 + $0x4ec] sm:$0xf]  ;;  %v4869_v53 = vor.u32 %v7083_v60, %v4866_v26  ;;  %v5474_v23 = vld [vmem:[%s11603_s1 + $0x5d8] sm:$0xf0] }
 0x1b4   :  { %4333 = vmatpush.bf16.msrb.mxu1 %v6977_v52  ;;  %v7055_v52 = vld [vmem:[%s11603_s1 + $0x2c] sm:$0xf]  ;;  %v4062_v15 = vadd.f32 %v4061_v62, %v4048_v19  ;;  %v5490_v19 = vld [vmem:[%s11603_s1 + $0x5f8] sm:$0xf0] }
 0x1b5   :  { %4347 = vmatpush.bf16.msrb.mxu2 %v4805_v25  ;;  %v4627_v25 = vperm.slane %v10674_v2, 1  ;;  %v4616_v27 = vmul.f32 %v4608_v50, %v4597_v63  ;;  %v4757_v16 = vor.u32 %v7055_v52, %v4754_v11  ;;  %v7239_v55 = vld [vmem:[%s11603_s1 + $0x5ec] sm:$0xf]  ;;  %v5090_v62 = vld [vmem:[%s11603_s1 + $0x2d8] sm:$0xf0] }
 0x1b6   :  { %4361 = vmatpush.bf16.msrb.mxu3 %v4933_v9  ;;  %v6929_v9 = vor.u32 %v7601_v56, %v6928_v4  ;;  %v7139_v21 = vld [vmem:[%s11603_s1 + $0x2cc] sm:$0xf]  ;;  %v5237_v56 = vor.u32 %v7175_v13, %v5234_v0  ;;  %v5493_v11 = vor.u32 %v7239_v55, %v5490_v19  ;;  %v5218_v63 = vld [vmem:[%s11603_s1 + $0x3d8] sm:$0xf0] }
 0x1b7   :  { %4320 = vmatpush.bf16.msrb.mxu0 %v6833_v57  ;;  %v7597_v57 = vld [vmem:[%s11603_s1 + $0x1114] sm:$0xf0]  ;;  %v4635_v7 = vadd.f32 %v4627_v25, %v4616_v27  ;;  %v4089_v33 = vpop.f32.mrf.mxu3  ;;  %v7171_v52 = vld [vmem:[%s11603_s1 + $0x3cc] sm:$0xf]  ;;  %v5093_v61 = vor.u32 %v7139_v21, %v5090_v62  ;;  %v5170_v19 = vld [vmem:[%s11603_s1 + $0x378] sm:$0xf0] }
 0x1b8   :  { %4334 = vmatpush.bf16.msrb.mxu1 %v6961_v48  ;;  %v4075_v48 = vpop.f32.mrf.mxu2  ;;  %v7203_v14 = vld [vmem:[%s11603_s1 + $0x4cc] sm:$0xf]  ;;  %v5221_v34 = vor.u32 %v7171_v52, %v5218_v63 }
 0x1b9   :  { %4348 = vmatpush.bf16.msrb.mxu2 %v4789_v29  ;;  %v4738_v29 = vld [vmem:[%s11603_s1 + $0x18] sm:$0xf0]  ;;  %4643 = vst [vmem:[%s11606_s3 + $0x8] sm:$0xff] %v4635_v7  ;;  %v7131_v7 = vld [vmem:[%s11603_s1 + $0x28c] sm:$0xf] }
 0x1ba   :  { %4362 = vmatpush.bf16.msrb.mxu3 %v4917_v30  ;;  %v4076_v30 = vadd.f32 %v4075_v48, %v4062_v15  ;;  %v7135_v15 = vld [vmem:[%s11603_s1 + $0x2ac] sm:$0xf]  ;;  %v5458_v48 = vld [vmem:[%s11603_s1 + $0x5b8] sm:$0xf0] }
 0x1bb   :  { %4321 = vmatpush.bf16.msrb.mxu0 %v6817_v28  ;;  %v6913_v28 = vor.u32 %v7597_v57, %v6912_v59  ;;  %v7167_v59 = vld [vmem:[%s11603_s1 + $0x3ac] sm:$0xf] }
 0x1bc   :  { %4335 = vmatpush.bf16.msrb.mxu1 %v6945_v49  ;;  %v4090_v18 = vadd.f32 %v4089_v33, %v4076_v30  ;;  %v4741_v49 = vor.u32 %v7051_v42, %v4738_v29  ;;  %v7199_v57 = vld [vmem:[%s11603_s1 + $0x4ac] sm:$0xf]  ;;  %v5330_v42 = vld [vmem:[%s11603_s1 + $0x4b8] sm:$0xf0] }
 0x1bd   :  { %4349 = vmatpush.bf16.msrb.mxu2 %v4773_v54  ;;  %v5109_v54 = vor.u32 %v7143_v20, %v5106_v6  ;;  %v5333_v26 = vor.u32 %v7199_v57, %v5330_v42  ;;  %v5058_v30 = vld [vmem:[%s11603_s1 + $0x298] sm:$0xf0]  ;;  %v7195_v20 = vld [vmem:[%s11603_s1 + $0x48c] sm:$0xf] }
 0x1be   :  { %4363 = vmatpush.bf16.msrb.mxu3 %v4901_v24  ;;  %v4601_v4 = vmax.f32 %v4090_v18, 0.0  ;;  %v5365_v24 = vor.u32 %v7207_v12, %v5362_v37  ;;  %v5314_v6 = vld [vmem:[%s11603_s1 + $0x498] sm:$0xf0]  ;;  %v7227_v13 = vld [vmem:[%s11603_s1 + $0x58c] sm:$0xf]  ;;  %v5061_v0 = vor.u32 %v7131_v7, %v5058_v30 }
 0x1bf   :  { %4322 = vmatpush.bf16.msrb.mxu0 %v6801_v8  ;;  %v5317_v37 = vor.u32 %v7195_v20, %v5314_v6  ;;  %v7127_v18 = vld [vmem:[%s11603_s1 + $0x26c] sm:$0xf]  ;;  %v5266_v42 = vld [vmem:[%s11603_s1 + $0x438] sm:$0xf0] }
 0x1c0   :  { %4336 = vmatpush.bf16.msrb.mxu1 %v6929_v9  ;;  %v4620_v8 = vmul.f32 %v4608_v50, %v4601_v4  ;;  %v7235_v9 = vld [vmem:[%s11603_s1 + $0x5cc] sm:$0xf]  ;;  %v5349_v50 = vor.u32 %v7203_v14, %v5346_v5  ;;  %v5426_v4 = vld [vmem:[%s11603_s1 + $0x578] sm:$0xf0] }
 0x1c1   :  { %4350 = vmatpush.bf16.msrb.mxu2 %v4757_v16  ;;  %v5074_v16 = vld [vmem:[%s11603_s1 + $0x2b8] sm:$0xf0]  ;;  %v5477_v2 = vor.u32 %v7235_v9, %v5474_v23  ;;  %v7223_v21 = vld [vmem:[%s11603_s1 + $0x56c] sm:$0xf] }
 0x1c2   :  { %4364 = vmatpush.bf16.msrb.mxu3 %v4885_v22  ;;  %v4639_v27 = vadd.f32 %v4627_v25, %v4620_v8  ;;  %v5202_v25 = vld [vmem:[%s11603_s1 + $0x3b8] sm:$0xf0]  ;;  %v7231_v22 = vld [vmem:[%s11603_s1 + $0x5ac] sm:$0xf]  ;;  %v5077_v29 = vor.u32 %v7135_v15, %v5074_v16  ;;  %v5429_v14 = vor.u32 %v7223_v21, %v5426_v4 }
 0x1c3   :  { %4323 = vmatpush.bf16.msrb.mxu0 %v6785_v3  ;;  %v5205_v60 = vor.u32 %v7167_v59, %v5202_v25  ;;  %v5461_v33 = vor.u32 %v7231_v22, %v5458_v48  ;;  %v5442_v3 = vld [vmem:[%s11603_s1 + $0x598] sm:$0xf0]  ;;  %v7123_v52 = vld [vmem:[%s11603_s1 + $0x24c] sm:$0xf] }
 0x1c4   :  { %4337 = vmatpush.bf16.msrb.mxu1 %v6913_v28  ;;  %4647 = vst [vmem:[%s11606_s3 + $0x28] sm:$0xff] %v4639_v27  ;;  %v5042_v28 = vld [vmem:[%s11603_s1 + $0x278] sm:$0xf0]  ;;  %v5445_v55 = vor.u32 %v7227_v13, %v5442_v3  ;;  %v7155_v63 = vld [vmem:[%s11603_s1 + $0x34c] sm:$0xf] }
 0x1c5   :  { %4351 = vmatpush.bf16.msrb.mxu2 %v4741_v49  ;;  %v7159_v49 = vld [vmem:[%s11603_s1 + $0x36c] sm:$0xf]  ;;  %v5154_v5 = vld [vmem:[%s11603_s1 + $0x358] sm:$0xf0] }
 0x1c6   :  { %4365 = vmatpush.bf16.msrb.mxu3 %v4869_v53  ;;  %4324 = vmatmul.bf16.vlgmr.msrb.gmra.mxu0 %v8801_v45  ;;  %v7191_v53 = vld [vmem:[%s11603_s1 + $0x46c] sm:$0xf]  ;;  %v5282_v9 = vld [vmem:[%s11603_s1 + $0x458] sm:$0xf0] }
 0x1c7   :  { %4372 = vmatpush.bf16.msra.mxu0 %v5109_v54  ;;  %4338 = vmatmul.bf16.vlgmr.msrb.gmra.mxu1 %v8812_v51  ;;  %v5298_v54 = vld [vmem:[%s11603_s1 + $0x478] sm:$0xf0]  ;;  %v7187_v8 = vld [vmem:[%s11603_s1 + $0x44c] sm:$0xf] }
 0x1c8   :  { %4386 = vmatpush.bf16.msra.mxu1 %v5237_v56  ;;  %4352 = vmatmul.bf16.vlgmr.msrb.gmra.mxu2 %v7907_v58  ;;  %v7163_v58 = vld [vmem:[%s11603_s1 + $0x38c] sm:$0xf]  ;;  %v5045_v56 = vor.u32 %v7127_v18, %v5042_v28  ;;  %v5301_v62 = vor.u32 %v7191_v53, %v5298_v54  ;;  %v5010_v16 = vld [vmem:[%s11603_s1 + $0x238] sm:$0xf0] }
 0x1c9   :  { %4400 = vmatpush.bf16.msra.mxu2 %v5365_v24  ;;  %4366 = vmatmul.bf16.vlgmr.msrb.gmra.mxu3 %v7943_v10  ;;  %v5186_v10 = vld [vmem:[%s11603_s1 + $0x398] sm:$0xf0]  ;;  %v5173_v24 = vor.u32 %v7159_v49, %v5170_v19  ;;  %v7219_v23 = vld [vmem:[%s11603_s1 + $0x54c] sm:$0xf] }
 0x1ca   :  { %4414 = vmatpush.bf16.msra.mxu3 %v5493_v11  ;;  %v5189_v12 = vor.u32 %v7163_v58, %v5186_v10  ;;  %v5026_v11 = vld [vmem:[%s11603_s1 + $0x258] sm:$0xf0]  ;;  %v7119_v15 = vld [vmem:[%s11603_s1 + $0x22c] sm:$0xf] }
 0x1cb   :  { %4373 = vmatpush.bf16.msra.mxu0 %v5093_v61  ;;  %v5410_v61 = vld [vmem:[%s11603_s1 + $0x558] sm:$0xf0]  ;;  %v5029_v27 = vor.u32 %v7123_v52, %v5026_v11  ;;  %v7151_v59 = vld [vmem:[%s11603_s1 + $0x32c] sm:$0xf] }
 0x1cc   :  { %4387 = vmatpush.bf16.msra.mxu1 %v5221_v34  ;;  %v5157_v34 = vor.u32 %v7155_v63, %v5154_v5  ;;  %v5138_v25 = vld [vmem:[%s11603_s1 + $0x338] sm:$0xf0]  ;;  %v7183_v57 = vld [vmem:[%s11603_s1 + $0x42c] sm:$0xf] }
 0x1cd   :  { %4401 = vmatpush.bf16.msra.mxu2 %v5349_v50  ;;  %v5285_v50 = vor.u32 %v7187_v8, %v5282_v9  ;;  %v7215_v22 = vld [vmem:[%s11603_s1 + $0x52c] sm:$0xf]  ;;  %v5394_v48 = vld [vmem:[%s11603_s1 + $0x538] sm:$0xf0]  ;;  %v5141_v7 = vor.u32 %v7151_v59, %v5138_v25  ;;  %v5269_v30 = vor.u32 %v7183_v57, %v5266_v42 }
 0x1ce   :  { %4415 = vmatpush.bf16.msra.mxu3 %v5477_v2  ;;  %v5413_v2 = vor.u32 %v7219_v23, %v5410_v61  ;;  %v7147_v58 = vld [vmem:[%s11603_s1 + $0x30c] sm:$0xf]  ;;  %v5397_v20 = vor.u32 %v7215_v22, %v5394_v48  ;;  %v5250_v6 = vld [vmem:[%s11603_s1 + $0x418] sm:$0xf0] }
 0x1cf   :  { %4374 = vmatpush.bf16.msra.mxu0 %v5077_v29  ;;  %v5013_v29 = vor.u32 %v7119_v15, %v5010_v16  ;;  %v7179_v10 = vld [vmem:[%s11603_s1 + $0x40c] sm:$0xf]  ;;  %v5378_v3 = vld [vmem:[%s11603_s1 + $0x518] sm:$0xf0] }
 0x1d0   :  { %4388 = vmatpush.bf16.msra.mxu1 %v5205_v60  ;;  %v7115_v60 = vld [vmem:[%s11603_s1 + $0x20c] sm:$0xf]  ;;  %v5746_v28 = vld [vmem:[%s11603_s1 + $0x7f8] sm:$0xf0]  ;;  %v5253_v53 = vor.u32 %v7179_v10, %v5250_v6 }
 0x1d1   :  { %4402 = vmatpush.bf16.msra.mxu2 %v5333_v26  ;;  %v4994_v26 = vld [vmem:[%s11603_s1 + $0x218] sm:$0xf0]  ;;  %v7211_v13 = vld [vmem:[%s11603_s1 + $0x50c] sm:$0xf] }
 0x1d2   :  { %4416 = vmatpush.bf16.msra.mxu3 %v5461_v33  ;;  %v5122_v33 = vld [vmem:[%s11603_s1 + $0x318] sm:$0xf0]  ;;  %v4997_v18 = vor.u32 %v7115_v60, %v4994_v26  ;;  %v7335_v49 = vld [vmem:[%s11603_s1 + $0x8ec] sm:$0xf]  ;;  %v5381_v4 = vor.u32 %v7211_v13, %v5378_v3 }
 0x1d3   :  { %4375 = vmatpush.bf16.msra.mxu0 %v5061_v0  ;;  %v7271_v0 = vld [vmem:[%s11603_s1 + $0x6ec] sm:$0xf]  ;;  %v5125_v19 = vor.u32 %v7147_v58, %v5122_v33  ;;  %v6002_v21 = vld [vmem:[%s11603_s1 + $0x9f8] sm:$0xf0] }
 0x1d4   :  { %4389 = vmatpush.bf16.msra.mxu1 %v5189_v12  ;;  %v5618_v12 = vld [vmem:[%s11603_s1 + $0x6f8] sm:$0xf0]  ;;  %v7367_v54 = vld [vmem:[%s11603_s1 + $0x9ec] sm:$0xf] }
 0x1d5   :  { %4403 = vmatpush.bf16.msra.mxu2 %v5317_v37  ;;  %v7303_v37 = vld [vmem:[%s11603_s1 + $0x7ec] sm:$0xf]  ;;  %v5602_v11 = vld [vmem:[%s11603_s1 + $0x6d8] sm:$0xf0] }
 0x1d6   :  { %4417 = vmatpush.bf16.msra.mxu3 %v5445_v55  ;;  %v5874_v55 = vld [vmem:[%s11603_s1 + $0x8f8] sm:$0xf0]  ;;  %v7267_v52 = vld [vmem:[%s11603_s1 + $0x6cc] sm:$0xf] }
 0x1d7   :  { %4376 = vmatpush.bf16.msra.mxu0 %v5045_v56  ;;  %v5621_v56 = vor.u32 %v7271_v0, %v5618_v12  ;;  %v7299_v63 = vld [vmem:[%s11603_s1 + $0x7cc] sm:$0xf]  ;;  %v5730_v5 = vld [vmem:[%s11603_s1 + $0x7d8] sm:$0xf0] }
 0x1d8   :  { %4390 = vmatpush.bf16.msra.mxu1 %v5173_v24  ;;  %v5749_v24 = vor.u32 %v7303_v37, %v5746_v28  ;;  %v7331_v8 = vld [vmem:[%s11603_s1 + $0x8cc] sm:$0xf]  ;;  %v5858_v9 = vld [vmem:[%s11603_s1 + $0x8d8] sm:$0xf0] }
 0x1d9   :  { %4404 = vmatpush.bf16.msra.mxu2 %v5301_v62  ;;  %v5877_v62 = vor.u32 %v7335_v49, %v5874_v55  ;;  %v7363_v23 = vld [vmem:[%s11603_s1 + $0x9cc] sm:$0xf]  ;;  %v5986_v61 = vld [vmem:[%s11603_s1 + $0x9d8] sm:$0xf0] }
 0x1da   :  { %4418 = vmatpush.bf16.msra.mxu3 %v5429_v14  ;;  %v6005_v14 = vor.u32 %v7367_v54, %v6002_v21  ;;  %v7263_v15 = vld [vmem:[%s11603_s1 + $0x6ac] sm:$0xf]  ;;  %v5586_v16 = vld [vmem:[%s11603_s1 + $0x6b8] sm:$0xf0] }
 0x1db   :  { %4377 = vmatpush.bf16.msra.mxu0 %v5029_v27  ;;  %v5605_v27 = vor.u32 %v7267_v52, %v5602_v11  ;;  %v7295_v59 = vld [vmem:[%s11603_s1 + $0x7ac] sm:$0xf]  ;;  %v5714_v25 = vld [vmem:[%s11603_s1 + $0x7b8] sm:$0xf0]  ;;  %v5589_v48 = vor.u32 %v7263_v15, %v5586_v16 }
 0x1dc   :  { %4391 = vmatpush.bf16.msra.mxu1 %v5157_v34  ;;  %v5733_v34 = vor.u32 %v7299_v63, %v5730_v5  ;;  %v7327_v57 = vld [vmem:[%s11603_s1 + $0x8ac] sm:$0xf]  ;;  %v5842_v42 = vld [vmem:[%s11603_s1 + $0x8b8] sm:$0xf0] }
 0x1dd   :  { %4405 = vmatpush.bf16.msra.mxu2 %v5285_v50  ;;  %v5861_v50 = vor.u32 %v7331_v8, %v5858_v9  ;;  %v5970_v22 = vld [vmem:[%s11603_s1 + $0x9b8] sm:$0xf0]  ;;  %v5845_v60 = vor.u32 %v7327_v57, %v5842_v42  ;;  %v7291_v26 = vld [vmem:[%s11603_s1 + $0x78c] sm:$0xf] }
 0x1de   :  { %4419 = vmatpush.bf16.msra.mxu3 %v5413_v2  ;;  %v5989_v2 = vor.u32 %v7363_v23, %v5986_v61  ;;  %v5826_v58 = vld [vmem:[%s11603_s1 + $0x898] sm:$0xf0]  ;;  %v7355_v33 = vld [vmem:[%s11603_s1 + $0x98c] sm:$0xf] }
 0x1df   :  { %4378 = vmatpush.bf16.msra.mxu0 %v5013_v29  ;;  %v5717_v29 = vor.u32 %v7295_v59, %v5714_v25  ;;  %v5954_v10 = vld [vmem:[%s11603_s1 + $0x998] sm:$0xf0]  ;;  %v7255_v3 = vld [vmem:[%s11603_s1 + $0x66c] sm:$0xf] }
 0x1e0   :  { %4392 = vmatpush.bf16.msra.mxu1 %v5141_v7  ;;  %v5698_v7 = vld [vmem:[%s11603_s1 + $0x798] sm:$0xf0]  ;;  %v7287_v12 = vld [vmem:[%s11603_s1 + $0x76c] sm:$0xf]  ;;  %v5957_v37 = vor.u32 %v7355_v33, %v5954_v10 }
 0x1e1   :  { %4406 = vmatpush.bf16.msra.mxu2 %v5269_v30  ;;  %v7323_v30 = vld [vmem:[%s11603_s1 + $0x88c] sm:$0xf]  ;;  %v5701_v6 = vor.u32 %v7291_v26, %v5698_v7  ;;  %v5554_v0 = vld [vmem:[%s11603_s1 + $0x678] sm:$0xf0] }
 0x1e2   :  { %4420 = vmatpush.bf16.msra.mxu3 %v5397_v20  ;;  %v5829_v13 = vor.u32 %v7323_v30, %v5826_v58  ;;  %v7319_v28 = vld [vmem:[%s11603_s1 + $0x86c] sm:$0xf]  ;;  %v5810_v49 = vld [vmem:[%s11603_s1 + $0x878] sm:$0xf0]  ;;  %v11113_v30 = vpop.f32.mrf.mxu0 }
 0x1e3   :  { %4379 = vmatpush.bf16.msra.mxu0 %v4997_v18  ;;  %v5682_v18 = vld [vmem:[%s11603_s1 + $0x778] sm:$0xf0]  ;;  %v7351_v55 = vld [vmem:[%s11603_s1 + $0x96c] sm:$0xf]  ;;  %v5813_v21 = vor.u32 %v7319_v28, %v5810_v49 }
 0x1e4   :  { %4393 = vmatpush.bf16.msra.mxu1 %v5125_v19  ;;  %v5938_v19 = vld [vmem:[%s11603_s1 + $0x978] sm:$0xf0]  ;;  %v5685_v54 = vor.u32 %v7287_v12, %v5682_v18  ;;  %v7315_v11 = vld [vmem:[%s11603_s1 + $0x84c] sm:$0xf] }
 0x1e5   :  { %4407 = vmatpush.bf16.msra.mxu2 %v5253_v53  ;;  %v5557_v53 = vor.u32 %v7255_v3, %v5554_v0  ;;  %v5666_v52 = vld [vmem:[%s11603_s1 + $0x758] sm:$0xf0]  ;;  %v7247_v61 = vld [vmem:[%s11603_s1 + $0x62c] sm:$0xf] }
 0x1e6   :  { %4421 = vmatpush.bf16.msra.mxu3 %v5381_v4  ;;  %4380 = vmatmul.bf16.vlgmr.msra.gmra.mxu0 %v7921_v1  ;;  %v7359_v1 = vld [vmem:[%s11603_s1 + $0x9ac] sm:$0xf]  ;;  %v5794_v63 = vld [vmem:[%s11603_s1 + $0x858] sm:$0xf0] }
 0x1e7   :  { %4428 = vmatpush.bf16.msrb.mxu0 %v5621_v56  ;;  %4394 = vmatmul.bf16.vlgmr.msra.gmra.mxu1 %v7957_v17  ;;  %v7259_v17 = vld [vmem:[%s11603_s1 + $0x68c] sm:$0xf]  ;;  %v5538_v56 = vld [vmem:[%s11603_s1 + $0x658] sm:$0xf0]  ;;  %v5797_v23 = vor.u32 %v7315_v11, %v5794_v63 }
 0x1e8   :  { %4442 = vmatpush.bf16.msrb.mxu1 %v5749_v24  ;;  %4408 = vmatmul.bf16.vlgmr.msra.gmra.mxu2 %v8129_v39  ;;  %v5570_v39 = vld [vmem:[%s11603_s1 + $0x698] sm:$0xf0]  ;;  %v7251_v4 = vld [vmem:[%s11603_s1 + $0x64c] sm:$0xf] }
 0x1e9   :  { %4456 = vmatpush.bf16.msrb.mxu2 %v5877_v62  ;;  %4422 = vmatmul.bf16.vlgmr.msra.gmra.mxu3 %v8142_v44  ;;  %v5973_v44 = vor.u32 %v7359_v1, %v5970_v22  ;;  %v5573_v20 = vor.u32 %v7259_v17, %v5570_v39  ;;  %v7283_v24 = vld [vmem:[%s11603_s1 + $0x74c] sm:$0xf]  ;;  %v5941_v62 = vor.u32 %v7351_v55, %v5938_v19  ;;  %v5922_v5 = vld [vmem:[%s11603_s1 + $0x958] sm:$0xf0] }
 0x1ea   :  { %4470 = vmatpush.bf16.msrb.mxu3 %v6005_v14  ;;  %v7347_v14 = vld [vmem:[%s11603_s1 + $0x94c] sm:$0xf]  ;;  %v5541_v8 = vor.u32 %v7251_v4, %v5538_v56  ;;  %v5669_v9 = vor.u32 %v7283_v24, %v5666_v52  ;;  %v5650_v15 = vld [vmem:[%s11603_s1 + $0x738] sm:$0xf0] }
 0x1eb   :  { %4429 = vmatpush.bf16.msrb.mxu0 %v5605_v27  ;;  %v5522_v27 = vld [vmem:[%s11603_s1 + $0x638] sm:$0xf0]  ;;  %v7311_v16 = vld [vmem:[%s11603_s1 + $0x82c] sm:$0xf] }
 0x1ec   :  { %4443 = vmatpush.bf16.msrb.mxu1 %v5733_v34  ;;  %v7279_v34 = vld [vmem:[%s11603_s1 + $0x72c] sm:$0xf]  ;;  %v5778_v59 = vld [vmem:[%s11603_s1 + $0x838] sm:$0xf0]  ;;  %v5525_v57 = vor.u32 %v7247_v61, %v5522_v27 }
 0x1ed   :  { %4457 = vmatpush.bf16.msrb.mxu2 %v5861_v50  ;;  %v5925_v50 = vor.u32 %v7347_v14, %v5922_v5  ;;  %v5906_v25 = vld [vmem:[%s11603_s1 + $0x938] sm:$0xf0]  ;;  %v7243_v42 = vld [vmem:[%s11603_s1 + $0x60c] sm:$0xf]  ;;  %v5653_v22 = vor.u32 %v7279_v34, %v5650_v15  ;;  %v11165_v5 = vpop.f32.mrf.mxu2 }
 0x1ee   :  { %4471 = vmatpush.bf16.msrb.mxu3 %v5989_v2  ;;  %v7343_v2 = vld [vmem:[%s11603_s1 + $0x92c] sm:$0xf]  ;;  %v5506_v1 = vld [vmem:[%s11603_s1 + $0x618] sm:$0xf0] }
 0x1ef   :  { %4430 = vmatpush.bf16.msrb.mxu0 %v5589_v48  ;;  %v5781_v48 = vor.u32 %v7311_v16, %v5778_v59  ;;  %v7307_v17 = vld [vmem:[%s11603_s1 + $0x80c] sm:$0xf]  ;;  %v5909_v39 = vor.u32 %v7343_v2, %v5906_v25  ;;  %v5762_v26 = vld [vmem:[%s11603_s1 + $0x818] sm:$0xf0]  ;;  %v11186_v59 = vpop.f32.mrf.mxu0 }
 0x1f0   :  { %4444 = vmatpush.bf16.msrb.mxu1 %v5717_v29  ;;  %v7275_v29 = vld [vmem:[%s11603_s1 + $0x70c] sm:$0xf]  ;;  %v5890_v7 = vld [vmem:[%s11603_s1 + $0x918] sm:$0xf0] }
 0x1f1   :  { %4458 = vmatpush.bf16.msrb.mxu2 %v5845_v60  ;;  %v5634_v60 = vld [vmem:[%s11603_s1 + $0x718] sm:$0xf0]  ;;  %v7399_v58 = vld [vmem:[%s11603_s1 + $0xaec] sm:$0xf] }
 0x1f2   :  { %4472 = vmatpush.bf16.msrb.mxu3 %v5973_v44  ;;  %v7339_v44 = vld [vmem:[%s11603_s1 + $0x90c] sm:$0xf]  ;;  %v6130_v33 = vld [vmem:[%s11603_s1 + $0xaf8] sm:$0xf0]  ;;  %v5637_v12 = vor.u32 %v7275_v29, %v5634_v60 }
 0x1f3   :  { %4431 = vmatpush.bf16.msrb.mxu0 %v5573_v20  ;;  %v7431_v10 = vld [vmem:[%s11603_s1 + $0xbec] sm:$0xf]  ;;  %v11124_v20 = vpop.f32.mrf.mxu1  ;;  %v6386_v0 = vld [vmem:[%s11603_s1 + $0xcf8] sm:$0xf0]  ;;  %v5893_v49 = vor.u32 %v7339_v44, %v5890_v7  ;;  %v6133_v55 = vor.u32 %v7399_v58, %v6130_v33 }
 0x1f4   :  { %4445 = vmatpush.bf16.msrb.mxu1 %v5701_v6  ;;  %v5509_v6 = vor.u32 %v7243_v42, %v5506_v1  ;;  %v7463_v3 = vld [vmem:[%s11603_s1 + $0xcec] sm:$0xf]  ;;  %v6514_v28 = vld [vmem:[%s11603_s1 + $0xdf8] sm:$0xf0]  ;;  %v11199_v42 = vpop.f32.mrf.mxu3 }
 0x1f5   :  { %4459 = vmatpush.bf16.msrb.mxu2 %v5829_v13  ;;  %v6258_v13 = vld [vmem:[%s11603_s1 + $0xbf8] sm:$0xf0]  ;;  %v7495_v18 = vld [vmem:[%s11603_s1 + $0xdec] sm:$0xf] }
 0x1f6   :  { %4473 = vmatpush.bf16.msrb.mxu3 %v5957_v37  ;;  %v5765_v37 = vor.u32 %v7307_v17, %v5762_v26  ;;  %v6261_v19 = vor.u32 %v7431_v10, %v6258_v13  ;;  %v7427_v4 = vld [vmem:[%s11603_s1 + $0xbcc] sm:$0xf]  ;;  %v6517_v56 = vor.u32 %v7495_v18, %v6514_v28  ;;  %v6242_v24 = vld [vmem:[%s11603_s1 + $0xbd8] sm:$0xf0]  ;;  %v11249_v28 = vpop.f32.mrf.mxu2 }
 0x1f7   :  { %4432 = vmatpush.bf16.msrb.mxu0 %v5557_v53  ;;  %v6389_v53 = vor.u32 %v7463_v3, %v6386_v0  ;;  %v6370_v52 = vld [vmem:[%s11603_s1 + $0xcd8] sm:$0xf0]  ;;  %v7491_v11 = vld [vmem:[%s11603_s1 + $0xdcc] sm:$0xf] }
 0x1f8   :  { %4446 = vmatpush.bf16.msrb.mxu1 %v5685_v54  ;;  %v7395_v54 = vld [vmem:[%s11603_s1 + $0xacc] sm:$0xf]  ;;  %v6498_v63 = vld [vmem:[%s11603_s1 + $0xdd8] sm:$0xf0] }
 0x1f9   :  { %4460 = vmatpush.bf16.msrb.mxu2 %v5813_v21  ;;  %v6114_v21 = vld [vmem:[%s11603_s1 + $0xad8] sm:$0xf0]  ;;  %v7423_v27 = vld [vmem:[%s11603_s1 + $0xbac] sm:$0xf]  ;;  %v6501_v34 = vor.u32 %v7491_v11, %v6498_v63 }
 0x1fa   :  { %4474 = vmatpush.bf16.msrb.mxu3 %v5941_v62  ;;  %v7459_v62 = vld [vmem:[%s11603_s1 + $0xccc] sm:$0xf]  ;;  %v6117_v14 = vor.u32 %v7395_v54, %v6114_v21  ;;  %v6098_v61 = vld [vmem:[%s11603_s1 + $0xab8] sm:$0xf0] }
 0x1fb   :  { %4433 = vmatpush.bf16.msrb.mxu0 %v5541_v8  ;;  %v6245_v8 = vor.u32 %v7427_v4, %v6242_v24  ;;  %v7455_v15 = vld [vmem:[%s11603_s1 + $0xcac] sm:$0xf]  ;;  %v6354_v16 = vld [vmem:[%s11603_s1 + $0xcb8] sm:$0xf0]  ;;  %v11196_v25 = vpop.f32.mrf.mxu1 }
 0x1fc   :  { %4447 = vmatpush.bf16.msrb.mxu1 %v5669_v9  ;;  %v6373_v9 = vor.u32 %v7459_v62, %v6370_v52  ;;  %v6482_v2 = vld [vmem:[%s11603_s1 + $0xdb8] sm:$0xf0]  ;;  %v7387_v1 = vld [vmem:[%s11603_s1 + $0xa8c] sm:$0xf] }
 0x1fd   :  { %4461 = vmatpush.bf16.msrb.mxu2 %v5797_v23  ;;  %v7391_v23 = vld [vmem:[%s11603_s1 + $0xaac] sm:$0xf]  ;;  %v6210_v29 = vld [vmem:[%s11603_s1 + $0xb98] sm:$0xf0] }
 0x1fe   :  { %4475 = vmatpush.bf16.msrb.mxu3 %v5925_v50  ;;  %v6226_v50 = vld [vmem:[%s11603_s1 + $0xbb8] sm:$0xf0]  ;;  %v7451_v60 = vld [vmem:[%s11603_s1 + $0xc8c] sm:$0xf] }
 0x1ff   :  { %4434 = vmatpush.bf16.msrb.mxu0 %v5525_v57  ;;  %v6101_v57 = vor.u32 %v7391_v23, %v6098_v61  ;;  %v6338_v17 = vld [vmem:[%s11603_s1 + $0xc98] sm:$0xf0]  ;;  %v11228_v44 = vld [vmem:[%s11605_s2] ss:$4 sm:$0xf] }
 0x200   :  { %4448 = vmatpush.bf16.msrb.mxu1 %v5653_v22  ;;  %v6082_v22 = vld [vmem:[%s11603_s1 + $0xa98] sm:$0xf0]  ;;  %v612_v7 = vperm.slane %v11228_v44, 2  ;;  %v6341_v10 = vor.u32 %v7451_v60, %v6338_v17  ;;  %v7415_v3 = vld [vmem:[%s11603_s1 + $0xb6c] sm:$0xf] }
 0x201   :  { %4462 = vmatpush.bf16.msrb.mxu2 %v5781_v48  ;;  %v6466_v26 = vld [vmem:[%s11603_s1 + $0xd98] sm:$0xf0]  ;;  %v6085_v58 = vor.u32 %v7387_v1, %v6082_v22  ;;  %v7379_v4 = vld [vmem:[%s11603_s1 + $0xa4c] sm:$0xf] }
 0x202   :  { %4476 = vmatpush.bf16.msrb.mxu3 %v5909_v39  ;;  %v7483_v39 = vld [vmem:[%s11603_s1 + $0xd8c] sm:$0xf]  ;;  %v6066_v13 = vld [vmem:[%s11603_s1 + $0xa78] sm:$0xf0]  ;;  %v4102_v62 = vadd.f32 %v11113_v30, %v612_v7 }
 0x203   :  { %4435 = vmatpush.bf16.msrb.mxu0 %v5509_v6  ;;  %v7383_v6 = vld [vmem:[%s11603_s1 + $0xa6c] sm:$0xf]  ;;  %v6469_v0 = vor.u32 %v7483_v39, %v6466_v26  ;;  %v6322_v18 = vld [vmem:[%s11603_s1 + $0xc78] sm:$0xf0]  ;;  %v11271_v52 = vpop.f32.mrf.mxu1 }
 0x204   :  { %4449 = vmatpush.bf16.msrb.mxu1 %v5637_v12  ;;  %v6194_v12 = vld [vmem:[%s11603_s1 + $0xb78] sm:$0xf0]  ;;  %v7411_v24 = vld [vmem:[%s11603_s1 + $0xb4c] sm:$0xf] }
 0x205   :  { %4463 = vmatpush.bf16.msrb.mxu2 %v5765_v37  ;;  %v7447_v37 = vld [vmem:[%s11603_s1 + $0xc6c] sm:$0xf]  ;;  %v6197_v54 = vor.u32 %v7415_v3, %v6194_v12  ;;  %v6178_v63 = vld [vmem:[%s11603_s1 + $0xb58] sm:$0xf0] }
 0x206   :  { %4477 = vmatpush.bf16.msrb.mxu3 %v5893_v49  ;;  %4436 = vmatmul.bf16.vlgmr.msrb.gmra.mxu0 %v8140_v43  ;;  %v7487_v43 = vld [vmem:[%s11603_s1 + $0xdac] sm:$0xf]  ;;  %v6325_v21 = vor.u32 %v7447_v37, %v6322_v18  ;;  %v6434_v23 = vld [vmem:[%s11603_s1 + $0xd58] sm:$0xf0]  ;;  %v4104_v18 = vadd.f32 %v11186_v59, %v612_v7 }
 0x207   :  { %4484 = vmatpush.bf16.msra.mxu0 %v6133_v55  ;;  %4450 = vmatmul.bf16.vlgmr.msrb.gmra.mxu1 %v8150_v47  ;;  %v6357_v47 = vor.u32 %v7455_v15, %v6354_v16  ;;  %v6485_v48 = vor.u32 %v7487_v43, %v6482_v2  ;;  %v7479_v49 = vld [vmem:[%s11603_s1 + $0xd6c] sm:$0xf]  ;;  %v6450_v55 = vld [vmem:[%s11603_s1 + $0xd78] sm:$0xf0]  ;;  %v4116_v43 = vadd.f32 %v11124_v20, %v4102_v62 }
 0x208   :  { %4498 = vmatpush.bf16.msra.mxu1 %v6261_v19  ;;  %4464 = vmatmul.bf16.vlgmr.msrb.gmra.mxu2 %v8357_v31  ;;  %v6229_v31 = vor.u32 %v7423_v27, %v6226_v50  ;;  %v6069_v19 = vor.u32 %v7383_v6, %v6066_v13  ;;  %v6453_v11 = vor.u32 %v7479_v49, %v6450_v55  ;;  %v7475_v30 = vld [vmem:[%s11603_s1 + $0xd4c] sm:$0xf]  ;;  %v6034_v15 = vld [vmem:[%s11603_s1 + $0xa38] sm:$0xf0] }
 0x209   :  { %4512 = vmatpush.bf16.msra.mxu2 %v6389_v53  ;;  %4478 = vmatmul.bf16.vlgmr.msrb.gmra.mxu3 %v8370_v36  ;;  %v7419_v36 = vld [vmem:[%s11603_s1 + $0xb8c] sm:$0xf]  ;;  %v11257_v53 = vpop.f32.mrf.mxu0  ;;  %v6181_v27 = vor.u32 %v7411_v24, %v6178_v63  ;;  %v6437_v2 = vor.u32 %v7475_v30, %v6434_v23  ;;  %v6418_v20 = vld [vmem:[%s11603_s1 + $0xd38] sm:$0xf0] }
 0x20a   :  { %4526 = vmatpush.bf16.msra.mxu3 %v6517_v56  ;;  %v6213_v33 = vor.u32 %v7419_v36, %v6210_v29  ;;  %v6050_v56 = vld [vmem:[%s11603_s1 + $0xa58] sm:$0xf0]  ;;  %v7375_v50 = vld [vmem:[%s11603_s1 + $0xa2c] sm:$0xf]  ;;  %v11321_v29 = vpop.f32.mrf.mxu2 }
 0x20b   :  { %4485 = vmatpush.bf16.msra.mxu0 %v6117_v14  ;;  %v7443_v14 = vld [vmem:[%s11603_s1 + $0xc4c] sm:$0xf]  ;;  %v6053_v61 = vor.u32 %v7379_v4, %v6050_v56  ;;  %v6037_v22 = vor.u32 %v7375_v50, %v6034_v15  ;;  %v6146_v26 = vld [vmem:[%s11603_s1 + $0xb18] sm:$0xf0]  ;;  %v11356_v49 = vpop.f32.mrf.mxu1 }
 0x20c   :  { %4499 = vmatpush.bf16.msra.mxu1 %v6245_v8  ;;  %v6306_v8 = vld [vmem:[%s11603_s1 + $0xc58] sm:$0xf0]  ;;  %v7407_v16 = vld [vmem:[%s11603_s1 + $0xb2c] sm:$0xf] }
 0x20d   :  { %4513 = vmatpush.bf16.msra.mxu2 %v6373_v9  ;;  %v11282_v9 = vpop.f32.mrf.mxu3  ;;  %v7471_v1 = vld [vmem:[%s11603_s1 + $0xd2c] sm:$0xf]  ;;  %v6274_v6 = vld [vmem:[%s11603_s1 + $0xc18] sm:$0xf0] }
 0x20e   :  { %4527 = vmatpush.bf16.msra.mxu3 %v6501_v34  ;;  %v6309_v34 = vor.u32 %v7443_v14, %v6306_v8  ;;  %v7371_v36 = vld [vmem:[%s11603_s1 + $0xa0c] sm:$0xf]  ;;  %v6402_v3 = vld [vmem:[%s11603_s1 + $0xd18] sm:$0xf0] }
 0x20f   :  { %4486 = vmatpush.bf16.msra.mxu0 %v6101_v57  ;;  %v6162_v57 = vld [vmem:[%s11603_s1 + $0xb38] sm:$0xf0]  ;;  %v7403_v39 = vld [vmem:[%s11603_s1 + $0xb0c] sm:$0xf] }
 0x210   :  { %4500 = vmatpush.bf16.msra.mxu1 %v6229_v31  ;;  %v7439_v31 = vld [vmem:[%s11603_s1 + $0xc2c] sm:$0xf]  ;;  %v6165_v60 = vor.u32 %v7407_v16, %v6162_v57  ;;  %v6642_v12 = vld [vmem:[%s11603_s1 + $0xef8] sm:$0xf0]  ;;  %v6149_v59 = vor.u32 %v7403_v39, %v6146_v26 }
 0x211   :  { %4514 = vmatpush.bf16.msra.mxu2 %v6357_v47  ;;  %v6290_v47 = vld [vmem:[%s11603_s1 + $0xc38] sm:$0xf0]  ;;  %v7467_v13 = vld [vmem:[%s11603_s1 + $0xd0c] sm:$0xf] }
 0x212   :  { %4528 = vmatpush.bf16.msra.mxu3 %v6485_v48  ;;  %v6018_v48 = vld [vmem:[%s11603_s1 + $0xa18] sm:$0xf0]  ;;  %v6293_v17 = vor.u32 %v7439_v31, %v6290_v47  ;;  %v7559_v37 = vld [vmem:[%s11603_s1 + $0xfec] sm:$0xf]  ;;  %v11402_v57 = vpop.f32.mrf.mxu2 }
 0x213   :  { %4487 = vmatpush.bf16.msra.mxu0 %v6085_v58  ;;  %v7435_v58 = vld [vmem:[%s11603_s1 + $0xc0c] sm:$0xf]  ;;  %v6021_v55 = vor.u32 %v7371_v36, %v6018_v48  ;;  %v7026_v24 = vld [vmem:[%s11603_s1 + $0x11f8] sm:$0xf0]  ;;  %v11416_v48 = vpop.f32.mrf.mxu1 }
 0x214   :  { %4501 = vmatpush.bf16.msra.mxu1 %v6213_v33  ;;  %v4130_v33 = vadd.f32 %v11165_v5, %v4116_v43  ;;  %v7527_v5 = vld [vmem:[%s11603_s1 + $0xeec] sm:$0xf]  ;;  %v6277_v7 = vor.u32 %v7435_v58, %v6274_v6  ;;  %v6626_v23 = vld [vmem:[%s11603_s1 + $0xed8] sm:$0xf0] }
 0x215   :  { %4515 = vmatpush.bf16.msra.mxu2 %v6341_v10  ;;  %v6421_v10 = vor.u32 %v7471_v1, %v6418_v20  ;;  %v11367_v4 = vpop.f32.mrf.mxu3  ;;  %v7623_v56 = vld [vmem:[%s11603_s1 + $0x11ec] sm:$0xf]  ;;  %v6645_v63 = vor.u32 %v7527_v5, %v6642_v12  ;;  %v6882_v15 = vld [vmem:[%s11603_s1 + $0x10d8] sm:$0xf0] }
 0x216   :  { %4529 = vmatpush.bf16.msra.mxu3 %v6469_v0  ;;  %v11342_v0 = vpop.f32.mrf.mxu0  ;;  %v4144_v62 = vadd.f32 %v11199_v42, %v4130_v33  ;;  %v7523_v30 = vld [vmem:[%s11603_s1 + $0xecc] sm:$0xf]  ;;  %v7029_v42 = vor.u32 %v7623_v56, %v7026_v24  ;;  %v7010_v16 = vld [vmem:[%s11603_s1 + $0x11d8] sm:$0xf0] }
 0x217   :  { %4488 = vmatpush.bf16.msra.mxu0 %v6069_v19  ;;  %v6770_v19 = vld [vmem:[%s11603_s1 + $0xff8] sm:$0xf0]  ;;  %v7587_v50 = vld [vmem:[%s11603_s1 + $0x10cc] sm:$0xf] }
 0x218   :  { %4502 = vmatpush.bf16.msra.mxu1 %v6197_v54  ;;  %v7591_v54 = vld [vmem:[%s11603_s1 + $0x10ec] sm:$0xf]  ;;  %v6773_v14 = vor.u32 %v7559_v37, %v6770_v19  ;;  %v4158_v43 = vadd.f32 %v11257_v53, %v4144_v62  ;;  %v6885_v1 = vor.u32 %v7587_v50, %v6882_v15  ;;  %v6866_v26 = vld [vmem:[%s11603_s1 + $0x10b8] sm:$0xf0] }
 0x219   :  { %4516 = vmatpush.bf16.msra.mxu2 %v6325_v21  ;;  %v6898_v21 = vld [vmem:[%s11603_s1 + $0x10f8] sm:$0xf0]  ;;  %v7519_v20 = vld [vmem:[%s11603_s1 + $0xeac] sm:$0xf] }
 0x21a   :  { %4530 = vmatpush.bf16.msra.mxu3 %v6453_v11  ;;  %v6405_v11 = vor.u32 %v7467_v13, %v6402_v3  ;;  %v6901_v8 = vor.u32 %v7591_v54, %v6898_v21  ;;  %v7551_v53 = vld [vmem:[%s11603_s1 + $0xfac] sm:$0xf]  ;;  %v4172_v58 = vadd.f32 %v11271_v52, %v4158_v43  ;;  %v6594_v13 = vld [vmem:[%s11603_s1 + $0xe98] sm:$0xf0]  ;;  %v4241_v54 = vpop.f32.mrf.mxu2 }
 0x21b   :  { %4489 = vmatpush.bf16.msra.mxu0 %v6053_v61  ;;  %v7555_v61 = vld [vmem:[%s11603_s1 + $0xfcc] sm:$0xf]  ;;  %v6722_v5 = vld [vmem:[%s11603_s1 + $0xf98] sm:$0xf0] }
 0x21c   :  { %4503 = vmatpush.bf16.msra.mxu1 %v6181_v27  ;;  %v4118_v27 = vadd.f32 %v11196_v25, %v4104_v18  ;;  %v7619_v25 = vld [vmem:[%s11603_s1 + $0x11cc] sm:$0xf]  ;;  %v6850_v37 = vld [vmem:[%s11603_s1 + $0x1098] sm:$0xf0] }
 0x21d   :  { %4517 = vmatpush.bf16.msra.mxu2 %v6309_v34  ;;  %v6754_v34 = vld [vmem:[%s11603_s1 + $0xfd8] sm:$0xf0]  ;;  %v7583_v39 = vld [vmem:[%s11603_s1 + $0x10ac] sm:$0xf] }
 0x21e   :  { %4531 = vmatpush.bf16.msra.mxu3 %v6437_v2  ;;  %v6629_v2 = vor.u32 %v7523_v30, %v6626_v23  ;;  %v11404_v31 = vpop.f32.mrf.mxu0  ;;  %v6757_v47 = vor.u32 %v7555_v61, %v6754_v34  ;;  %v4132_v36 = vadd.f32 %v11249_v28, %v4118_v27  ;;  %v6994_v28 = vld [vmem:[%s11603_s1 + $0x11b8] sm:$0xf0]  ;;  %v7515_v6 = vld [vmem:[%s11603_s1 + $0xe8c] sm:$0xf]  ;;  %v11492_v61 = vpop.f32.mrf.mxu1 }
 0x21f   :  { %4490 = vmatpush.bf16.msra.mxu0 %v6037_v22  ;;  %v6610_v22 = vld [vmem:[%s11603_s1 + $0xeb8] sm:$0xf0]  ;;  %v7579_v12 = vld [vmem:[%s11603_s1 + $0x108c] sm:$0xf]  ;;  %v6597_v19 = vor.u32 %v7515_v6, %v6594_v13 }
 0x220   :  { %4504 = vmatpush.bf16.msra.mxu1 %v6165_v60  ;;  %v7013_v60 = vor.u32 %v7619_v25, %v7010_v16  ;;  %v6613_v33 = vor.u32 %v7519_v20, %v6610_v22  ;;  %v4146_v52 = vadd.f32 %v11282_v9, %v4132_v36  ;;  %v7611_v18 = vld [vmem:[%s11603_s1 + $0x118c] sm:$0xf]  ;;  %v6978_v9 = vld [vmem:[%s11603_s1 + $0x1198] sm:$0xf0] }
 0x221   :  { %4518 = vmatpush.bf16.msra.mxu2 %v6293_v17  ;;  %v6738_v17 = vld [vmem:[%s11603_s1 + $0xfb8] sm:$0xf0]  ;;  %v7543_v24 = vld [vmem:[%s11603_s1 + $0xf6c] sm:$0xf]  ;;  %v6981_v62 = vor.u32 %v7611_v18, %v6978_v9 }
 0x222   :  { %4532 = vmatpush.bf16.msra.mxu3 %v6421_v10  ;;  %v11438_v10 = vpop.f32.mrf.mxu3  ;;  %v6578_v56 = vld [vmem:[%s11603_s1 + $0xe78] sm:$0xf0]  ;;  %v7607_v30 = vld [vmem:[%s11603_s1 + $0x116c] sm:$0xf] }
 0x223   :  { %4491 = vmatpush.bf16.msra.mxu0 %v6021_v55  ;;  %v4186_v55 = vadd.f32 %v11321_v29, %v4172_v58  ;;  %v4160_v29 = vadd.f32 %v11342_v0, %v4146_v52  ;;  %v6962_v0 = vld [vmem:[%s11603_s1 + $0x1178] sm:$0xf0]  ;;  %v7507_v15 = vld [vmem:[%s11603_s1 + $0xe4c] sm:$0xf] }
 0x224   :  { %4505 = vmatpush.bf16.msra.mxu1 %v6149_v59  ;;  %v6853_v59 = vor.u32 %v7579_v12, %v6850_v37  ;;  %v6562_v25 = vld [vmem:[%s11603_s1 + $0xe58] sm:$0xf0]  ;;  %v7567_v58 = vld [vmem:[%s11603_s1 + $0x102c] sm:$0xf] }
 0x225   :  { %4519 = vmatpush.bf16.msra.mxu2 %v6277_v7  ;;  %v7511_v7 = vld [vmem:[%s11603_s1 + $0xe6c] sm:$0xf]  ;;  %v4200_v23 = vadd.f32 %v11367_v4, %v4186_v55  ;;  %v4174_v16 = vadd.f32 %v11356_v49, %v4160_v29  ;;  %v6818_v20 = vld [vmem:[%s11603_s1 + $0x1058] sm:$0xf0] }
 0x226   :  { %4533 = vmatpush.bf16.msra.mxu3 %v6405_v11  ;;  %4492 = vmatmul.bf16.vlgmr.msra.gmra.mxu0 %v8368_v35  ;;  %v7615_v35 = vld [vmem:[%s11603_s1 + $0x11ac] sm:$0xf]  ;;  %v6706_v11 = vld [vmem:[%s11603_s1 + $0xf78] sm:$0xf0]  ;;  %v6581_v27 = vor.u32 %v7511_v7, %v6578_v56  ;;  %v4283_v52 = vpop.f32.mrf.mxu1 }
 0x227   :  { %4540 = vmatpush.bf16.msrb.mxu0 %v6645_v63  ;;  %4506 = vmatmul.bf16.vlgmr.msra.gmra.mxu1 %v8378_v40  ;;  %v6869_v40 = vor.u32 %v7583_v39, %v6866_v26  ;;  %v6997_v3 = vor.u32 %v7615_v35, %v6994_v28  ;;  %v7575_v63 = vld [vmem:[%s11603_s1 + $0x106c] sm:$0xf]  ;;  %v6709_v34 = vor.u32 %v7543_v24, %v6706_v11  ;;  %v6546_v39 = vld [vmem:[%s11603_s1 + $0xe38] sm:$0xf0] }
 0x228   :  { %4554 = vmatpush.bf16.msrb.mxu1 %v6773_v14  ;;  %4520 = vmatmul.bf16.vlgmr.msra.gmra.mxu2 %v8585_v32  ;;  %v6741_v32 = vor.u32 %v7551_v53, %v6738_v17  ;;  %v6834_v14 = vld [vmem:[%s11603_s1 + $0x1078] sm:$0xf0]  ;;  %v7539_v4 = vld [vmem:[%s11603_s1 + $0xf4c] sm:$0xf]  ;;  %v4214_v43 = vadd.f32 %v11404_v31, %v4200_v23  ;;  %v4188_v22 = vadd.f32 %v11402_v57, %v4174_v16 }
 0x229   :  { %4568 = vmatpush.bf16.msrb.mxu2 %v6901_v8  ;;  %4534 = vmatmul.bf16.vlgmr.msra.gmra.mxu3 %v8598_v41  ;;  %v7547_v41 = vld [vmem:[%s11603_s1 + $0xf8c] sm:$0xf]  ;;  %v4215_v8 = vpop.f32.mrf.mxu0  ;;  %v6837_v50 = vor.u32 %v7575_v63, %v6834_v14  ;;  %v6946_v31 = vld [vmem:[%s11603_s1 + $0x1158] sm:$0xf0]  ;;  %v6565_v53 = vor.u32 %v7507_v15, %v6562_v25 }
 0x22a   :  { %4582 = vmatpush.bf16.msrb.mxu3 %v7029_v42  ;;  %v6725_v21 = vor.u32 %v7547_v41, %v6722_v5  ;;  %v4255_v42 = vpop.f32.mrf.mxu3  ;;  %v7603_v49 = vld [vmem:[%s11603_s1 + $0x114c] sm:$0xf]  ;;  %v4228_v57 = vadd.f32 %v11416_v48, %v4214_v43  ;;  %v6674_v28 = vld [vmem:[%s11603_s1 + $0xf38] sm:$0xf0]  ;;  %v4202_v13 = vadd.f32 %v11438_v10, %v4188_v22 }
 0x22b   :  { %4541 = vmatpush.bf16.msrb.mxu0 %v6629_v2  ;;  %v6965_v2 = vor.u32 %v7607_v30, %v6962_v0  ;;  %v7503_v17 = vld [vmem:[%s11603_s1 + $0xe2c] sm:$0xf]  ;;  %v6949_v35 = vor.u32 %v7603_v49, %v6946_v31  ;;  %v6930_v6 = vld [vmem:[%s11603_s1 + $0x1138] sm:$0xf0] }
 0x22c   :  { %4555 = vmatpush.bf16.msrb.mxu1 %v6757_v47  ;;  %v6690_v47 = vld [vmem:[%s11603_s1 + $0xf58] sm:$0xf0]  ;;  %v7535_v26 = vld [vmem:[%s11603_s1 + $0xf2c] sm:$0xf]  ;;  %v4242_v41 = vadd.f32 %v4241_v54, %v4228_v57  ;;  %v4216_v9 = vadd.f32 %v4215_v8, %v4202_v13  ;;  %v613_v13 = vperm.slane %v11228_v44, 3 }
 0x22d   :  { %4569 = vmatpush.bf16.msrb.mxu2 %v6885_v1  ;;  %v7571_v1 = vld [vmem:[%s11603_s1 + $0x104c] sm:$0xf]  ;;  %v6693_v36 = vor.u32 %v7539_v4, %v6690_v47  ;;  %v6677_v5 = vor.u32 %v7535_v26, %v6674_v28  ;;  %v6530_v18 = vld [vmem:[%s11603_s1 + $0xe18] sm:$0xf0] }
 0x22e   :  { %4583 = vmatpush.bf16.msrb.mxu3 %v7013_v60  ;;  %v6821_v60 = vor.u32 %v7571_v1, %v6818_v20  ;;  %v7599_v48 = vld [vmem:[%s11603_s1 + $0x112c] sm:$0xf]  ;;  %v6914_v56 = vld [vmem:[%s11603_s1 + $0x1118] sm:$0xf0]  ;;  %v4256_v24 = vadd.f32 %v4255_v42, %v4242_v41  ;;  %v4230_v63 = vadd.f32 %v11492_v61, %v4216_v9 }
 0x22f   :  { %4542 = vmatpush.bf16.msrb.mxu0 %v6613_v33  ;;  %v6802_v33 = vld [vmem:[%s11603_s1 + $0x1038] sm:$0xf0]  ;;  %v7499_v37 = vld [vmem:[%s11603_s1 + $0xe0c] sm:$0xf]  ;;  %v6933_v55 = vor.u32 %v7599_v48, %v6930_v6 }
 0x230   :  { %4556 = vmatpush.bf16.msrb.mxu1 %v6741_v32  ;;  %v4243_v32 = vpop.f32.mrf.mxu2  ;;  %v6805_v12 = vor.u32 %v7567_v58, %v6802_v33  ;;  %v7531_v10 = vld [vmem:[%s11603_s1 + $0xf0c] sm:$0xf]  ;;  %v6533_v29 = vor.u32 %v7499_v37, %v6530_v18 }
 0x231   :  { %4570 = vmatpush.bf16.msrb.mxu2 %v6869_v40  ;;  %v4269_v40 = vpop.f32.mrf.mxu0  ;;  %v7563_v54 = vld [vmem:[%s11603_s1 + $0x100c] sm:$0xf]  ;;  %v4244_v0 = vadd.f32 %v4243_v32, %v4230_v63 }
 0x232   :  { %4584 = vmatpush.bf16.msrb.mxu3 %v6997_v3  ;;  %v6549_v3 = vor.u32 %v7503_v17, %v6546_v39  ;;  %v7595_v7 = vld [vmem:[%s11603_s1 + $0x110c] sm:$0xf]  ;;  %v4270_v14 = vadd.f32 %v4269_v40, %v4256_v24 }
 0x233   :  { %4543 = vmatpush.bf16.msrb.mxu0 %v6597_v19  ;;  %v6658_v19 = vld [vmem:[%s11603_s1 + $0xf18] sm:$0xf0]  ;;  %v6917_v8 = vor.u32 %v7595_v7, %v6914_v56 }
 0x234   :  { %4557 = vmatpush.bf16.msrb.mxu1 %v6725_v21  ;;  %v6786_v21 = vld [vmem:[%s11603_s1 + $0x1018] sm:$0xf0] }
 0x235   :  { %4571 = vmatpush.bf16.msrb.mxu2 %v6853_v59  ;;  %v4257_v59 = vpop.f32.mrf.mxu3  ;;  %v6789_v11 = vor.u32 %v7563_v54, %v6786_v21 }
 0x236   :  { %4585 = vmatpush.bf16.msrb.mxu3 %v6981_v62  ;;  %v6661_v62 = vor.u32 %v7531_v10, %v6658_v19 }
 0x237   :  { %4544 = vmatpush.bf16.msrb.mxu0 %v6581_v27  ;;  %v4284_v27 = vadd.f32 %v4283_v52, %v4270_v14 }
 0x238   :  { %4558 = vmatpush.bf16.msrb.mxu1 %v6709_v34  ;;  %v4297_v30 = vpop.f32.mrf.mxu2  ;;  %v4285_v34 = vpop.f32.mrf.mxu1 }
 0x239   :  { %4572 = vmatpush.bf16.msrb.mxu2 %v6837_v50  ;;  %v4271_v23 = vpop.f32.mrf.mxu0  ;;  %v4258_v50 = vadd.f32 %v4257_v59, %v4244_v0  ;;  %v4298_v15 = vadd.f32 %v4297_v30, %v4284_v27 }
 0x23a   :  { %4586 = vmatpush.bf16.msrb.mxu3 %v6965_v2 }
 0x23b   :  { %4545 = vmatpush.bf16.msrb.mxu0 %v6565_v53  ;;  %v4272_v61 = vadd.f32 %v4271_v23, %v4258_v50 }
 0x23c   :  { %4559 = vmatpush.bf16.msrb.mxu1 %v6693_v36 }
 0x23d   :  { %4573 = vmatpush.bf16.msrb.mxu2 %v6821_v60  ;;  %v4311_v42 = vpop.f32.mrf.mxu3  ;;  %v4286_v43 = vadd.f32 %v4285_v34, %v4272_v61 }
 0x23e   :  { %4587 = vmatpush.bf16.msrb.mxu3 %v6949_v35  ;;  %v4312_v25 = vadd.f32 %v4311_v42, %v4298_v15 }
 0x23f   :  { %4546 = vmatpush.bf16.msrb.mxu0 %v6549_v3 }
 0x240   :  { %4560 = vmatpush.bf16.msrb.mxu1 %v6677_v5  ;;  %v4299_v4 = vpop.f32.mrf.mxu2 }
 0x241   :  { %4574 = vmatpush.bf16.msrb.mxu2 %v6805_v12  ;;  %v4300_v1 = vadd.f32 %v4299_v4, %v4286_v43 }
 0x242   :  { %4588 = vmatpush.bf16.msrb.mxu3 %v6933_v55 }
 0x243   :  { %4547 = vmatpush.bf16.msrb.mxu0 %v6533_v29  ;;  %v4325_v16 = vpop.f32.mrf.mxu0 }
 0x244   :  { %4561 = vmatpush.bf16.msrb.mxu1 %v6661_v62  ;;  %v4326_v2 = vadd.f32 %v4325_v16, %v4312_v25  ;;  %v4339_v47 = vpop.f32.mrf.mxu1 }
 0x245   :  { %4575 = vmatpush.bf16.msrb.mxu2 %v6789_v11  ;;  %v4313_v49 = vpop.f32.mrf.mxu3 }
 0x246   :  { %4589 = vmatpush.bf16.msrb.mxu3 %v6917_v8  ;;  %4548 = vmatmul.bf16.vlgmr.msrb.gmra.mxu0 %v8596_v38  ;;  %v4340_v20 = vadd.f32 %v4339_v47, %v4326_v2  ;;  %v11579_v38 = vld [vmem:[%s11605_s2 + $0x1] ss:$4 sm:$0xf]  ;;  %v4314_v22 = vadd.f32 %v4313_v49, %v4300_v1 }
 0x247   :  { %4562 = vmatmul.bf16.vlgmr.msrb.gmra.mxu1 %v8606_v46  ;;  %v4609_v46 = vperm.slane %v11579_v38, 2 }
 0x248   :  { %4576 = vmatmul.bf16.vlgmr.msrb.gmra.mxu2 %v8801_v45  ;;  %v4598_v45 = vmax.f32 %v4340_v20, 0.0 }
 0x249   :  { %4590 = vmatmul.bf16.vlgmr.msrb.gmra.mxu3 %v8812_v51  ;;  %v11585_v51 = vld [vmem:[%s11605_s2 + $0x2] ss:$4 sm:$0xf] }
 0x24a   :  { %v4628_v31 = vperm.slane %v11585_v51, 2  ;;  %v4617_v53 = vmul.f32 %v4609_v46, %v4598_v45 }
 0x24b   :  { %v4327_v36 = vpop.f32.mrf.mxu0  ;;  %v4353_v58 = vpop.f32.mrf.mxu2 }
 0x24c   :  { %v4636_v60 = vadd.f32 %v4628_v31, %v4617_v53  ;;  %v4328_v17 = vadd.f32 %v4327_v36, %v4314_v22  ;;  %v4341_v39 = vpop.f32.mrf.mxu1  ;;  %v4354_v3 = vadd.f32 %v4353_v58, %v613_v13 }
 0x24d   :  { %v4367_v33 = vpop.f32.mrf.mxu3 }
 0x24e   :  { %4644 = vst [vmem:[%s11606_s3 + $0x10] sm:$0xff] %v4636_v60  ;;  %v4342_v26 = vadd.f32 %v4341_v39, %v4328_v17  ;;  %v4368_v37 = vadd.f32 %v4367_v33, %v4354_v3 }
 0x250   :  { %v4602_v57 = vmax.f32 %v4342_v26, 0.0 }
 0x252   :  { %v4621_v35 = vmul.f32 %v4609_v46, %v4602_v57 }
 0x253   :  { %v4355_v32 = vpop.f32.mrf.mxu2 }
 0x254   :  { %v4640_v28 = vadd.f32 %v4628_v31, %v4621_v35  ;;  %v4356_v19 = vadd.f32 %v4355_v32, %v613_v13 }
 0x255   :  { %v4369_v40 = vpop.f32.mrf.mxu3 }
 0x256   :  { %4648 = vst [vmem:[%s11606_s3 + $0x30] sm:$0xff] %v4640_v28  ;;  %v4370_v59 = vadd.f32 %v4369_v40, %v4356_v19 }
 0x263   :  { %v4381_v48 = vpop.f32.mrf.mxu0 }
 0x264   :  { %v4395_v6 = vpop.f32.mrf.mxu1  ;;  %v4382_v10 = vadd.f32 %v4381_v48, %v4368_v37  ;;  %v4610_v48 = vperm.slane %v11579_v38, 3 }
 0x266   :  { %v4396_v21 = vadd.f32 %v4395_v6, %v4382_v10 }
 0x26b   :  { %v4409_v41 = vpop.f32.mrf.mxu2  ;;  %v4383_v5 = vpop.f32.mrf.mxu0 }
 0x26c   :  { %v4423_v52 = vpop.f32.mrf.mxu3  ;;  %v4397_v12 = vpop.f32.mrf.mxu1  ;;  %v4410_v56 = vadd.f32 %v4409_v41, %v4396_v21  ;;  %v4384_v29 = vadd.f32 %v4383_v5, %v4370_v59  ;;  %v4629_v41 = vperm.slane %v11585_v51, 3 }
 0x26e   :  { %v4424_v44 = vadd.f32 %v4423_v52, %v4410_v56  ;;  %v4398_v63 = vadd.f32 %v4397_v12, %v4384_v29 }
 0x273   :  { %v4411_v18 = vpop.f32.mrf.mxu2 }
 0x274   :  { %v4425_v9 = vpop.f32.mrf.mxu3  ;;  %v4412_v8 = vadd.f32 %v4411_v18, %v4398_v63 }
 0x276   :  { %v4426_v34 = vadd.f32 %v4425_v9, %v4412_v8 }
 0x283   :  { %v4437_v55 = vpop.f32.mrf.mxu0 }
 0x284   :  { %v4451_v54 = vpop.f32.mrf.mxu1  ;;  %v4438_v14 = vadd.f32 %v4437_v55, %v4424_v44 }
 0x286   :  { %v4452_v0 = vadd.f32 %v4451_v54, %v4438_v14 }
 0x28b   :  { %v4465_v7 = vpop.f32.mrf.mxu2  ;;  %v4439_v62 = vpop.f32.mrf.mxu0 }
 0x28c   :  { %v4479_v24 = vpop.f32.mrf.mxu3  ;;  %v4453_v11 = vpop.f32.mrf.mxu1  ;;  %v4466_v42 = vadd.f32 %v4465_v7, %v4452_v0  ;;  %v4440_v15 = vadd.f32 %v4439_v62, %v4426_v34 }
 0x28e   :  { %v4480_v61 = vadd.f32 %v4479_v24, %v4466_v42  ;;  %v4454_v4 = vadd.f32 %v4453_v11, %v4440_v15 }
 0x293   :  { %v4467_v30 = vpop.f32.mrf.mxu2 }
 0x294   :  { %v4481_v23 = vpop.f32.mrf.mxu3  ;;  %v4468_v2 = vadd.f32 %v4467_v30, %v4454_v4 }
 0x296   :  { %v4482_v46 = vadd.f32 %v4481_v23, %v4468_v2 }
 0x2a3   :  { %v4493_v27 = vpop.f32.mrf.mxu0 }
 0x2a4   :  { %v4507_v50 = vpop.f32.mrf.mxu1  ;;  %v4494_v16 = vadd.f32 %v4493_v27, %v4480_v61 }
 0x2a6   :  { %v4508_v1 = vadd.f32 %v4507_v50, %v4494_v16 }
 0x2ab   :  { %v4521_v25 = vpop.f32.mrf.mxu2  ;;  %v4495_v47 = vpop.f32.mrf.mxu0 }
 0x2ac   :  { %v4535_v43 = vpop.f32.mrf.mxu3  ;;  %v4509_v20 = vpop.f32.mrf.mxu1  ;;  %v4522_v49 = vadd.f32 %v4521_v25, %v4508_v1  ;;  %v4496_v45 = vadd.f32 %v4495_v47, %v4482_v46 }
 0x2ae   :  { %v4536_v22 = vadd.f32 %v4535_v43, %v4522_v49  ;;  %v4510_v60 = vadd.f32 %v4509_v20, %v4496_v45 }
 0x2b3   :  { %v4523_v31 = vpop.f32.mrf.mxu2 }
 0x2b4   :  { %v4537_v53 = vpop.f32.mrf.mxu3  ;;  %v4524_v26 = vadd.f32 %v4523_v31, %v4510_v60 }
 0x2b6   :  { %v4538_v28 = vadd.f32 %v4537_v53, %v4524_v26 }
 0x2c3   :  { %v4549_v36 = vpop.f32.mrf.mxu0 }
 0x2c4   :  { %v4550_v17 = vadd.f32 %v4549_v36, %v4536_v22  ;;  %v4563_v39 = vpop.f32.mrf.mxu1 }
 0x2c6   :  { %v4564_v57 = vadd.f32 %v4563_v39, %v4550_v17 }
 0x2cb   :  { %v4577_v35 = vpop.f32.mrf.mxu2  ;;  %v4551_v32 = vpop.f32.mrf.mxu0 }
 0x2cc   :  { %v4578_v58 = vadd.f32 %v4577_v35, %v4564_v57  ;;  %v4591_v33 = vpop.f32.mrf.mxu3  ;;  %v4552_v6 = vadd.f32 %v4551_v32, %v4538_v28  ;;  %v4565_v52 = vpop.f32.mrf.mxu1 }
 0x2ce   :  { %v4592_v40 = vadd.f32 %v4591_v33, %v4578_v58  ;;  %v4566_v5 = vadd.f32 %v4565_v52, %v4552_v6 }
 0x2d0   :  { %v4599_v13 = vmax.f32 %v4592_v40, 0.0 }
 0x2d2   :  { %v4618_v3 = vmul.f32 %v4610_v48, %v4599_v13 }
 0x2d3   :  { %v4579_v12 = vpop.f32.mrf.mxu2 }
 0x2d4   :  { %v4637_v37 = vadd.f32 %v4629_v41, %v4618_v3  ;;  %v4580_v18 = vadd.f32 %v4579_v12, %v4566_v5  ;;  %v4593_v10 = vpop.f32.mrf.mxu3 }
 0x2d6   :  { %4645 = vst [vmem:[%s11606_s3 + $0x18] sm:$0xff] %v4637_v37  ;;  %v4594_v9 = vadd.f32 %v4593_v10, %v4580_v18 }
 0x2d8   :  { %v4603_v55 = vmax.f32 %v4594_v9, 0.0 }
 0x2da   :  { %v4622_v19 = vmul.f32 %v4610_v48, %v4603_v55 }
 0x2dc   :  { %v4641_v54 = vadd.f32 %v4629_v41, %v4622_v19 }
 0x2de   :  { %4649 = vst [vmem:[%s11606_s3 + $0x38] sm:$0xff] %v4641_v54 }

</bundles_post_ra>
